<compile_context>
chip_gen: v5e
topology: v5e:2x2
jax: 0.10.0
libtpu: 0.0.40
codegen_flags: <defaults>
</compile_context>

<pallas_src>
import functools
import math

import jax
import jax.numpy as jnp
from jax import lax
from jax.experimental import pallas as pl
from jax.experimental.pallas import tpu as pltpu

_LOG_2PI = math.log(2.0 * math.pi)


def _rup(x, m):
    return ((x + m - 1) // m) * m


def _cdiv(a, b):
    return -(-a // b)


# ----------------------------------------------------------------------------
# Kernel 1: tiled matmul + bias (bf16 operands, f32 accumulate)
# ----------------------------------------------------------------------------
def _mm_bias_kernel(a_ref, w_ref, b_ref, o_ref, acc_ref):
    @pl.when(pl.program_id(2) == 0)
    def _init():
        acc_ref[...] = jnp.zeros_like(acc_ref)

    acc_ref[...] += jnp.dot(a_ref[...], w_ref[...],
                            preferred_element_type=jnp.float32)

    @pl.when(pl.program_id(2) == pl.num_programs(2) - 1)
    def _fin():
        o_ref[...] = (acc_ref[...] + b_ref[...]).astype(o_ref.dtype)


def pallas_linear(a, w, b=None, out_dtype=jnp.float32):
    """a: (M, K), w: (K, N), b: (N,) or None -> (M, N)."""
    M, K = a.shape
    N = w.shape[1]
    # 128-granular padding; tiles that exactly divide the padded dims.
    if M <= 128:
        tm = _rup(M, 8)
        Mp = tm
    else:
        Mp = _rup(M, 128)
        tm = 256 if (Mp % 256 == 0 and Mp >= 512) else 128
    Np = _rup(N, 128)
    tn = 256 if (Np % 256 == 0 and Np >= 512) else 128
    if K <= 128:
        Kp, tk = K, K
    else:
        Kp = _rup(K, 128)
        tk = 512 if Kp % 512 == 0 else (256 if Kp % 256 == 0 else 128)

    a_p = jnp.pad(a.astype(jnp.bfloat16), ((0, Mp - M), (0, Kp - K)))
    w_p = jnp.pad(w.astype(jnp.bfloat16), ((0, Kp - K), (0, Np - N)))
    b_arr = b if b is not None else jnp.zeros((N,), jnp.float32)
    b_p = jnp.pad(b_arr.astype(jnp.float32), (0, Np - N)).reshape(1, Np)

    out = pl.pallas_call(
        _mm_bias_kernel,
        out_shape=jax.ShapeDtypeStruct((Mp, Np), out_dtype),
        grid=(Mp // tm, Np // tn, Kp // tk),
        in_specs=[
            pl.BlockSpec((tm, tk), lambda i, j, k: (i, k)),
            pl.BlockSpec((tk, tn), lambda i, j, k: (k, j)),
            pl.BlockSpec((1, tn), lambda i, j, k: (0, j)),
        ],
        out_specs=pl.BlockSpec((tm, tn), lambda i, j, k: (i, j)),
        scratch_shapes=[pltpu.VMEM((tm, tn), jnp.float32)],
        compiler_params=pltpu.CompilerParams(
            dimension_semantics=("parallel", "parallel", "arbitrary")),
    )(a_p, w_p, b_p)
    return out[:M, :N]


def conv1x1_cl(x, w, b, out_dtype=jnp.float32):
    """x: (B, T, Cin), w: (Cin, Cout) -> (B, T, Cout)."""
    B, T, Cin = x.shape
    y = pallas_linear(x.reshape(B * T, Cin), w, b, out_dtype=out_dtype)
    return y.reshape(B, T, -1)


# ----------------------------------------------------------------------------
# Kernel 2: K-tap conv, channels-last, time-tiled (halo blocks), lane-dense out
# ----------------------------------------------------------------------------
def _conv_tap_kernel(K, dil, x_ref, w_ref, b_ref, o_ref):
    tT = o_ref.shape[-2]
    acc = jnp.zeros((tT, o_ref.shape[-1]), jnp.float32)
    for k in range(K):                                    # static unroll, K <= 16
        acc = acc + jnp.dot(x_ref[pl.ds(k * dil, tT), :], w_ref[k],
                            preferred_element_type=jnp.float32)
    o_ref[...] = (acc + b_ref[...]).astype(o_ref.dtype)


def _time_blocks(x_p, n_t, tT, tin_tile):
    if n_t == 1:
        return x_p[:, None]
    return jnp.stack([x_p[:, i * tT: i * tT + tin_tile] for i in range(n_t)],
                     axis=1)


def conv_taps(x, wk, b, *, dilation=1, pad_l=None, pad_r=None,
              out_dtype=jnp.float32, t_tile=512):
    """x: (B, T, Cin), wk: (K, Cin, Cout), b: (Cout,) or None -> (B, Tout, Cout)."""
    K, Cin_w, Cout = wk.shape
    if pad_l is None:
        pad_l = dilation * (K - 1) // 2
    if pad_r is None:
        pad_r = dilation * (K - 1) // 2
    if pad_l < 0:
        x = x[:, -pad_l:, :]
        pad_l = 0
    if pad_r < 0:
        x = x[:, : x.shape[1] + pad_r, :]
        pad_r = 0
    B, T, Cin = x.shape
    halo = dilation * (K - 1)
    Tout = T + pad_l + pad_r - halo

    if Tout <= t_tile:
        tT, n_t = _rup(Tout, 8), 1
    else:
        tT, n_t = t_tile, _cdiv(Tout, t_tile)
    Tout_p = n_t * tT
    L = Tout_p + halo
    tin_tile = tT + halo
    x_p = jnp.pad(x.astype(jnp.bfloat16), ((0, 0), (pad_l, L - T - pad_l), (0, 0)))
    x_blk = _time_blocks(x_p, n_t, tT, tin_tile)          # (B, n_t, tin_tile, Cin)

    Cout_p = _rup(Cout, 128)
    tco = 256 if (Cout_p % 256 == 0 and Cout_p >= 512) else 128
    n_co = Cout_p // tco
    wk_p = jnp.pad(wk.astype(jnp.bfloat16), ((0, 0), (0, 0), (0, Cout_p - Cout)))
    b_arr = b if b is not None else jnp.zeros((Cout,), jnp.float32)
    b_p = jnp.pad(b_arr.astype(jnp.float32), (0, Cout_p - Cout)).reshape(1, Cout_p)

    out = pl.pallas_call(
        functools.partial(_conv_tap_kernel, K, dilation),
        out_shape=jax.ShapeDtypeStruct((B, Tout_p, Cout_p), out_dtype),
        grid=(B, n_t, n_co),
        in_specs=[
            pl.BlockSpec((None, None, tin_tile, Cin), lambda bb, ti, j: (bb, ti, 0, 0)),
            pl.BlockSpec((K, Cin, tco), lambda bb, ti, j: (0, 0, j)),
            pl.BlockSpec((1, tco), lambda bb, ti, j: (0, j)),
        ],
        out_specs=pl.BlockSpec((None, tT, tco), lambda bb, ti, j: (bb, ti, j)),
        compiler_params=pltpu.CompilerParams(
            dimension_semantics=("parallel", "parallel", "parallel")),
    )(x_blk, wk_p, b_p)
    return out[:, :Tout, :Cout]


# ----------------------------------------------------------------------------
# Kernel 3: fused WaveNet layer: K-tap conv + gate (tanh*sigmoid) + res_skip 1x1
# ----------------------------------------------------------------------------
def _wn_fused_kernel(K, dil, hp, x_ref, w_ref, b_ref, rsw_ref, rsb_ref, o_ref):
    tT = o_ref.shape[-2]
    acc = jnp.zeros((tT, 2 * hp), jnp.float32)
    for k in range(K):
        acc = acc + jnp.dot(x_ref[pl.ds(k * dil, tT), :], w_ref[k],
                            preferred_element_type=jnp.float32)
    acc = acc + b_ref[...]
    g = jnp.tanh(acc[:, :hp]) * jax.nn.sigmoid(acc[:, hp:])
    rs = jnp.dot(g.astype(jnp.bfloat16), rsw_ref[...],
                 preferred_element_type=jnp.float32) + rsb_ref[...]
    o_ref[...] = rs.astype(o_ref.dtype)


def wn_layer_fused(x, in_w, in_b, rs_w, rs_b, hidden, last, t_tile=256):
    """x: (B, T, hidden).  in_w: (K, hidden, 2*hidden).  rs_w: (hidden, rs_ch)."""
    B, T, _ = x.shape
    K = in_w.shape[0]
    Hp = _rup(hidden, 128)
    halo = K - 1
    pad = (K - 1) // 2

    # gate weight: [tanh half | sigmoid half], each half padded to Hp lanes
    w_g = jnp.zeros((K, hidden, 2 * Hp), jnp.bfloat16)
    w_g = w_g.at[:, :, :hidden].set(in_w[:, :, :hidden].astype(jnp.bfloat16))
    w_g = w_g.at[:, :, Hp:Hp + hidden].set(in_w[:, :, hidden:].astype(jnp.bfloat16))
    b_g = jnp.zeros((1, 2 * Hp), jnp.float32)
    b_g = b_g.at[0, :hidden].set(in_b[:hidden])
    b_g = b_g.at[0, Hp:Hp + hidden].set(in_b[hidden:])

    if last:
        out_w = Hp
        rsw_p = jnp.zeros((Hp, out_w), jnp.bfloat16)
        rsw_p = rsw_p.at[:hidden, :hidden].set(rs_w.astype(jnp.bfloat16))
        rsb_p = jnp.zeros((1, out_w), jnp.float32).at[0, :hidden].set(rs_b)
    else:
        out_w = 2 * Hp
        rsw_p = jnp.zeros((Hp, out_w), jnp.bfloat16)
        rsw_p = rsw_p.at[:hidden, :hidden].set(rs_w[:, :hidden].astype(jnp.bfloat16))
        rsw_p = rsw_p.at[:hidden, Hp:Hp + hidden].set(rs_w[:, hidden:].astype(jnp.bfloat16))
        rsb_p = jnp.zeros((1, out_w), jnp.float32)
        rsb_p = rsb_p.at[0, :hidden].set(rs_b[:hidden])
        rsb_p = rsb_p.at[0, Hp:Hp + hidden].set(rs_b[hidden:])

    Tout = T
    if Tout <= t_tile:
        tT, n_t = _rup(Tout, 8), 1
    else:
        tT, n_t = t_tile, _cdiv(Tout, t_tile)
    Tout_p = n_t * tT
    L = Tout_p + halo
    tin_tile = tT + halo
    x_p = jnp.pad(x.astype(jnp.bfloat16), ((0, 0), (pad, L - T - pad), (0, 0)))
    x_blk = _time_blocks(x_p, n_t, tT, tin_tile)

    out = pl.pallas_call(
        functools.partial(_wn_fused_kernel, K, 1, Hp),
        out_shape=jax.ShapeDtypeStruct((B, Tout_p, out_w), jnp.float32),
        grid=(B, n_t),
        in_specs=[
            pl.BlockSpec((None, None, tin_tile, hidden), lambda bb, ti: (bb, ti, 0, 0)),
            pl.BlockSpec((K, hidden, 2 * Hp), lambda bb, ti: (0, 0, 0)),
            pl.BlockSpec((1, 2 * Hp), lambda bb, ti: (0, 0)),
            pl.BlockSpec((Hp, out_w), lambda bb, ti: (0, 0)),
            pl.BlockSpec((1, out_w), lambda bb, ti: (0, 0)),
        ],
        out_specs=pl.BlockSpec((None, tT, out_w), lambda bb, ti: (bb, ti, 0)),
        compiler_params=pltpu.CompilerParams(
            dimension_semantics=("parallel", "parallel")),
    )(x_blk, w_g, b_g, rsw_p, rsb_p)
    out = out[:, :T]
    if last:
        return out[..., :hidden]
    return out[..., :hidden], out[..., Hp:Hp + hidden]


# ----------------------------------------------------------------------------
# Fused polyphase ConvTranspose1d (single conv_taps call; x read once)
# ----------------------------------------------------------------------------
def conv_transpose_fused(x, wk_eq, b, *, stride, padding):
    """x: (B, T, Cin), wk_eq: (K, Cin, Cout) equiv-conv taps -> (B, T*stride, Cout)."""
    B, T, Cin = x.shape
    K, _, Cout = wk_eq.shape
    P = K - 1 - padding
    phases = []
    for r in range(stride):
        k0 = (P - r) % stride
        taps = list(range(k0, K, stride))
        base = (r + k0 - P) // stride
        phases.append((taps, base))
    minb = min(base for _, base in phases)
    lmax = max(base + len(taps) for taps, base in phases) - minb

    w_f = jnp.zeros((lmax, Cin, Cout * stride), wk_eq.dtype)
    for r, (taps, base) in enumerate(phases):
        off = base - minb
        for l, t in enumerate(taps):
            w_f = w_f.at[off + l, :, r * Cout:(r + 1) * Cout].set(wk_eq[t])
    b_f = jnp.tile(b, stride) if b is not None else None

    y = conv_taps(x, w_f, b_f, dilation=1,
                  pad_l=-minb, pad_r=(lmax - 1) + minb)    # (B, T, Cout*stride)
    return y.reshape(B, T, stride, Cout).reshape(B, T * stride, Cout)


# ----------------------------------------------------------------------------
# Kernel 4: fused flash-style attention (dk padded to 128, bf16 out)
# ----------------------------------------------------------------------------
def _flash_kernel(scale, q_ref, k_ref, v_ref, km_ref, o_ref, m_sc, l_sc, acc_sc):
    ki = pl.program_id(2)

    @pl.when(ki == 0)
    def _init():
        m_sc[...] = jnp.full_like(m_sc, -1e30)
        l_sc[...] = jnp.zeros_like(l_sc)
        acc_sc[...] = jnp.zeros_like(acc_sc)

    s = lax.dot_general(q_ref[...], k_ref[...], (((1,), (1,)), ((), ())),
                        preferred_element_type=jnp.float32) * scale
    s = jnp.where(km_ref[...] > 0.0, s, -1e4)             # matches reference masking
    m_prev = m_sc[...]
    m_new = jnp.maximum(m_prev, jnp.max(s, axis=-1, keepdims=True))
    alpha = jnp.exp(m_prev - m_new)
    p = jnp.exp(s - m_new)
    l_sc[...] = alpha * l_sc[...] + jnp.sum(p, axis=-1, keepdims=True)
    acc_sc[...] = alpha * acc_sc[...] + jnp.dot(
        p.astype(jnp.bfloat16), v_ref[...], preferred_element_type=jnp.float32)
    m_sc[...] = m_new

    @pl.when(ki == pl.num_programs(2) - 1)
    def _fin():
        o_ref[...] = (acc_sc[...] *
                      pl.reciprocal(l_sc[...], approx=True)).astype(o_ref.dtype)


def pallas_flash_attention(q, k, v, key_mask, scale):
    """q,k,v: (B*H, T, dk); key_mask: (B, T) -> (B*H, T, dk) bf16."""
    BH, T, dk = q.shape
    B = key_mask.shape[0]
    H = BH // B
    dkp = _rup(dk, 128)
    Tp = _rup(T, 8) if T <= 128 else _rup(T, 128)
    tq = min(Tp, 128)
    tkv = tq

    def padt(t):
        return jnp.pad(t, ((0, 0), (0, Tp - T), (0, dkp - dk))).astype(jnp.bfloat16)

    qp, kp, vp = padt(q), padt(k), padt(v)
    km = jnp.repeat(key_mask, H, axis=0)
    km = jnp.pad(km, ((0, 0), (0, Tp - T)))[:, None, :].astype(jnp.float32)

    out = pl.pallas_call(
        functools.partial(_flash_kernel, scale),
        out_shape=jax.ShapeDtypeStruct((BH, Tp, dkp), jnp.bfloat16),
        grid=(BH, Tp // tq, Tp // tkv),
        in_specs=[
            pl.BlockSpec((None, tq, dkp), lambda b, qi, ki: (b, qi, 0)),
            pl.BlockSpec((None, tkv, dkp), lambda b, qi, ki: (b, ki, 0)),
            pl.BlockSpec((None, tkv, dkp), lambda b, qi, ki: (b, ki, 0)),
            pl.BlockSpec((None, 1, tkv), lambda b, qi, ki: (b, 0, ki)),
        ],
        out_specs=pl.BlockSpec((None, tq, dkp), lambda b, qi, ki: (b, qi, 0)),
        scratch_shapes=[pltpu.VMEM((tq, 1), jnp.float32),
                        pltpu.VMEM((tq, 1), jnp.float32),
                        pltpu.VMEM((tq, dkp), jnp.float32)],
        compiler_params=pltpu.CompilerParams(
            dimension_semantics=("parallel", "parallel", "arbitrary")),
    )(qp, kp, vp, km)
    return out[:, :T, :dk]


# ----------------------------------------------------------------------------
# Kernel 5: fused neg_cent, tiled over T_y, lane-dense Tx output
# ----------------------------------------------------------------------------
def _neg_cent_kernel(zp_ref, s_ref, mps_ref, c14_ref, o_ref):
    zp = zp_ref[...]
    dims = (((1,), (1,)), ((), ()))
    o_ref[...] = (c14_ref[...]
                  + lax.dot_general(-0.5 * (zp * zp), s_ref[...], dims,
                                    preferred_element_type=jnp.float32)
                  + lax.dot_general(zp, mps_ref[...], dims,
                                    preferred_element_type=jnp.float32))


def pallas_neg_cent(z_p, m_p, logs_p):
    """z_p: (B, Ty, C); m_p, logs_p: (B, Tx, C) -> (B, Ty, Tx)."""
    B, Ty, C = z_p.shape
    Tx = m_p.shape[1]
    s = jnp.exp(-2.0 * logs_p)
    mps = m_p * s
    c14 = jnp.sum(-0.5 * _LOG_2PI - logs_p - 0.5 * (m_p * m_p) * s, axis=2)  # (B,Tx)

    Txp = _rup(Tx, 128)
    tty = 256 if Ty > 256 else _rup(Ty, 8)
    Typ = _rup(Ty, tty)
    zp_p = jnp.pad(z_p, ((0, 0), (0, Typ - Ty), (0, 0)))
    s_p = jnp.pad(s, ((0, 0), (0, Txp - Tx), (0, 0)))
    mps_p = jnp.pad(mps, ((0, 0), (0, Txp - Tx), (0, 0)))
    c14_p = jnp.pad(c14, ((0, 0), (0, Txp - Tx)))[:, None, :]

    out = pl.pallas_call(
        _neg_cent_kernel,
        out_shape=jax.ShapeDtypeStruct((B, Typ, Txp), jnp.float32),
        grid=(B, Typ // tty),
        in_specs=[
            pl.BlockSpec((None, tty, C), lambda b, i: (b, i, 0)),
            pl.BlockSpec((None, Txp, C), lambda b, i: (b, 0, 0)),
            pl.BlockSpec((None, Txp, C), lambda b, i: (b, 0, 0)),
            pl.BlockSpec((None, 1, Txp), lambda b, i: (b, 0, 0)),
        ],
        out_specs=pl.BlockSpec((None, tty, Txp), lambda b, i: (b, i, 0)),
        compiler_params=pltpu.CompilerParams(
            dimension_semantics=("parallel", "parallel")),
    )(zp_p, s_p, mps_p, c14_p)
    return out[:, :Ty, :Tx]


# ----------------------------------------------------------------------------
# Kernel 6: tiled bmm (prior expansion over the alignment), bf16 operands
# ----------------------------------------------------------------------------
def _bmm_kernel(a_ref, b_ref, o_ref):
    o_ref[...] = jnp.dot(a_ref[...], b_ref[...],
                         preferred_element_type=jnp.float32)


def pallas_bmm(a, b):
    """a: (B, M, K), b: (B, K, N) -> (B, M, N) f32; attn is 0/1 so bf16 exact."""
    B, M, K = a.shape
    N = b.shape[2]
    tm = 256 if M > 256 else _rup(M, 8)
    Mp = _rup(M, tm)
    Np = _rup(N, 128)
    a_p = jnp.pad(a.astype(jnp.bfloat16), ((0, 0), (0, Mp - M), (0, 0)))
    b_p = jnp.pad(b.astype(jnp.bfloat16), ((0, 0), (0, 0), (0, Np - N)))
    out = pl.pallas_call(
        _bmm_kernel,
        out_shape=jax.ShapeDtypeStruct((B, Mp, Np), jnp.float32),
        grid=(B, Mp // tm),
        in_specs=[pl.BlockSpec((None, tm, K), lambda bb, i: (bb, i, 0)),
                  pl.BlockSpec((None, K, Np), lambda bb, i: (bb, 0, 0))],
        out_specs=pl.BlockSpec((None, tm, Np), lambda bb, i: (bb, i, 0)),
        compiler_params=pltpu.CompilerParams(
            dimension_semantics=("parallel", "parallel")),
    )(a_p, b_p)
    return out[:, :M, :N]


# ----------------------------------------------------------------------------
# Small plain-JAX building blocks
# ----------------------------------------------------------------------------
def sequence_mask(lengths, max_len):
    return (jnp.arange(max_len)[None, :] < lengths[:, None]).astype(jnp.float32)


def layer_norm_last(x, gamma, beta, eps=1e-5):
    mean = jnp.mean(x, axis=-1, keepdims=True)
    var = jnp.mean((x - mean) ** 2, axis=-1, keepdims=True)
    return (x - mean) / jnp.sqrt(var + eps) * gamma + beta


# ----------------------------------------------------------------------------
# Parameter construction (deterministic, synthetic; weights stored in bf16)
# ----------------------------------------------------------------------------
class KeyGen:
    def __init__(self, seed):
        self._key = jax.random.PRNGKey(seed)

    def __call__(self):
        self._key, k = jax.random.split(self._key)
        return k


def _init(key, shape, scale=0.1):
    return scale * jax.random.normal(key, shape, dtype=jnp.float32)


def make_conv(kg, cout, cin, k, scale=0.1, zero=False, bias=True):
    if zero:
        w = jnp.zeros((k, cin, cout), jnp.bfloat16)
    else:
        w = _init(kg(), (k, cin, cout), scale).astype(jnp.bfloat16)
    b = jnp.zeros((cout,), jnp.float32) if bias else None
    return dict(w=w, b=b)


def make_wn(kg, hidden, kernel, n_layers):
    in_layers, res_skip = [], []
    for i in range(n_layers):
        in_layers.append(make_conv(kg, 2 * hidden, hidden, kernel))
        rs_ch = 2 * hidden if i < n_layers - 1 else hidden
        res_skip.append(make_conv(kg, rs_ch, hidden, 1))
    return dict(in_layers=in_layers, res_skip=res_skip)


def make_params(seed, cfg):
    kg = KeyGen(seed)
    H, F, I = cfg["hidden_channels"], cfg["filter_channels"], cfg["inter_channels"]
    K = cfg["kernel_size"]
    p = {}

    enc_p = dict(emb=_init(kg(), (cfg["n_vocab"], H), H ** -0.5), layers=[])
    for _ in range(cfg["n_layers"]):
        enc_p["layers"].append(dict(
            q=make_conv(kg, H, H, 1), k=make_conv(kg, H, H, 1),
            v=make_conv(kg, H, H, 1), o=make_conv(kg, H, H, 1),
            ln1=dict(g=jnp.ones(H), b=jnp.zeros(H)),
            ffn1=make_conv(kg, F, H, K), ffn2=make_conv(kg, H, F, K),
            ln2=dict(g=jnp.ones(H), b=jnp.zeros(H)),
        ))
    enc_p["proj"] = make_conv(kg, 2 * I, H, 1)
    p["enc_p"] = enc_p

    p["enc_q"] = dict(
        pre=make_conv(kg, H, cfg["spec_channels"], 1),
        wn=make_wn(kg, H, 5, 16),
        proj=make_conv(kg, 2 * I, H, 1),
    )

    half = I // 2
    p["flow"] = [dict(pre=make_conv(kg, H, half, 1),
                      wn=make_wn(kg, H, 5, 4),
                      post=make_conv(kg, half, H, 1, zero=True))
                 for _ in range(4)]

    Fd = 256
    p["dp"] = dict(
        c1=make_conv(kg, Fd, H, 3), ln1=dict(g=jnp.ones(Fd), b=jnp.zeros(Fd)),
        c2=make_conv(kg, Fd, Fd, 3), ln2=dict(g=jnp.ones(Fd), b=jnp.zeros(Fd)),
        proj=make_conv(kg, 1, Fd, 1),
    )

    U0 = cfg["upsample_initial_channel"]
    dec = dict(pre=make_conv(kg, U0, I, 7), ups=[], resblocks=[])
    ch = U0
    for u, k in zip(cfg["upsample_rates"], cfg["upsample_kernel_sizes"]):
        dec["ups"].append(dict(
            w=_init(kg(), (k, ch, ch // 2), 0.1).astype(jnp.bfloat16),
            b=jnp.zeros(ch // 2, jnp.float32)))
        ch //= 2
        for rk, dils in zip(cfg["resblock_kernel_sizes"],
                            cfg["resblock_dilation_sizes"]):
            dec["resblocks"].append(dict(
                convs1=[make_conv(kg, ch, ch, rk) for _ in dils],
                convs2=[make_conv(kg, ch, ch, rk) for _ in dils]))
    dec["post"] = make_conv(kg, 1, ch, 7, bias=False)
    p["dec"] = dec
    return p


# ----------------------------------------------------------------------------
# Sub-modules (channels-last activations throughout)
# ----------------------------------------------------------------------------
def mha(x, lp, n_heads, key_mask):
    # TODO(synk): VITS relative-position attention (window_size=4) omitted;
    #             standard scaled-dot-product attention is used.
    B, T, C = x.shape
    dk = C // n_heads
    wqkv = jnp.concatenate([lp["q"]["w"][0], lp["k"]["w"][0], lp["v"]["w"][0]], axis=1)
    bqkv = jnp.concatenate([lp["q"]["b"], lp["k"]["b"], lp["v"]["b"]])
    qkv = pallas_linear(x.reshape(B * T, C), wqkv, bqkv,
                        out_dtype=jnp.bfloat16).reshape(B, T, 3 * C)
    q, k, v = qkv[..., :C], qkv[..., C:2 * C], qkv[..., 2 * C:]

    def split_heads(t):
        return t.reshape(B, T, n_heads, dk).transpose(0, 2, 1, 3).reshape(B * n_heads, T, dk)

    out = pallas_flash_attention(split_heads(q), split_heads(k), split_heads(v),
                                 key_mask, 1.0 / math.sqrt(dk))
    out = out.reshape(B, n_heads, T, dk).transpose(0, 2, 1, 3).reshape(B * T, C)
    out = pallas_linear(out, lp["o"]["w"][0], lp["o"]["b"])
    return out.reshape(B, T, C)


def ffn(x, x_mask, lp):
    h = conv_taps(x * x_mask, lp["ffn1"]["w"], lp["ffn1"]["b"], out_dtype=jnp.bfloat16)
    h = jax.nn.relu(h)
    h = conv_taps(h * x_mask.astype(h.dtype), lp["ffn2"]["w"], lp["ffn2"]["b"])
    return h * x_mask


def text_encoder(x_ids, x_lengths, pe, cfg):
    H = cfg["hidden_channels"]
    B, T = x_ids.shape
    h = pe["emb"][x_ids] * math.sqrt(H)                    # (B, T, H)
    x_mask = sequence_mask(x_lengths, T)[:, :, None]       # (B, T, 1)
    key_mask = x_mask[:, :, 0]
    h = h * x_mask
    for lp in pe["layers"]:
        y = mha(h, lp, cfg["n_heads"], key_mask)
        h = layer_norm_last(h + y, lp["ln1"]["g"], lp["ln1"]["b"])
        y = ffn(h, x_mask, lp)
        h = layer_norm_last(h + y, lp["ln2"]["g"], lp["ln2"]["b"])
    h = h * x_mask
    stats = conv1x1_cl(h, pe["proj"]["w"][0], pe["proj"]["b"]) * x_mask
    m, logs = jnp.split(stats, 2, axis=-1)
    return h, m, logs, x_mask


def wn_forward(x, x_mask, wn, hidden):
    output = jnp.zeros_like(x)
    n = len(wn["in_layers"])
    for i in range(n):
        il, rl = wn["in_layers"][i], wn["res_skip"][i]
        last = (i == n - 1)
        res = wn_layer_fused(x, il["w"], il["b"], rl["w"][0], rl["b"], hidden, last)
        if not last:
            res_x, skip = res
            x = (x + res_x) * x_mask
            output = output + skip
        else:
            output = output + res
    return output * x_mask


def posterior_encoder(y, y_lengths, pq, cfg, key):
    B, _, T = y.shape
    y_cl = jnp.transpose(y, (0, 2, 1))                     # (B, T, spec)
    y_mask = sequence_mask(y_lengths, T)[:, :, None]
    h = conv1x1_cl(y_cl, pq["pre"]["w"][0], pq["pre"]["b"]) * y_mask
    h = wn_forward(h, y_mask, pq["wn"], cfg["hidden_channels"])
    stats = conv1x1_cl(h, pq["proj"]["w"][0], pq["proj"]["b"]) * y_mask
    m, logs = jnp.split(stats, 2, axis=-1)
    z = (m + jax.random.normal(key, m.shape, jnp.float32) * jnp.exp(logs)) * y_mask
    return z, m, logs, y_mask


def flow_forward(x, x_mask, flows, cfg):
    H = cfg["hidden_channels"]
    half = cfg["inter_channels"] // 2
    for fp in flows:
        x0, x1 = x[..., :half], x[..., half:]
        h = conv1x1_cl(x0, fp["pre"]["w"][0], fp["pre"]["b"]) * x_mask
        h = wn_forward(h, x_mask, fp["wn"], H)
        m = conv1x1_cl(h, fp["post"]["w"][0], fp["post"]["b"]) * x_mask
        x1 = m + x1 * x_mask                               # mean_only => logs = 0
        x = jnp.concatenate([x0, x1], axis=-1)
        x = jnp.flip(x, axis=-1)                           # Flip flow
    return x


def duration_predictor(x, x_mask, dp):
    # Dropout (p=0.5) treated as eval-mode identity.
    h = conv_taps(x * x_mask, dp["c1"]["w"], dp["c1"]["b"])
    h = jax.nn.relu(h)
    h = layer_norm_last(h, dp["ln1"]["g"], dp["ln1"]["b"])
    h = conv_taps(h * x_mask, dp["c2"]["w"], dp["c2"]["b"])
    h = jax.nn.relu(h)
    h = layer_norm_last(h, dp["ln2"]["g"], dp["ln2"]["b"])
    h = conv1x1_cl(h * x_mask, dp["proj"]["w"][0], dp["proj"]["b"])
    return h * x_mask


def resblock1(x, rb, dilations):
    for c1, c2, d in zip(rb["convs1"], rb["convs2"], dilations):
        xt = jax.nn.leaky_relu(x, 0.1)
        xt = conv_taps(xt, c1["w"], c1["b"], dilation=d, out_dtype=jnp.bfloat16)
        xt = jax.nn.leaky_relu(xt, 0.1)
        xt = conv_taps(xt, c2["w"], c2["b"], dilation=1)
        x = xt + x
    return x


def generator(x, gp, cfg):
    num_k = len(cfg["resblock_kernel_sizes"])
    h = conv_taps(x, gp["pre"]["w"], gp["pre"]["b"])       # K=7, pad 3
    for i, (u, k) in enumerate(zip(cfg["upsample_rates"], cfg["upsample_kernel_sizes"])):
        h = jax.nn.leaky_relu(h, 0.1)
        h = conv_transpose_fused(h, gp["ups"][i]["w"], gp["ups"][i]["b"],
                                 stride=u, padding=(k - u) // 2)
        xs = None
        for j in range(num_k):
            r = resblock1(h, gp["resblocks"][i * num_k + j],
                          cfg["resblock_dilation_sizes"][j])
            xs = r if xs is None else xs + r
        h = xs / num_k
    h = jax.nn.leaky_relu(h)                               # default slope 0.01
    h = conv_taps(h, gp["post"]["w"], None)                # K=7, bias=False
    return jnp.tanh(h)                                     # (B, T, 1)


# ----------------------------------------------------------------------------
# Monotonic alignment (maximum_path) — sequential DP in plain JAX
# ----------------------------------------------------------------------------
def maximum_path_jax(neg_cent, attn_mask):
    # TODO(synk): monotonic_align.maximum_path is a sequential DP + backtrack;
    #             implemented with lax.scan in plain JAX, not as a Pallas kernel.
    B, T_y, T_x = neg_cent.shape
    big_neg = -1e9
    x_len = jnp.sum(attn_mask[:, 0, :], axis=-1).astype(jnp.int32)
    y_len = jnp.sum(attn_mask[:, :, 0], axis=-1).astype(jnp.int32)
    value = jnp.where(attn_mask > 0, neg_cent, big_neg)
    xs = jnp.arange(T_x)

    def fwd_step(prev, inp):
        y, row = inp
        up = jnp.where(xs[None, :] == y, big_neg, prev)
        left0 = jnp.where(y == 0, 0.0, big_neg)
        left = jnp.concatenate([jnp.broadcast_to(left0, (B, 1)), prev[:, :-1]], axis=1)
        cur = row + jnp.maximum(left, up)
        cur = jnp.where(xs[None, :] > y, big_neg, cur)
        return cur, cur

    init = jnp.full((B, T_x), big_neg, jnp.float32)
    _, acc = lax.scan(fwd_step, init,
                      (jnp.arange(T_y), jnp.transpose(value, (1, 0, 2))))
    acc = jnp.transpose(acc, (1, 0, 2))                    # (B, T_y, T_x)

    batch_idx = jnp.arange(B)

    def bwd_step(index, y):
        active = y < y_len
        row = jnp.zeros((B, T_x), jnp.float32).at[batch_idx, index].set(1.0)
        row = row * active[:, None].astype(jnp.float32)
        prev_row = acc[:, jnp.maximum(y - 1, 0), :]
        v_here = prev_row[batch_idx, index]
        v_left = prev_row[batch_idx, jnp.maximum(index - 1, 0)]
        dec = (index != 0) & ((index == y) | (v_here < v_left))
        new_index = jnp.where(active & dec, index - 1, index)
        return new_index, row

    _, rows = lax.scan(bwd_step, x_len - 1, jnp.arange(T_y - 1, -1, -1))
    path = jnp.flip(jnp.transpose(rows, (1, 0, 2)), axis=1)
    return path


def rand_slice_segments_cl(x, lengths, seg, key):
    """x: (B, T, C) -> (B, seg, C)."""
    B, T, C = x.shape
    ids_max = jnp.maximum(lengths - seg + 1, 1).astype(jnp.float32)
    ids = (jax.random.uniform(key, (B,)) * ids_max).astype(jnp.int32)

    def slice_one(xb, i):
        return lax.dynamic_slice(xb, (i, 0), (seg, C))

    return jax.vmap(slice_one)(x, ids), ids


# ----------------------------------------------------------------------------
# Full SynthesizerTrn.forward  (use_sdp=False path)
# ----------------------------------------------------------------------------
# TODO(synk): StochasticDurationPredictor (use_sdp=True) not implemented;
#             the constructor option use_sdp=False (DurationPredictor) is used.
def synthesizer_forward(params, cfg, x_ids, x_lengths, y, y_lengths, rng):
    k_enc, k_slice = jax.random.split(rng)

    h_x, m_p, logs_p, x_mask = text_encoder(x_ids, x_lengths, params["enc_p"], cfg)
    z, m_q, logs_q, y_mask = posterior_encoder(y, y_lengths, params["enc_q"], cfg, k_enc)
    z_p = flow_forward(z, y_mask, params["flow"], cfg)                 # (B, Ty, I)

    # ---- alignment (torch.inference_mode block) ----
    neg_cent = pallas_neg_cent(z_p, m_p, logs_p)                       # (B, Ty, Tx)
    attn_mask = y_mask[:, :, 0][:, :, None] * x_mask[:, :, 0][:, None, :]
    attn = maximum_path_jax(neg_cent, attn_mask)                       # (B, Ty, Tx)
    attn = lax.stop_gradient(attn)

    w = jnp.sum(attn, axis=1)[:, :, None]                              # (B, Tx, 1)

    # duration loss (use_sdp=False)
    logw_ = jnp.log(w + 1e-6) * x_mask
    logw = duration_predictor(lax.stop_gradient(h_x), x_mask, params["dp"])
    l_length = jnp.sum((logw - logw_) ** 2, axis=(1, 2)) / jnp.sum(x_mask)

    # expand prior over the alignment (m_p / logs_p fused into one bmm)
    mlp = jnp.concatenate([m_p, logs_p], axis=-1)                      # (B, Tx, 2I)
    expd = pallas_bmm(attn, mlp)                                       # (B, Ty, 2I)
    m_p_e, logs_p_e = jnp.split(expd, 2, axis=-1)

    z_slice, ids_slice = rand_slice_segments_cl(z, y_lengths, cfg["segment_size"], k_slice)
    o = generator(z_slice, params["dec"], cfg)                         # (B, T_wav, 1)

    # back to reference (B, C, T) layouts for outputs only
    to_cf = lambda t: jnp.transpose(t, (0, 2, 1))
    extras = tuple(to_cf(t) for t in (z, z_p, m_p_e, logs_p_e, m_q, logs_q))
    return (to_cf(o), l_length, attn[:, None], ids_slice,
            to_cf(x_mask), to_cf(y_mask), extras)


# ----------------------------------------------------------------------------
# Main
# ----------------------------------------------------------------------------
if __name__ == "__main__":
    cfg = dict(
        n_vocab=10, spec_channels=9, segment_size=4,
        inter_channels=4, hidden_channels=8, filter_channels=16,
        n_heads=2, n_layers=2, kernel_size=3, p_dropout=0.0,
        resblock="1", resblock_kernel_sizes=[3],
        resblock_dilation_sizes=[[1, 3, 5]],
        upsample_rates=[2, 2], upsample_initial_channel=16,
        upsample_kernel_sizes=[4, 4], gin_channels=0, use_sdp=False,
    )
    params = make_params(0, cfg)

    key = jax.random.PRNGKey(0)
    k1, k2, k3 = jax.random.split(key, 3)
    B, T_x, T_y = 2, 6, 12
    x_ids = jax.random.randint(k1, (B, T_x), 0, cfg["n_vocab"])
    x_lengths = jnp.array([T_x, T_x], jnp.int32)
    y = jax.random.normal(k2, (B, cfg["spec_channels"], T_y), jnp.float32)
    y_lengths = jnp.array([T_y, T_y], jnp.int32)

    @jax.jit
    def fwd(params, x_ids, x_lengths, y, y_lengths, rng):
        return synthesizer_forward(params, cfg, x_ids, x_lengths, y, y_lengths, rng)

    outs = fwd(params, x_ids, x_lengths, y, y_lengths, k3)
    jax.block_until_ready(outs)

    o, l_length, attn, ids_slice, x_mask, y_mask, extras = outs
    assert o.shape == (B, 1, cfg["segment_size"] * 2 * 2)
    assert l_length.shape == (B,)
    assert attn.shape == (B, 1, T_y, T_x)
    print("KERNEL_OK")
</pallas_src>

<mosaic_0001>
module attributes {stable_mosaic.version = 11 : i64} {
  func.func @_mm_bias_kernel(%arg0: i32, %arg1: i32, %arg2: i32, %arg3: memref<24x9xbf16, #tpu.memory_space<vmem>>, %arg4: memref<9x128xbf16, #tpu.memory_space<vmem>>, %arg5: memref<1x128xf32, #tpu.memory_space<vmem>>, %arg6: memref<24x128xf32, #tpu.memory_space<vmem>>, %arg7: memref<24x128xf32, #tpu.memory_space<vmem>>) attributes {dimension_semantics = [#tpu.dimension_semantics<parallel>, #tpu.dimension_semantics<parallel>, #tpu.dimension_semantics<arbitrary>], iteration_bounds = array<i64: 1, 1, 1>, scalar_prefetch = 0 : i64, scratch_operands = 1 : i64, tpu.core_type = #tpu.core_type<tc>, window_params = [{transform_indices = @transform_0, window_bounds = array<i64: 24, 9>}, {transform_indices = @transform_1, window_bounds = array<i64: 9, 128>}, {transform_indices = @transform_2, window_bounds = array<i64: 1, 128>}, {transform_indices = @transform_3, window_bounds = array<i64: 24, 128>}]} {
    %c0_i32 = arith.constant 0 : i32
    %0 = arith.cmpi eq, %arg2, %c0_i32 : i32
    %1 = arith.extui %0 : i1 to i32
    %c0_i32_0 = arith.constant 0 : i32
    %2 = arith.cmpi ne, %1, %c0_i32_0 : i32
    scf.if %2 {
      %cst_10 = arith.constant 0.000000e+00 : f32
      %12 = vector.broadcast %cst_10 : f32 to vector<24x128xf32>
      %c0_11 = arith.constant 0 : index
      %c0_12 = arith.constant 0 : index
      %13 = vector.load %arg7[%c0_11, %c0_12] : memref<24x128xf32, #tpu.memory_space<vmem>>, vector<24x128xf32>
      tpu.vector_store %arg7[%c0_11, %c0_12], %12 {strides = array<i32>} : memref<24x128xf32, #tpu.memory_space<vmem>>, vector<24x128xf32>,
    } else {
    }
    %c0 = arith.constant 0 : index
    %c0_1 = arith.constant 0 : index
    %3 = vector.load %arg7[%c0, %c0_1] : memref<24x128xf32, #tpu.memory_space<vmem>>, vector<24x128xf32>
    %c0_2 = arith.constant 0 : index
    %c0_3 = arith.constant 0 : index
    %4 = vector.load %arg3[%c0_2, %c0_3] : memref<24x9xbf16, #tpu.memory_space<vmem>>, vector<24x9xbf16>
    %c0_4 = arith.constant 0 : index
    %c0_5 = arith.constant 0 : index
    %5 = vector.load %arg4[%c0_4, %c0_5] : memref<9x128xbf16, #tpu.memory_space<vmem>>, vector<9x128xbf16>
    %cst = arith.constant dense<0.000000e+00> : vector<24x128xf32>
    %6 = tpu.matmul %4, %5, %cst {dimension_numbers = #tpu.dot_dimension_numbers<[1], [0], [0], [1], [0, 0, 1, 1], [], []>} : vector<24x9xbf16>, vector<9x128xbf16>, vector<24x128xf32> -> vector<24x128xf32>
    %7 = arith.addf %3, %6 : vector<24x128xf32>
    %c0_6 = arith.constant 0 : index
    %c0_7 = arith.constant 0 : index
    %8 = vector.load %arg7[%c0_6, %c0_7] : memref<24x128xf32, #tpu.memory_space<vmem>>, vector<24x128xf32>
    tpu.vector_store %arg7[%c0_6, %c0_7], %7 {strides = array<i32>} : memref<24x128xf32, #tpu.memory_space<vmem>>, vector<24x128xf32>,
    %c0_i32_8 = arith.constant 0 : i32
    %9 = arith.cmpi eq, %arg2, %c0_i32_8 : i32
    %10 = arith.extui %9 : i1 to i32
    %c0_i32_9 = arith.constant 0 : i32
    %11 = arith.cmpi ne, %10, %c0_i32_9 : i32
    scf.if %11 {
      %c0_10 = arith.constant 0 : index
      %c0_11 = arith.constant 0 : index
      %12 = vector.load %arg7[%c0_10, %c0_11] : memref<24x128xf32, #tpu.memory_space<vmem>>, vector<24x128xf32>
      %c0_12 = arith.constant 0 : index
      %c0_13 = arith.constant 0 : index
      %13 = vector.load %arg5[%c0_12, %c0_13] : memref<1x128xf32, #tpu.memory_space<vmem>>, vector<1x128xf32>
      %14 = vector.broadcast %13 : vector<1x128xf32> to vector<24x128xf32>
      %15 = arith.addf %12, %14 : vector<24x128xf32>
      %c0_14 = arith.constant 0 : index
      %c0_15 = arith.constant 0 : index
      %16 = vector.load %arg6[%c0_14, %c0_15] : memref<24x128xf32, #tpu.memory_space<vmem>>, vector<24x128xf32>
      tpu.vector_store %arg6[%c0_14, %c0_15], %15 {strides = array<i32>} : memref<24x128xf32, #tpu.memory_space<vmem>>, vector<24x128xf32>,
    } else {
    }
    return
  }
  func.func @transform_0(%arg0: i32, %arg1: i32, %arg2: i32) -> (i32, i32) {
    %c0_i32 = arith.constant 0 : i32
    return %arg0, %arg2 : i32, i32
  }
  func.func @transform_1(%arg0: i32, %arg1: i32, %arg2: i32) -> (i32, i32) {
    %c0_i32 = arith.constant 0 : i32
    return %arg2, %arg1 : i32, i32
  }
  func.func @transform_2(%arg0: i32, %arg1: i32, %arg2: i32) -> (i32, i32) {
    %c0_i32 = arith.constant 0 : i32
    %c0_i32_0 = arith.constant 0 : i32
    return %c0_i32, %arg1 : i32, i32
  }
  func.func @transform_3(%arg0: i32, %arg1: i32, %arg2: i32) -> (i32, i32) {
    %c0_i32 = arith.constant 0 : i32
    return %arg0, %arg1 : i32, i32
  }
}

module attributes {stable_mosaic.version = 11 : i64} {
  func.func @_wn_fused_kernel(%arg0: i32, %arg1: i32, %arg2: memref<1x1x20x8xbf16, #tpu.memory_space<vmem>>, %arg3: memref<5x8x256xbf16, #tpu.memory_space<vmem>>, %arg4: memref<1x256xf32, #tpu.memory_space<vmem>>, %arg5: memref<128x256xbf16, #tpu.memory_space<vmem>>, %arg6: memref<1x256xf32, #tpu.memory_space<vmem>>, %arg7: memref<1x16x256xf32, #tpu.memory_space<vmem>>) attributes {dimension_semantics = [#tpu.dimension_semantics<parallel>, #tpu.dimension_semantics<parallel>], iteration_bounds = array<i64: 2, 1>, scalar_prefetch = 0 : i64, scratch_operands = 0 : i64, tpu.core_type = #tpu.core_type<tc>, window_params = [{transform_indices = @transform_0, window_bounds = array<i64: 1, 1, 20, 8>}, {pipeline_mode = #tpu.pipeline_mode<synchronous>, transform_indices = @transform_1, window_bounds = array<i64: 5, 8, 256>}, {pipeline_mode = #tpu.pipeline_mode<synchronous>, transform_indices = @transform_2, window_bounds = array<i64: 1, 256>}, {pipeline_mode = #tpu.pipeline_mode<synchronous>, transform_indices = @transform_3, window_bounds = array<i64: 128, 256>}, {pipeline_mode = #tpu.pipeline_mode<synchronous>, transform_indices = @transform_4, window_bounds = array<i64: 1, 256>}, {transform_indices = @transform_5, window_bounds = array<i64: 1, 16, 256>}]} {
    %cst = arith.constant 0.000000e+00 : f32
    %0 = vector.broadcast %cst : f32 to vector<16x256xf32>
    %c0 = arith.constant 0 : index
    %c0_0 = arith.constant 0 : index
    %c0_1 = arith.constant 0 : index
    %c0_2 = arith.constant 0 : index
    %1 = vector.load %arg2[%c0, %c0_0, %c0_1, %c0_2] : memref<1x1x20x8xbf16, #tpu.memory_space<vmem>>, vector<1x1x16x8xbf16>
    %2 = vector.shape_cast %1 : vector<1x1x16x8xbf16> to vector<16x8xbf16>
    %c0_3 = arith.constant 0 : index
    %c0_4 = arith.constant 0 : index
    %c0_5 = arith.constant 0 : index
    %3 = vector.load %arg3[%c0_3, %c0_4, %c0_5] : memref<5x8x256xbf16, #tpu.memory_space<vmem>>, vector<1x8x256xbf16>
    %4 = vector.shape_cast %3 : vector<1x8x256xbf16> to vector<8x256xbf16>
    %cst_6 = arith.constant dense<0.000000e+00> : vector<16x256xf32>
    %5 = tpu.matmul %2, %4, %cst_6 {dimension_numbers = #tpu.dot_dimension_numbers<[1], [0], [0], [1], [0, 0, 1, 1], [], []>} : vector<16x8xbf16>, vector<8x256xbf16>, vector<16x256xf32> -> vector<16x256xf32>
    %6 = arith.addf %0, %5 : vector<16x256xf32>
    %c0_7 = arith.constant 0 : index
    %c0_8 = arith.constant 0 : index
    %c1 = arith.constant 1 : index
    %c0_9 = arith.constant 0 : index
    %7 = vector.load %arg2[%c0_7, %c0_8, %c1, %c0_9] : memref<1x1x20x8xbf16, #tpu.memory_space<vmem>>, vector<1x1x16x8xbf16>
    %8 = vector.shape_cast %7 : vector<1x1x16x8xbf16> to vector<16x8xbf16>
    %c1_10 = arith.constant 1 : index
    %c0_11 = arith.constant 0 : index
    %c0_12 = arith.constant 0 : index
    %9 = vector.load %arg3[%c1_10, %c0_11, %c0_12] : memref<5x8x256xbf16, #tpu.memory_space<vmem>>, vector<1x8x256xbf16>
    %10 = vector.shape_cast %9 : vector<1x8x256xbf16> to vector<8x256xbf16>
    %cst_13 = arith.constant dense<0.000000e+00> : vector<16x256xf32>
    %11 = tpu.matmul %8, %10, %cst_13 {dimension_numbers = #tpu.dot_dimension_numbers<[1], [0], [0], [1], [0, 0, 1, 1], [], []>} : vector<16x8xbf16>, vector<8x256xbf16>, vector<16x256xf32> -> vector<16x256xf32>
    %12 = arith.addf %6, %11 : vector<16x256xf32>
    %c0_14 = arith.constant 0 : index
    %c0_15 = arith.constant 0 : index
    %c2 = arith.constant 2 : index
    %c0_16 = arith.constant 0 : index
    %13 = vector.load %arg2[%c0_14, %c0_15, %c2, %c0_16] : memref<1x1x20x8xbf16, #tpu.memory_space<vmem>>, vector<1x1x16x8xbf16>
    %14 = vector.shape_cast %13 : vector<1x1x16x8xbf16> to vector<16x8xbf16>
    %c2_17 = arith.constant 2 : index
    %c0_18 = arith.constant 0 : index
    %c0_19 = arith.constant 0 : index
    %15 = vector.load %arg3[%c2_17, %c0_18, %c0_19] : memref<5x8x256xbf16, #tpu.memory_space<vmem>>, vector<1x8x256xbf16>
    %16 = vector.shape_cast %15 : vector<1x8x256xbf16> to vector<8x256xbf16>
    %cst_20 = arith.constant dense<0.000000e+00> : vector<16x256xf32>
    %17 = tpu.matmul %14, %16, %cst_20 {dimension_numbers = #tpu.dot_dimension_numbers<[1], [0], [0], [1], [0, 0, 1, 1], [], []>} : vector<16x8xbf16>, vector<8x256xbf16>, vector<16x256xf32> -> vector<16x256xf32>
    %18 = arith.addf %12, %17 : vector<16x256xf32>
    %c0_21 = arith.constant 0 : index
    %c0_22 = arith.constant 0 : index
    %c3 = arith.constant 3 : index
    %c0_23 = arith.constant 0 : index
    %19 = vector.load %arg2[%c0_21, %c0_22, %c3, %c0_23] : memref<1x1x20x8xbf16, #tpu.memory_space<vmem>>, vector<1x1x16x8xbf16>
    %20 = vector.shape_cast %19 : vector<1x1x16x8xbf16> to vector<16x8xbf16>
    %c3_24 = arith.constant 3 : index
    %c0_25 = arith.constant 0 : index
    %c0_26 = arith.constant 0 : index
    %21 = vector.load %arg3[%c3_24, %c0_25, %c0_26] : memref<5x8x256xbf16, #tpu.memory_space<vmem>>, vector<1x8x256xbf16>
    %22 = vector.shape_cast %21 : vector<1x8x256xbf16> to vector<8x256xbf16>
    %cst_27 = arith.constant dense<0.000000e+00> : vector<16x256xf32>
    %23 = tpu.matmul %20, %22, %cst_27 {dimension_numbers = #tpu.dot_dimension_numbers<[1], [0], [0], [1], [0, 0, 1, 1], [], []>} : vector<16x8xbf16>, vector<8x256xbf16>, vector<16x256xf32> -> vector<16x256xf32>
    %24 = arith.addf %18, %23 : vector<16x256xf32>
    %c0_28 = arith.constant 0 : index
    %c0_29 = arith.constant 0 : index
    %c4 = arith.constant 4 : index
    %c0_30 = arith.constant 0 : index
    %25 = vector.load %arg2[%c0_28, %c0_29, %c4, %c0_30] : memref<1x1x20x8xbf16, #tpu.memory_space<vmem>>, vector<1x1x16x8xbf16>
    %26 = vector.shape_cast %25 : vector<1x1x16x8xbf16> to vector<16x8xbf16>
    %c4_31 = arith.constant 4 : index
    %c0_32 = arith.constant 0 : index
    %c0_33 = arith.constant 0 : index
    %27 = vector.load %arg3[%c4_31, %c0_32, %c0_33] : memref<5x8x256xbf16, #tpu.memory_space<vmem>>, vector<1x8x256xbf16>
    %28 = vector.shape_cast %27 : vector<1x8x256xbf16> to vector<8x256xbf16>
    %cst_34 = arith.constant dense<0.000000e+00> : vector<16x256xf32>
    %29 = tpu.matmul %26, %28, %cst_34 {dimension_numbers = #tpu.dot_dimension_numbers<[1], [0], [0], [1], [0, 0, 1, 1], [], []>} : vector<16x8xbf16>, vector<8x256xbf16>, vector<16x256xf32> -> vector<16x256xf32>
    %30 = arith.addf %24, %29 : vector<16x256xf32>
    %c0_35 = arith.constant 0 : index
    %c0_36 = arith.constant 0 : index
    %31 = vector.load %arg4[%c0_35, %c0_36] : memref<1x256xf32, #tpu.memory_space<vmem>>, vector<1x256xf32>
    %32 = vector.broadcast %31 : vector<1x256xf32> to vector<16x256xf32>
    %33 = arith.addf %30, %32 : vector<16x256xf32>
    %34 = vector.extract_strided_slice %33 {offsets = [0, 0], sizes = [16, 128], strides = [1, 1]} : vector<16x256xf32> to vector<16x128xf32>
    %35 = math.tanh %34 : vector<16x128xf32>
    %36 = vector.extract_strided_slice %33 {offsets = [0, 128], sizes = [16, 128], strides = [1, 1]} : vector<16x256xf32> to vector<16x128xf32>
    %37 = arith.negf %36 : vector<16x128xf32>
    %38 = math.exp %37 : vector<16x128xf32>
    %cst_37 = arith.constant 1.000000e+00 : f32
    %39 = vector.broadcast %cst_37 : f32 to vector<16x128xf32>
    %40 = arith.addf %39, %38 : vector<16x128xf32>
    %41 = arith.divf %39, %40 : vector<16x128xf32>
    %42 = arith.mulf %35, %41 : vector<16x128xf32>
    %43 = arith.truncf %42 : vector<16x128xf32> to vector<16x128xbf16>
    %c0_38 = arith.constant 0 : index
    %c0_39 = arith.constant 0 : index
    %44 = vector.load %arg5[%c0_38, %c0_39] : memref<128x256xbf16, #tpu.memory_space<vmem>>, vector<128x256xbf16>
    %cst_40 = arith.constant dense<0.000000e+00> : vector<16x256xf32>
    %45 = tpu.matmul %43, %44, %cst_40 {dimension_numbers = #tpu.dot_dimension_numbers<[1], [0], [0], [1], [0, 0, 1, 1], [], []>} : vector<16x128xbf16>, vector<128x256xbf16>, vector<16x256xf32> -> vector<16x256xf32>
    %c0_41 = arith.constant 0 : index
    %c0_42 = arith.constant 0 : index
    %46 = vector.load %arg6[%c0_41, %c0_42] : memref<1x256xf32, #tpu.memory_space<vmem>>, vector<1x256xf32>
    %47 = vector.broadcast %46 : vector<1x256xf32> to vector<16x256xf32>
    %48 = arith.addf %45, %47 : vector<16x256xf32>
    %c0_43 = arith.constant 0 : index
    %c0_44 = arith.constant 0 : index
    %c0_45 = arith.constant 0 : index
    %49 = vector.load %arg7[%c0_43, %c0_44, %c0_45] : memref<1x16x256xf32, #tpu.memory_space<vmem>>, vector<1x16x256xf32>
    %50 = vector.shape_cast %49 : vector<1x16x256xf32> to vector<16x256xf32>
    %51 = vector.shape_cast %48 : vector<16x256xf32> to vector<1x16x256xf32>
    tpu.vector_store %arg7[%c0_43, %c0_44, %c0_45], %51 {strides = array<i32>} : memref<1x16x256xf32, #tpu.memory_space<vmem>>, vector<1x16x256xf32>,
    return
  }
  func.func @transform_0(%arg0: i32, %arg1: i32) -> (i32, i32, i32, i32) {
    %c0_i32 = arith.constant 0 : i32
    %c0_i32_0 = arith.constant 0 : i32
    %c0_i32_1 = arith.constant 0 : i32
    return %arg0, %arg1, %c0_i32, %c0_i32_0 : i32, i32, i32, i32
  }
  func.func @transform_1(%arg0: i32, %arg1: i32) -> (i32, i32, i32) {
    %c0_i32 = arith.constant 0 : i32
    %c0_i32_0 = arith.constant 0 : i32
    %c0_i32_1 = arith.constant 0 : i32
    %c0_i32_2 = arith.constant 0 : i32
    return %c0_i32, %c0_i32_0, %c0_i32_1 : i32, i32, i32
  }
  func.func @transform_2(%arg0: i32, %arg1: i32) -> (i32, i32) {
    %c0_i32 = arith.constant 0 : i32
    %c0_i32_0 = arith.constant 0 : i32
    %c0_i32_1 = arith.constant 0 : i32
    return %c0_i32, %c0_i32_0 : i32, i32
  }
  func.func @transform_3(%arg0: i32, %arg1: i32) -> (i32, i32) {
    %c0_i32 = arith.constant 0 : i32
    %c0_i32_0 = arith.constant 0 : i32
    %c0_i32_1 = arith.constant 0 : i32
    return %c0_i32, %c0_i32_0 : i32, i32
  }
  func.func @transform_4(%arg0: i32, %arg1: i32) -> (i32, i32) {
    %c0_i32 = arith.constant 0 : i32
    %c0_i32_0 = arith.constant 0 : i32
    %c0_i32_1 = arith.constant 0 : i32
    return %c0_i32, %c0_i32_0 : i32, i32
  }
  func.func @transform_5(%arg0: i32, %arg1: i32) -> (i32, i32, i32) {
    %c0_i32 = arith.constant 0 : i32
    %c0_i32_0 = arith.constant 0 : i32
    return %arg0, %arg1, %c0_i32 : i32, i32, i32
  }
}

module attributes {stable_mosaic.version = 11 : i64} {
  func.func @_wn_fused_kernel(%arg0: i32, %arg1: i32, %arg2: memref<1x1x20x8xbf16, #tpu.memory_space<vmem>>, %arg3: memref<5x8x256xbf16, #tpu.memory_space<vmem>>, %arg4: memref<1x256xf32, #tpu.memory_space<vmem>>, %arg5: memref<128x128xbf16, #tpu.memory_space<vmem>>, %arg6: memref<1x128xf32, #tpu.memory_space<vmem>>, %arg7: memref<1x16x128xf32, #tpu.memory_space<vmem>>) attributes {dimension_semantics = [#tpu.dimension_semantics<parallel>, #tpu.dimension_semantics<parallel>], iteration_bounds = array<i64: 2, 1>, scalar_prefetch = 0 : i64, scratch_operands = 0 : i64, tpu.core_type = #tpu.core_type<tc>, window_params = [{transform_indices = @transform_0, window_bounds = array<i64: 1, 1, 20, 8>}, {pipeline_mode = #tpu.pipeline_mode<synchronous>, transform_indices = @transform_1, window_bounds = array<i64: 5, 8, 256>}, {pipeline_mode = #tpu.pipeline_mode<synchronous>, transform_indices = @transform_2, window_bounds = array<i64: 1, 256>}, {pipeline_mode = #tpu.pipeline_mode<synchronous>, transform_indices = @transform_3, window_bounds = array<i64: 128, 128>}, {pipeline_mode = #tpu.pipeline_mode<synchronous>, transform_indices = @transform_4, window_bounds = array<i64: 1, 128>}, {transform_indices = @transform_5, window_bounds = array<i64: 1, 16, 128>}]} {
    %cst = arith.constant 0.000000e+00 : f32
    %0 = vector.broadcast %cst : f32 to vector<16x256xf32>
    %c0 = arith.constant 0 : index
    %c0_0 = arith.constant 0 : index
    %c0_1 = arith.constant 0 : index
    %c0_2 = arith.constant 0 : index
    %1 = vector.load %arg2[%c0, %c0_0, %c0_1, %c0_2] : memref<1x1x20x8xbf16, #tpu.memory_space<vmem>>, vector<1x1x16x8xbf16>
    %2 = vector.shape_cast %1 : vector<1x1x16x8xbf16> to vector<16x8xbf16>
    %c0_3 = arith.constant 0 : index
    %c0_4 = arith.constant 0 : index
    %c0_5 = arith.constant 0 : index
    %3 = vector.load %arg3[%c0_3, %c0_4, %c0_5] : memref<5x8x256xbf16, #tpu.memory_space<vmem>>, vector<1x8x256xbf16>
    %4 = vector.shape_cast %3 : vector<1x8x256xbf16> to vector<8x256xbf16>
    %cst_6 = arith.constant dense<0.000000e+00> : vector<16x256xf32>
    %5 = tpu.matmul %2, %4, %cst_6 {dimension_numbers = #tpu.dot_dimension_numbers<[1], [0], [0], [1], [0, 0, 1, 1], [], []>} : vector<16x8xbf16>, vector<8x256xbf16>, vector<16x256xf32> -> vector<16x256xf32>
    %6 = arith.addf %0, %5 : vector<16x256xf32>
    %c0_7 = arith.constant 0 : index
    %c0_8 = arith.constant 0 : index
    %c1 = arith.constant 1 : index
    %c0_9 = arith.constant 0 : index
    %7 = vector.load %arg2[%c0_7, %c0_8, %c1, %c0_9] : memref<1x1x20x8xbf16, #tpu.memory_space<vmem>>, vector<1x1x16x8xbf16>
    %8 = vector.shape_cast %7 : vector<1x1x16x8xbf16> to vector<16x8xbf16>
    %c1_10 = arith.constant 1 : index
    %c0_11 = arith.constant 0 : index
    %c0_12 = arith.constant 0 : index
    %9 = vector.load %arg3[%c1_10, %c0_11, %c0_12] : memref<5x8x256xbf16, #tpu.memory_space<vmem>>, vector<1x8x256xbf16>
    %10 = vector.shape_cast %9 : vector<1x8x256xbf16> to vector<8x256xbf16>
    %cst_13 = arith.constant dense<0.000000e+00> : vector<16x256xf32>
    %11 = tpu.matmul %8, %10, %cst_13 {dimension_numbers = #tpu.dot_dimension_numbers<[1], [0], [0], [1], [0, 0, 1, 1], [], []>} : vector<16x8xbf16>, vector<8x256xbf16>, vector<16x256xf32> -> vector<16x256xf32>
    %12 = arith.addf %6, %11 : vector<16x256xf32>
    %c0_14 = arith.constant 0 : index
    %c0_15 = arith.constant 0 : index
    %c2 = arith.constant 2 : index
    %c0_16 = arith.constant 0 : index
    %13 = vector.load %arg2[%c0_14, %c0_15, %c2, %c0_16] : memref<1x1x20x8xbf16, #tpu.memory_space<vmem>>, vector<1x1x16x8xbf16>
    %14 = vector.shape_cast %13 : vector<1x1x16x8xbf16> to vector<16x8xbf16>
    %c2_17 = arith.constant 2 : index
    %c0_18 = arith.constant 0 : index
    %c0_19 = arith.constant 0 : index
    %15 = vector.load %arg3[%c2_17, %c0_18, %c0_19] : memref<5x8x256xbf16, #tpu.memory_space<vmem>>, vector<1x8x256xbf16>
    %16 = vector.shape_cast %15 : vector<1x8x256xbf16> to vector<8x256xbf16>
    %cst_20 = arith.constant dense<0.000000e+00> : vector<16x256xf32>
    %17 = tpu.matmul %14, %16, %cst_20 {dimension_numbers = #tpu.dot_dimension_numbers<[1], [0], [0], [1], [0, 0, 1, 1], [], []>} : vector<16x8xbf16>, vector<8x256xbf16>, vector<16x256xf32> -> vector<16x256xf32>
    %18 = arith.addf %12, %17 : vector<16x256xf32>
    %c0_21 = arith.constant 0 : index
    %c0_22 = arith.constant 0 : index
    %c3 = arith.constant 3 : index
    %c0_23 = arith.constant 0 : index
    %19 = vector.load %arg2[%c0_21, %c0_22, %c3, %c0_23] : memref<1x1x20x8xbf16, #tpu.memory_space<vmem>>, vector<1x1x16x8xbf16>
    %20 = vector.shape_cast %19 : vector<1x1x16x8xbf16> to vector<16x8xbf16>
    %c3_24 = arith.constant 3 : index
    %c0_25 = arith.constant 0 : index
    %c0_26 = arith.constant 0 : index
    %21 = vector.load %arg3[%c3_24, %c0_25, %c0_26] : memref<5x8x256xbf16, #tpu.memory_space<vmem>>, vector<1x8x256xbf16>
    %22 = vector.shape_cast %21 : vector<1x8x256xbf16> to vector<8x256xbf16>
    %cst_27 = arith.constant dense<0.000000e+00> : vector<16x256xf32>
    %23 = tpu.matmul %20, %22, %cst_27 {dimension_numbers = #tpu.dot_dimension_numbers<[1], [0], [0], [1], [0, 0, 1, 1], [], []>} : vector<16x8xbf16>, vector<8x256xbf16>, vector<16x256xf32> -> vector<16x256xf32>
    %24 = arith.addf %18, %23 : vector<16x256xf32>
    %c0_28 = arith.constant 0 : index
    %c0_29 = arith.constant 0 : index
    %c4 = arith.constant 4 : index
    %c0_30 = arith.constant 0 : index
    %25 = vector.load %arg2[%c0_28, %c0_29, %c4, %c0_30] : memref<1x1x20x8xbf16, #tpu.memory_space<vmem>>, vector<1x1x16x8xbf16>
    %26 = vector.shape_cast %25 : vector<1x1x16x8xbf16> to vector<16x8xbf16>
    %c4_31 = arith.constant 4 : index
    %c0_32 = arith.constant 0 : index
    %c0_33 = arith.constant 0 : index
    %27 = vector.load %arg3[%c4_31, %c0_32, %c0_33] : memref<5x8x256xbf16, #tpu.memory_space<vmem>>, vector<1x8x256xbf16>
    %28 = vector.shape_cast %27 : vector<1x8x256xbf16> to vector<8x256xbf16>
    %cst_34 = arith.constant dense<0.000000e+00> : vector<16x256xf32>
    %29 = tpu.matmul %26, %28, %cst_34 {dimension_numbers = #tpu.dot_dimension_numbers<[1], [0], [0], [1], [0, 0, 1, 1], [], []>} : vector<16x8xbf16>, vector<8x256xbf16>, vector<16x256xf32> -> vector<16x256xf32>
    %30 = arith.addf %24, %29 : vector<16x256xf32>
    %c0_35 = arith.constant 0 : index
    %c0_36 = arith.constant 0 : index
    %31 = vector.load %arg4[%c0_35, %c0_36] : memref<1x256xf32, #tpu.memory_space<vmem>>, vector<1x256xf32>
    %32 = vector.broadcast %31 : vector<1x256xf32> to vector<16x256xf32>
    %33 = arith.addf %30, %32 : vector<16x256xf32>
    %34 = vector.extract_strided_slice %33 {offsets = [0, 0], sizes = [16, 128], strides = [1, 1]} : vector<16x256xf32> to vector<16x128xf32>
    %35 = math.tanh %34 : vector<16x128xf32>
    %36 = vector.extract_strided_slice %33 {offsets = [0, 128], sizes = [16, 128], strides = [1, 1]} : vector<16x256xf32> to vector<16x128xf32>
    %37 = arith.negf %36 : vector<16x128xf32>
    %38 = math.exp %37 : vector<16x128xf32>
    %cst_37 = arith.constant 1.000000e+00 : f32
    %39 = vector.broadcast %cst_37 : f32 to vector<16x128xf32>
    %40 = arith.addf %39, %38 : vector<16x128xf32>
    %41 = arith.divf %39, %40 : vector<16x128xf32>
    %42 = arith.mulf %35, %41 : vector<16x128xf32>
    %43 = arith.truncf %42 : vector<16x128xf32> to vector<16x128xbf16>
    %c0_38 = arith.constant 0 : index
    %c0_39 = arith.constant 0 : index
    %44 = vector.load %arg5[%c0_38, %c0_39] : memref<128x128xbf16, #tpu.memory_space<vmem>>, vector<128x128xbf16>
    %cst_40 = arith.constant dense<0.000000e+00> : vector<16x128xf32>
    %45 = tpu.matmul %43, %44, %cst_40 {dimension_numbers = #tpu.dot_dimension_numbers<[1], [0], [0], [1], [0, 0, 1, 1], [], []>} : vector<16x128xbf16>, vector<128x128xbf16>, vector<16x128xf32> -> vector<16x128xf32>
    %c0_41 = arith.constant 0 : index
    %c0_42 = arith.constant 0 : index
    %46 = vector.load %arg6[%c0_41, %c0_42] : memref<1x128xf32, #tpu.memory_space<vmem>>, vector<1x128xf32>
    %47 = vector.broadcast %46 : vector<1x128xf32> to vector<16x128xf32>
    %48 = arith.addf %45, %47 : vector<16x128xf32>
    %c0_43 = arith.constant 0 : index
    %c0_44 = arith.constant 0 : index
    %c0_45 = arith.constant 0 : index
    %49 = vector.load %arg7[%c0_43, %c0_44, %c0_45] : memref<1x16x128xf32, #tpu.memory_space<vmem>>, vector<1x16x128xf32>
    %50 = vector.shape_cast %49 : vector<1x16x128xf32> to vector<16x128xf32>
    %51 = vector.shape_cast %48 : vector<16x128xf32> to vector<1x16x128xf32>
    tpu.vector_store %arg7[%c0_43, %c0_44, %c0_45], %51 {strides = array<i32>} : memref<1x16x128xf32, #tpu.memory_space<vmem>>, vector<1x16x128xf32>,
    return
  }
  func.func @transform_0(%arg0: i32, %arg1: i32) -> (i32, i32, i32, i32) {
    %c0_i32 = arith.constant 0 : i32
    %c0_i32_0 = arith.constant 0 : i32
    %c0_i32_1 = arith.constant 0 : i32
    return %arg0, %arg1, %c0_i32, %c0_i32_0 : i32, i32, i32, i32
  }
  func.func @transform_1(%arg0: i32, %arg1: i32) -> (i32, i32, i32) {
    %c0_i32 = arith.constant 0 : i32
    %c0_i32_0 = arith.constant 0 : i32
    %c0_i32_1 = arith.constant 0 : i32
    %c0_i32_2 = arith.constant 0 : i32
    return %c0_i32, %c0_i32_0, %c0_i32_1 : i32, i32, i32
  }
  func.func @transform_2(%arg0: i32, %arg1: i32) -> (i32, i32) {
    %c0_i32 = arith.constant 0 : i32
    %c0_i32_0 = arith.constant 0 : i32
    %c0_i32_1 = arith.constant 0 : i32
    return %c0_i32, %c0_i32_0 : i32, i32
  }
  func.func @transform_3(%arg0: i32, %arg1: i32) -> (i32, i32) {
    %c0_i32 = arith.constant 0 : i32
    %c0_i32_0 = arith.constant 0 : i32
    %c0_i32_1 = arith.constant 0 : i32
    return %c0_i32, %c0_i32_0 : i32, i32
  }
  func.func @transform_4(%arg0: i32, %arg1: i32) -> (i32, i32) {
    %c0_i32 = arith.constant 0 : i32
    %c0_i32_0 = arith.constant 0 : i32
    %c0_i32_1 = arith.constant 0 : i32
    return %c0_i32, %c0_i32_0 : i32, i32
  }
  func.func @transform_5(%arg0: i32, %arg1: i32) -> (i32, i32, i32) {
    %c0_i32 = arith.constant 0 : i32
    %c0_i32_0 = arith.constant 0 : i32
    return %arg0, %arg1, %c0_i32 : i32, i32, i32
  }
}

module attributes {stable_mosaic.version = 11 : i64} {
  func.func @_mm_bias_kernel(%arg0: i32, %arg1: i32, %arg2: i32, %arg3: memref<24x8xbf16, #tpu.memory_space<vmem>>, %arg4: memref<8x128xbf16, #tpu.memory_space<vmem>>, %arg5: memref<1x128xf32, #tpu.memory_space<vmem>>, %arg6: memref<24x128xf32, #tpu.memory_space<vmem>>, %arg7: memref<24x128xf32, #tpu.memory_space<vmem>>) attributes {dimension_semantics = [#tpu.dimension_semantics<parallel>, #tpu.dimension_semantics<parallel>, #tpu.dimension_semantics<arbitrary>], iteration_bounds = array<i64: 1, 1, 1>, scalar_prefetch = 0 : i64, scratch_operands = 1 : i64, tpu.core_type = #tpu.core_type<tc>, window_params = [{transform_indices = @transform_0, window_bounds = array<i64: 24, 8>}, {transform_indices = @transform_1, window_bounds = array<i64: 8, 128>}, {transform_indices = @transform_2, window_bounds = array<i64: 1, 128>}, {transform_indices = @transform_3, window_bounds = array<i64: 24, 128>}]} {
    %c0_i32 = arith.constant 0 : i32
    %0 = arith.cmpi eq, %arg2, %c0_i32 : i32
    %1 = arith.extui %0 : i1 to i32
    %c0_i32_0 = arith.constant 0 : i32
    %2 = arith.cmpi ne, %1, %c0_i32_0 : i32
    scf.if %2 {
      %cst_10 = arith.constant 0.000000e+00 : f32
      %12 = vector.broadcast %cst_10 : f32 to vector<24x128xf32>
      %c0_11 = arith.constant 0 : index
      %c0_12 = arith.constant 0 : index
      %13 = vector.load %arg7[%c0_11, %c0_12] : memref<24x128xf32, #tpu.memory_space<vmem>>, vector<24x128xf32>
      tpu.vector_store %arg7[%c0_11, %c0_12], %12 {strides = array<i32>} : memref<24x128xf32, #tpu.memory_space<vmem>>, vector<24x128xf32>,
    } else {
    }
    %c0 = arith.constant 0 : index
    %c0_1 = arith.constant 0 : index
    %3 = vector.load %arg7[%c0, %c0_1] : memref<24x128xf32, #tpu.memory_space<vmem>>, vector<24x128xf32>
    %c0_2 = arith.constant 0 : index
    %c0_3 = arith.constant 0 : index
    %4 = vector.load %arg3[%c0_2, %c0_3] : memref<24x8xbf16, #tpu.memory_space<vmem>>, vector<24x8xbf16>
    %c0_4 = arith.constant 0 : index
    %c0_5 = arith.constant 0 : index
    %5 = vector.load %arg4[%c0_4, %c0_5] : memref<8x128xbf16, #tpu.memory_space<vmem>>, vector<8x128xbf16>
    %cst = arith.constant dense<0.000000e+00> : vector<24x128xf32>
    %6 = tpu.matmul %4, %5, %cst {dimension_numbers = #tpu.dot_dimension_numbers<[1], [0], [0], [1], [0, 0, 1, 1], [], []>} : vector<24x8xbf16>, vector<8x128xbf16>, vector<24x128xf32> -> vector<24x128xf32>
    %7 = arith.addf %3, %6 : vector<24x128xf32>
    %c0_6 = arith.constant 0 : index
    %c0_7 = arith.constant 0 : index
    %8 = vector.load %arg7[%c0_6, %c0_7] : memref<24x128xf32, #tpu.memory_space<vmem>>, vector<24x128xf32>
    tpu.vector_store %arg7[%c0_6, %c0_7], %7 {strides = array<i32>} : memref<24x128xf32, #tpu.memory_space<vmem>>, vector<24x128xf32>,
    %c0_i32_8 = arith.constant 0 : i32
    %9 = arith.cmpi eq, %arg2, %c0_i32_8 : i32
    %10 = arith.extui %9 : i1 to i32
    %c0_i32_9 = arith.constant 0 : i32
    %11 = arith.cmpi ne, %10, %c0_i32_9 : i32
    scf.if %11 {
      %c0_10 = arith.constant 0 : index
      %c0_11 = arith.constant 0 : index
      %12 = vector.load %arg7[%c0_10, %c0_11] : memref<24x128xf32, #tpu.memory_space<vmem>>, vector<24x128xf32>
      %c0_12 = arith.constant 0 : index
      %c0_13 = arith.constant 0 : index
      %13 = vector.load %arg5[%c0_12, %c0_13] : memref<1x128xf32, #tpu.memory_space<vmem>>, vector<1x128xf32>
      %14 = vector.broadcast %13 : vector<1x128xf32> to vector<24x128xf32>
      %15 = arith.addf %12, %14 : vector<24x128xf32>
      %c0_14 = arith.constant 0 : index
      %c0_15 = arith.constant 0 : index
      %16 = vector.load %arg6[%c0_14, %c0_15] : memref<24x128xf32, #tpu.memory_space<vmem>>, vector<24x128xf32>
      tpu.vector_store %arg6[%c0_14, %c0_15], %15 {strides = array<i32>} : memref<24x128xf32, #tpu.memory_space<vmem>>, vector<24x128xf32>,
    } else {
    }
    return
  }
  func.func @transform_0(%arg0: i32, %arg1: i32, %arg2: i32) -> (i32, i32) {
    %c0_i32 = arith.constant 0 : i32
    return %arg0, %arg2 : i32, i32
  }
  func.func @transform_1(%arg0: i32, %arg1: i32, %arg2: i32) -> (i32, i32) {
    %c0_i32 = arith.constant 0 : i32
    return %arg2, %arg1 : i32, i32
  }
  func.func @transform_2(%arg0: i32, %arg1: i32, %arg2: i32) -> (i32, i32) {
    %c0_i32 = arith.constant 0 : i32
    %c0_i32_0 = arith.constant 0 : i32
    return %c0_i32, %arg1 : i32, i32
  }
  func.func @transform_3(%arg0: i32, %arg1: i32, %arg2: i32) -> (i32, i32) {
    %c0_i32 = arith.constant 0 : i32
    return %arg0, %arg1 : i32, i32
  }
}

module attributes {stable_mosaic.version = 11 : i64} {
  func.func @_conv_tap_kernel(%arg0: i32, %arg1: i32, %arg2: i32, %arg3: memref<1x1x14x4xbf16, #tpu.memory_space<vmem>>, %arg4: memref<7x4x128xbf16, #tpu.memory_space<vmem>>, %arg5: memref<1x128xf32, #tpu.memory_space<vmem>>, %arg6: memref<1x8x128xf32, #tpu.memory_space<vmem>>) attributes {dimension_semantics = [#tpu.dimension_semantics<parallel>, #tpu.dimension_semantics<parallel>, #tpu.dimension_semantics<parallel>], iteration_bounds = array<i64: 2, 1, 1>, scalar_prefetch = 0 : i64, scratch_operands = 0 : i64, tpu.core_type = #tpu.core_type<tc>, window_params = [{transform_indices = @transform_0, window_bounds = array<i64: 1, 1, 14, 4>}, {transform_indices = @transform_1, window_bounds = array<i64: 7, 4, 128>}, {transform_indices = @transform_2, window_bounds = array<i64: 1, 128>}, {transform_indices = @transform_3, window_bounds = array<i64: 1, 8, 128>}]} {
    %cst = arith.constant 0.000000e+00 : f32
    %0 = vector.broadcast %cst : f32 to vector<8x128xf32>
    %c0 = arith.constant 0 : index
    %c0_0 = arith.constant 0 : index
    %c0_1 = arith.constant 0 : index
    %c0_2 = arith.constant 0 : index
    %1 = vector.load %arg3[%c0, %c0_0, %c0_1, %c0_2] : memref<1x1x14x4xbf16, #tpu.memory_space<vmem>>, vector<1x1x8x4xbf16>
    %2 = vector.shape_cast %1 : vector<1x1x8x4xbf16> to vector<8x4xbf16>
    %c0_3 = arith.constant 0 : index
    %c0_4 = arith.constant 0 : index
    %c0_5 = arith.constant 0 : index
    %3 = vector.load %arg4[%c0_3, %c0_4, %c0_5] : memref<7x4x128xbf16, #tpu.memory_space<vmem>>, vector<1x4x128xbf16>
    %4 = vector.shape_cast %3 : vector<1x4x128xbf16> to vector<4x128xbf16>
    %cst_6 = arith.constant dense<0.000000e+00> : vector<8x128xf32>
    %5 = tpu.matmul %2, %4, %cst_6 {dimension_numbers = #tpu.dot_dimension_numbers<[1], [0], [0], [1], [0, 0, 1, 1], [], []>} : vector<8x4xbf16>, vector<4x128xbf16>, vector<8x128xf32> -> vector<8x128xf32>
    %6 = arith.addf %0, %5 : vector<8x128xf32>
    %c0_7 = arith.constant 0 : index
    %c0_8 = arith.constant 0 : index
    %c1 = arith.constant 1 : index
    %c0_9 = arith.constant 0 : index
    %7 = vector.load %arg3[%c0_7, %c0_8, %c1, %c0_9] : memref<1x1x14x4xbf16, #tpu.memory_space<vmem>>, vector<1x1x8x4xbf16>
    %8 = vector.shape_cast %7 : vector<1x1x8x4xbf16> to vector<8x4xbf16>
    %c1_10 = arith.constant 1 : index
    %c0_11 = arith.constant 0 : index
    %c0_12 = arith.constant 0 : index
    %9 = vector.load %arg4[%c1_10, %c0_11, %c0_12] : memref<7x4x128xbf16, #tpu.memory_space<vmem>>, vector<1x4x128xbf16>
    %10 = vector.shape_cast %9 : vector<1x4x128xbf16> to vector<4x128xbf16>
    %cst_13 = arith.constant dense<0.000000e+00> : vector<8x128xf32>
    %11 = tpu.matmul %8, %10, %cst_13 {dimension_numbers = #tpu.dot_dimension_numbers<[1], [0], [0], [1], [0, 0, 1, 1], [], []>} : vector<8x4xbf16>, vector<4x128xbf16>, vector<8x128xf32> -> vector<8x128xf32>
    %12 = arith.addf %6, %11 : vector<8x128xf32>
    %c0_14 = arith.constant 0 : index
    %c0_15 = arith.constant 0 : index
    %c2 = arith.constant 2 : index
    %c0_16 = arith.constant 0 : index
    %13 = vector.load %arg3[%c0_14, %c0_15, %c2, %c0_16] : memref<1x1x14x4xbf16, #tpu.memory_space<vmem>>, vector<1x1x8x4xbf16>
    %14 = vector.shape_cast %13 : vector<1x1x8x4xbf16> to vector<8x4xbf16>
    %c2_17 = arith.constant 2 : index
    %c0_18 = arith.constant 0 : index
    %c0_19 = arith.constant 0 : index
    %15 = vector.load %arg4[%c2_17, %c0_18, %c0_19] : memref<7x4x128xbf16, #tpu.memory_space<vmem>>, vector<1x4x128xbf16>
    %16 = vector.shape_cast %15 : vector<1x4x128xbf16> to vector<4x128xbf16>
    %cst_20 = arith.constant dense<0.000000e+00> : vector<8x128xf32>
    %17 = tpu.matmul %14, %16, %cst_20 {dimension_numbers = #tpu.dot_dimension_numbers<[1], [0], [0], [1], [0, 0, 1, 1], [], []>} : vector<8x4xbf16>, vector<4x128xbf16>, vector<8x128xf32> -> vector<8x128xf32>
    %18 = arith.addf %12, %17 : vector<8x128xf32>
    %c0_21 = arith.constant 0 : index
    %c0_22 = arith.constant 0 : index
    %c3 = arith.constant 3 : index
    %c0_23 = arith.constant 0 : index
    %19 = vector.load %arg3[%c0_21, %c0_22, %c3, %c0_23] : memref<1x1x14x4xbf16, #tpu.memory_space<vmem>>, vector<1x1x8x4xbf16>
    %20 = vector.shape_cast %19 : vector<1x1x8x4xbf16> to vector<8x4xbf16>
    %c3_24 = arith.constant 3 : index
    %c0_25 = arith.constant 0 : index
    %c0_26 = arith.constant 0 : index
    %21 = vector.load %arg4[%c3_24, %c0_25, %c0_26] : memref<7x4x128xbf16, #tpu.memory_space<vmem>>, vector<1x4x128xbf16>
    %22 = vector.shape_cast %21 : vector<1x4x128xbf16> to vector<4x128xbf16>
    %cst_27 = arith.constant dense<0.000000e+00> : vector<8x128xf32>
    %23 = tpu.matmul %20, %22, %cst_27 {dimension_numbers = #tpu.dot_dimension_numbers<[1], [0], [0], [1], [0, 0, 1, 1], [], []>} : vector<8x4xbf16>, vector<4x128xbf16>, vector<8x128xf32> -> vector<8x128xf32>
    %24 = arith.addf %18, %23 : vector<8x128xf32>
    %c0_28 = arith.constant 0 : index
    %c0_29 = arith.constant 0 : index
    %c4 = arith.constant 4 : index
    %c0_30 = arith.constant 0 : index
    %25 = vector.load %arg3[%c0_28, %c0_29, %c4, %c0_30] : memref<1x1x14x4xbf16, #tpu.memory_space<vmem>>, vector<1x1x8x4xbf16>
    %26 = vector.shape_cast %25 : vector<1x1x8x4xbf16> to vector<8x4xbf16>
    %c4_31 = arith.constant 4 : index
    %c0_32 = arith.constant 0 : index
    %c0_33 = arith.constant 0 : index
    %27 = vector.load %arg4[%c4_31, %c0_32, %c0_33] : memref<7x4x128xbf16, #tpu.memory_space<vmem>>, vector<1x4x128xbf16>
    %28 = vector.shape_cast %27 : vector<1x4x128xbf16> to vector<4x128xbf16>
    %cst_34 = arith.constant dense<0.000000e+00> : vector<8x128xf32>
    %29 = tpu.matmul %26, %28, %cst_34 {dimension_numbers = #tpu.dot_dimension_numbers<[1], [0], [0], [1], [0, 0, 1, 1], [], []>} : vector<8x4xbf16>, vector<4x128xbf16>, vector<8x128xf32> -> vector<8x128xf32>
    %30 = arith.addf %24, %29 : vector<8x128xf32>
    %c0_35 = arith.constant 0 : index
    %c0_36 = arith.constant 0 : index
    %c5 = arith.constant 5 : index
    %c0_37 = arith.constant 0 : index
    %31 = vector.load %arg3[%c0_35, %c0_36, %c5, %c0_37] : memref<1x1x14x4xbf16, #tpu.memory_space<vmem>>, vector<1x1x8x4xbf16>
    %32 = vector.shape_cast %31 : vector<1x1x8x4xbf16> to vector<8x4xbf16>
    %c5_38 = arith.constant 5 : index
    %c0_39 = arith.constant 0 : index
    %c0_40 = arith.constant 0 : index
    %33 = vector.load %arg4[%c5_38, %c0_39, %c0_40] : memref<7x4x128xbf16, #tpu.memory_space<vmem>>, vector<1x4x128xbf16>
    %34 = vector.shape_cast %33 : vector<1x4x128xbf16> to vector<4x128xbf16>
    %cst_41 = arith.constant dense<0.000000e+00> : vector<8x128xf32>
    %35 = tpu.matmul %32, %34, %cst_41 {dimension_numbers = #tpu.dot_dimension_numbers<[1], [0], [0], [1], [0, 0, 1, 1], [], []>} : vector<8x4xbf16>, vector<4x128xbf16>, vector<8x128xf32> -> vector<8x128xf32>
    %36 = arith.addf %30, %35 : vector<8x128xf32>
    %c0_42 = arith.constant 0 : index
    %c0_43 = arith.constant 0 : index
    %c6 = arith.constant 6 : index
    %c0_44 = arith.constant 0 : index
    %37 = vector.load %arg3[%c0_42, %c0_43, %c6, %c0_44] : memref<1x1x14x4xbf16, #tpu.memory_space<vmem>>, vector<1x1x8x4xbf16>
    %38 = vector.shape_cast %37 : vector<1x1x8x4xbf16> to vector<8x4xbf16>
    %c6_45 = arith.constant 6 : index
    %c0_46 = arith.constant 0 : index
    %c0_47 = arith.constant 0 : index
    %39 = vector.load %arg4[%c6_45, %c0_46, %c0_47] : memref<7x4x128xbf16, #tpu.memory_space<vmem>>, vector<1x4x128xbf16>
    %40 = vector.shape_cast %39 : vector<1x4x128xbf16> to vector<4x128xbf16>
    %cst_48 = arith.constant dense<0.000000e+00> : vector<8x128xf32>
    %41 = tpu.matmul %38, %40, %cst_48 {dimension_numbers = #tpu.dot_dimension_numbers<[1], [0], [0], [1], [0, 0, 1, 1], [], []>} : vector<8x4xbf16>, vector<4x128xbf16>, vector<8x128xf32> -> vector<8x128xf32>
    %42 = arith.addf %36, %41 : vector<8x128xf32>
    %c0_49 = arith.constant 0 : index
    %c0_50 = arith.constant 0 : index
    %43 = vector.load %arg5[%c0_49, %c0_50] : memref<1x128xf32, #tpu.memory_space<vmem>>, vector<1x128xf32>
    %44 = vector.broadcast %43 : vector<1x128xf32> to vector<8x128xf32>
    %45 = arith.addf %42, %44 : vector<8x128xf32>
    %c0_51 = arith.constant 0 : index
    %c0_52 = arith.constant 0 : index
    %c0_53 = arith.constant 0 : index
    %46 = vector.load %arg6[%c0_51, %c0_52, %c0_53] : memref<1x8x128xf32, #tpu.memory_space<vmem>>, vector<1x8x128xf32>
    %47 = vector.shape_cast %46 : vector<1x8x128xf32> to vector<8x128xf32>
    %48 = vector.shape_cast %45 : vector<8x128xf32> to vector<1x8x128xf32>
    tpu.vector_store %arg6[%c0_51, %c0_52, %c0_53], %48 {strides = array<i32>} : memref<1x8x128xf32, #tpu.memory_space<vmem>>, vector<1x8x128xf32>,
    return
  }
  func.func @transform_0(%arg0: i32, %arg1: i32, %arg2: i32) -> (i32, i32, i32, i32) {
    %c0_i32 = arith.constant 0 : i32
    %c0_i32_0 = arith.constant 0 : i32
    %c0_i32_1 = arith.constant 0 : i32
    return %arg0, %arg1, %c0_i32, %c0_i32_0 : i32, i32, i32, i32
  }
  func.func @transform_1(%arg0: i32, %arg1: i32, %arg2: i32) -> (i32, i32, i32) {
    %c0_i32 = arith.constant 0 : i32
    %c0_i32_0 = arith.constant 0 : i32
    %c0_i32_1 = arith.constant 0 : i32
    return %c0_i32, %c0_i32_0, %arg2 : i32, i32, i32
  }
  func.func @transform_2(%arg0: i32, %arg1: i32, %arg2: i32) -> (i32, i32) {
    %c0_i32 = arith.constant 0 : i32
    %c0_i32_0 = arith.constant 0 : i32
    return %c0_i32, %arg2 : i32, i32
  }
  func.func @transform_3(%arg0: i32, %arg1: i32, %arg2: i32) -> (i32, i32, i32) {
    %c0_i32 = arith.constant 0 : i32
    return %arg0, %arg1, %arg2 : i32, i32, i32
  }
}

module attributes {stable_mosaic.version = 11 : i64} {
  func.func @_conv_tap_kernel(%arg0: i32, %arg1: i32, %arg2: i32, %arg3: memref<1x1x10x16xbf16, #tpu.memory_space<vmem>>, %arg4: memref<3x16x128xbf16, #tpu.memory_space<vmem>>, %arg5: memref<1x128xf32, #tpu.memory_space<vmem>>, %arg6: memref<1x8x128xf32, #tpu.memory_space<vmem>>) attributes {dimension_semantics = [#tpu.dimension_semantics<parallel>, #tpu.dimension_semantics<parallel>, #tpu.dimension_semantics<parallel>], iteration_bounds = array<i64: 2, 1, 1>, scalar_prefetch = 0 : i64, scratch_operands = 0 : i64, tpu.core_type = #tpu.core_type<tc>, window_params = [{transform_indices = @transform_0, window_bounds = array<i64: 1, 1, 10, 16>}, {transform_indices = @transform_1, window_bounds = array<i64: 3, 16, 128>}, {transform_indices = @transform_2, window_bounds = array<i64: 1, 128>}, {transform_indices = @transform_3, window_bounds = array<i64: 1, 8, 128>}]} {
    %cst = arith.constant 0.000000e+00 : f32
    %0 = vector.broadcast %cst : f32 to vector<8x128xf32>
    %c0 = arith.constant 0 : index
    %c0_0 = arith.constant 0 : index
    %c0_1 = arith.constant 0 : index
    %c0_2 = arith.constant 0 : index
    %1 = vector.load %arg3[%c0, %c0_0, %c0_1, %c0_2] : memref<1x1x10x16xbf16, #tpu.memory_space<vmem>>, vector<1x1x8x16xbf16>
    %2 = vector.shape_cast %1 : vector<1x1x8x16xbf16> to vector<8x16xbf16>
    %c0_3 = arith.constant 0 : index
    %c0_4 = arith.constant 0 : index
    %c0_5 = arith.constant 0 : index
    %3 = vector.load %arg4[%c0_3, %c0_4, %c0_5] : memref<3x16x128xbf16, #tpu.memory_space<vmem>>, vector<1x16x128xbf16>
    %4 = vector.shape_cast %3 : vector<1x16x128xbf16> to vector<16x128xbf16>
    %cst_6 = arith.constant dense<0.000000e+00> : vector<8x128xf32>
    %5 = tpu.matmul %2, %4, %cst_6 {dimension_numbers = #tpu.dot_dimension_numbers<[1], [0], [0], [1], [0, 0, 1, 1], [], []>} : vector<8x16xbf16>, vector<16x128xbf16>, vector<8x128xf32> -> vector<8x128xf32>
    %6 = arith.addf %0, %5 : vector<8x128xf32>
    %c0_7 = arith.constant 0 : index
    %c0_8 = arith.constant 0 : index
    %c1 = arith.constant 1 : index
    %c0_9 = arith.constant 0 : index
    %7 = vector.load %arg3[%c0_7, %c0_8, %c1, %c0_9] : memref<1x1x10x16xbf16, #tpu.memory_space<vmem>>, vector<1x1x8x16xbf16>
    %8 = vector.shape_cast %7 : vector<1x1x8x16xbf16> to vector<8x16xbf16>
    %c1_10 = arith.constant 1 : index
    %c0_11 = arith.constant 0 : index
    %c0_12 = arith.constant 0 : index
    %9 = vector.load %arg4[%c1_10, %c0_11, %c0_12] : memref<3x16x128xbf16, #tpu.memory_space<vmem>>, vector<1x16x128xbf16>
    %10 = vector.shape_cast %9 : vector<1x16x128xbf16> to vector<16x128xbf16>
    %cst_13 = arith.constant dense<0.000000e+00> : vector<8x128xf32>
    %11 = tpu.matmul %8, %10, %cst_13 {dimension_numbers = #tpu.dot_dimension_numbers<[1], [0], [0], [1], [0, 0, 1, 1], [], []>} : vector<8x16xbf16>, vector<16x128xbf16>, vector<8x128xf32> -> vector<8x128xf32>
    %12 = arith.addf %6, %11 : vector<8x128xf32>
    %c0_14 = arith.constant 0 : index
    %c0_15 = arith.constant 0 : index
    %c2 = arith.constant 2 : index
    %c0_16 = arith.constant 0 : index
    %13 = vector.load %arg3[%c0_14, %c0_15, %c2, %c0_16] : memref<1x1x10x16xbf16, #tpu.memory_space<vmem>>, vector<1x1x8x16xbf16>
    %14 = vector.shape_cast %13 : vector<1x1x8x16xbf16> to vector<8x16xbf16>
    %c2_17 = arith.constant 2 : index
    %c0_18 = arith.constant 0 : index
    %c0_19 = arith.constant 0 : index
    %15 = vector.load %arg4[%c2_17, %c0_18, %c0_19] : memref<3x16x128xbf16, #tpu.memory_space<vmem>>, vector<1x16x128xbf16>
    %16 = vector.shape_cast %15 : vector<1x16x128xbf16> to vector<16x128xbf16>
    %cst_20 = arith.constant dense<0.000000e+00> : vector<8x128xf32>
    %17 = tpu.matmul %14, %16, %cst_20 {dimension_numbers = #tpu.dot_dimension_numbers<[1], [0], [0], [1], [0, 0, 1, 1], [], []>} : vector<8x16xbf16>, vector<16x128xbf16>, vector<8x128xf32> -> vector<8x128xf32>
    %18 = arith.addf %12, %17 : vector<8x128xf32>
    %c0_21 = arith.constant 0 : index
    %c0_22 = arith.constant 0 : index
    %19 = vector.load %arg5[%c0_21, %c0_22] : memref<1x128xf32, #tpu.memory_space<vmem>>, vector<1x128xf32>
    %20 = vector.broadcast %19 : vector<1x128xf32> to vector<8x128xf32>
    %21 = arith.addf %18, %20 : vector<8x128xf32>
    %c0_23 = arith.constant 0 : index
    %c0_24 = arith.constant 0 : index
    %c0_25 = arith.constant 0 : index
    %22 = vector.load %arg6[%c0_23, %c0_24, %c0_25] : memref<1x8x128xf32, #tpu.memory_space<vmem>>, vector<1x8x128xf32>
    %23 = vector.shape_cast %22 : vector<1x8x128xf32> to vector<8x128xf32>
    %24 = vector.shape_cast %21 : vector<8x128xf32> to vector<1x8x128xf32>
    tpu.vector_store %arg6[%c0_23, %c0_24, %c0_25], %24 {strides = array<i32>} : memref<1x8x128xf32, #tpu.memory_space<vmem>>, vector<1x8x128xf32>,
    return
  }
  func.func @transform_0(%arg0: i32, %arg1: i32, %arg2: i32) -> (i32, i32, i32, i32) {
    %c0_i32 = arith.constant 0 : i32
    %c0_i32_0 = arith.constant 0 : i32
    %c0_i32_1 = arith.constant 0 : i32
    return %arg0, %arg1, %c0_i32, %c0_i32_0 : i32, i32, i32, i32
  }
  func.func @transform_1(%arg0: i32, %arg1: i32, %arg2: i32) -> (i32, i32, i32) {
    %c0_i32 = arith.constant 0 : i32
    %c0_i32_0 = arith.constant 0 : i32
    %c0_i32_1 = arith.constant 0 : i32
    return %c0_i32, %c0_i32_0, %arg2 : i32, i32, i32
  }
  func.func @transform_2(%arg0: i32, %arg1: i32, %arg2: i32) -> (i32, i32) {
    %c0_i32 = arith.constant 0 : i32
    %c0_i32_0 = arith.constant 0 : i32
    return %c0_i32, %arg2 : i32, i32
  }
  func.func @transform_3(%arg0: i32, %arg1: i32, %arg2: i32) -> (i32, i32, i32) {
    %c0_i32 = arith.constant 0 : i32
    return %arg0, %arg1, %arg2 : i32, i32, i32
  }
}

module attributes {stable_mosaic.version = 11 : i64} {
  func.func @_conv_tap_kernel(%arg0: i32, %arg1: i32, %arg2: i32, %arg3: memref<1x1x10x8xbf16, #tpu.memory_space<vmem>>, %arg4: memref<3x8x128xbf16, #tpu.memory_space<vmem>>, %arg5: memref<1x128xf32, #tpu.memory_space<vmem>>, %arg6: memref<1x8x128xbf16, #tpu.memory_space<vmem>>) attributes {dimension_semantics = [#tpu.dimension_semantics<parallel>, #tpu.dimension_semantics<parallel>, #tpu.dimension_semantics<parallel>], iteration_bounds = array<i64: 2, 1, 1>, scalar_prefetch = 0 : i64, scratch_operands = 0 : i64, tpu.core_type = #tpu.core_type<tc>, window_params = [{transform_indices = @transform_0, window_bounds = array<i64: 1, 1, 10, 8>}, {transform_indices = @transform_1, window_bounds = array<i64: 3, 8, 128>}, {transform_indices = @transform_2, window_bounds = array<i64: 1, 128>}, {transform_indices = @transform_3, window_bounds = array<i64: 1, 8, 128>}]} {
    %cst = arith.constant 0.000000e+00 : f32
    %0 = vector.broadcast %cst : f32 to vector<8x128xf32>
    %c0 = arith.constant 0 : index
    %c0_0 = arith.constant 0 : index
    %c0_1 = arith.constant 0 : index
    %c0_2 = arith.constant 0 : index
    %1 = vector.load %arg3[%c0, %c0_0, %c0_1, %c0_2] : memref<1x1x10x8xbf16, #tpu.memory_space<vmem>>, vector<1x1x8x8xbf16>
    %2 = vector.shape_cast %1 : vector<1x1x8x8xbf16> to vector<8x8xbf16>
    %c0_3 = arith.constant 0 : index
    %c0_4 = arith.constant 0 : index
    %c0_5 = arith.constant 0 : index
    %3 = vector.load %arg4[%c0_3, %c0_4, %c0_5] : memref<3x8x128xbf16, #tpu.memory_space<vmem>>, vector<1x8x128xbf16>
    %4 = vector.shape_cast %3 : vector<1x8x128xbf16> to vector<8x128xbf16>
    %cst_6 = arith.constant dense<0.000000e+00> : vector<8x128xf32>
    %5 = tpu.matmul %2, %4, %cst_6 {dimension_numbers = #tpu.dot_dimension_numbers<[1], [0], [0], [1], [0, 0, 1, 1], [], []>} : vector<8x8xbf16>, vector<8x128xbf16>, vector<8x128xf32> -> vector<8x128xf32>
    %6 = arith.addf %0, %5 : vector<8x128xf32>
    %c0_7 = arith.constant 0 : index
    %c0_8 = arith.constant 0 : index
    %c1 = arith.constant 1 : index
    %c0_9 = arith.constant 0 : index
    %7 = vector.load %arg3[%c0_7, %c0_8, %c1, %c0_9] : memref<1x1x10x8xbf16, #tpu.memory_space<vmem>>, vector<1x1x8x8xbf16>
    %8 = vector.shape_cast %7 : vector<1x1x8x8xbf16> to vector<8x8xbf16>
    %c1_10 = arith.constant 1 : index
    %c0_11 = arith.constant 0 : index
    %c0_12 = arith.constant 0 : index
    %9 = vector.load %arg4[%c1_10, %c0_11, %c0_12] : memref<3x8x128xbf16, #tpu.memory_space<vmem>>, vector<1x8x128xbf16>
    %10 = vector.shape_cast %9 : vector<1x8x128xbf16> to vector<8x128xbf16>
    %cst_13 = arith.constant dense<0.000000e+00> : vector<8x128xf32>
    %11 = tpu.matmul %8, %10, %cst_13 {dimension_numbers = #tpu.dot_dimension_numbers<[1], [0], [0], [1], [0, 0, 1, 1], [], []>} : vector<8x8xbf16>, vector<8x128xbf16>, vector<8x128xf32> -> vector<8x128xf32>
    %12 = arith.addf %6, %11 : vector<8x128xf32>
    %c0_14 = arith.constant 0 : index
    %c0_15 = arith.constant 0 : index
    %c2 = arith.constant 2 : index
    %c0_16 = arith.constant 0 : index
    %13 = vector.load %arg3[%c0_14, %c0_15, %c2, %c0_16] : memref<1x1x10x8xbf16, #tpu.memory_space<vmem>>, vector<1x1x8x8xbf16>
    %14 = vector.shape_cast %13 : vector<1x1x8x8xbf16> to vector<8x8xbf16>
    %c2_17 = arith.constant 2 : index
    %c0_18 = arith.constant 0 : index
    %c0_19 = arith.constant 0 : index
    %15 = vector.load %arg4[%c2_17, %c0_18, %c0_19] : memref<3x8x128xbf16, #tpu.memory_space<vmem>>, vector<1x8x128xbf16>
    %16 = vector.shape_cast %15 : vector<1x8x128xbf16> to vector<8x128xbf16>
    %cst_20 = arith.constant dense<0.000000e+00> : vector<8x128xf32>
    %17 = tpu.matmul %14, %16, %cst_20 {dimension_numbers = #tpu.dot_dimension_numbers<[1], [0], [0], [1], [0, 0, 1, 1], [], []>} : vector<8x8xbf16>, vector<8x128xbf16>, vector<8x128xf32> -> vector<8x128xf32>
    %18 = arith.addf %12, %17 : vector<8x128xf32>
    %c0_21 = arith.constant 0 : index
    %c0_22 = arith.constant 0 : index
    %19 = vector.load %arg5[%c0_21, %c0_22] : memref<1x128xf32, #tpu.memory_space<vmem>>, vector<1x128xf32>
    %20 = vector.broadcast %19 : vector<1x128xf32> to vector<8x128xf32>
    %21 = arith.addf %18, %20 : vector<8x128xf32>
    %22 = arith.truncf %21 : vector<8x128xf32> to vector<8x128xbf16>
    %c0_23 = arith.constant 0 : index
    %c0_24 = arith.constant 0 : index
    %c0_25 = arith.constant 0 : index
    %23 = vector.load %arg6[%c0_23, %c0_24, %c0_25] : memref<1x8x128xbf16, #tpu.memory_space<vmem>>, vector<1x8x128xbf16>
    %24 = vector.shape_cast %23 : vector<1x8x128xbf16> to vector<8x128xbf16>
    %25 = vector.shape_cast %22 : vector<8x128xbf16> to vector<1x8x128xbf16>
    tpu.vector_store %arg6[%c0_23, %c0_24, %c0_25], %25 {strides = array<i32>} : memref<1x8x128xbf16, #tpu.memory_space<vmem>>, vector<1x8x128xbf16>,
    return
  }
  func.func @transform_0(%arg0: i32, %arg1: i32, %arg2: i32) -> (i32, i32, i32, i32) {
    %c0_i32 = arith.constant 0 : i32
    %c0_i32_0 = arith.constant 0 : i32
    %c0_i32_1 = arith.constant 0 : i32
    return %arg0, %arg1, %c0_i32, %c0_i32_0 : i32, i32, i32, i32
  }
  func.func @transform_1(%arg0: i32, %arg1: i32, %arg2: i32) -> (i32, i32, i32) {
    %c0_i32 = arith.constant 0 : i32
    %c0_i32_0 = arith.constant 0 : i32
    %c0_i32_1 = arith.constant 0 : i32
    return %c0_i32, %c0_i32_0, %arg2 : i32, i32, i32
  }
  func.func @transform_2(%arg0: i32, %arg1: i32, %arg2: i32) -> (i32, i32) {
    %c0_i32 = arith.constant 0 : i32
    %c0_i32_0 = arith.constant 0 : i32
    return %c0_i32, %arg2 : i32, i32
  }
  func.func @transform_3(%arg0: i32, %arg1: i32, %arg2: i32) -> (i32, i32, i32) {
    %c0_i32 = arith.constant 0 : i32
    return %arg0, %arg1, %arg2 : i32, i32, i32
  }
}

module attributes {stable_mosaic.version = 11 : i64} {
  func.func @_conv_tap_kernel(%arg0: i32, %arg1: i32, %arg2: i32, %arg3: memref<1x1x14x8xbf16, #tpu.memory_space<vmem>>, %arg4: memref<3x8x128xbf16, #tpu.memory_space<vmem>>, %arg5: memref<1x128xf32, #tpu.memory_space<vmem>>, %arg6: memref<1x8x128xbf16, #tpu.memory_space<vmem>>) attributes {dimension_semantics = [#tpu.dimension_semantics<parallel>, #tpu.dimension_semantics<parallel>, #tpu.dimension_semantics<parallel>], iteration_bounds = array<i64: 2, 1, 1>, scalar_prefetch = 0 : i64, scratch_operands = 0 : i64, tpu.core_type = #tpu.core_type<tc>, window_params = [{transform_indices = @transform_0, window_bounds = array<i64: 1, 1, 14, 8>}, {transform_indices = @transform_1, window_bounds = array<i64: 3, 8, 128>}, {transform_indices = @transform_2, window_bounds = array<i64: 1, 128>}, {transform_indices = @transform_3, window_bounds = array<i64: 1, 8, 128>}]} {
    %cst = arith.constant 0.000000e+00 : f32
    %0 = vector.broadcast %cst : f32 to vector<8x128xf32>
    %c0 = arith.constant 0 : index
    %c0_0 = arith.constant 0 : index
    %c0_1 = arith.constant 0 : index
    %c0_2 = arith.constant 0 : index
    %1 = vector.load %arg3[%c0, %c0_0, %c0_1, %c0_2] : memref<1x1x14x8xbf16, #tpu.memory_space<vmem>>, vector<1x1x8x8xbf16>
    %2 = vector.shape_cast %1 : vector<1x1x8x8xbf16> to vector<8x8xbf16>
    %c0_3 = arith.constant 0 : index
    %c0_4 = arith.constant 0 : index
    %c0_5 = arith.constant 0 : index
    %3 = vector.load %arg4[%c0_3, %c0_4, %c0_5] : memref<3x8x128xbf16, #tpu.memory_space<vmem>>, vector<1x8x128xbf16>
    %4 = vector.shape_cast %3 : vector<1x8x128xbf16> to vector<8x128xbf16>
    %cst_6 = arith.constant dense<0.000000e+00> : vector<8x128xf32>
    %5 = tpu.matmul %2, %4, %cst_6 {dimension_numbers = #tpu.dot_dimension_numbers<[1], [0], [0], [1], [0, 0, 1, 1], [], []>} : vector<8x8xbf16>, vector<8x128xbf16>, vector<8x128xf32> -> vector<8x128xf32>
    %6 = arith.addf %0, %5 : vector<8x128xf32>
    %c0_7 = arith.constant 0 : index
    %c0_8 = arith.constant 0 : index
    %c3 = arith.constant 3 : index
    %c0_9 = arith.constant 0 : index
    %7 = vector.load %arg3[%c0_7, %c0_8, %c3, %c0_9] : memref<1x1x14x8xbf16, #tpu.memory_space<vmem>>, vector<1x1x8x8xbf16>
    %8 = vector.shape_cast %7 : vector<1x1x8x8xbf16> to vector<8x8xbf16>
    %c1 = arith.constant 1 : index
    %c0_10 = arith.constant 0 : index
    %c0_11 = arith.constant 0 : index
    %9 = vector.load %arg4[%c1, %c0_10, %c0_11] : memref<3x8x128xbf16, #tpu.memory_space<vmem>>, vector<1x8x128xbf16>
    %10 = vector.shape_cast %9 : vector<1x8x128xbf16> to vector<8x128xbf16>
    %cst_12 = arith.constant dense<0.000000e+00> : vector<8x128xf32>
    %11 = tpu.matmul %8, %10, %cst_12 {dimension_numbers = #tpu.dot_dimension_numbers<[1], [0], [0], [1], [0, 0, 1, 1], [], []>} : vector<8x8xbf16>, vector<8x128xbf16>, vector<8x128xf32> -> vector<8x128xf32>
    %12 = arith.addf %6, %11 : vector<8x128xf32>
    %c0_13 = arith.constant 0 : index
    %c0_14 = arith.constant 0 : index
    %c6 = arith.constant 6 : index
    %c0_15 = arith.constant 0 : index
    %13 = vector.load %arg3[%c0_13, %c0_14, %c6, %c0_15] : memref<1x1x14x8xbf16, #tpu.memory_space<vmem>>, vector<1x1x8x8xbf16>
    %14 = vector.shape_cast %13 : vector<1x1x8x8xbf16> to vector<8x8xbf16>
    %c2 = arith.constant 2 : index
    %c0_16 = arith.constant 0 : index
    %c0_17 = arith.constant 0 : index
    %15 = vector.load %arg4[%c2, %c0_16, %c0_17] : memref<3x8x128xbf16, #tpu.memory_space<vmem>>, vector<1x8x128xbf16>
    %16 = vector.shape_cast %15 : vector<1x8x128xbf16> to vector<8x128xbf16>
    %cst_18 = arith.constant dense<0.000000e+00> : vector<8x128xf32>
    %17 = tpu.matmul %14, %16, %cst_18 {dimension_numbers = #tpu.dot_dimension_numbers<[1], [0], [0], [1], [0, 0, 1, 1], [], []>} : vector<8x8xbf16>, vector<8x128xbf16>, vector<8x128xf32> -> vector<8x128xf32>
    %18 = arith.addf %12, %17 : vector<8x128xf32>
    %c0_19 = arith.constant 0 : index
    %c0_20 = arith.constant 0 : index
    %19 = vector.load %arg5[%c0_19, %c0_20] : memref<1x128xf32, #tpu.memory_space<vmem>>, vector<1x128xf32>
    %20 = vector.broadcast %19 : vector<1x128xf32> to vector<8x128xf32>
    %21 = arith.addf %18, %20 : vector<8x128xf32>
    %22 = arith.truncf %21 : vector<8x128xf32> to vector<8x128xbf16>
    %c0_21 = arith.constant 0 : index
    %c0_22 = arith.constant 0 : index
    %c0_23 = arith.constant 0 : index
    %23 = vector.load %arg6[%c0_21, %c0_22, %c0_23] : memref<1x8x128xbf16, #tpu.memory_space<vmem>>, vector<1x8x128xbf16>
    %24 = vector.shape_cast %23 : vector<1x8x128xbf16> to vector<8x128xbf16>
    %25 = vector.shape_cast %22 : vector<8x128xbf16> to vector<1x8x128xbf16>
    tpu.vector_store %arg6[%c0_21, %c0_22, %c0_23], %25 {strides = array<i32>} : memref<1x8x128xbf16, #tpu.memory_space<vmem>>, vector<1x8x128xbf16>,
    return
  }
  func.func @transform_0(%arg0: i32, %arg1: i32, %arg2: i32) -> (i32, i32, i32, i32) {
    %c0_i32 = arith.constant 0 : i32
    %c0_i32_0 = arith.constant 0 : i32
    %c0_i32_1 = arith.constant 0 : i32
    return %arg0, %arg1, %c0_i32, %c0_i32_0 : i32, i32, i32, i32
  }
  func.func @transform_1(%arg0: i32, %arg1: i32, %arg2: i32) -> (i32, i32, i32) {
    %c0_i32 = arith.constant 0 : i32
    %c0_i32_0 = arith.constant 0 : i32
    %c0_i32_1 = arith.constant 0 : i32
    return %c0_i32, %c0_i32_0, %arg2 : i32, i32, i32
  }
  func.func @transform_2(%arg0: i32, %arg1: i32, %arg2: i32) -> (i32, i32) {
    %c0_i32 = arith.constant 0 : i32
    %c0_i32_0 = arith.constant 0 : i32
    return %c0_i32, %arg2 : i32, i32
  }
  func.func @transform_3(%arg0: i32, %arg1: i32, %arg2: i32) -> (i32, i32, i32) {
    %c0_i32 = arith.constant 0 : i32
    return %arg0, %arg1, %arg2 : i32, i32, i32
  }
}

module attributes {stable_mosaic.version = 11 : i64} {
  func.func @_conv_tap_kernel(%arg0: i32, %arg1: i32, %arg2: i32, %arg3: memref<1x1x10x8xbf16, #tpu.memory_space<vmem>>, %arg4: memref<3x8x128xbf16, #tpu.memory_space<vmem>>, %arg5: memref<1x128xf32, #tpu.memory_space<vmem>>, %arg6: memref<1x8x128xf32, #tpu.memory_space<vmem>>) attributes {dimension_semantics = [#tpu.dimension_semantics<parallel>, #tpu.dimension_semantics<parallel>, #tpu.dimension_semantics<parallel>], iteration_bounds = array<i64: 2, 1, 1>, scalar_prefetch = 0 : i64, scratch_operands = 0 : i64, tpu.core_type = #tpu.core_type<tc>, window_params = [{transform_indices = @transform_0, window_bounds = array<i64: 1, 1, 10, 8>}, {transform_indices = @transform_1, window_bounds = array<i64: 3, 8, 128>}, {transform_indices = @transform_2, window_bounds = array<i64: 1, 128>}, {transform_indices = @transform_3, window_bounds = array<i64: 1, 8, 128>}]} {
    %cst = arith.constant 0.000000e+00 : f32
    %0 = vector.broadcast %cst : f32 to vector<8x128xf32>
    %c0 = arith.constant 0 : index
    %c0_0 = arith.constant 0 : index
    %c0_1 = arith.constant 0 : index
    %c0_2 = arith.constant 0 : index
    %1 = vector.load %arg3[%c0, %c0_0, %c0_1, %c0_2] : memref<1x1x10x8xbf16, #tpu.memory_space<vmem>>, vector<1x1x8x8xbf16>
    %2 = vector.shape_cast %1 : vector<1x1x8x8xbf16> to vector<8x8xbf16>
    %c0_3 = arith.constant 0 : index
    %c0_4 = arith.constant 0 : index
    %c0_5 = arith.constant 0 : index
    %3 = vector.load %arg4[%c0_3, %c0_4, %c0_5] : memref<3x8x128xbf16, #tpu.memory_space<vmem>>, vector<1x8x128xbf16>
    %4 = vector.shape_cast %3 : vector<1x8x128xbf16> to vector<8x128xbf16>
    %cst_6 = arith.constant dense<0.000000e+00> : vector<8x128xf32>
    %5 = tpu.matmul %2, %4, %cst_6 {dimension_numbers = #tpu.dot_dimension_numbers<[1], [0], [0], [1], [0, 0, 1, 1], [], []>} : vector<8x8xbf16>, vector<8x128xbf16>, vector<8x128xf32> -> vector<8x128xf32>
    %6 = arith.addf %0, %5 : vector<8x128xf32>
    %c0_7 = arith.constant 0 : index
    %c0_8 = arith.constant 0 : index
    %c1 = arith.constant 1 : index
    %c0_9 = arith.constant 0 : index
    %7 = vector.load %arg3[%c0_7, %c0_8, %c1, %c0_9] : memref<1x1x10x8xbf16, #tpu.memory_space<vmem>>, vector<1x1x8x8xbf16>
    %8 = vector.shape_cast %7 : vector<1x1x8x8xbf16> to vector<8x8xbf16>
    %c1_10 = arith.constant 1 : index
    %c0_11 = arith.constant 0 : index
    %c0_12 = arith.constant 0 : index
    %9 = vector.load %arg4[%c1_10, %c0_11, %c0_12] : memref<3x8x128xbf16, #tpu.memory_space<vmem>>, vector<1x8x128xbf16>
    %10 = vector.shape_cast %9 : vector<1x8x128xbf16> to vector<8x128xbf16>
    %cst_13 = arith.constant dense<0.000000e+00> : vector<8x128xf32>
    %11 = tpu.matmul %8, %10, %cst_13 {dimension_numbers = #tpu.dot_dimension_numbers<[1], [0], [0], [1], [0, 0, 1, 1], [], []>} : vector<8x8xbf16>, vector<8x128xbf16>, vector<8x128xf32> -> vector<8x128xf32>
    %12 = arith.addf %6, %11 : vector<8x128xf32>
    %c0_14 = arith.constant 0 : index
    %c0_15 = arith.constant 0 : index
    %c2 = arith.constant 2 : index
    %c0_16 = arith.constant 0 : index
    %13 = vector.load %arg3[%c0_14, %c0_15, %c2, %c0_16] : memref<1x1x10x8xbf16, #tpu.memory_space<vmem>>, vector<1x1x8x8xbf16>
    %14 = vector.shape_cast %13 : vector<1x1x8x8xbf16> to vector<8x8xbf16>
    %c2_17 = arith.constant 2 : index
    %c0_18 = arith.constant 0 : index
    %c0_19 = arith.constant 0 : index
    %15 = vector.load %arg4[%c2_17, %c0_18, %c0_19] : memref<3x8x128xbf16, #tpu.memory_space<vmem>>, vector<1x8x128xbf16>
    %16 = vector.shape_cast %15 : vector<1x8x128xbf16> to vector<8x128xbf16>
    %cst_20 = arith.constant dense<0.000000e+00> : vector<8x128xf32>
    %17 = tpu.matmul %14, %16, %cst_20 {dimension_numbers = #tpu.dot_dimension_numbers<[1], [0], [0], [1], [0, 0, 1, 1], [], []>} : vector<8x8xbf16>, vector<8x128xbf16>, vector<8x128xf32> -> vector<8x128xf32>
    %18 = arith.addf %12, %17 : vector<8x128xf32>
    %c0_21 = arith.constant 0 : index
    %c0_22 = arith.constant 0 : index
    %19 = vector.load %arg5[%c0_21, %c0_22] : memref<1x128xf32, #tpu.memory_space<vmem>>, vector<1x128xf32>
    %20 = vector.broadcast %19 : vector<1x128xf32> to vector<8x128xf32>
    %21 = arith.addf %18, %20 : vector<8x128xf32>
    %c0_23 = arith.constant 0 : index
    %c0_24 = arith.constant 0 : index
    %c0_25 = arith.constant 0 : index
    %22 = vector.load %arg6[%c0_23, %c0_24, %c0_25] : memref<1x8x128xf32, #tpu.memory_space<vmem>>, vector<1x8x128xf32>
    %23 = vector.shape_cast %22 : vector<1x8x128xf32> to vector<8x128xf32>
    %24 = vector.shape_cast %21 : vector<8x128xf32> to vector<1x8x128xf32>
    tpu.vector_store %arg6[%c0_23, %c0_24, %c0_25], %24 {strides = array<i32>} : memref<1x8x128xf32, #tpu.memory_space<vmem>>, vector<1x8x128xf32>,
    return
  }
  func.func @transform_0(%arg0: i32, %arg1: i32, %arg2: i32) -> (i32, i32, i32, i32) {
    %c0_i32 = arith.constant 0 : i32
    %c0_i32_0 = arith.constant 0 : i32
    %c0_i32_1 = arith.constant 0 : i32
    return %arg0, %arg1, %c0_i32, %c0_i32_0 : i32, i32, i32, i32
  }
  func.func @transform_1(%arg0: i32, %arg1: i32, %arg2: i32) -> (i32, i32, i32) {
    %c0_i32 = arith.constant 0 : i32
    %c0_i32_0 = arith.constant 0 : i32
    %c0_i32_1 = arith.constant 0 : i32
    return %c0_i32, %c0_i32_0, %arg2 : i32, i32, i32
  }
  func.func @transform_2(%arg0: i32, %arg1: i32, %arg2: i32) -> (i32, i32) {
    %c0_i32 = arith.constant 0 : i32
    %c0_i32_0 = arith.constant 0 : i32
    return %c0_i32, %arg2 : i32, i32
  }
  func.func @transform_3(%arg0: i32, %arg1: i32, %arg2: i32) -> (i32, i32, i32) {
    %c0_i32 = arith.constant 0 : i32
    return %arg0, %arg1, %arg2 : i32, i32, i32
  }
}

module attributes {stable_mosaic.version = 11 : i64} {
  func.func @_conv_tap_kernel(%arg0: i32, %arg1: i32, %arg2: i32, %arg3: memref<1x1x18x8xbf16, #tpu.memory_space<vmem>>, %arg4: memref<3x8x128xbf16, #tpu.memory_space<vmem>>, %arg5: memref<1x128xf32, #tpu.memory_space<vmem>>, %arg6: memref<1x8x128xbf16, #tpu.memory_space<vmem>>) attributes {dimension_semantics = [#tpu.dimension_semantics<parallel>, #tpu.dimension_semantics<parallel>, #tpu.dimension_semantics<parallel>], iteration_bounds = array<i64: 2, 1, 1>, scalar_prefetch = 0 : i64, scratch_operands = 0 : i64, tpu.core_type = #tpu.core_type<tc>, window_params = [{transform_indices = @transform_0, window_bounds = array<i64: 1, 1, 18, 8>}, {transform_indices = @transform_1, window_bounds = array<i64: 3, 8, 128>}, {transform_indices = @transform_2, window_bounds = array<i64: 1, 128>}, {transform_indices = @transform_3, window_bounds = array<i64: 1, 8, 128>}]} {
    %cst = arith.constant 0.000000e+00 : f32
    %0 = vector.broadcast %cst : f32 to vector<8x128xf32>
    %c0 = arith.constant 0 : index
    %c0_0 = arith.constant 0 : index
    %c0_1 = arith.constant 0 : index
    %c0_2 = arith.constant 0 : index
    %1 = vector.load %arg3[%c0, %c0_0, %c0_1, %c0_2] : memref<1x1x18x8xbf16, #tpu.memory_space<vmem>>, vector<1x1x8x8xbf16>
    %2 = vector.shape_cast %1 : vector<1x1x8x8xbf16> to vector<8x8xbf16>
    %c0_3 = arith.constant 0 : index
    %c0_4 = arith.constant 0 : index
    %c0_5 = arith.constant 0 : index
    %3 = vector.load %arg4[%c0_3, %c0_4, %c0_5] : memref<3x8x128xbf16, #tpu.memory_space<vmem>>, vector<1x8x128xbf16>
    %4 = vector.shape_cast %3 : vector<1x8x128xbf16> to vector<8x128xbf16>
    %cst_6 = arith.constant dense<0.000000e+00> : vector<8x128xf32>
    %5 = tpu.matmul %2, %4, %cst_6 {dimension_numbers = #tpu.dot_dimension_numbers<[1], [0], [0], [1], [0, 0, 1, 1], [], []>} : vector<8x8xbf16>, vector<8x128xbf16>, vector<8x128xf32> -> vector<8x128xf32>
    %6 = arith.addf %0, %5 : vector<8x128xf32>
    %c0_7 = arith.constant 0 : index
    %c0_8 = arith.constant 0 : index
    %c5 = arith.constant 5 : index
    %c0_9 = arith.constant 0 : index
    %7 = vector.load %arg3[%c0_7, %c0_8, %c5, %c0_9] : memref<1x1x18x8xbf16, #tpu.memory_space<vmem>>, vector<1x1x8x8xbf16>
    %8 = vector.shape_cast %7 : vector<1x1x8x8xbf16> to vector<8x8xbf16>
    %c1 = arith.constant 1 : index
    %c0_10 = arith.constant 0 : index
    %c0_11 = arith.constant 0 : index
    %9 = vector.load %arg4[%c1, %c0_10, %c0_11] : memref<3x8x128xbf16, #tpu.memory_space<vmem>>, vector<1x8x128xbf16>
    %10 = vector.shape_cast %9 : vector<1x8x128xbf16> to vector<8x128xbf16>
    %cst_12 = arith.constant dense<0.000000e+00> : vector<8x128xf32>
    %11 = tpu.matmul %8, %10, %cst_12 {dimension_numbers = #tpu.dot_dimension_numbers<[1], [0], [0], [1], [0, 0, 1, 1], [], []>} : vector<8x8xbf16>, vector<8x128xbf16>, vector<8x128xf32> -> vector<8x128xf32>
    %12 = arith.addf %6, %11 : vector<8x128xf32>
    %c0_13 = arith.constant 0 : index
    %c0_14 = arith.constant 0 : index
    %c10 = arith.constant 10 : index
    %c0_15 = arith.constant 0 : index
    %13 = vector.load %arg3[%c0_13, %c0_14, %c10, %c0_15] : memref<1x1x18x8xbf16, #tpu.memory_space<vmem>>, vector<1x1x8x8xbf16>
    %14 = vector.shape_cast %13 : vector<1x1x8x8xbf16> to vector<8x8xbf16>
    %c2 = arith.constant 2 : index
    %c0_16 = arith.constant 0 : index
    %c0_17 = arith.constant 0 : index
    %15 = vector.load %arg4[%c2, %c0_16, %c0_17] : memref<3x8x128xbf16, #tpu.memory_space<vmem>>, vector<1x8x128xbf16>
    %16 = vector.shape_cast %15 : vector<1x8x128xbf16> to vector<8x128xbf16>
    %cst_18 = arith.constant dense<0.000000e+00> : vector<8x128xf32>
    %17 = tpu.matmul %14, %16, %cst_18 {dimension_numbers = #tpu.dot_dimension_numbers<[1], [0], [0], [1], [0, 0, 1, 1], [], []>} : vector<8x8xbf16>, vector<8x128xbf16>, vector<8x128xf32> -> vector<8x128xf32>
    %18 = arith.addf %12, %17 : vector<8x128xf32>
    %c0_19 = arith.constant 0 : index
    %c0_20 = arith.constant 0 : index
    %19 = vector.load %arg5[%c0_19, %c0_20] : memref<1x128xf32, #tpu.memory_space<vmem>>, vector<1x128xf32>
    %20 = vector.broadcast %19 : vector<1x128xf32> to vector<8x128xf32>
    %21 = arith.addf %18, %20 : vector<8x128xf32>
    %22 = arith.truncf %21 : vector<8x128xf32> to vector<8x128xbf16>
    %c0_21 = arith.constant 0 : index
    %c0_22 = arith.constant 0 : index
    %c0_23 = arith.constant 0 : index
    %23 = vector.load %arg6[%c0_21, %c0_22, %c0_23] : memref<1x8x128xbf16, #tpu.memory_space<vmem>>, vector<1x8x128xbf16>
    %24 = vector.shape_cast %23 : vector<1x8x128xbf16> to vector<8x128xbf16>
    %25 = vector.shape_cast %22 : vector<8x128xbf16> to vector<1x8x128xbf16>
    tpu.vector_store %arg6[%c0_21, %c0_22, %c0_23], %25 {strides = array<i32>} : memref<1x8x128xbf16, #tpu.memory_space<vmem>>, vector<1x8x128xbf16>,
    return
  }
  func.func @transform_0(%arg0: i32, %arg1: i32, %arg2: i32) -> (i32, i32, i32, i32) {
    %c0_i32 = arith.constant 0 : i32
    %c0_i32_0 = arith.constant 0 : i32
    %c0_i32_1 = arith.constant 0 : i32
    return %arg0, %arg1, %c0_i32, %c0_i32_0 : i32, i32, i32, i32
  }
  func.func @transform_1(%arg0: i32, %arg1: i32, %arg2: i32) -> (i32, i32, i32) {
    %c0_i32 = arith.constant 0 : i32
    %c0_i32_0 = arith.constant 0 : i32
    %c0_i32_1 = arith.constant 0 : i32
    return %c0_i32, %c0_i32_0, %arg2 : i32, i32, i32
  }
  func.func @transform_2(%arg0: i32, %arg1: i32, %arg2: i32) -> (i32, i32) {
    %c0_i32 = arith.constant 0 : i32
    %c0_i32_0 = arith.constant 0 : i32
    return %c0_i32, %arg2 : i32, i32
  }
  func.func @transform_3(%arg0: i32, %arg1: i32, %arg2: i32) -> (i32, i32, i32) {
    %c0_i32 = arith.constant 0 : i32
    return %arg0, %arg1, %arg2 : i32, i32, i32
  }
}

module attributes {stable_mosaic.version = 11 : i64} {
  func.func @_conv_tap_kernel(%arg0: i32, %arg1: i32, %arg2: i32, %arg3: memref<1x1x22x4xbf16, #tpu.memory_space<vmem>>, %arg4: memref<3x4x128xbf16, #tpu.memory_space<vmem>>, %arg5: memref<1x128xf32, #tpu.memory_space<vmem>>, %arg6: memref<1x16x128xbf16, #tpu.memory_space<vmem>>) attributes {dimension_semantics = [#tpu.dimension_semantics<parallel>, #tpu.dimension_semantics<parallel>, #tpu.dimension_semantics<parallel>], iteration_bounds = array<i64: 2, 1, 1>, scalar_prefetch = 0 : i64, scratch_operands = 0 : i64, tpu.core_type = #tpu.core_type<tc>, window_params = [{transform_indices = @transform_0, window_bounds = array<i64: 1, 1, 22, 4>}, {transform_indices = @transform_1, window_bounds = array<i64: 3, 4, 128>}, {transform_indices = @transform_2, window_bounds = array<i64: 1, 128>}, {transform_indices = @transform_3, window_bounds = array<i64: 1, 16, 128>}]} {
    %cst = arith.constant 0.000000e+00 : f32
    %0 = vector.broadcast %cst : f32 to vector<16x128xf32>
    %c0 = arith.constant 0 : index
    %c0_0 = arith.constant 0 : index
    %c0_1 = arith.constant 0 : index
    %c0_2 = arith.constant 0 : index
    %1 = vector.load %arg3[%c0, %c0_0, %c0_1, %c0_2] : memref<1x1x22x4xbf16, #tpu.memory_space<vmem>>, vector<1x1x16x4xbf16>
    %2 = vector.shape_cast %1 : vector<1x1x16x4xbf16> to vector<16x4xbf16>
    %c0_3 = arith.constant 0 : index
    %c0_4 = arith.constant 0 : index
    %c0_5 = arith.constant 0 : index
    %3 = vector.load %arg4[%c0_3, %c0_4, %c0_5] : memref<3x4x128xbf16, #tpu.memory_space<vmem>>, vector<1x4x128xbf16>
    %4 = vector.shape_cast %3 : vector<1x4x128xbf16> to vector<4x128xbf16>
    %cst_6 = arith.constant dense<0.000000e+00> : vector<16x128xf32>
    %5 = tpu.matmul %2, %4, %cst_6 {dimension_numbers = #tpu.dot_dimension_numbers<[1], [0], [0], [1], [0, 0, 1, 1], [], []>} : vector<16x4xbf16>, vector<4x128xbf16>, vector<16x128xf32> -> vector<16x128xf32>
    %6 = arith.addf %0, %5 : vector<16x128xf32>
    %c0_7 = arith.constant 0 : index
    %c0_8 = arith.constant 0 : index
    %c3 = arith.constant 3 : index
    %c0_9 = arith.constant 0 : index
    %7 = vector.load %arg3[%c0_7, %c0_8, %c3, %c0_9] : memref<1x1x22x4xbf16, #tpu.memory_space<vmem>>, vector<1x1x16x4xbf16>
    %8 = vector.shape_cast %7 : vector<1x1x16x4xbf16> to vector<16x4xbf16>
    %c1 = arith.constant 1 : index
    %c0_10 = arith.constant 0 : index
    %c0_11 = arith.constant 0 : index
    %9 = vector.load %arg4[%c1, %c0_10, %c0_11] : memref<3x4x128xbf16, #tpu.memory_space<vmem>>, vector<1x4x128xbf16>
    %10 = vector.shape_cast %9 : vector<1x4x128xbf16> to vector<4x128xbf16>
    %cst_12 = arith.constant dense<0.000000e+00> : vector<16x128xf32>
    %11 = tpu.matmul %8, %10, %cst_12 {dimension_numbers = #tpu.dot_dimension_numbers<[1], [0], [0], [1], [0, 0, 1, 1], [], []>} : vector<16x4xbf16>, vector<4x128xbf16>, vector<16x128xf32> -> vector<16x128xf32>
    %12 = arith.addf %6, %11 : vector<16x128xf32>
    %c0_13 = arith.constant 0 : index
    %c0_14 = arith.constant 0 : index
    %c6 = arith.constant 6 : index
    %c0_15 = arith.constant 0 : index
    %13 = vector.load %arg3[%c0_13, %c0_14, %c6, %c0_15] : memref<1x1x22x4xbf16, #tpu.memory_space<vmem>>, vector<1x1x16x4xbf16>
    %14 = vector.shape_cast %13 : vector<1x1x16x4xbf16> to vector<16x4xbf16>
    %c2 = arith.constant 2 : index
    %c0_16 = arith.constant 0 : index
    %c0_17 = arith.constant 0 : index
    %15 = vector.load %arg4[%c2, %c0_16, %c0_17] : memref<3x4x128xbf16, #tpu.memory_space<vmem>>, vector<1x4x128xbf16>
    %16 = vector.shape_cast %15 : vector<1x4x128xbf16> to vector<4x128xbf16>
    %cst_18 = arith.constant dense<0.000000e+00> : vector<16x128xf32>
    %17 = tpu.matmul %14, %16, %cst_18 {dimension_numbers = #tpu.dot_dimension_numbers<[1], [0], [0], [1], [0, 0, 1, 1], [], []>} : vector<16x4xbf16>, vector<4x128xbf16>, vector<16x128xf32> -> vector<16x128xf32>
    %18 = arith.addf %12, %17 : vector<16x128xf32>
    %c0_19 = arith.constant 0 : index
    %c0_20 = arith.constant 0 : index
    %19 = vector.load %arg5[%c0_19, %c0_20] : memref<1x128xf32, #tpu.memory_space<vmem>>, vector<1x128xf32>
    %20 = vector.broadcast %19 : vector<1x128xf32> to vector<16x128xf32>
    %21 = arith.addf %18, %20 : vector<16x128xf32>
    %22 = arith.truncf %21 : vector<16x128xf32> to vector<16x128xbf16>
    %c0_21 = arith.constant 0 : index
    %c0_22 = arith.constant 0 : index
    %c0_23 = arith.constant 0 : index
    %23 = vector.load %arg6[%c0_21, %c0_22, %c0_23] : memref<1x16x128xbf16, #tpu.memory_space<vmem>>, vector<1x16x128xbf16>
    %24 = vector.shape_cast %23 : vector<1x16x128xbf16> to vector<16x128xbf16>
    %25 = vector.shape_cast %22 : vector<16x128xbf16> to vector<1x16x128xbf16>
    tpu.vector_store %arg6[%c0_21, %c0_22, %c0_23], %25 {strides = array<i32>} : memref<1x16x128xbf16, #tpu.memory_space<vmem>>, vector<1x16x128xbf16>,
    return
  }
  func.func @transform_0(%arg0: i32, %arg1: i32, %arg2: i32) -> (i32, i32, i32, i32) {
    %c0_i32 = arith.constant 0 : i32
    %c0_i32_0 = arith.constant 0 : i32
    %c0_i32_1 = arith.constant 0 : i32
    return %arg0, %arg1, %c0_i32, %c0_i32_0 : i32, i32, i32, i32
  }
  func.func @transform_1(%arg0: i32, %arg1: i32, %arg2: i32) -> (i32, i32, i32) {
    %c0_i32 = arith.constant 0 : i32
    %c0_i32_0 = arith.constant 0 : i32
    %c0_i32_1 = arith.constant 0 : i32
    return %c0_i32, %c0_i32_0, %arg2 : i32, i32, i32
  }
  func.func @transform_2(%arg0: i32, %arg1: i32, %arg2: i32) -> (i32, i32) {
    %c0_i32 = arith.constant 0 : i32
    %c0_i32_0 = arith.constant 0 : i32
    return %c0_i32, %arg2 : i32, i32
  }
  func.func @transform_3(%arg0: i32, %arg1: i32, %arg2: i32) -> (i32, i32, i32) {
    %c0_i32 = arith.constant 0 : i32
    return %arg0, %arg1, %arg2 : i32, i32, i32
  }
}

module attributes {stable_mosaic.version = 11 : i64} {
  func.func @_conv_tap_kernel(%arg0: i32, %arg1: i32, %arg2: i32, %arg3: memref<1x1x18x4xbf16, #tpu.memory_space<vmem>>, %arg4: memref<3x4x128xbf16, #tpu.memory_space<vmem>>, %arg5: memref<1x128xf32, #tpu.memory_space<vmem>>, %arg6: memref<1x16x128xbf16, #tpu.memory_space<vmem>>) attributes {dimension_semantics = [#tpu.dimension_semantics<parallel>, #tpu.dimension_semantics<parallel>, #tpu.dimension_semantics<parallel>], iteration_bounds = array<i64: 2, 1, 1>, scalar_prefetch = 0 : i64, scratch_operands = 0 : i64, tpu.core_type = #tpu.core_type<tc>, window_params = [{transform_indices = @transform_0, window_bounds = array<i64: 1, 1, 18, 4>}, {transform_indices = @transform_1, window_bounds = array<i64: 3, 4, 128>}, {transform_indices = @transform_2, window_bounds = array<i64: 1, 128>}, {transform_indices = @transform_3, window_bounds = array<i64: 1, 16, 128>}]} {
    %cst = arith.constant 0.000000e+00 : f32
    %0 = vector.broadcast %cst : f32 to vector<16x128xf32>
    %c0 = arith.constant 0 : index
    %c0_0 = arith.constant 0 : index
    %c0_1 = arith.constant 0 : index
    %c0_2 = arith.constant 0 : index
    %1 = vector.load %arg3[%c0, %c0_0, %c0_1, %c0_2] : memref<1x1x18x4xbf16, #tpu.memory_space<vmem>>, vector<1x1x16x4xbf16>
    %2 = vector.shape_cast %1 : vector<1x1x16x4xbf16> to vector<16x4xbf16>
    %c0_3 = arith.constant 0 : index
    %c0_4 = arith.constant 0 : index
    %c0_5 = arith.constant 0 : index
    %3 = vector.load %arg4[%c0_3, %c0_4, %c0_5] : memref<3x4x128xbf16, #tpu.memory_space<vmem>>, vector<1x4x128xbf16>
    %4 = vector.shape_cast %3 : vector<1x4x128xbf16> to vector<4x128xbf16>
    %cst_6 = arith.constant dense<0.000000e+00> : vector<16x128xf32>
    %5 = tpu.matmul %2, %4, %cst_6 {dimension_numbers = #tpu.dot_dimension_numbers<[1], [0], [0], [1], [0, 0, 1, 1], [], []>} : vector<16x4xbf16>, vector<4x128xbf16>, vector<16x128xf32> -> vector<16x128xf32>
    %6 = arith.addf %0, %5 : vector<16x128xf32>
    %c0_7 = arith.constant 0 : index
    %c0_8 = arith.constant 0 : index
    %c1 = arith.constant 1 : index
    %c0_9 = arith.constant 0 : index
    %7 = vector.load %arg3[%c0_7, %c0_8, %c1, %c0_9] : memref<1x1x18x4xbf16, #tpu.memory_space<vmem>>, vector<1x1x16x4xbf16>
    %8 = vector.shape_cast %7 : vector<1x1x16x4xbf16> to vector<16x4xbf16>
    %c1_10 = arith.constant 1 : index
    %c0_11 = arith.constant 0 : index
    %c0_12 = arith.constant 0 : index
    %9 = vector.load %arg4[%c1_10, %c0_11, %c0_12] : memref<3x4x128xbf16, #tpu.memory_space<vmem>>, vector<1x4x128xbf16>
    %10 = vector.shape_cast %9 : vector<1x4x128xbf16> to vector<4x128xbf16>
    %cst_13 = arith.constant dense<0.000000e+00> : vector<16x128xf32>
    %11 = tpu.matmul %8, %10, %cst_13 {dimension_numbers = #tpu.dot_dimension_numbers<[1], [0], [0], [1], [0, 0, 1, 1], [], []>} : vector<16x4xbf16>, vector<4x128xbf16>, vector<16x128xf32> -> vector<16x128xf32>
    %12 = arith.addf %6, %11 : vector<16x128xf32>
    %c0_14 = arith.constant 0 : index
    %c0_15 = arith.constant 0 : index
    %c2 = arith.constant 2 : index
    %c0_16 = arith.constant 0 : index
    %13 = vector.load %arg3[%c0_14, %c0_15, %c2, %c0_16] : memref<1x1x18x4xbf16, #tpu.memory_space<vmem>>, vector<1x1x16x4xbf16>
    %14 = vector.shape_cast %13 : vector<1x1x16x4xbf16> to vector<16x4xbf16>
    %c2_17 = arith.constant 2 : index
    %c0_18 = arith.constant 0 : index
    %c0_19 = arith.constant 0 : index
    %15 = vector.load %arg4[%c2_17, %c0_18, %c0_19] : memref<3x4x128xbf16, #tpu.memory_space<vmem>>, vector<1x4x128xbf16>
    %16 = vector.shape_cast %15 : vector<1x4x128xbf16> to vector<4x128xbf16>
    %cst_20 = arith.constant dense<0.000000e+00> : vector<16x128xf32>
    %17 = tpu.matmul %14, %16, %cst_20 {dimension_numbers = #tpu.dot_dimension_numbers<[1], [0], [0], [1], [0, 0, 1, 1], [], []>} : vector<16x4xbf16>, vector<4x128xbf16>, vector<16x128xf32> -> vector<16x128xf32>
    %18 = arith.addf %12, %17 : vector<16x128xf32>
    %c0_21 = arith.constant 0 : index
    %c0_22 = arith.constant 0 : index
    %19 = vector.load %arg5[%c0_21, %c0_22] : memref<1x128xf32, #tpu.memory_space<vmem>>, vector<1x128xf32>
    %20 = vector.broadcast %19 : vector<1x128xf32> to vector<16x128xf32>
    %21 = arith.addf %18, %20 : vector<16x128xf32>
    %22 = arith.truncf %21 : vector<16x128xf32> to vector<16x128xbf16>
    %c0_23 = arith.constant 0 : index
    %c0_24 = arith.constant 0 : index
    %c0_25 = arith.constant 0 : index
    %23 = vector.load %arg6[%c0_23, %c0_24, %c0_25] : memref<1x16x128xbf16, #tpu.memory_space<vmem>>, vector<1x16x128xbf16>
    %24 = vector.shape_cast %23 : vector<1x16x128xbf16> to vector<16x128xbf16>
    %25 = vector.shape_cast %22 : vector<16x128xbf16> to vector<1x16x128xbf16>
    tpu.vector_store %arg6[%c0_23, %c0_24, %c0_25], %25 {strides = array<i32>} : memref<1x16x128xbf16, #tpu.memory_space<vmem>>, vector<1x16x128xbf16>,
    return
  }
  func.func @transform_0(%arg0: i32, %arg1: i32, %arg2: i32) -> (i32, i32, i32, i32) {
    %c0_i32 = arith.constant 0 : i32
    %c0_i32_0 = arith.constant 0 : i32
    %c0_i32_1 = arith.constant 0 : i32
    return %arg0, %arg1, %c0_i32, %c0_i32_0 : i32, i32, i32, i32
  }
  func.func @transform_1(%arg0: i32, %arg1: i32, %arg2: i32) -> (i32, i32, i32) {
    %c0_i32 = arith.constant 0 : i32
    %c0_i32_0 = arith.constant 0 : i32
    %c0_i32_1 = arith.constant 0 : i32
    return %c0_i32, %c0_i32_0, %arg2 : i32, i32, i32
  }
  func.func @transform_2(%arg0: i32, %arg1: i32, %arg2: i32) -> (i32, i32) {
    %c0_i32 = arith.constant 0 : i32
    %c0_i32_0 = arith.constant 0 : i32
    return %c0_i32, %arg2 : i32, i32
  }
  func.func @transform_3(%arg0: i32, %arg1: i32, %arg2: i32) -> (i32, i32, i32) {
    %c0_i32 = arith.constant 0 : i32
    return %arg0, %arg1, %arg2 : i32, i32, i32
  }
}

module attributes {stable_mosaic.version = 11 : i64} {
  func.func @_conv_tap_kernel(%arg0: i32, %arg1: i32, %arg2: i32, %arg3: memref<1x1x18x4xbf16, #tpu.memory_space<vmem>>, %arg4: memref<3x4x128xbf16, #tpu.memory_space<vmem>>, %arg5: memref<1x128xf32, #tpu.memory_space<vmem>>, %arg6: memref<1x16x128xf32, #tpu.memory_space<vmem>>) attributes {dimension_semantics = [#tpu.dimension_semantics<parallel>, #tpu.dimension_semantics<parallel>, #tpu.dimension_semantics<parallel>], iteration_bounds = array<i64: 2, 1, 1>, scalar_prefetch = 0 : i64, scratch_operands = 0 : i64, tpu.core_type = #tpu.core_type<tc>, window_params = [{transform_indices = @transform_0, window_bounds = array<i64: 1, 1, 18, 4>}, {transform_indices = @transform_1, window_bounds = array<i64: 3, 4, 128>}, {transform_indices = @transform_2, window_bounds = array<i64: 1, 128>}, {transform_indices = @transform_3, window_bounds = array<i64: 1, 16, 128>}]} {
    %cst = arith.constant 0.000000e+00 : f32
    %0 = vector.broadcast %cst : f32 to vector<16x128xf32>
    %c0 = arith.constant 0 : index
    %c0_0 = arith.constant 0 : index
    %c0_1 = arith.constant 0 : index
    %c0_2 = arith.constant 0 : index
    %1 = vector.load %arg3[%c0, %c0_0, %c0_1, %c0_2] : memref<1x1x18x4xbf16, #tpu.memory_space<vmem>>, vector<1x1x16x4xbf16>
    %2 = vector.shape_cast %1 : vector<1x1x16x4xbf16> to vector<16x4xbf16>
    %c0_3 = arith.constant 0 : index
    %c0_4 = arith.constant 0 : index
    %c0_5 = arith.constant 0 : index
    %3 = vector.load %arg4[%c0_3, %c0_4, %c0_5] : memref<3x4x128xbf16, #tpu.memory_space<vmem>>, vector<1x4x128xbf16>
    %4 = vector.shape_cast %3 : vector<1x4x128xbf16> to vector<4x128xbf16>
    %cst_6 = arith.constant dense<0.000000e+00> : vector<16x128xf32>
    %5 = tpu.matmul %2, %4, %cst_6 {dimension_numbers = #tpu.dot_dimension_numbers<[1], [0], [0], [1], [0, 0, 1, 1], [], []>} : vector<16x4xbf16>, vector<4x128xbf16>, vector<16x128xf32> -> vector<16x128xf32>
    %6 = arith.addf %0, %5 : vector<16x128xf32>
    %c0_7 = arith.constant 0 : index
    %c0_8 = arith.constant 0 : index
    %c1 = arith.constant 1 : index
    %c0_9 = arith.constant 0 : index
    %7 = vector.load %arg3[%c0_7, %c0_8, %c1, %c0_9] : memref<1x1x18x4xbf16, #tpu.memory_space<vmem>>, vector<1x1x16x4xbf16>
    %8 = vector.shape_cast %7 : vector<1x1x16x4xbf16> to vector<16x4xbf16>
    %c1_10 = arith.constant 1 : index
    %c0_11 = arith.constant 0 : index
    %c0_12 = arith.constant 0 : index
    %9 = vector.load %arg4[%c1_10, %c0_11, %c0_12] : memref<3x4x128xbf16, #tpu.memory_space<vmem>>, vector<1x4x128xbf16>
    %10 = vector.shape_cast %9 : vector<1x4x128xbf16> to vector<4x128xbf16>
    %cst_13 = arith.constant dense<0.000000e+00> : vector<16x128xf32>
    %11 = tpu.matmul %8, %10, %cst_13 {dimension_numbers = #tpu.dot_dimension_numbers<[1], [0], [0], [1], [0, 0, 1, 1], [], []>} : vector<16x4xbf16>, vector<4x128xbf16>, vector<16x128xf32> -> vector<16x128xf32>
    %12 = arith.addf %6, %11 : vector<16x128xf32>
    %c0_14 = arith.constant 0 : index
    %c0_15 = arith.constant 0 : index
    %c2 = arith.constant 2 : index
    %c0_16 = arith.constant 0 : index
    %13 = vector.load %arg3[%c0_14, %c0_15, %c2, %c0_16] : memref<1x1x18x4xbf16, #tpu.memory_space<vmem>>, vector<1x1x16x4xbf16>
    %14 = vector.shape_cast %13 : vector<1x1x16x4xbf16> to vector<16x4xbf16>
    %c2_17 = arith.constant 2 : index
    %c0_18 = arith.constant 0 : index
    %c0_19 = arith.constant 0 : index
    %15 = vector.load %arg4[%c2_17, %c0_18, %c0_19] : memref<3x4x128xbf16, #tpu.memory_space<vmem>>, vector<1x4x128xbf16>
    %16 = vector.shape_cast %15 : vector<1x4x128xbf16> to vector<4x128xbf16>
    %cst_20 = arith.constant dense<0.000000e+00> : vector<16x128xf32>
    %17 = tpu.matmul %14, %16, %cst_20 {dimension_numbers = #tpu.dot_dimension_numbers<[1], [0], [0], [1], [0, 0, 1, 1], [], []>} : vector<16x4xbf16>, vector<4x128xbf16>, vector<16x128xf32> -> vector<16x128xf32>
    %18 = arith.addf %12, %17 : vector<16x128xf32>
    %c0_21 = arith.constant 0 : index
    %c0_22 = arith.constant 0 : index
    %19 = vector.load %arg5[%c0_21, %c0_22] : memref<1x128xf32, #tpu.memory_space<vmem>>, vector<1x128xf32>
    %20 = vector.broadcast %19 : vector<1x128xf32> to vector<16x128xf32>
    %21 = arith.addf %18, %20 : vector<16x128xf32>
    %c0_23 = arith.constant 0 : index
    %c0_24 = arith.constant 0 : index
    %c0_25 = arith.constant 0 : index
    %22 = vector.load %arg6[%c0_23, %c0_24, %c0_25] : memref<1x16x128xf32, #tpu.memory_space<vmem>>, vector<1x16x128xf32>
    %23 = vector.shape_cast %22 : vector<1x16x128xf32> to vector<16x128xf32>
    %24 = vector.shape_cast %21 : vector<16x128xf32> to vector<1x16x128xf32>
    tpu.vector_store %arg6[%c0_23, %c0_24, %c0_25], %24 {strides = array<i32>} : memref<1x16x128xf32, #tpu.memory_space<vmem>>, vector<1x16x128xf32>,
    return
  }
  func.func @transform_0(%arg0: i32, %arg1: i32, %arg2: i32) -> (i32, i32, i32, i32) {
    %c0_i32 = arith.constant 0 : i32
    %c0_i32_0 = arith.constant 0 : i32
    %c0_i32_1 = arith.constant 0 : i32
    return %arg0, %arg1, %c0_i32, %c0_i32_0 : i32, i32, i32, i32
  }
  func.func @transform_1(%arg0: i32, %arg1: i32, %arg2: i32) -> (i32, i32, i32) {
    %c0_i32 = arith.constant 0 : i32
    %c0_i32_0 = arith.constant 0 : i32
    %c0_i32_1 = arith.constant 0 : i32
    return %c0_i32, %c0_i32_0, %arg2 : i32, i32, i32
  }
  func.func @transform_2(%arg0: i32, %arg1: i32, %arg2: i32) -> (i32, i32) {
    %c0_i32 = arith.constant 0 : i32
    %c0_i32_0 = arith.constant 0 : i32
    return %c0_i32, %arg2 : i32, i32
  }
  func.func @transform_3(%arg0: i32, %arg1: i32, %arg2: i32) -> (i32, i32, i32) {
    %c0_i32 = arith.constant 0 : i32
    return %arg0, %arg1, %arg2 : i32, i32, i32
  }
}

module attributes {stable_mosaic.version = 11 : i64} {
  func.func @_conv_tap_kernel(%arg0: i32, %arg1: i32, %arg2: i32, %arg3: memref<1x1x26x4xbf16, #tpu.memory_space<vmem>>, %arg4: memref<3x4x128xbf16, #tpu.memory_space<vmem>>, %arg5: memref<1x128xf32, #tpu.memory_space<vmem>>, %arg6: memref<1x16x128xbf16, #tpu.memory_space<vmem>>) attributes {dimension_semantics = [#tpu.dimension_semantics<parallel>, #tpu.dimension_semantics<parallel>, #tpu.dimension_semantics<parallel>], iteration_bounds = array<i64: 2, 1, 1>, scalar_prefetch = 0 : i64, scratch_operands = 0 : i64, tpu.core_type = #tpu.core_type<tc>, window_params = [{transform_indices = @transform_0, window_bounds = array<i64: 1, 1, 26, 4>}, {transform_indices = @transform_1, window_bounds = array<i64: 3, 4, 128>}, {transform_indices = @transform_2, window_bounds = array<i64: 1, 128>}, {transform_indices = @transform_3, window_bounds = array<i64: 1, 16, 128>}]} {
    %cst = arith.constant 0.000000e+00 : f32
    %0 = vector.broadcast %cst : f32 to vector<16x128xf32>
    %c0 = arith.constant 0 : index
    %c0_0 = arith.constant 0 : index
    %c0_1 = arith.constant 0 : index
    %c0_2 = arith.constant 0 : index
    %1 = vector.load %arg3[%c0, %c0_0, %c0_1, %c0_2] : memref<1x1x26x4xbf16, #tpu.memory_space<vmem>>, vector<1x1x16x4xbf16>
    %2 = vector.shape_cast %1 : vector<1x1x16x4xbf16> to vector<16x4xbf16>
    %c0_3 = arith.constant 0 : index
    %c0_4 = arith.constant 0 : index
    %c0_5 = arith.constant 0 : index
    %3 = vector.load %arg4[%c0_3, %c0_4, %c0_5] : memref<3x4x128xbf16, #tpu.memory_space<vmem>>, vector<1x4x128xbf16>
    %4 = vector.shape_cast %3 : vector<1x4x128xbf16> to vector<4x128xbf16>
    %cst_6 = arith.constant dense<0.000000e+00> : vector<16x128xf32>
    %5 = tpu.matmul %2, %4, %cst_6 {dimension_numbers = #tpu.dot_dimension_numbers<[1], [0], [0], [1], [0, 0, 1, 1], [], []>} : vector<16x4xbf16>, vector<4x128xbf16>, vector<16x128xf32> -> vector<16x128xf32>
    %6 = arith.addf %0, %5 : vector<16x128xf32>
    %c0_7 = arith.constant 0 : index
    %c0_8 = arith.constant 0 : index
    %c5 = arith.constant 5 : index
    %c0_9 = arith.constant 0 : index
    %7 = vector.load %arg3[%c0_7, %c0_8, %c5, %c0_9] : memref<1x1x26x4xbf16, #tpu.memory_space<vmem>>, vector<1x1x16x4xbf16>
    %8 = vector.shape_cast %7 : vector<1x1x16x4xbf16> to vector<16x4xbf16>
    %c1 = arith.constant 1 : index
    %c0_10 = arith.constant 0 : index
    %c0_11 = arith.constant 0 : index
    %9 = vector.load %arg4[%c1, %c0_10, %c0_11] : memref<3x4x128xbf16, #tpu.memory_space<vmem>>, vector<1x4x128xbf16>
    %10 = vector.shape_cast %9 : vector<1x4x128xbf16> to vector<4x128xbf16>
    %cst_12 = arith.constant dense<0.000000e+00> : vector<16x128xf32>
    %11 = tpu.matmul %8, %10, %cst_12 {dimension_numbers = #tpu.dot_dimension_numbers<[1], [0], [0], [1], [0, 0, 1, 1], [], []>} : vector<16x4xbf16>, vector<4x128xbf16>, vector<16x128xf32> -> vector<16x128xf32>
    %12 = arith.addf %6, %11 : vector<16x128xf32>
    %c0_13 = arith.constant 0 : index
    %c0_14 = arith.constant 0 : index
    %c10 = arith.constant 10 : index
    %c0_15 = arith.constant 0 : index
    %13 = vector.load %arg3[%c0_13, %c0_14, %c10, %c0_15] : memref<1x1x26x4xbf16, #tpu.memory_space<vmem>>, vector<1x1x16x4xbf16>
    %14 = vector.shape_cast %13 : vector<1x1x16x4xbf16> to vector<16x4xbf16>
    %c2 = arith.constant 2 : index
    %c0_16 = arith.constant 0 : index
    %c0_17 = arith.constant 0 : index
    %15 = vector.load %arg4[%c2, %c0_16, %c0_17] : memref<3x4x128xbf16, #tpu.memory_space<vmem>>, vector<1x4x128xbf16>
    %16 = vector.shape_cast %15 : vector<1x4x128xbf16> to vector<4x128xbf16>
    %cst_18 = arith.constant dense<0.000000e+00> : vector<16x128xf32>
    %17 = tpu.matmul %14, %16, %cst_18 {dimension_numbers = #tpu.dot_dimension_numbers<[1], [0], [0], [1], [0, 0, 1, 1], [], []>} : vector<16x4xbf16>, vector<4x128xbf16>, vector<16x128xf32> -> vector<16x128xf32>
    %18 = arith.addf %12, %17 : vector<16x128xf32>
    %c0_19 = arith.constant 0 : index
    %c0_20 = arith.constant 0 : index
    %19 = vector.load %arg5[%c0_19, %c0_20] : memref<1x128xf32, #tpu.memory_space<vmem>>, vector<1x128xf32>
    %20 = vector.broadcast %19 : vector<1x128xf32> to vector<16x128xf32>
    %21 = arith.addf %18, %20 : vector<16x128xf32>
    %22 = arith.truncf %21 : vector<16x128xf32> to vector<16x128xbf16>
    %c0_21 = arith.constant 0 : index
    %c0_22 = arith.constant 0 : index
    %c0_23 = arith.constant 0 : index
    %23 = vector.load %arg6[%c0_21, %c0_22, %c0_23] : memref<1x16x128xbf16, #tpu.memory_space<vmem>>, vector<1x16x128xbf16>
    %24 = vector.shape_cast %23 : vector<1x16x128xbf16> to vector<16x128xbf16>
    %25 = vector.shape_cast %22 : vector<16x128xbf16> to vector<1x16x128xbf16>
    tpu.vector_store %arg6[%c0_21, %c0_22, %c0_23], %25 {strides = array<i32>} : memref<1x16x128xbf16, #tpu.memory_space<vmem>>, vector<1x16x128xbf16>,
    return
  }
  func.func @transform_0(%arg0: i32, %arg1: i32, %arg2: i32) -> (i32, i32, i32, i32) {
    %c0_i32 = arith.constant 0 : i32
    %c0_i32_0 = arith.constant 0 : i32
    %c0_i32_1 = arith.constant 0 : i32
    return %arg0, %arg1, %c0_i32, %c0_i32_0 : i32, i32, i32, i32
  }
  func.func @transform_1(%arg0: i32, %arg1: i32, %arg2: i32) -> (i32, i32, i32) {
    %c0_i32 = arith.constant 0 : i32
    %c0_i32_0 = arith.constant 0 : i32
    %c0_i32_1 = arith.constant 0 : i32
    return %c0_i32, %c0_i32_0, %arg2 : i32, i32, i32
  }
  func.func @transform_2(%arg0: i32, %arg1: i32, %arg2: i32) -> (i32, i32) {
    %c0_i32 = arith.constant 0 : i32
    %c0_i32_0 = arith.constant 0 : i32
    return %c0_i32, %arg2 : i32, i32
  }
  func.func @transform_3(%arg0: i32, %arg1: i32, %arg2: i32) -> (i32, i32, i32) {
    %c0_i32 = arith.constant 0 : i32
    return %arg0, %arg1, %arg2 : i32, i32, i32
  }
}

module attributes {stable_mosaic.version = 11 : i64} {
  func.func @_conv_tap_kernel(%arg0: i32, %arg1: i32, %arg2: i32, %arg3: memref<1x1x22x4xbf16, #tpu.memory_space<vmem>>, %arg4: memref<7x4x128xbf16, #tpu.memory_space<vmem>>, %arg5: memref<1x128xf32, #tpu.memory_space<vmem>>, %arg6: memref<1x16x128xf32, #tpu.memory_space<vmem>>) attributes {dimension_semantics = [#tpu.dimension_semantics<parallel>, #tpu.dimension_semantics<parallel>, #tpu.dimension_semantics<parallel>], iteration_bounds = array<i64: 2, 1, 1>, scalar_prefetch = 0 : i64, scratch_operands = 0 : i64, tpu.core_type = #tpu.core_type<tc>, window_params = [{transform_indices = @transform_0, window_bounds = array<i64: 1, 1, 22, 4>}, {transform_indices = @transform_1, window_bounds = array<i64: 7, 4, 128>}, {transform_indices = @transform_2, window_bounds = array<i64: 1, 128>}, {transform_indices = @transform_3, window_bounds = array<i64: 1, 16, 128>}]} {
    %cst = arith.constant 0.000000e+00 : f32
    %0 = vector.broadcast %cst : f32 to vector<16x128xf32>
    %c0 = arith.constant 0 : index
    %c0_0 = arith.constant 0 : index
    %c0_1 = arith.constant 0 : index
    %c0_2 = arith.constant 0 : index
    %1 = vector.load %arg3[%c0, %c0_0, %c0_1, %c0_2] : memref<1x1x22x4xbf16, #tpu.memory_space<vmem>>, vector<1x1x16x4xbf16>
    %2 = vector.shape_cast %1 : vector<1x1x16x4xbf16> to vector<16x4xbf16>
    %c0_3 = arith.constant 0 : index
    %c0_4 = arith.constant 0 : index
    %c0_5 = arith.constant 0 : index
    %3 = vector.load %arg4[%c0_3, %c0_4, %c0_5] : memref<7x4x128xbf16, #tpu.memory_space<vmem>>, vector<1x4x128xbf16>
    %4 = vector.shape_cast %3 : vector<1x4x128xbf16> to vector<4x128xbf16>
    %cst_6 = arith.constant dense<0.000000e+00> : vector<16x128xf32>
    %5 = tpu.matmul %2, %4, %cst_6 {dimension_numbers = #tpu.dot_dimension_numbers<[1], [0], [0], [1], [0, 0, 1, 1], [], []>} : vector<16x4xbf16>, vector<4x128xbf16>, vector<16x128xf32> -> vector<16x128xf32>
    %6 = arith.addf %0, %5 : vector<16x128xf32>
    %c0_7 = arith.constant 0 : index
    %c0_8 = arith.constant 0 : index
    %c1 = arith.constant 1 : index
    %c0_9 = arith.constant 0 : index
    %7 = vector.load %arg3[%c0_7, %c0_8, %c1, %c0_9] : memref<1x1x22x4xbf16, #tpu.memory_space<vmem>>, vector<1x1x16x4xbf16>
    %8 = vector.shape_cast %7 : vector<1x1x16x4xbf16> to vector<16x4xbf16>
    %c1_10 = arith.constant 1 : index
    %c0_11 = arith.constant 0 : index
    %c0_12 = arith.constant 0 : index
    %9 = vector.load %arg4[%c1_10, %c0_11, %c0_12] : memref<7x4x128xbf16, #tpu.memory_space<vmem>>, vector<1x4x128xbf16>
    %10 = vector.shape_cast %9 : vector<1x4x128xbf16> to vector<4x128xbf16>
    %cst_13 = arith.constant dense<0.000000e+00> : vector<16x128xf32>
    %11 = tpu.matmul %8, %10, %cst_13 {dimension_numbers = #tpu.dot_dimension_numbers<[1], [0], [0], [1], [0, 0, 1, 1], [], []>} : vector<16x4xbf16>, vector<4x128xbf16>, vector<16x128xf32> -> vector<16x128xf32>
    %12 = arith.addf %6, %11 : vector<16x128xf32>
    %c0_14 = arith.constant 0 : index
    %c0_15 = arith.constant 0 : index
    %c2 = arith.constant 2 : index
    %c0_16 = arith.constant 0 : index
    %13 = vector.load %arg3[%c0_14, %c0_15, %c2, %c0_16] : memref<1x1x22x4xbf16, #tpu.memory_space<vmem>>, vector<1x1x16x4xbf16>
    %14 = vector.shape_cast %13 : vector<1x1x16x4xbf16> to vector<16x4xbf16>
    %c2_17 = arith.constant 2 : index
    %c0_18 = arith.constant 0 : index
    %c0_19 = arith.constant 0 : index
    %15 = vector.load %arg4[%c2_17, %c0_18, %c0_19] : memref<7x4x128xbf16, #tpu.memory_space<vmem>>, vector<1x4x128xbf16>
    %16 = vector.shape_cast %15 : vector<1x4x128xbf16> to vector<4x128xbf16>
    %cst_20 = arith.constant dense<0.000000e+00> : vector<16x128xf32>
    %17 = tpu.matmul %14, %16, %cst_20 {dimension_numbers = #tpu.dot_dimension_numbers<[1], [0], [0], [1], [0, 0, 1, 1], [], []>} : vector<16x4xbf16>, vector<4x128xbf16>, vector<16x128xf32> -> vector<16x128xf32>
    %18 = arith.addf %12, %17 : vector<16x128xf32>
    %c0_21 = arith.constant 0 : index
    %c0_22 = arith.constant 0 : index
    %c3 = arith.constant 3 : index
    %c0_23 = arith.constant 0 : index
    %19 = vector.load %arg3[%c0_21, %c0_22, %c3, %c0_23] : memref<1x1x22x4xbf16, #tpu.memory_space<vmem>>, vector<1x1x16x4xbf16>
    %20 = vector.shape_cast %19 : vector<1x1x16x4xbf16> to vector<16x4xbf16>
    %c3_24 = arith.constant 3 : index
    %c0_25 = arith.constant 0 : index
    %c0_26 = arith.constant 0 : index
    %21 = vector.load %arg4[%c3_24, %c0_25, %c0_26] : memref<7x4x128xbf16, #tpu.memory_space<vmem>>, vector<1x4x128xbf16>
    %22 = vector.shape_cast %21 : vector<1x4x128xbf16> to vector<4x128xbf16>
    %cst_27 = arith.constant dense<0.000000e+00> : vector<16x128xf32>
    %23 = tpu.matmul %20, %22, %cst_27 {dimension_numbers = #tpu.dot_dimension_numbers<[1], [0], [0], [1], [0, 0, 1, 1], [], []>} : vector<16x4xbf16>, vector<4x128xbf16>, vector<16x128xf32> -> vector<16x128xf32>
    %24 = arith.addf %18, %23 : vector<16x128xf32>
    %c0_28 = arith.constant 0 : index
    %c0_29 = arith.constant 0 : index
    %c4 = arith.constant 4 : index
    %c0_30 = arith.constant 0 : index
    %25 = vector.load %arg3[%c0_28, %c0_29, %c4, %c0_30] : memref<1x1x22x4xbf16, #tpu.memory_space<vmem>>, vector<1x1x16x4xbf16>
    %26 = vector.shape_cast %25 : vector<1x1x16x4xbf16> to vector<16x4xbf16>
    %c4_31 = arith.constant 4 : index
    %c0_32 = arith.constant 0 : index
    %c0_33 = arith.constant 0 : index
    %27 = vector.load %arg4[%c4_31, %c0_32, %c0_33] : memref<7x4x128xbf16, #tpu.memory_space<vmem>>, vector<1x4x128xbf16>
    %28 = vector.shape_cast %27 : vector<1x4x128xbf16> to vector<4x128xbf16>
    %cst_34 = arith.constant dense<0.000000e+00> : vector<16x128xf32>
    %29 = tpu.matmul %26, %28, %cst_34 {dimension_numbers = #tpu.dot_dimension_numbers<[1], [0], [0], [1], [0, 0, 1, 1], [], []>} : vector<16x4xbf16>, vector<4x128xbf16>, vector<16x128xf32> -> vector<16x128xf32>
    %30 = arith.addf %24, %29 : vector<16x128xf32>
    %c0_35 = arith.constant 0 : index
    %c0_36 = arith.constant 0 : index
    %c5 = arith.constant 5 : index
    %c0_37 = arith.constant 0 : index
    %31 = vector.load %arg3[%c0_35, %c0_36, %c5, %c0_37] : memref<1x1x22x4xbf16, #tpu.memory_space<vmem>>, vector<1x1x16x4xbf16>
    %32 = vector.shape_cast %31 : vector<1x1x16x4xbf16> to vector<16x4xbf16>
    %c5_38 = arith.constant 5 : index
    %c0_39 = arith.constant 0 : index
    %c0_40 = arith.constant 0 : index
    %33 = vector.load %arg4[%c5_38, %c0_39, %c0_40] : memref<7x4x128xbf16, #tpu.memory_space<vmem>>, vector<1x4x128xbf16>
    %34 = vector.shape_cast %33 : vector<1x4x128xbf16> to vector<4x128xbf16>
    %cst_41 = arith.constant dense<0.000000e+00> : vector<16x128xf32>
    %35 = tpu.matmul %32, %34, %cst_41 {dimension_numbers = #tpu.dot_dimension_numbers<[1], [0], [0], [1], [0, 0, 1, 1], [], []>} : vector<16x4xbf16>, vector<4x128xbf16>, vector<16x128xf32> -> vector<16x128xf32>
    %36 = arith.addf %30, %35 : vector<16x128xf32>
    %c0_42 = arith.constant 0 : index
    %c0_43 = arith.constant 0 : index
    %c6 = arith.constant 6 : index
    %c0_44 = arith.constant 0 : index
    %37 = vector.load %arg3[%c0_42, %c0_43, %c6, %c0_44] : memref<1x1x22x4xbf16, #tpu.memory_space<vmem>>, vector<1x1x16x4xbf16>
    %38 = vector.shape_cast %37 : vector<1x1x16x4xbf16> to vector<16x4xbf16>
    %c6_45 = arith.constant 6 : index
    %c0_46 = arith.constant 0 : index
    %c0_47 = arith.constant 0 : index
    %39 = vector.load %arg4[%c6_45, %c0_46, %c0_47] : memref<7x4x128xbf16, #tpu.memory_space<vmem>>, vector<1x4x128xbf16>
    %40 = vector.shape_cast %39 : vector<1x4x128xbf16> to vector<4x128xbf16>
    %cst_48 = arith.constant dense<0.000000e+00> : vector<16x128xf32>
    %41 = tpu.matmul %38, %40, %cst_48 {dimension_numbers = #tpu.dot_dimension_numbers<[1], [0], [0], [1], [0, 0, 1, 1], [], []>} : vector<16x4xbf16>, vector<4x128xbf16>, vector<16x128xf32> -> vector<16x128xf32>
    %42 = arith.addf %36, %41 : vector<16x128xf32>
    %c0_49 = arith.constant 0 : index
    %c0_50 = arith.constant 0 : index
    %43 = vector.load %arg5[%c0_49, %c0_50] : memref<1x128xf32, #tpu.memory_space<vmem>>, vector<1x128xf32>
    %44 = vector.broadcast %43 : vector<1x128xf32> to vector<16x128xf32>
    %45 = arith.addf %42, %44 : vector<16x128xf32>
    %c0_51 = arith.constant 0 : index
    %c0_52 = arith.constant 0 : index
    %c0_53 = arith.constant 0 : index
    %46 = vector.load %arg6[%c0_51, %c0_52, %c0_53] : memref<1x16x128xf32, #tpu.memory_space<vmem>>, vector<1x16x128xf32>
    %47 = vector.shape_cast %46 : vector<1x16x128xf32> to vector<16x128xf32>
    %48 = vector.shape_cast %45 : vector<16x128xf32> to vector<1x16x128xf32>
    tpu.vector_store %arg6[%c0_51, %c0_52, %c0_53], %48 {strides = array<i32>} : memref<1x16x128xf32, #tpu.memory_space<vmem>>, vector<1x16x128xf32>,
    return
  }
  func.func @transform_0(%arg0: i32, %arg1: i32, %arg2: i32) -> (i32, i32, i32, i32) {
    %c0_i32 = arith.constant 0 : i32
    %c0_i32_0 = arith.constant 0 : i32
    %c0_i32_1 = arith.constant 0 : i32
    return %arg0, %arg1, %c0_i32, %c0_i32_0 : i32, i32, i32, i32
  }
  func.func @transform_1(%arg0: i32, %arg1: i32, %arg2: i32) -> (i32, i32, i32) {
    %c0_i32 = arith.constant 0 : i32
    %c0_i32_0 = arith.constant 0 : i32
    %c0_i32_1 = arith.constant 0 : i32
    return %c0_i32, %c0_i32_0, %arg2 : i32, i32, i32
  }
  func.func @transform_2(%arg0: i32, %arg1: i32, %arg2: i32) -> (i32, i32) {
    %c0_i32 = arith.constant 0 : i32
    %c0_i32_0 = arith.constant 0 : i32
    return %c0_i32, %arg2 : i32, i32
  }
  func.func @transform_3(%arg0: i32, %arg1: i32, %arg2: i32) -> (i32, i32, i32) {
    %c0_i32 = arith.constant 0 : i32
    return %arg0, %arg1, %arg2 : i32, i32, i32
  }
}

module attributes {stable_mosaic.version = 11 : i64} {
  func.func @_mm_bias_kernel(%arg0: i32, %arg1: i32, %arg2: i32, %arg3: memref<24x2xbf16, #tpu.memory_space<vmem>>, %arg4: memref<2x128xbf16, #tpu.memory_space<vmem>>, %arg5: memref<1x128xf32, #tpu.memory_space<vmem>>, %arg6: memref<24x128xf32, #tpu.memory_space<vmem>>, %arg7: memref<24x128xf32, #tpu.memory_space<vmem>>) attributes {dimension_semantics = [#tpu.dimension_semantics<parallel>, #tpu.dimension_semantics<parallel>, #tpu.dimension_semantics<arbitrary>], iteration_bounds = array<i64: 1, 1, 1>, scalar_prefetch = 0 : i64, scratch_operands = 1 : i64, tpu.core_type = #tpu.core_type<tc>, window_params = [{transform_indices = @transform_0, window_bounds = array<i64: 24, 2>}, {transform_indices = @transform_1, window_bounds = array<i64: 2, 128>}, {transform_indices = @transform_2, window_bounds = array<i64: 1, 128>}, {transform_indices = @transform_3, window_bounds = array<i64: 24, 128>}]} {
    %c0_i32 = arith.constant 0 : i32
    %0 = arith.cmpi eq, %arg2, %c0_i32 : i32
    %1 = arith.extui %0 : i1 to i32
    %c0_i32_0 = arith.constant 0 : i32
    %2 = arith.cmpi ne, %1, %c0_i32_0 : i32
    scf.if %2 {
      %cst_10 = arith.constant 0.000000e+00 : f32
      %12 = vector.broadcast %cst_10 : f32 to vector<24x128xf32>
      %c0_11 = arith.constant 0 : index
      %c0_12 = arith.constant 0 : index
      %13 = vector.load %arg7[%c0_11, %c0_12] : memref<24x128xf32, #tpu.memory_space<vmem>>, vector<24x128xf32>
      tpu.vector_store %arg7[%c0_11, %c0_12], %12 {strides = array<i32>} : memref<24x128xf32, #tpu.memory_space<vmem>>, vector<24x128xf32>,
    } else {
    }
    %c0 = arith.constant 0 : index
    %c0_1 = arith.constant 0 : index
    %3 = vector.load %arg7[%c0, %c0_1] : memref<24x128xf32, #tpu.memory_space<vmem>>, vector<24x128xf32>
    %c0_2 = arith.constant 0 : index
    %c0_3 = arith.constant 0 : index
    %4 = vector.load %arg3[%c0_2, %c0_3] : memref<24x2xbf16, #tpu.memory_space<vmem>>, vector<24x2xbf16>
    %c0_4 = arith.constant 0 : index
    %c0_5 = arith.constant 0 : index
    %5 = vector.load %arg4[%c0_4, %c0_5] : memref<2x128xbf16, #tpu.memory_space<vmem>>, vector<2x128xbf16>
    %cst = arith.constant dense<0.000000e+00> : vector<24x128xf32>
    %6 = tpu.matmul %4, %5, %cst {dimension_numbers = #tpu.dot_dimension_numbers<[1], [0], [0], [1], [0, 0, 1, 1], [], []>} : vector<24x2xbf16>, vector<2x128xbf16>, vector<24x128xf32> -> vector<24x128xf32>
    %7 = arith.addf %3, %6 : vector<24x128xf32>
    %c0_6 = arith.constant 0 : index
    %c0_7 = arith.constant 0 : index
    %8 = vector.load %arg7[%c0_6, %c0_7] : memref<24x128xf32, #tpu.memory_space<vmem>>, vector<24x128xf32>
    tpu.vector_store %arg7[%c0_6, %c0_7], %7 {strides = array<i32>} : memref<24x128xf32, #tpu.memory_space<vmem>>, vector<24x128xf32>,
    %c0_i32_8 = arith.constant 0 : i32
    %9 = arith.cmpi eq, %arg2, %c0_i32_8 : i32
    %10 = arith.extui %9 : i1 to i32
    %c0_i32_9 = arith.constant 0 : i32
    %11 = arith.cmpi ne, %10, %c0_i32_9 : i32
    scf.if %11 {
      %c0_10 = arith.constant 0 : index
      %c0_11 = arith.constant 0 : index
      %12 = vector.load %arg7[%c0_10, %c0_11] : memref<24x128xf32, #tpu.memory_space<vmem>>, vector<24x128xf32>
      %c0_12 = arith.constant 0 : index
      %c0_13 = arith.constant 0 : index
      %13 = vector.load %arg5[%c0_12, %c0_13] : memref<1x128xf32, #tpu.memory_space<vmem>>, vector<1x128xf32>
      %14 = vector.broadcast %13 : vector<1x128xf32> to vector<24x128xf32>
      %15 = arith.addf %12, %14 : vector<24x128xf32>
      %c0_14 = arith.constant 0 : index
      %c0_15 = arith.constant 0 : index
      %16 = vector.load %arg6[%c0_14, %c0_15] : memref<24x128xf32, #tpu.memory_space<vmem>>, vector<24x128xf32>
      tpu.vector_store %arg6[%c0_14, %c0_15], %15 {strides = array<i32>} : memref<24x128xf32, #tpu.memory_space<vmem>>, vector<24x128xf32>,
    } else {
    }
    return
  }
  func.func @transform_0(%arg0: i32, %arg1: i32, %arg2: i32) -> (i32, i32) {
    %c0_i32 = arith.constant 0 : i32
    return %arg0, %arg2 : i32, i32
  }
  func.func @transform_1(%arg0: i32, %arg1: i32, %arg2: i32) -> (i32, i32) {
    %c0_i32 = arith.constant 0 : i32
    return %arg2, %arg1 : i32, i32
  }
  func.func @transform_2(%arg0: i32, %arg1: i32, %arg2: i32) -> (i32, i32) {
    %c0_i32 = arith.constant 0 : i32
    %c0_i32_0 = arith.constant 0 : i32
    return %c0_i32, %arg1 : i32, i32
  }
  func.func @transform_3(%arg0: i32, %arg1: i32, %arg2: i32) -> (i32, i32) {
    %c0_i32 = arith.constant 0 : i32
    return %arg0, %arg1 : i32, i32
  }
}

module attributes {stable_mosaic.version = 11 : i64} {
  func.func @_mm_bias_kernel(%arg0: i32, %arg1: i32, %arg2: i32, %arg3: memref<16x8xbf16, #tpu.memory_space<vmem>>, %arg4: memref<8x128xbf16, #tpu.memory_space<vmem>>, %arg5: memref<1x128xf32, #tpu.memory_space<vmem>>, %arg6: memref<16x128xbf16, #tpu.memory_space<vmem>>, %arg7: memref<16x128xf32, #tpu.memory_space<vmem>>) attributes {dimension_semantics = [#tpu.dimension_semantics<parallel>, #tpu.dimension_semantics<parallel>, #tpu.dimension_semantics<arbitrary>], iteration_bounds = array<i64: 1, 1, 1>, scalar_prefetch = 0 : i64, scratch_operands = 1 : i64, tpu.core_type = #tpu.core_type<tc>, window_params = [{transform_indices = @transform_0, window_bounds = array<i64: 16, 8>}, {transform_indices = @transform_1, window_bounds = array<i64: 8, 128>}, {transform_indices = @transform_2, window_bounds = array<i64: 1, 128>}, {transform_indices = @transform_3, window_bounds = array<i64: 16, 128>}]} {
    %c0_i32 = arith.constant 0 : i32
    %0 = arith.cmpi eq, %arg2, %c0_i32 : i32
    %1 = arith.extui %0 : i1 to i32
    %c0_i32_0 = arith.constant 0 : i32
    %2 = arith.cmpi ne, %1, %c0_i32_0 : i32
    scf.if %2 {
      %cst_10 = arith.constant 0.000000e+00 : f32
      %12 = vector.broadcast %cst_10 : f32 to vector<16x128xf32>
      %c0_11 = arith.constant 0 : index
      %c0_12 = arith.constant 0 : index
      %13 = vector.load %arg7[%c0_11, %c0_12] : memref<16x128xf32, #tpu.memory_space<vmem>>, vector<16x128xf32>
      tpu.vector_store %arg7[%c0_11, %c0_12], %12 {strides = array<i32>} : memref<16x128xf32, #tpu.memory_space<vmem>>, vector<16x128xf32>,
    } else {
    }
    %c0 = arith.constant 0 : index
    %c0_1 = arith.constant 0 : index
    %3 = vector.load %arg7[%c0, %c0_1] : memref<16x128xf32, #tpu.memory_space<vmem>>, vector<16x128xf32>
    %c0_2 = arith.constant 0 : index
    %c0_3 = arith.constant 0 : index
    %4 = vector.load %arg3[%c0_2, %c0_3] : memref<16x8xbf16, #tpu.memory_space<vmem>>, vector<16x8xbf16>
    %c0_4 = arith.constant 0 : index
    %c0_5 = arith.constant 0 : index
    %5 = vector.load %arg4[%c0_4, %c0_5] : memref<8x128xbf16, #tpu.memory_space<vmem>>, vector<8x128xbf16>
    %cst = arith.constant dense<0.000000e+00> : vector<16x128xf32>
    %6 = tpu.matmul %4, %5, %cst {dimension_numbers = #tpu.dot_dimension_numbers<[1], [0], [0], [1], [0, 0, 1, 1], [], []>} : vector<16x8xbf16>, vector<8x128xbf16>, vector<16x128xf32> -> vector<16x128xf32>
    %7 = arith.addf %3, %6 : vector<16x128xf32>
    %c0_6 = arith.constant 0 : index
    %c0_7 = arith.constant 0 : index
    %8 = vector.load %arg7[%c0_6, %c0_7] : memref<16x128xf32, #tpu.memory_space<vmem>>, vector<16x128xf32>
    tpu.vector_store %arg7[%c0_6, %c0_7], %7 {strides = array<i32>} : memref<16x128xf32, #tpu.memory_space<vmem>>, vector<16x128xf32>,
    %c0_i32_8 = arith.constant 0 : i32
    %9 = arith.cmpi eq, %arg2, %c0_i32_8 : i32
    %10 = arith.extui %9 : i1 to i32
    %c0_i32_9 = arith.constant 0 : i32
    %11 = arith.cmpi ne, %10, %c0_i32_9 : i32
    scf.if %11 {
      %c0_10 = arith.constant 0 : index
      %c0_11 = arith.constant 0 : index
      %12 = vector.load %arg7[%c0_10, %c0_11] : memref<16x128xf32, #tpu.memory_space<vmem>>, vector<16x128xf32>
      %c0_12 = arith.constant 0 : index
      %c0_13 = arith.constant 0 : index
      %13 = vector.load %arg5[%c0_12, %c0_13] : memref<1x128xf32, #tpu.memory_space<vmem>>, vector<1x128xf32>
      %14 = vector.broadcast %13 : vector<1x128xf32> to vector<16x128xf32>
      %15 = arith.addf %12, %14 : vector<16x128xf32>
      %16 = arith.truncf %15 : vector<16x128xf32> to vector<16x128xbf16>
      %c0_14 = arith.constant 0 : index
      %c0_15 = arith.constant 0 : index
      %17 = vector.load %arg6[%c0_14, %c0_15] : memref<16x128xbf16, #tpu.memory_space<vmem>>, vector<16x128xbf16>
      tpu.vector_store %arg6[%c0_14, %c0_15], %16 {strides = array<i32>} : memref<16x128xbf16, #tpu.memory_space<vmem>>, vector<16x128xbf16>,
    } else {
    }
    return
  }
  func.func @transform_0(%arg0: i32, %arg1: i32, %arg2: i32) -> (i32, i32) {
    %c0_i32 = arith.constant 0 : i32
    return %arg0, %arg2 : i32, i32
  }
  func.func @transform_1(%arg0: i32, %arg1: i32, %arg2: i32) -> (i32, i32) {
    %c0_i32 = arith.constant 0 : i32
    return %arg2, %arg1 : i32, i32
  }
  func.func @transform_2(%arg0: i32, %arg1: i32, %arg2: i32) -> (i32, i32) {
    %c0_i32 = arith.constant 0 : i32
    %c0_i32_0 = arith.constant 0 : i32
    return %c0_i32, %arg1 : i32, i32
  }
  func.func @transform_3(%arg0: i32, %arg1: i32, %arg2: i32) -> (i32, i32) {
    %c0_i32 = arith.constant 0 : i32
    return %arg0, %arg1 : i32, i32
  }
}

module attributes {stable_mosaic.version = 11 : i64} {
  func.func @_flash_kernel(%arg0: i32, %arg1: i32, %arg2: i32, %arg3: memref<1x8x128xbf16, #tpu.memory_space<vmem>>, %arg4: memref<1x8x128xbf16, #tpu.memory_space<vmem>>, %arg5: memref<1x8x128xbf16, #tpu.memory_space<vmem>>, %arg6: memref<1x1x8xf32, #tpu.memory_space<vmem>>, %arg7: memref<1x8x128xbf16, #tpu.memory_space<vmem>>, %arg8: memref<8x1xf32, #tpu.memory_space<vmem>>, %arg9: memref<8x1xf32, #tpu.memory_space<vmem>>, %arg10: memref<8x128xf32, #tpu.memory_space<vmem>>) attributes {dimension_semantics = [#tpu.dimension_semantics<parallel>, #tpu.dimension_semantics<parallel>, #tpu.dimension_semantics<arbitrary>], iteration_bounds = array<i64: 4, 1, 1>, scalar_prefetch = 0 : i64, scratch_operands = 3 : i64, tpu.core_type = #tpu.core_type<tc>, window_params = [{transform_indices = @transform_0, window_bounds = array<i64: 1, 8, 128>}, {transform_indices = @transform_1, window_bounds = array<i64: 1, 8, 128>}, {transform_indices = @transform_2, window_bounds = array<i64: 1, 8, 128>}, {transform_indices = @transform_3, window_bounds = array<i64: 1, 1, 8>}, {transform_indices = @transform_4, window_bounds = array<i64: 1, 8, 128>}]} {
    %c0_i32 = arith.constant 0 : i32
    %0 = arith.cmpi eq, %arg2, %c0_i32 : i32
    %1 = arith.extui %0 : i1 to i32
    %c0_i32_0 = arith.constant 0 : i32
    %2 = arith.cmpi ne, %1, %c0_i32_0 : i32
    scf.if %2 {
      %cst_32 = arith.constant -1.000000e+30 : f32
      %46 = vector.broadcast %cst_32 : f32 to vector<8x1xf32>
      %c0_33 = arith.constant 0 : index
      %c0_34 = arith.constant 0 : index
      %47 = vector.load %arg8[%c0_33, %c0_34] : memref<8x1xf32, #tpu.memory_space<vmem>>, vector<8x1xf32>
      tpu.vector_store %arg8[%c0_33, %c0_34], %46 {strides = array<i32>} : memref<8x1xf32, #tpu.memory_space<vmem>>, vector<8x1xf32>,
      %cst_35 = arith.constant 0.000000e+00 : f32
      %48 = vector.broadcast %cst_35 : f32 to vector<8x1xf32>
      %c0_36 = arith.constant 0 : index
      %c0_37 = arith.constant 0 : index
      %49 = vector.load %arg9[%c0_36, %c0_37] : memref<8x1xf32, #tpu.memory_space<vmem>>, vector<8x1xf32>
      tpu.vector_store %arg9[%c0_36, %c0_37], %48 {strides = array<i32>} : memref<8x1xf32, #tpu.memory_space<vmem>>, vector<8x1xf32>,
      %cst_38 = arith.constant 0.000000e+00 : f32
      %50 = vector.broadcast %cst_38 : f32 to vector<8x128xf32>
      %c0_39 = arith.constant 0 : index
      %c0_40 = arith.constant 0 : index
      %51 = vector.load %arg10[%c0_39, %c0_40] : memref<8x128xf32, #tpu.memory_space<vmem>>, vector<8x128xf32>
      tpu.vector_store %arg10[%c0_39, %c0_40], %50 {strides = array<i32>} : memref<8x128xf32, #tpu.memory_space<vmem>>, vector<8x128xf32>,
    } else {
    }
    %c0 = arith.constant 0 : index
    %c0_1 = arith.constant 0 : index
    %c0_2 = arith.constant 0 : index
    %3 = vector.load %arg3[%c0, %c0_1, %c0_2] : memref<1x8x128xbf16, #tpu.memory_space<vmem>>, vector<1x8x128xbf16>
    %4 = vector.shape_cast %3 : vector<1x8x128xbf16> to vector<8x128xbf16>
    %c0_3 = arith.constant 0 : index
    %c0_4 = arith.constant 0 : index
    %c0_5 = arith.constant 0 : index
    %5 = vector.load %arg4[%c0_3, %c0_4, %c0_5] : memref<1x8x128xbf16, #tpu.memory_space<vmem>>, vector<1x8x128xbf16>
    %6 = vector.shape_cast %5 : vector<1x8x128xbf16> to vector<8x128xbf16>
    %cst = arith.constant dense<0.000000e+00> : vector<8x8xf32>
    %7 = tpu.matmul %4, %6, %cst {dimension_numbers = #tpu.dot_dimension_numbers<[1], [1], [0], [0], [0, 0, 1, 0], [], []>} : vector<8x128xbf16>, vector<8x128xbf16>, vector<8x8xf32> -> vector<8x8xf32>
    %cst_6 = arith.constant 5.000000e-01 : f32
    %8 = vector.broadcast %cst_6 : f32 to vector<8x8xf32>
    %9 = arith.mulf %7, %8 : vector<8x8xf32>
    %c0_7 = arith.constant 0 : index
    %c0_8 = arith.constant 0 : index
    %c0_9 = arith.constant 0 : index
    %10 = vector.load %arg6[%c0_7, %c0_8, %c0_9] : memref<1x1x8xf32, #tpu.memory_space<vmem>>, vector<1x1x8xf32>
    %11 = vector.shape_cast %10 : vector<1x1x8xf32> to vector<1x8xf32>
    %cst_10 = arith.constant 0.000000e+00 : f32
    %12 = vector.broadcast %cst_10 : f32 to vector<1x8xf32>
    %13 = arith.cmpf ogt, %11, %12 : vector<1x8xf32>
    %cst_11 = arith.constant -1.000000e+04 : f32
    %14 = vector.shape_cast %13 : vector<1x8xi1> to vector<1x8xi1>
    %15 = vector.broadcast %14 : vector<1x8xi1> to vector<8x8xi1>
    %16 = vector.broadcast %cst_11 : f32 to vector<8x8xf32>
    %17 = arith.select %15, %9, %16 : vector<8x8xi1>, vector<8x8xf32>
    %c0_12 = arith.constant 0 : index
    %c0_13 = arith.constant 0 : index
    %18 = vector.load %arg8[%c0_12, %c0_13] : memref<8x1xf32, #tpu.memory_space<vmem>>, vector<8x1xf32>
    %cst_14 = arith.constant dense<0xFF800000> : vector<8xf32>
    %19 = vector.multi_reduction <maximumf>, %17, %cst_14 [1] : vector<8x8xf32> to vector<8xf32>
    %20 = vector.shape_cast %19 : vector<8xf32> to vector<8x1xf32>
    %21 = arith.maximumf %18, %20 : vector<8x1xf32>
    %22 = arith.subf %18, %21 : vector<8x1xf32>
    %23 = math.exp %22 : vector<8x1xf32>
    %24 = vector.broadcast %21 : vector<8x1xf32> to vector<8x8xf32>
    %25 = arith.subf %17, %24 : vector<8x8xf32>
    %26 = math.exp %25 : vector<8x8xf32>
    %c0_15 = arith.constant 0 : index
    %c0_16 = arith.constant 0 : index
    %27 = vector.load %arg9[%c0_15, %c0_16] : memref<8x1xf32, #tpu.memory_space<vmem>>, vector<8x1xf32>
    %28 = arith.mulf %23, %27 : vector<8x1xf32>
    %cst_17 = arith.constant dense<0.000000e+00> : vector<8xf32>
    %29 = vector.multi_reduction <add>, %26, %cst_17 [1] : vector<8x8xf32> to vector<8xf32>
    %30 = vector.shape_cast %29 : vector<8xf32> to vector<8x1xf32>
    %31 = arith.addf %28, %30 : vector<8x1xf32>
    %c0_18 = arith.constant 0 : index
    %c0_19 = arith.constant 0 : index
    %32 = vector.load %arg9[%c0_18, %c0_19] : memref<8x1xf32, #tpu.memory_space<vmem>>, vector<8x1xf32>
    tpu.vector_store %arg9[%c0_18, %c0_19], %31 {strides = array<i32>} : memref<8x1xf32, #tpu.memory_space<vmem>>, vector<8x1xf32>,
    %c0_20 = arith.constant 0 : index
    %c0_21 = arith.constant 0 : index
    %33 = vector.load %arg10[%c0_20, %c0_21] : memref<8x128xf32, #tpu.memory_space<vmem>>, vector<8x128xf32>
    %34 = vector.broadcast %23 : vector<8x1xf32> to vector<8x128xf32>
    %35 = arith.mulf %34, %33 : vector<8x128xf32>
    %36 = arith.truncf %26 : vector<8x8xf32> to vector<8x8xbf16>
    %c0_22 = arith.constant 0 : index
    %c0_23 = arith.constant 0 : index
    %c0_24 = arith.constant 0 : index
    %37 = vector.load %arg5[%c0_22, %c0_23, %c0_24] : memref<1x8x128xbf16, #tpu.memory_space<vmem>>, vector<1x8x128xbf16>
    %38 = vector.shape_cast %37 : vector<1x8x128xbf16> to vector<8x128xbf16>
    %cst_25 = arith.constant dense<0.000000e+00> : vector<8x128xf32>
    %39 = tpu.matmul %36, %38, %cst_25 {dimension_numbers = #tpu.dot_dimension_numbers<[1], [0], [0], [1], [0, 0, 1, 1], [], []>} : vector<8x8xbf16>, vector<8x128xbf16>, vector<8x128xf32> -> vector<8x128xf32>
    %40 = arith.addf %35, %39 : vector<8x128xf32>
    %c0_26 = arith.constant 0 : index
    %c0_27 = arith.constant 0 : index
    %41 = vector.load %arg10[%c0_26, %c0_27] : memref<8x128xf32, #tpu.memory_space<vmem>>, vector<8x128xf32>
    tpu.vector_store %arg10[%c0_26, %c0_27], %40 {strides = array<i32>} : memref<8x128xf32, #tpu.memory_space<vmem>>, vector<8x128xf32>,
    %c0_28 = arith.constant 0 : index
    %c0_29 = arith.constant 0 : index
    %42 = vector.load %arg8[%c0_28, %c0_29] : memref<8x1xf32, #tpu.memory_space<vmem>>, vector<8x1xf32>
    tpu.vector_store %arg8[%c0_28, %c0_29], %21 {strides = array<i32>} : memref<8x1xf32, #tpu.memory_space<vmem>>, vector<8x1xf32>,
    %c0_i32_30 = arith.constant 0 : i32
    %43 = arith.cmpi eq, %arg2, %c0_i32_30 : i32
    %44 = arith.extui %43 : i1 to i32
    %c0_i32_31 = arith.constant 0 : i32
    %45 = arith.cmpi ne, %44, %c0_i32_31 : i32
    scf.if %45 {
      %c0_32 = arith.constant 0 : index
      %c0_33 = arith.constant 0 : index
      %46 = vector.load %arg10[%c0_32, %c0_33] : memref<8x128xf32, #tpu.memory_space<vmem>>, vector<8x128xf32>
      %c0_34 = arith.constant 0 : index
      %c0_35 = arith.constant 0 : index
      %47 = vector.load %arg9[%c0_34, %c0_35] : memref<8x1xf32, #tpu.memory_space<vmem>>, vector<8x1xf32>
      %48 = tpu.reciprocal %47 {approx = true} : vector<8x1xf32> -> vector<8x1xf32>
      %49 = vector.broadcast %48 : vector<8x1xf32> to vector<8x128xf32>
      %50 = arith.mulf %46, %49 : vector<8x128xf32>
      %51 = arith.truncf %50 : vector<8x128xf32> to vector<8x128xbf16>
      %c0_36 = arith.constant 0 : index
      %c0_37 = arith.constant 0 : index
      %c0_38 = arith.constant 0 : index
      %52 = vector.load %arg7[%c0_36, %c0_37, %c0_38] : memref<1x8x128xbf16, #tpu.memory_space<vmem>>, vector<1x8x128xbf16>
      %53 = vector.shape_cast %52 : vector<1x8x128xbf16> to vector<8x128xbf16>
      %54 = vector.shape_cast %51 : vector<8x128xbf16> to vector<1x8x128xbf16>
      tpu.vector_store %arg7[%c0_36, %c0_37, %c0_38], %54 {strides = array<i32>} : memref<1x8x128xbf16, #tpu.memory_space<vmem>>, vector<1x8x128xbf16>,
    } else {
    }
    return
  }
  func.func @transform_0(%arg0: i32, %arg1: i32, %arg2: i32) -> (i32, i32, i32) {
    %c0_i32 = arith.constant 0 : i32
    %c0_i32_0 = arith.constant 0 : i32
    return %arg0, %arg1, %c0_i32 : i32, i32, i32
  }
  func.func @transform_1(%arg0: i32, %arg1: i32, %arg2: i32) -> (i32, i32, i32) {
    %c0_i32 = arith.constant 0 : i32
    %c0_i32_0 = arith.constant 0 : i32
    return %arg0, %arg2, %c0_i32 : i32, i32, i32
  }
  func.func @transform_2(%arg0: i32, %arg1: i32, %arg2: i32) -> (i32, i32, i32) {
    %c0_i32 = arith.constant 0 : i32
    %c0_i32_0 = arith.constant 0 : i32
    return %arg0, %arg2, %c0_i32 : i32, i32, i32
  }
  func.func @transform_3(%arg0: i32, %arg1: i32, %arg2: i32) -> (i32, i32, i32) {
    %c0_i32 = arith.constant 0 : i32
    %c0_i32_0 = arith.constant 0 : i32
    return %arg0, %c0_i32, %arg2 : i32, i32, i32
  }
  func.func @transform_4(%arg0: i32, %arg1: i32, %arg2: i32) -> (i32, i32, i32) {
    %c0_i32 = arith.constant 0 : i32
    %c0_i32_0 = arith.constant 0 : i32
    return %arg0, %arg1, %c0_i32 : i32, i32, i32
  }
}

module attributes {stable_mosaic.version = 11 : i64} {
  func.func @_mm_bias_kernel(%arg0: i32, %arg1: i32, %arg2: i32, %arg3: memref<16x8xbf16, #tpu.memory_space<vmem>>, %arg4: memref<8x128xbf16, #tpu.memory_space<vmem>>, %arg5: memref<1x128xf32, #tpu.memory_space<vmem>>, %arg6: memref<16x128xf32, #tpu.memory_space<vmem>>, %arg7: memref<16x128xf32, #tpu.memory_space<vmem>>) attributes {dimension_semantics = [#tpu.dimension_semantics<parallel>, #tpu.dimension_semantics<parallel>, #tpu.dimension_semantics<arbitrary>], iteration_bounds = array<i64: 1, 1, 1>, scalar_prefetch = 0 : i64, scratch_operands = 1 : i64, tpu.core_type = #tpu.core_type<tc>, window_params = [{transform_indices = @transform_0, window_bounds = array<i64: 16, 8>}, {transform_indices = @transform_1, window_bounds = array<i64: 8, 128>}, {transform_indices = @transform_2, window_bounds = array<i64: 1, 128>}, {transform_indices = @transform_3, window_bounds = array<i64: 16, 128>}]} {
    %c0_i32 = arith.constant 0 : i32
    %0 = arith.cmpi eq, %arg2, %c0_i32 : i32
    %1 = arith.extui %0 : i1 to i32
    %c0_i32_0 = arith.constant 0 : i32
    %2 = arith.cmpi ne, %1, %c0_i32_0 : i32
    scf.if %2 {
      %cst_10 = arith.constant 0.000000e+00 : f32
      %12 = vector.broadcast %cst_10 : f32 to vector<16x128xf32>
      %c0_11 = arith.constant 0 : index
      %c0_12 = arith.constant 0 : index
      %13 = vector.load %arg7[%c0_11, %c0_12] : memref<16x128xf32, #tpu.memory_space<vmem>>, vector<16x128xf32>
      tpu.vector_store %arg7[%c0_11, %c0_12], %12 {strides = array<i32>} : memref<16x128xf32, #tpu.memory_space<vmem>>, vector<16x128xf32>,
    } else {
    }
    %c0 = arith.constant 0 : index
    %c0_1 = arith.constant 0 : index
    %3 = vector.load %arg7[%c0, %c0_1] : memref<16x128xf32, #tpu.memory_space<vmem>>, vector<16x128xf32>
    %c0_2 = arith.constant 0 : index
    %c0_3 = arith.constant 0 : index
    %4 = vector.load %arg3[%c0_2, %c0_3] : memref<16x8xbf16, #tpu.memory_space<vmem>>, vector<16x8xbf16>
    %c0_4 = arith.constant 0 : index
    %c0_5 = arith.constant 0 : index
    %5 = vector.load %arg4[%c0_4, %c0_5] : memref<8x128xbf16, #tpu.memory_space<vmem>>, vector<8x128xbf16>
    %cst = arith.constant dense<0.000000e+00> : vector<16x128xf32>
    %6 = tpu.matmul %4, %5, %cst {dimension_numbers = #tpu.dot_dimension_numbers<[1], [0], [0], [1], [0, 0, 1, 1], [], []>} : vector<16x8xbf16>, vector<8x128xbf16>, vector<16x128xf32> -> vector<16x128xf32>
    %7 = arith.addf %3, %6 : vector<16x128xf32>
    %c0_6 = arith.constant 0 : index
    %c0_7 = arith.constant 0 : index
    %8 = vector.load %arg7[%c0_6, %c0_7] : memref<16x128xf32, #tpu.memory_space<vmem>>, vector<16x128xf32>
    tpu.vector_store %arg7[%c0_6, %c0_7], %7 {strides = array<i32>} : memref<16x128xf32, #tpu.memory_space<vmem>>, vector<16x128xf32>,
    %c0_i32_8 = arith.constant 0 : i32
    %9 = arith.cmpi eq, %arg2, %c0_i32_8 : i32
    %10 = arith.extui %9 : i1 to i32
    %c0_i32_9 = arith.constant 0 : i32
    %11 = arith.cmpi ne, %10, %c0_i32_9 : i32
    scf.if %11 {
      %c0_10 = arith.constant 0 : index
      %c0_11 = arith.constant 0 : index
      %12 = vector.load %arg7[%c0_10, %c0_11] : memref<16x128xf32, #tpu.memory_space<vmem>>, vector<16x128xf32>
      %c0_12 = arith.constant 0 : index
      %c0_13 = arith.constant 0 : index
      %13 = vector.load %arg5[%c0_12, %c0_13] : memref<1x128xf32, #tpu.memory_space<vmem>>, vector<1x128xf32>
      %14 = vector.broadcast %13 : vector<1x128xf32> to vector<16x128xf32>
      %15 = arith.addf %12, %14 : vector<16x128xf32>
      %c0_14 = arith.constant 0 : index
      %c0_15 = arith.constant 0 : index
      %16 = vector.load %arg6[%c0_14, %c0_15] : memref<16x128xf32, #tpu.memory_space<vmem>>, vector<16x128xf32>
      tpu.vector_store %arg6[%c0_14, %c0_15], %15 {strides = array<i32>} : memref<16x128xf32, #tpu.memory_space<vmem>>, vector<16x128xf32>,
    } else {
    }
    return
  }
  func.func @transform_0(%arg0: i32, %arg1: i32, %arg2: i32) -> (i32, i32) {
    %c0_i32 = arith.constant 0 : i32
    return %arg0, %arg2 : i32, i32
  }
  func.func @transform_1(%arg0: i32, %arg1: i32, %arg2: i32) -> (i32, i32) {
    %c0_i32 = arith.constant 0 : i32
    return %arg2, %arg1 : i32, i32
  }
  func.func @transform_2(%arg0: i32, %arg1: i32, %arg2: i32) -> (i32, i32) {
    %c0_i32 = arith.constant 0 : i32
    %c0_i32_0 = arith.constant 0 : i32
    return %c0_i32, %arg1 : i32, i32
  }
  func.func @transform_3(%arg0: i32, %arg1: i32, %arg2: i32) -> (i32, i32) {
    %c0_i32 = arith.constant 0 : i32
    return %arg0, %arg1 : i32, i32
  }
}

module attributes {stable_mosaic.version = 11 : i64} {
  func.func @_neg_cent_kernel(%arg0: i32, %arg1: i32, %arg2: memref<1x16x4xf32, #tpu.memory_space<vmem>>, %arg3: memref<1x128x4xf32, #tpu.memory_space<vmem>>, %arg4: memref<1x128x4xf32, #tpu.memory_space<vmem>>, %arg5: memref<1x1x128xf32, #tpu.memory_space<vmem>>, %arg6: memref<1x16x128xf32, #tpu.memory_space<vmem>>) attributes {dimension_semantics = [#tpu.dimension_semantics<parallel>, #tpu.dimension_semantics<parallel>], iteration_bounds = array<i64: 2, 1>, scalar_prefetch = 0 : i64, scratch_operands = 0 : i64, tpu.core_type = #tpu.core_type<tc>, window_params = [{transform_indices = @transform_0, window_bounds = array<i64: 1, 16, 4>}, {transform_indices = @transform_1, window_bounds = array<i64: 1, 128, 4>}, {transform_indices = @transform_2, window_bounds = array<i64: 1, 128, 4>}, {transform_indices = @transform_3, window_bounds = array<i64: 1, 1, 128>}, {transform_indices = @transform_4, window_bounds = array<i64: 1, 16, 128>}]} {
    %c0 = arith.constant 0 : index
    %c0_0 = arith.constant 0 : index
    %c0_1 = arith.constant 0 : index
    %0 = vector.load %arg2[%c0, %c0_0, %c0_1] : memref<1x16x4xf32, #tpu.memory_space<vmem>>, vector<1x16x4xf32>
    %1 = vector.shape_cast %0 : vector<1x16x4xf32> to vector<16x4xf32>
    %c0_2 = arith.constant 0 : index
    %c0_3 = arith.constant 0 : index
    %c0_4 = arith.constant 0 : index
    %2 = vector.load %arg5[%c0_2, %c0_3, %c0_4] : memref<1x1x128xf32, #tpu.memory_space<vmem>>, vector<1x1x128xf32>
    %3 = vector.shape_cast %2 : vector<1x1x128xf32> to vector<1x128xf32>
    %4 = arith.mulf %1, %1 : vector<16x4xf32>
    %cst = arith.constant -5.000000e-01 : f32
    %5 = vector.broadcast %cst : f32 to vector<16x4xf32>
    %6 = arith.mulf %5, %4 : vector<16x4xf32>
    %c0_5 = arith.constant 0 : index
    %c0_6 = arith.constant 0 : index
    %c0_7 = arith.constant 0 : index
    %7 = vector.load %arg3[%c0_5, %c0_6, %c0_7] : memref<1x128x4xf32, #tpu.memory_space<vmem>>, vector<1x128x4xf32>
    %8 = vector.shape_cast %7 : vector<1x128x4xf32> to vector<128x4xf32>
    %cst_8 = arith.constant dense<0.000000e+00> : vector<16x128xf32>
    %9 = tpu.matmul %6, %8, %cst_8 {dimension_numbers = #tpu.dot_dimension_numbers<[1], [1], [0], [0], [0, 0, 1, 0], [], []>} : vector<16x4xf32>, vector<128x4xf32>, vector<16x128xf32> -> vector<16x128xf32>
    %10 = vector.broadcast %3 : vector<1x128xf32> to vector<16x128xf32>
    %11 = arith.addf %10, %9 : vector<16x128xf32>
    %c0_9 = arith.constant 0 : index
    %c0_10 = arith.constant 0 : index
    %c0_11 = arith.constant 0 : index
    %12 = vector.load %arg4[%c0_9, %c0_10, %c0_11] : memref<1x128x4xf32, #tpu.memory_space<vmem>>, vector<1x128x4xf32>
    %13 = vector.shape_cast %12 : vector<1x128x4xf32> to vector<128x4xf32>
    %cst_12 = arith.constant dense<0.000000e+00> : vector<16x128xf32>
    %14 = tpu.matmul %1, %13, %cst_12 {dimension_numbers = #tpu.dot_dimension_numbers<[1], [1], [0], [0], [0, 0, 1, 0], [], []>} : vector<16x4xf32>, vector<128x4xf32>, vector<16x128xf32> -> vector<16x128xf32>
    %15 = arith.addf %11, %14 : vector<16x128xf32>
    %c0_13 = arith.constant 0 : index
    %c0_14 = arith.constant 0 : index
    %c0_15 = arith.constant 0 : index
    %16 = vector.load %arg6[%c0_13, %c0_14, %c0_15] : memref<1x16x128xf32, #tpu.memory_space<vmem>>, vector<1x16x128xf32>
    %17 = vector.shape_cast %16 : vector<1x16x128xf32> to vector<16x128xf32>
    %18 = vector.shape_cast %15 : vector<16x128xf32> to vector<1x16x128xf32>
    tpu.vector_store %arg6[%c0_13, %c0_14, %c0_15], %18 {strides = array<i32>} : memref<1x16x128xf32, #tpu.memory_space<vmem>>, vector<1x16x128xf32>,
    return
  }
  func.func @transform_0(%arg0: i32, %arg1: i32) -> (i32, i32, i32) {
    %c0_i32 = arith.constant 0 : i32
    %c0_i32_0 = arith.constant 0 : i32
    return %arg0, %arg1, %c0_i32 : i32, i32, i32
  }
  func.func @transform_1(%arg0: i32, %arg1: i32) -> (i32, i32, i32) {
    %c0_i32 = arith.constant 0 : i32
    %c0_i32_0 = arith.constant 0 : i32
    %c0_i32_1 = arith.constant 0 : i32
    return %arg0, %c0_i32, %c0_i32_0 : i32, i32, i32
  }
  func.func @transform_2(%arg0: i32, %arg1: i32) -> (i32, i32, i32) {
    %c0_i32 = arith.constant 0 : i32
    %c0_i32_0 = arith.constant 0 : i32
    %c0_i32_1 = arith.constant 0 : i32
    return %arg0, %c0_i32, %c0_i32_0 : i32, i32, i32
  }
  func.func @transform_3(%arg0: i32, %arg1: i32) -> (i32, i32, i32) {
    %c0_i32 = arith.constant 0 : i32
    %c0_i32_0 = arith.constant 0 : i32
    %c0_i32_1 = arith.constant 0 : i32
    return %arg0, %c0_i32, %c0_i32_0 : i32, i32, i32
  }
  func.func @transform_4(%arg0: i32, %arg1: i32) -> (i32, i32, i32) {
    %c0_i32 = arith.constant 0 : i32
    %c0_i32_0 = arith.constant 0 : i32
    return %arg0, %arg1, %c0_i32 : i32, i32, i32
  }
}

module attributes {stable_mosaic.version = 11 : i64} {
  func.func @_conv_tap_kernel(%arg0: i32, %arg1: i32, %arg2: i32, %arg3: memref<1x1x10x8xbf16, #tpu.memory_space<vmem>>, %arg4: memref<3x8x128xbf16, #tpu.memory_space<vmem>>, %arg5: memref<1x128xf32, #tpu.memory_space<vmem>>, %arg6: memref<1x8x128xf32, #tpu.memory_space<vmem>>) attributes {dimension_semantics = [#tpu.dimension_semantics<parallel>, #tpu.dimension_semantics<parallel>, #tpu.dimension_semantics<parallel>], iteration_bounds = array<i64: 2, 1, 2>, scalar_prefetch = 0 : i64, scratch_operands = 0 : i64, tpu.core_type = #tpu.core_type<tc>, window_params = [{transform_indices = @transform_0, window_bounds = array<i64: 1, 1, 10, 8>}, {transform_indices = @transform_1, window_bounds = array<i64: 3, 8, 128>}, {transform_indices = @transform_2, window_bounds = array<i64: 1, 128>}, {transform_indices = @transform_3, window_bounds = array<i64: 1, 8, 128>}]} {
    %cst = arith.constant 0.000000e+00 : f32
    %0 = vector.broadcast %cst : f32 to vector<8x128xf32>
    %c0 = arith.constant 0 : index
    %c0_0 = arith.constant 0 : index
    %c0_1 = arith.constant 0 : index
    %c0_2 = arith.constant 0 : index
    %1 = vector.load %arg3[%c0, %c0_0, %c0_1, %c0_2] : memref<1x1x10x8xbf16, #tpu.memory_space<vmem>>, vector<1x1x8x8xbf16>
    %2 = vector.shape_cast %1 : vector<1x1x8x8xbf16> to vector<8x8xbf16>
    %c0_3 = arith.constant 0 : index
    %c0_4 = arith.constant 0 : index
    %c0_5 = arith.constant 0 : index
    %3 = vector.load %arg4[%c0_3, %c0_4, %c0_5] : memref<3x8x128xbf16, #tpu.memory_space<vmem>>, vector<1x8x128xbf16>
    %4 = vector.shape_cast %3 : vector<1x8x128xbf16> to vector<8x128xbf16>
    %cst_6 = arith.constant dense<0.000000e+00> : vector<8x128xf32>
    %5 = tpu.matmul %2, %4, %cst_6 {dimension_numbers = #tpu.dot_dimension_numbers<[1], [0], [0], [1], [0, 0, 1, 1], [], []>} : vector<8x8xbf16>, vector<8x128xbf16>, vector<8x128xf32> -> vector<8x128xf32>
    %6 = arith.addf %0, %5 : vector<8x128xf32>
    %c0_7 = arith.constant 0 : index
    %c0_8 = arith.constant 0 : index
    %c1 = arith.constant 1 : index
    %c0_9 = arith.constant 0 : index
    %7 = vector.load %arg3[%c0_7, %c0_8, %c1, %c0_9] : memref<1x1x10x8xbf16, #tpu.memory_space<vmem>>, vector<1x1x8x8xbf16>
    %8 = vector.shape_cast %7 : vector<1x1x8x8xbf16> to vector<8x8xbf16>
    %c1_10 = arith.constant 1 : index
    %c0_11 = arith.constant 0 : index
    %c0_12 = arith.constant 0 : index
    %9 = vector.load %arg4[%c1_10, %c0_11, %c0_12] : memref<3x8x128xbf16, #tpu.memory_space<vmem>>, vector<1x8x128xbf16>
    %10 = vector.shape_cast %9 : vector<1x8x128xbf16> to vector<8x128xbf16>
    %cst_13 = arith.constant dense<0.000000e+00> : vector<8x128xf32>
    %11 = tpu.matmul %8, %10, %cst_13 {dimension_numbers = #tpu.dot_dimension_numbers<[1], [0], [0], [1], [0, 0, 1, 1], [], []>} : vector<8x8xbf16>, vector<8x128xbf16>, vector<8x128xf32> -> vector<8x128xf32>
    %12 = arith.addf %6, %11 : vector<8x128xf32>
    %c0_14 = arith.constant 0 : index
    %c0_15 = arith.constant 0 : index
    %c2 = arith.constant 2 : index
    %c0_16 = arith.constant 0 : index
    %13 = vector.load %arg3[%c0_14, %c0_15, %c2, %c0_16] : memref<1x1x10x8xbf16, #tpu.memory_space<vmem>>, vector<1x1x8x8xbf16>
    %14 = vector.shape_cast %13 : vector<1x1x8x8xbf16> to vector<8x8xbf16>
    %c2_17 = arith.constant 2 : index
    %c0_18 = arith.constant 0 : index
    %c0_19 = arith.constant 0 : index
    %15 = vector.load %arg4[%c2_17, %c0_18, %c0_19] : memref<3x8x128xbf16, #tpu.memory_space<vmem>>, vector<1x8x128xbf16>
    %16 = vector.shape_cast %15 : vector<1x8x128xbf16> to vector<8x128xbf16>
    %cst_20 = arith.constant dense<0.000000e+00> : vector<8x128xf32>
    %17 = tpu.matmul %14, %16, %cst_20 {dimension_numbers = #tpu.dot_dimension_numbers<[1], [0], [0], [1], [0, 0, 1, 1], [], []>} : vector<8x8xbf16>, vector<8x128xbf16>, vector<8x128xf32> -> vector<8x128xf32>
    %18 = arith.addf %12, %17 : vector<8x128xf32>
    %c0_21 = arith.constant 0 : index
    %c0_22 = arith.constant 0 : index
    %19 = vector.load %arg5[%c0_21, %c0_22] : memref<1x128xf32, #tpu.memory_space<vmem>>, vector<1x128xf32>
    %20 = vector.broadcast %19 : vector<1x128xf32> to vector<8x128xf32>
    %21 = arith.addf %18, %20 : vector<8x128xf32>
    %c0_23 = arith.constant 0 : index
    %c0_24 = arith.constant 0 : index
    %c0_25 = arith.constant 0 : index
    %22 = vector.load %arg6[%c0_23, %c0_24, %c0_25] : memref<1x8x128xf32, #tpu.memory_space<vmem>>, vector<1x8x128xf32>
    %23 = vector.shape_cast %22 : vector<1x8x128xf32> to vector<8x128xf32>
    %24 = vector.shape_cast %21 : vector<8x128xf32> to vector<1x8x128xf32>
    tpu.vector_store %arg6[%c0_23, %c0_24, %c0_25], %24 {strides = array<i32>} : memref<1x8x128xf32, #tpu.memory_space<vmem>>, vector<1x8x128xf32>,
    return
  }
  func.func @transform_0(%arg0: i32, %arg1: i32, %arg2: i32) -> (i32, i32, i32, i32) {
    %c0_i32 = arith.constant 0 : i32
    %c0_i32_0 = arith.constant 0 : i32
    %c0_i32_1 = arith.constant 0 : i32
    return %arg0, %arg1, %c0_i32, %c0_i32_0 : i32, i32, i32, i32
  }
  func.func @transform_1(%arg0: i32, %arg1: i32, %arg2: i32) -> (i32, i32, i32) {
    %c0_i32 = arith.constant 0 : i32
    %c0_i32_0 = arith.constant 0 : i32
    %c0_i32_1 = arith.constant 0 : i32
    return %c0_i32, %c0_i32_0, %arg2 : i32, i32, i32
  }
  func.func @transform_2(%arg0: i32, %arg1: i32, %arg2: i32) -> (i32, i32) {
    %c0_i32 = arith.constant 0 : i32
    %c0_i32_0 = arith.constant 0 : i32
    return %c0_i32, %arg2 : i32, i32
  }
  func.func @transform_3(%arg0: i32, %arg1: i32, %arg2: i32) -> (i32, i32, i32) {
    %c0_i32 = arith.constant 0 : i32
    return %arg0, %arg1, %arg2 : i32, i32, i32
  }
}

module attributes {stable_mosaic.version = 11 : i64} {
  func.func @_conv_tap_kernel(%arg0: i32, %arg1: i32, %arg2: i32, %arg3: memref<1x1x10x256xbf16, #tpu.memory_space<vmem>>, %arg4: memref<3x256x128xbf16, #tpu.memory_space<vmem>>, %arg5: memref<1x128xf32, #tpu.memory_space<vmem>>, %arg6: memref<1x8x128xf32, #tpu.memory_space<vmem>>) attributes {dimension_semantics = [#tpu.dimension_semantics<parallel>, #tpu.dimension_semantics<parallel>, #tpu.dimension_semantics<parallel>], iteration_bounds = array<i64: 2, 1, 2>, scalar_prefetch = 0 : i64, scratch_operands = 0 : i64, tpu.core_type = #tpu.core_type<tc>, window_params = [{transform_indices = @transform_0, window_bounds = array<i64: 1, 1, 10, 256>}, {transform_indices = @transform_1, window_bounds = array<i64: 3, 256, 128>}, {transform_indices = @transform_2, window_bounds = array<i64: 1, 128>}, {transform_indices = @transform_3, window_bounds = array<i64: 1, 8, 128>}]} {
    %cst = arith.constant 0.000000e+00 : f32
    %0 = vector.broadcast %cst : f32 to vector<8x128xf32>
    %c0 = arith.constant 0 : index
    %c0_0 = arith.constant 0 : index
    %c0_1 = arith.constant 0 : index
    %c0_2 = arith.constant 0 : index
    %1 = vector.load %arg3[%c0, %c0_0, %c0_1, %c0_2] : memref<1x1x10x256xbf16, #tpu.memory_space<vmem>>, vector<1x1x8x256xbf16>
    %2 = vector.shape_cast %1 : vector<1x1x8x256xbf16> to vector<8x256xbf16>
    %c0_3 = arith.constant 0 : index
    %c0_4 = arith.constant 0 : index
    %c0_5 = arith.constant 0 : index
    %3 = vector.load %arg4[%c0_3, %c0_4, %c0_5] : memref<3x256x128xbf16, #tpu.memory_space<vmem>>, vector<1x256x128xbf16>
    %4 = vector.shape_cast %3 : vector<1x256x128xbf16> to vector<256x128xbf16>
    %cst_6 = arith.constant dense<0.000000e+00> : vector<8x128xf32>
    %5 = tpu.matmul %2, %4, %cst_6 {dimension_numbers = #tpu.dot_dimension_numbers<[1], [0], [0], [1], [0, 0, 1, 1], [], []>} : vector<8x256xbf16>, vector<256x128xbf16>, vector<8x128xf32> -> vector<8x128xf32>
    %6 = arith.addf %0, %5 : vector<8x128xf32>
    %c0_7 = arith.constant 0 : index
    %c0_8 = arith.constant 0 : index
    %c1 = arith.constant 1 : index
    %c0_9 = arith.constant 0 : index
    %7 = vector.load %arg3[%c0_7, %c0_8, %c1, %c0_9] : memref<1x1x10x256xbf16, #tpu.memory_space<vmem>>, vector<1x1x8x256xbf16>
    %8 = vector.shape_cast %7 : vector<1x1x8x256xbf16> to vector<8x256xbf16>
    %c1_10 = arith.constant 1 : index
    %c0_11 = arith.constant 0 : index
    %c0_12 = arith.constant 0 : index
    %9 = vector.load %arg4[%c1_10, %c0_11, %c0_12] : memref<3x256x128xbf16, #tpu.memory_space<vmem>>, vector<1x256x128xbf16>
    %10 = vector.shape_cast %9 : vector<1x256x128xbf16> to vector<256x128xbf16>
    %cst_13 = arith.constant dense<0.000000e+00> : vector<8x128xf32>
    %11 = tpu.matmul %8, %10, %cst_13 {dimension_numbers = #tpu.dot_dimension_numbers<[1], [0], [0], [1], [0, 0, 1, 1], [], []>} : vector<8x256xbf16>, vector<256x128xbf16>, vector<8x128xf32> -> vector<8x128xf32>
    %12 = arith.addf %6, %11 : vector<8x128xf32>
    %c0_14 = arith.constant 0 : index
    %c0_15 = arith.constant 0 : index
    %c2 = arith.constant 2 : index
    %c0_16 = arith.constant 0 : index
    %13 = vector.load %arg3[%c0_14, %c0_15, %c2, %c0_16] : memref<1x1x10x256xbf16, #tpu.memory_space<vmem>>, vector<1x1x8x256xbf16>
    %14 = vector.shape_cast %13 : vector<1x1x8x256xbf16> to vector<8x256xbf16>
    %c2_17 = arith.constant 2 : index
    %c0_18 = arith.constant 0 : index
    %c0_19 = arith.constant 0 : index
    %15 = vector.load %arg4[%c2_17, %c0_18, %c0_19] : memref<3x256x128xbf16, #tpu.memory_space<vmem>>, vector<1x256x128xbf16>
    %16 = vector.shape_cast %15 : vector<1x256x128xbf16> to vector<256x128xbf16>
    %cst_20 = arith.constant dense<0.000000e+00> : vector<8x128xf32>
    %17 = tpu.matmul %14, %16, %cst_20 {dimension_numbers = #tpu.dot_dimension_numbers<[1], [0], [0], [1], [0, 0, 1, 1], [], []>} : vector<8x256xbf16>, vector<256x128xbf16>, vector<8x128xf32> -> vector<8x128xf32>
    %18 = arith.addf %12, %17 : vector<8x128xf32>
    %c0_21 = arith.constant 0 : index
    %c0_22 = arith.constant 0 : index
    %19 = vector.load %arg5[%c0_21, %c0_22] : memref<1x128xf32, #tpu.memory_space<vmem>>, vector<1x128xf32>
    %20 = vector.broadcast %19 : vector<1x128xf32> to vector<8x128xf32>
    %21 = arith.addf %18, %20 : vector<8x128xf32>
    %c0_23 = arith.constant 0 : index
    %c0_24 = arith.constant 0 : index
    %c0_25 = arith.constant 0 : index
    %22 = vector.load %arg6[%c0_23, %c0_24, %c0_25] : memref<1x8x128xf32, #tpu.memory_space<vmem>>, vector<1x8x128xf32>
    %23 = vector.shape_cast %22 : vector<1x8x128xf32> to vector<8x128xf32>
    %24 = vector.shape_cast %21 : vector<8x128xf32> to vector<1x8x128xf32>
    tpu.vector_store %arg6[%c0_23, %c0_24, %c0_25], %24 {strides = array<i32>} : memref<1x8x128xf32, #tpu.memory_space<vmem>>, vector<1x8x128xf32>,
    return
  }
  func.func @transform_0(%arg0: i32, %arg1: i32, %arg2: i32) -> (i32, i32, i32, i32) {
    %c0_i32 = arith.constant 0 : i32
    %c0_i32_0 = arith.constant 0 : i32
    %c0_i32_1 = arith.constant 0 : i32
    return %arg0, %arg1, %c0_i32, %c0_i32_0 : i32, i32, i32, i32
  }
  func.func @transform_1(%arg0: i32, %arg1: i32, %arg2: i32) -> (i32, i32, i32) {
    %c0_i32 = arith.constant 0 : i32
    %c0_i32_0 = arith.constant 0 : i32
    %c0_i32_1 = arith.constant 0 : i32
    return %c0_i32, %c0_i32_0, %arg2 : i32, i32, i32
  }
  func.func @transform_2(%arg0: i32, %arg1: i32, %arg2: i32) -> (i32, i32) {
    %c0_i32 = arith.constant 0 : i32
    %c0_i32_0 = arith.constant 0 : i32
    return %c0_i32, %arg2 : i32, i32
  }
  func.func @transform_3(%arg0: i32, %arg1: i32, %arg2: i32) -> (i32, i32, i32) {
    %c0_i32 = arith.constant 0 : i32
    return %arg0, %arg1, %arg2 : i32, i32, i32
  }
}

module attributes {stable_mosaic.version = 11 : i64} {
  func.func @_mm_bias_kernel(%arg0: i32, %arg1: i32, %arg2: i32, %arg3: memref<16x256xbf16, #tpu.memory_space<vmem>>, %arg4: memref<256x128xbf16, #tpu.memory_space<vmem>>, %arg5: memref<1x128xf32, #tpu.memory_space<vmem>>, %arg6: memref<16x128xf32, #tpu.memory_space<vmem>>, %arg7: memref<16x128xf32, #tpu.memory_space<vmem>>) attributes {dimension_semantics = [#tpu.dimension_semantics<parallel>, #tpu.dimension_semantics<parallel>, #tpu.dimension_semantics<arbitrary>], iteration_bounds = array<i64: 1, 1, 1>, scalar_prefetch = 0 : i64, scratch_operands = 1 : i64, tpu.core_type = #tpu.core_type<tc>, window_params = [{transform_indices = @transform_0, window_bounds = array<i64: 16, 256>}, {transform_indices = @transform_1, window_bounds = array<i64: 256, 128>}, {transform_indices = @transform_2, window_bounds = array<i64: 1, 128>}, {transform_indices = @transform_3, window_bounds = array<i64: 16, 128>}]} {
    %c0_i32 = arith.constant 0 : i32
    %0 = arith.cmpi eq, %arg2, %c0_i32 : i32
    %1 = arith.extui %0 : i1 to i32
    %c0_i32_0 = arith.constant 0 : i32
    %2 = arith.cmpi ne, %1, %c0_i32_0 : i32
    scf.if %2 {
      %cst_10 = arith.constant 0.000000e+00 : f32
      %12 = vector.broadcast %cst_10 : f32 to vector<16x128xf32>
      %c0_11 = arith.constant 0 : index
      %c0_12 = arith.constant 0 : index
      %13 = vector.load %arg7[%c0_11, %c0_12] : memref<16x128xf32, #tpu.memory_space<vmem>>, vector<16x128xf32>
      tpu.vector_store %arg7[%c0_11, %c0_12], %12 {strides = array<i32>} : memref<16x128xf32, #tpu.memory_space<vmem>>, vector<16x128xf32>,
    } else {
    }
    %c0 = arith.constant 0 : index
    %c0_1 = arith.constant 0 : index
    %3 = vector.load %arg7[%c0, %c0_1] : memref<16x128xf32, #tpu.memory_space<vmem>>, vector<16x128xf32>
    %c0_2 = arith.constant 0 : index
    %c0_3 = arith.constant 0 : index
    %4 = vector.load %arg3[%c0_2, %c0_3] : memref<16x256xbf16, #tpu.memory_space<vmem>>, vector<16x256xbf16>
    %c0_4 = arith.constant 0 : index
    %c0_5 = arith.constant 0 : index
    %5 = vector.load %arg4[%c0_4, %c0_5] : memref<256x128xbf16, #tpu.memory_space<vmem>>, vector<256x128xbf16>
    %cst = arith.constant dense<0.000000e+00> : vector<16x128xf32>
    %6 = tpu.matmul %4, %5, %cst {dimension_numbers = #tpu.dot_dimension_numbers<[1], [0], [0], [1], [0, 0, 1, 1], [], []>} : vector<16x256xbf16>, vector<256x128xbf16>, vector<16x128xf32> -> vector<16x128xf32>
    %7 = arith.addf %3, %6 : vector<16x128xf32>
    %c0_6 = arith.constant 0 : index
    %c0_7 = arith.constant 0 : index
    %8 = vector.load %arg7[%c0_6, %c0_7] : memref<16x128xf32, #tpu.memory_space<vmem>>, vector<16x128xf32>
    tpu.vector_store %arg7[%c0_6, %c0_7], %7 {strides = array<i32>} : memref<16x128xf32, #tpu.memory_space<vmem>>, vector<16x128xf32>,
    %c0_i32_8 = arith.constant 0 : i32
    %9 = arith.cmpi eq, %arg2, %c0_i32_8 : i32
    %10 = arith.extui %9 : i1 to i32
    %c0_i32_9 = arith.constant 0 : i32
    %11 = arith.cmpi ne, %10, %c0_i32_9 : i32
    scf.if %11 {
      %c0_10 = arith.constant 0 : index
      %c0_11 = arith.constant 0 : index
      %12 = vector.load %arg7[%c0_10, %c0_11] : memref<16x128xf32, #tpu.memory_space<vmem>>, vector<16x128xf32>
      %c0_12 = arith.constant 0 : index
      %c0_13 = arith.constant 0 : index
      %13 = vector.load %arg5[%c0_12, %c0_13] : memref<1x128xf32, #tpu.memory_space<vmem>>, vector<1x128xf32>
      %14 = vector.broadcast %13 : vector<1x128xf32> to vector<16x128xf32>
      %15 = arith.addf %12, %14 : vector<16x128xf32>
      %c0_14 = arith.constant 0 : index
      %c0_15 = arith.constant 0 : index
      %16 = vector.load %arg6[%c0_14, %c0_15] : memref<16x128xf32, #tpu.memory_space<vmem>>, vector<16x128xf32>
      tpu.vector_store %arg6[%c0_14, %c0_15], %15 {strides = array<i32>} : memref<16x128xf32, #tpu.memory_space<vmem>>, vector<16x128xf32>,
    } else {
    }
    return
  }
  func.func @transform_0(%arg0: i32, %arg1: i32, %arg2: i32) -> (i32, i32) {
    %c0_i32 = arith.constant 0 : i32
    return %arg0, %arg2 : i32, i32
  }
  func.func @transform_1(%arg0: i32, %arg1: i32, %arg2: i32) -> (i32, i32) {
    %c0_i32 = arith.constant 0 : i32
    return %arg2, %arg1 : i32, i32
  }
  func.func @transform_2(%arg0: i32, %arg1: i32, %arg2: i32) -> (i32, i32) {
    %c0_i32 = arith.constant 0 : i32
    %c0_i32_0 = arith.constant 0 : i32
    return %c0_i32, %arg1 : i32, i32
  }
  func.func @transform_3(%arg0: i32, %arg1: i32, %arg2: i32) -> (i32, i32) {
    %c0_i32 = arith.constant 0 : i32
    return %arg0, %arg1 : i32, i32
  }
}

module attributes {stable_mosaic.version = 11 : i64} {
  func.func @_bmm_kernel(%arg0: i32, %arg1: i32, %arg2: memref<1x16x6xbf16, #tpu.memory_space<vmem>>, %arg3: memref<1x6x128xbf16, #tpu.memory_space<vmem>>, %arg4: memref<1x16x128xf32, #tpu.memory_space<vmem>>) attributes {dimension_semantics = [#tpu.dimension_semantics<parallel>, #tpu.dimension_semantics<parallel>], iteration_bounds = array<i64: 2, 1>, scalar_prefetch = 0 : i64, scratch_operands = 0 : i64, tpu.core_type = #tpu.core_type<tc>, window_params = [{transform_indices = @transform_0, window_bounds = array<i64: 1, 16, 6>}, {transform_indices = @transform_1, window_bounds = array<i64: 1, 6, 128>}, {transform_indices = @transform_2, window_bounds = array<i64: 1, 16, 128>}]} {
    %c0 = arith.constant 0 : index
    %c0_0 = arith.constant 0 : index
    %c0_1 = arith.constant 0 : index
    %0 = vector.load %arg2[%c0, %c0_0, %c0_1] : memref<1x16x6xbf16, #tpu.memory_space<vmem>>, vector<1x16x6xbf16>
    %1 = vector.shape_cast %0 : vector<1x16x6xbf16> to vector<16x6xbf16>
    %c0_2 = arith.constant 0 : index
    %c0_3 = arith.constant 0 : index
    %c0_4 = arith.constant 0 : index
    %2 = vector.load %arg3[%c0_2, %c0_3, %c0_4] : memref<1x6x128xbf16, #tpu.memory_space<vmem>>, vector<1x6x128xbf16>
    %3 = vector.shape_cast %2 : vector<1x6x128xbf16> to vector<6x128xbf16>
    %cst = arith.constant dense<0.000000e+00> : vector<16x128xf32>
    %4 = tpu.matmul %1, %3, %cst {dimension_numbers = #tpu.dot_dimension_numbers<[1], [0], [0], [1], [0, 0, 1, 1], [], []>} : vector<16x6xbf16>, vector<6x128xbf16>, vector<16x128xf32> -> vector<16x128xf32>
    %c0_5 = arith.constant 0 : index
    %c0_6 = arith.constant 0 : index
    %c0_7 = arith.constant 0 : index
    %5 = vector.load %arg4[%c0_5, %c0_6, %c0_7] : memref<1x16x128xf32, #tpu.memory_space<vmem>>, vector<1x16x128xf32>
    %6 = vector.shape_cast %5 : vector<1x16x128xf32> to vector<16x128xf32>
    %7 = vector.shape_cast %4 : vector<16x128xf32> to vector<1x16x128xf32>
    tpu.vector_store %arg4[%c0_5, %c0_6, %c0_7], %7 {strides = array<i32>} : memref<1x16x128xf32, #tpu.memory_space<vmem>>, vector<1x16x128xf32>,
    return
  }
  func.func @transform_0(%arg0: i32, %arg1: i32) -> (i32, i32, i32) {
    %c0_i32 = arith.constant 0 : i32
    %c0_i32_0 = arith.constant 0 : i32
    return %arg0, %arg1, %c0_i32 : i32, i32, i32
  }
  func.func @transform_1(%arg0: i32, %arg1: i32) -> (i32, i32, i32) {
    %c0_i32 = arith.constant 0 : i32
    %c0_i32_0 = arith.constant 0 : i32
    %c0_i32_1 = arith.constant 0 : i32
    return %arg0, %c0_i32, %c0_i32_0 : i32, i32, i32
  }
  func.func @transform_2(%arg0: i32, %arg1: i32) -> (i32, i32, i32) {
    %c0_i32 = arith.constant 0 : i32
    %c0_i32_0 = arith.constant 0 : i32
    return %arg0, %arg1, %c0_i32 : i32, i32, i32
  }
}

</mosaic_0001>

<bundles_post_ra>
// kernel: fwd.74
= control target key start
LH: loop header
LB: loop body
LE: loop exit
PB: predicated region body
PF: predicated region fallthrough
CT: control target
= control target key end

     0   :  { %vm50_vm0 = vcmask 1043456   ;;  %vm51_vm1 = vcmask 1044480   ;;  %v116_v2 = vmov 65535   ;;  %vm43_vm2 = vcmask 72704   ;;  %s161_s1 = inlined_call_operand.vmem [shape: bf16[9,128], index: 1, kind: input, shape index: {}]   ;;  %s162_s0 = inlined_call_operand.vmem [shape: bf16[24,9], index: 0, kind: input, shape index: {}]   ;;  %s163_s2 = inlined_call_operand.vmem [shape: f32[1,128], index: 2, kind: input, shape index: {}]   ;;  %s164_s3 = inlined_call_operand.vmem [shape: f32[24,128], index: 3, kind: output, shape index: {}]  }
   0x1   :  { %v107_v0 = vld [vmem:[%s161_s1] sm:$0xf]  ;;  %v112_v1 = vld [vmem:[%s161_s1] sm:$0x10]  ;;  %v52_v3 = vsel %vm50_vm0, 4294967295, %v116_v2 }
   0x2   :  { %v108_v4 = vor.u32 %v112_v1, %v107_v0  ;;  %v53_v5 = vsel %vm51_vm1, %v52_v3, 0  ;;  %v27_v6 = vld [vmem:[%s162_s0 + $0x8] sm:$0xf]  ;;  %v111_v9 = vld [vmem:[%s162_s0] sm:$0xff] }
   0x3   :  { %v35_v7 = vunpack.c.l.b16 %v27_v6  ;;  %v115_v11 = vld [vmem:[%s163_s2] ss:$0 sm:$0xff] }
   0x4   :  { %v55_v8 = vand.u32 %v108_v4, %v53_v5 }
   0x5   :  { %v37_v10 = vpack.c.b16 %v35_v7, %v35_v7 }
   0x6   :  { %64 = vmatpush.bf16.msra.mxu0 %v55_v8  ;;  %113 = vmatpush.bf16.msra.mxu1 %v55_v8 }
   0x9   :  { %109 = vmatmul.msk.bf16.vlgmr.msra.gmra.mxu0 %vm43_vm2, %v111_v9  ;;  %110 = vmatmul.msk.bf16.vlgmr.msra.gmra.mxu1 %vm43_vm2, %v37_v10 }
  0x86   :  { %v66_v12 = vpop.f32.mrf.mxu0  ;;  %v71_v13 = vpop.f32.mrf.mxu1 }
  0x87   :  { %v91_v14 = vadd.f32 %v115_v11, %v66_v12  ;;  %v93_v15 = vadd.f32 %v115_v11, %v71_v13 }
  0x89   :  { %94 = vst [vmem:[%s164_s3] sm:$0xff] %v91_v14 }
  0x8a   :  { %96 = vst [vmem:[%s164_s3 + $0x10] sm:$0xff] %v93_v15 }
  0x8e   :  { %v68_v16 = vpop.f32.mrf.mxu0  ;;  %v73_v17 = vpop.f32.mrf.mxu1 }
  0x8f   :  { %v92_v18 = vadd.f32 %v115_v11, %v68_v16 }
  0x91   :  { %95 = vst [vmem:[%s164_s3 + $0x8] sm:$0xff] %v92_v18 }

// kernel: fwd.75
= control target key start
LH: loop header
LB: loop body
LE: loop exit
PB: predicated region body
PF: predicated region fallthrough
CT: control target
= control target key end

     0   :  { %s1044_s18 = smov 0   ;;  %s1046_s19 = smov 0   ;;  %s1248_s0 = inlined_call_operand.vmem [shape: bf16[2,1,20,8], index: 0, kind: input, shape index: {}]   ;;  %s1249_s1 = inlined_call_operand.vmem [shape: bf16[5,8,256], index: 1, kind: input, shape index: {}]   ;;  %s1250_s2 = inlined_call_operand.vmem [shape: f32[1,256], index: 2, kind: input, shape index: {}]   ;;  %s1251_s3 = inlined_call_operand.vmem [shape: bf16[128,256], index: 3, kind: input, shape index: {}]   ;;  %s1252_s4 = inlined_call_operand.vmem [shape: f32[1,256], index: 4, kind: input, shape index: {}]   ;;  %s1253_s5 = inlined_call_operand.vmem [shape: f32[2,16,256], index: 5, kind: output, shape index: {}]  }
   0x1   :  { %s1048_s20 = smov 0  }
   0x2 LB: > { %s27_s21 = sadd.s32 1, %s1008_s19  ;;  %p846_p0 = scmp.ge.s32.totalorder %s1012_s20, 1  ;;  %s1012_s20 = sphi %s1048_s20, %s15_s20   ;;  %s1008_s19 = sphi %s1046_s19, %s1255_s19   ;;  %s1004_s18 = sphi %s1044_s18, %s1254_s18  }
   0x3   : > { %p29_p1 = scmp.ge.s32.totalorder %s27_s21, 2  ;;  %p207_p2 = scmp.lt.s32.totalorder %s1012_s20, 3 }
   0x5   : > { %s1257_s21 = smov (%p29_p1, %s27_s21), 0  ;;  %p208_p3 = pnand %p846_p0, %p207_p2 }
   0x6   : > { %p244_p4 = scmp.lt.s32.totalorder (!%p208_p3), %s1004_s18, 1 }
   0x7   : > { %211 = sbr.rel (%p208_p3) target bundleno = 374 (0x176), region = 40 }
   0xc   : > { %v267_v0 = vld [vmem:[%s1249_s1] sm:$0xff]  ;;  %v850_v1 = vld [vmem:[%s1249_s1 + $0x8] sm:$0xff]  ;;  %v855_v2 = vld [vmem:[%s1249_s1 + $0x10] sm:$0xff]  ;;  %vm301_vm0 = vcmask 1043456   ;;  %s1259_s18 = smov (!%p244_p4, %s1004_s18), 1  ;;  %vm297_vm1 = vcmask 64512  }
   0xd   : > { %v338_v3 = vunpack.c.h.b16 %v267_v0  ;;  %v337_v4 = vunpack.c.l.b16 %v267_v0  ;;  %v293_v5 = vunpack.c.l.b16 %v850_v1  ;;  %v294_v6 = vunpack.c.h.b16 %v850_v1  ;;  %v858_v7 = vld [vmem:[%s1249_s1 + $0x18] sm:$0xff]  ;;  %s953_s30 = smul.u32 12, %s1259_s18  ;;  %v861_v18 = vld [vmem:[%s1249_s1 + $0x20] sm:$0xff]  ;;  %s932_s16 = sshll.u32 %s1259_s18, 5 }
   0xe   : > { %v389_v8 = vunpack.c.h.b16 %v855_v2  ;;  %v459_v9 = vunpack.c.h.b16 %v858_v7  ;;  %v458_v10 = vunpack.c.l.b16 %v858_v7  ;;  %v388_v25 = vunpack.c.l.b16 %v855_v2  ;;  %s262_s23 = scalar_lea.vmem %s1253_s5, %s932_s16 }
   0xf   : > { %v340_v11 = vpack.c.b16 %v338_v3, %v338_v3  ;;  %v339_v12 = vpack.c.b16 %v337_v4, %v337_v4  ;;  %v295_v13 = vpack.c.b16 %v293_v5, %v293_v5  ;;  %v296_v14 = vpack.c.b16 %v294_v6, %v294_v6  ;;  %s1087_s10 = scalar_lea.vmem %s1248_s0, %s953_s30 }
  0x10   : > { %v391_v15 = vpack.c.b16 %v389_v8, %v389_v8  ;;  %v461_v16 = vpack.c.b16 %v459_v9, %v459_v9  ;;  %v460_v17 = vpack.c.b16 %v458_v10, %v458_v10  ;;  %v1092_v26 = vld [vmem:[%s1087_s10] sm:$0xff]   ;;  %v268_v28 = vld [vmem:[%s1087_s10 + $0x8] sm:$0x1]  ;;  %v515_v30 = vunpack.c.h.b16 %v861_v18 }
  0x11   : > { %v347_v19 = vsel %vm301_vm0, %v340_v11, 0  ;;  %v344_v20 = vsel %vm301_vm0, %v339_v12, 0  ;;  %v303_v21 = vsel %vm301_vm0, %v295_v13, 0  ;;  %v306_v22 = vsel %vm301_vm0, %v296_v14, 0  ;;  %v377_v27 = vld [vmem:[%s1087_s10] sm:$0xe] }
  0x12   : > { %370 = vmatpush.bf16.msra.mxu3 %v347_v19  ;;  %356 = vmatpush.bf16.msra.mxu2 %v344_v20  ;;  %v399_v23 = vsel %vm301_vm0, %v391_v15, 0  ;;  %v469_v24 = vsel %vm301_vm0, %v461_v16, 0  ;;  %v466_v29 = vsel %vm301_vm0, %v460_v17, 0  ;;  %v514_v31 = vunpack.c.l.b16 %v861_v18  ;;  %v433_v35 = vld [vmem:[%s1087_s10 + $0x8] sm:$0x3] }
  0x13   : > { %315 = vmatpush.bf16.msra.mxu0 %v303_v21  ;;  %329 = vmatpush.bf16.msra.mxu1 %v306_v22  ;;  %v952_v32 = vunpack.c.h.b16 %v1092_v26  ;;  %v381_v33 = vunpack.c.l.b16 %v377_v27  ;;  %v276_v34 = vunpack.c.l.b16 %v268_v28  ;;  %v281_v36 = vshrl.u32 %v1092_v26, 16  ;;  %v503_v3 = vld [vmem:[%s1087_s10] sm:$0xc]  ;;  %v924_v13 = vld [vmem:[%s1251_s3 + $0x70] sm:$0xf] }
  0x14   : > { %v283_v37 = vshll.u32 %v1092_v26, 16  ;;  %v437_v38 = vunpack.c.l.b16 %v433_v35  ;;  %v390_v39 = vpack.c.b16 %v388_v25, %v388_v25  ;;  %v517_v42 = vpack.c.b16 %v515_v30, %v515_v30  ;;  %v948_v14 = vld [vmem:[%s1251_s3 + $0x74] sm:$0xf0]  ;;  %v947_v15 = vld [vmem:[%s1251_s3 + $0x74] sm:$0xf] }
  0x15   : > { %854 = vmatmul.msk.bf16.vlgmr.msra.gmra.mxu3 %vm297_vm1, %v1092_v26  ;;  %853 = vmatmul.msk.bf16.vlgmr.msra.gmra.mxu2 %vm297_vm1, %v1092_v26  ;;  %v382_v40 = vpack.c.b16 %v952_v32, %v381_v33  ;;  %v278_v41 = vpack.c.b16 %v276_v34, %v276_v34  ;;  %v516_v46 = vpack.c.b16 %v514_v31, %v514_v31  ;;  %vm279_vm2 = vsmask.f32 7424  ;;  %v926_v17 = vld [vmem:[%s1251_s3 + $0x78] sm:$0xf0]  ;;  %v916_v20 = vld [vmem:[%s1251_s3 + $0x60] sm:$0xf] }
  0x16   : > { %492 = vmatpush.bf16.msrb.mxu3 %v469_v24  ;;  %478 = vmatpush.bf16.msrb.mxu2 %v466_v29  ;;  %v285_v43 = vrot.slane %v283_v37, 1  ;;  %v438_v44 = vpack.c.b16 %v437_v38, %v437_v38  ;;  %v396_v45 = vsel %vm301_vm0, %v390_v39, 0  ;;  %v525_v58 = vsel %vm301_vm0, %v517_v42, 0  ;;  %v946_v21 = vld [vmem:[%s1251_s3 + $0x64] sm:$0xf0] }
  0x17   : > { %422 = vmatpush.bf16.msrb.mxu1 %v399_v23  ;;  %v288_v47 = vshll.u32 %v278_v41, 16  ;;  %v441_v48 = vshrl.u32 %v382_v40, 16  ;;  %v444_v49 = vshll.u32 %v382_v40, 16  ;;  %408 = vmatpush.bf16.msrb.mxu0 %v396_v45  ;;  %v522_v59 = vsel %vm301_vm0, %v516_v46, 0  ;;  %v945_v22 = vld [vmem:[%s1251_s3 + $0x64] sm:$0xf] }
  0x18   : > { %v286_v50 = vor.u32 %v285_v43, %v281_v36  ;;  %v449_v51 = vshrl.u32 %v438_v44, 16  ;;  %v452_v52 = vshll.u32 %v438_v44, 16  ;;  %vm439_vm3 = vsmask.f32 6400  ;;  %v918_v25 = vld [vmem:[%s1251_s3 + $0x68] sm:$0xf0] }
  0x19   : > { %v290_v53 = vrot.slane %v288_v47, 1  ;;  %v443_v54 = vrot.slane %v441_v48, 1  ;;  %v446_v55 = vrot.slane %v444_v49, 2  ;;  %v384_v0 = vrot.slane %v382_v40, 1  ;;  %v908_v28 = vld [vmem:[%s1251_s3 + $0x50] sm:$0xf] }
  0x1a   : > { %v451_v56 = vrot.slane %v449_v51, 1  ;;  %v454_v57 = vrot.slane %v452_v52, 2  ;;  %v385_v1 = vrot.slane %v278_v41, 1  ;;  %vm383_vm4 = vcmask 1046528   ;;  %v944_v29 = vld [vmem:[%s1251_s3 + $0x54] sm:$0xf0] }
  0x1b   : > { %v291_v60 = vsel %vm279_vm2, %v286_v50, %v290_v53  ;;  %v447_v61 = vor.u32 %v446_v55, %v443_v54  ;;  %v507_v4 = vunpack.c.l.b16 %v503_v3  ;;  %v511_v7 = vrot.slane %v438_v44, 2  ;;  %v943_v30 = vld [vmem:[%s1251_s3 + $0x54] sm:$0xf]  ;;  %v900_v35 = vld [vmem:[%s1251_s3 + $0x40] sm:$0xf] }
  0x1c   : > { %851 = vmatmul.msk.bf16.vlgmr.msra.gmra.mxu0 %vm297_vm1, %v291_v60  ;;  %852 = vmatmul.msk.bf16.vlgmr.msra.gmra.mxu1 %vm297_vm1, %v291_v60  ;;  %v455_v62 = vor.u32 %v454_v57, %v451_v56  ;;  %v386_v2 = vsel %vm383_vm4, %v384_v0, %v385_v1  ;;  %vm509_vm5 = vcmask 1045504   ;;  %v925_v16 = vor.u32 %v948_v14, %v924_v13  ;;  %v942_v36 = vld [vmem:[%s1251_s3 + $0x44] sm:$0xf0]  ;;  %v941_v37 = vld [vmem:[%s1251_s3 + $0x44] sm:$0xf] }
  0x1d   : > { %548 = vmatpush.bf16.msra.mxu1 %v525_v58  ;;  %534 = vmatpush.bf16.msra.mxu0 %v522_v59  ;;  %v508_v5 = vpack.c.b16 %v952_v32, %v507_v4  ;;  %v929_v18 = vor.u32 %v947_v15, %v926_v17  ;;  %v917_v24 = vor.u32 %v946_v21, %v916_v20  ;;  %v910_v32 = vld [vmem:[%s1251_s3 + $0x58] sm:$0xf0]  ;;  %v902_v40 = vld [vmem:[%s1251_s3 + $0x48] sm:$0xf0]  ;;  %v1176_v45 = vld [vmem:[%s1250_s2] sm:$0x3] }
  0x1e   : > { %v456_v63 = vsel %vm439_vm3, %v447_v61, %v455_v62  ;;  %714 = vmatpush.bf16.msra.mxu2 %v925_v16  ;;  %v921_v26 = vor.u32 %v945_v22, %v918_v25  ;;  %v909_v31 = vor.u32 %v944_v29, %v908_v28  ;;  %v913_v33 = vor.u32 %v943_v30, %v910_v32  ;;  %v892_v47 = vld [vmem:[%s1251_s3 + $0x30] sm:$0xf]  ;;  %v940_v48 = vld [vmem:[%s1251_s3 + $0x34] sm:$0xf0]  ;;  %v939_v49 = vld [vmem:[%s1251_s3 + $0x34] sm:$0xf] }
  0x1f   : > { %v510_v6 = vrot.slane %v508_v5, 2  ;;  %728 = vmatpush.bf16.msra.mxu3 %v929_v18  ;;  %v901_v39 = vor.u32 %v942_v36, %v900_v35  ;;  %v905_v43 = vor.u32 %v941_v37, %v902_v40  ;;  %v893_v50 = vor.u32 %v940_v48, %v892_v47  ;;  %v894_v51 = vld [vmem:[%s1251_s3 + $0x38] sm:$0xf0]  ;;  %v884_v55 = vld [vmem:[%s1251_s3 + $0x20] sm:$0xf] }
  0x20   : > { %v897_v52 = vor.u32 %v939_v49, %v894_v51  ;;  %v562_v53 = vperm.slane %v1176_v45, 1  ;;  %v938_v56 = vld [vmem:[%s1251_s3 + $0x24] sm:$0xf0]  ;;  %v937_v57 = vld [vmem:[%s1251_s3 + $0x24] sm:$0xf] }
  0x21   : > { %v512_v8 = vsel %vm509_vm5, %v510_v6, %v511_v7  ;;  %v885_v59 = vor.u32 %v938_v56, %v884_v55  ;;  %v886_v60 = vld [vmem:[%s1251_s3 + $0x28] sm:$0xf0]  ;;  %v876_v1 = vld [vmem:[%s1251_s3 + $0x10] sm:$0xf]  ;;  %v935_v3 = vld [vmem:[%s1251_s3 + $0x14] sm:$0xf] }
  0x22   : > { %715 = vmatpush.bf16.msra.mxu2 %v917_v24  ;;  %v889_v0 = vor.u32 %v937_v57, %v886_v60  ;;  %v878_v5 = vld [vmem:[%s1251_s3 + $0x18] sm:$0xf0]  ;;  %v933_v14 = vld [vmem:[%s1251_s3 + $0x4] sm:$0xf]  ;;  %v870_v15 = vld [vmem:[%s1251_s3 + $0x8] sm:$0xf0] }
  0x23   : > { %729 = vmatpush.bf16.msra.mxu3 %v921_v26  ;;  %v873_v20 = vor.u32 %v933_v14, %v870_v15 }
  0x25   : > { %859 = vmatmul.msk.bf16.vlgmr.msrb.gmra.mxu2 %vm297_vm1, %v456_v63  ;;  %860 = vmatmul.msk.bf16.vlgmr.msrb.gmra.mxu3 %vm297_vm1, %v456_v63 }
  0x26   : > { %716 = vmatpush.bf16.msra.mxu2 %v909_v31 }
  0x27   : > { %730 = vmatpush.bf16.msra.mxu3 %v913_v33 }
  0x2a   : > { %717 = vmatpush.bf16.msra.mxu2 %v901_v39 }
  0x2b   : > { %731 = vmatpush.bf16.msra.mxu3 %v905_v43 }
  0x2c   : > { %856 = vmatmul.msk.bf16.vlgmr.msrb.gmra.mxu0 %vm297_vm1, %v386_v2  ;;  %857 = vmatmul.msk.bf16.vlgmr.msrb.gmra.mxu1 %vm297_vm1, %v386_v2  ;;  %v936_v2 = vld [vmem:[%s1251_s3 + $0x14] sm:$0xf0] }
  0x2d   : > { %v877_v4 = vor.u32 %v936_v2, %v876_v1 }
  0x2e   : > { %718 = vmatpush.bf16.msra.mxu2 %v893_v50 }
  0x2f   : > { %732 = vmatpush.bf16.msra.mxu3 %v897_v52 }
  0x32   : > { %719 = vmatpush.bf16.msra.mxu2 %v885_v59 }
  0x33   : > { %733 = vmatpush.bf16.msra.mxu3 %v889_v0 }
  0x36   : > { %720 = vmatpush.bf16.msra.mxu2 %v877_v4 }
  0x3c   : > { %862 = vmatmul.msk.bf16.vlgmr.msra.gmra.mxu0 %vm297_vm1, %v512_v8  ;;  %863 = vmatmul.msk.bf16.vlgmr.msra.gmra.mxu1 %vm297_vm1, %v512_v8 }
  0x98   : > { %v372_v11 = vpop.f32.mrf.mxu3  ;;  %v1157_v34 = vpop.f32.mrf.mxu2 }
  0x99   : > { %v331_v9 = vpop.f32.mrf.mxu1  ;;  %v1117_v10 = vpop.f32.mrf.mxu0 }
  0x9a   : > { %v373_v41 = vadd.f32 %v372_v11, %v331_v9  ;;  %v881_v9 = vor.u32 %v935_v3, %v878_v5  ;;  %v868_v11 = vld [vmem:[%s1251_s3] sm:$0xf]  ;;  %v359_v29 = vadd.f32 %v1157_v34, %v1117_v10 }
  0x9b   : > { %v628_v3 = vld [vmem:[%s1252_s4] sm:$0x3] }
  0x9c   : > { %734 = vmatpush.bf16.msra.mxu3 %v881_v9  ;;  %v630_v4 = vperm.slane %v628_v3, 0  ;;  %v631_v5 = vperm.slane %v628_v3, 1 }
  0xa0   : > { %v374_v27 = vpop.f32.mrf.mxu3  ;;  %v360_v62 = vpop.f32.mrf.mxu2  ;;  %735 = vmatpush.bf16.msra.mxu3 %v873_v20 }
  0xa1   : > { %v333_v12 = vpop.f32.mrf.mxu1  ;;  %v1131_v19 = vpop.f32.mrf.mxu0 }
  0xa2   : > { %v375_v61 = vadd.f32 %v374_v27, %v333_v12  ;;  %v934_v12 = vld [vmem:[%s1251_s3 + $0x4] sm:$0xf0]  ;;  %v361_v30 = vadd.f32 %v360_v62, %v1131_v19 }
  0xa3   : > { %v869_v17 = vor.u32 %v934_v12, %v868_v11 }
  0xa5   : > { %721 = vmatpush.bf16.msra.mxu2 %v869_v17 }
  0xa8   : > { %v494_v44 = vpop.f32.mrf.mxu3 }
  0xa9   : > { %v424_v23 = vpop.f32.mrf.mxu1  ;;  %v1171_v42 = vpop.f32.mrf.mxu0 }
  0xaa   : > { %v430_v46 = vadd.f32 %v424_v23, %v373_v41  ;;  %v480_v23 = vpop.f32.mrf.mxu2  ;;  %v429_v31 = vadd.f32 %v1171_v42, %v359_v29 }
  0xac   : > { %v500_v54 = vadd.f32 %v494_v44, %v430_v46  ;;  %v561_v44 = vperm.slane %v1176_v45, 0 }
  0xb0   : > { %v496_v13 = vpop.f32.mrf.mxu3 }
  0xb1   : > { %v426_v38 = vpop.f32.mrf.mxu1  ;;  %v412_v6 = vpop.f32.mrf.mxu0 }
  0xb2   : > { %v432_v7 = vadd.f32 %v426_v38, %v375_v61  ;;  %v431_v32 = vadd.f32 %v412_v6, %v361_v30  ;;  %v482_v35 = vpop.f32.mrf.mxu2  ;;  %v499_v38 = vadd.f32 %v480_v23, %v429_v31 }
  0xb4   : > { %v502_v18 = vadd.f32 %v496_v13, %v432_v7  ;;  %v501_v41 = vadd.f32 %v482_v35, %v431_v32 }
  0xb9   : > { %v550_v58 = vpop.f32.mrf.mxu1  ;;  %v536_v26 = vpop.f32.mrf.mxu0 }
  0xba   : > { %v556_v63 = vadd.f32 %v550_v58, %v500_v54  ;;  %v555_v43 = vadd.f32 %v536_v26, %v499_v38 }
  0xbc   : > { %v566_v8 = vadd.f32 %v562_v53, %v556_v63  ;;  %v565_v19 = vadd.f32 %v561_v44, %v555_v43 }
  0xbe   : > { %v864_v16 = vmul.f32 -1.442695, %v566_v8 }
  0xc0   : > { %978 = vpow2.f32 %v864_v16 }
  0xc1   : > { %v552_v21 = vpop.f32.mrf.mxu1  ;;  %v538_v40 = vpop.f32.mrf.mxu0 }
  0xc2   : > { %v558_v22 = vadd.f32 %v552_v21, %v502_v18  ;;  %v557_v34 = vadd.f32 %v538_v40, %v501_v41 }
  0xc4   : > { %v568_v24 = vadd.f32 %v562_v53, %v558_v22  ;;  %v567_v48 = vadd.f32 %v561_v44, %v557_v34 }
  0xc6   : > { %v979_v25 = vpop.eup %978  ;;  %v865_v27 = vmul.f32 -1.442695, %v568_v24 }
  0xc7   : > { %v577_v28 = vadd.f32 1.0, %v979_v25 }
  0xc8   : > { %980 = vpow2.f32 %v865_v27 }
  0xc9   : > { %982 = vrcp.f32 %v577_v28  ;;  %v590_v50 = vand.u32 2147483648, %v577_v28  ;;  %vm584_vm7 = vweird.f32 %v577_v28  ;;  %v588_v52 = vand.u32 2147483647, %v577_v28 }
  0xcb   : > { %v591_v56 = vor.u32 1.1754944e-38, %v590_v50  ;;  %vm589_vm10 = vcmp.eq.f32.partialorder %v588_v52, 8.507059e+37 }
  0xce   : > { %v981_v33 = vpop.eup %980 }
  0xcf   : > { %v983_v36 = vpop.eup %982  ;;  %v578_v37 = vadd.f32 1.0, %v981_v33 }
  0xd0   : > { %v580_v39 = vmul.f32 %v983_v36, %v577_v28  ;;  %vm585_vm6 = vweird.f32 %v983_v36 }
  0xd1   : > { %984 = vrcp.f32 %v578_v37  ;;  %vm586_vm8 = vmor %vm584_vm7, %vm585_vm6  ;;  %v605_v53 = vand.u32 2147483648, %v578_v37  ;;  %v603_v45 = vand.u32 2147483647, %v578_v37  ;;  %vm599_vm11 = vweird.f32 %v578_v37 }
  0xd2   : > { %v581_v10 = vsub.f32 1.0, %v580_v39  ;;  %986 = vtanh.f32 %v565_v19 }
  0xd3   : > { %988 = vtanh.f32 %v567_v48  ;;  %v606_v59 = vor.u32 1.1754944e-38, %v605_v53  ;;  %vm604_vm13 = vcmp.eq.f32.partialorder %v603_v45, 8.507059e+37 }
  0xd4   : > { %v582_v46 = vmul.f32 %v983_v36, %v581_v10 }
  0xd6   : > { %v583_v49 = vadd.f32 %v983_v36, %v582_v46 }
  0xd7   : > { %v985_v47 = vpop.eup %984 }
  0xd8   : > { %v595_v42 = vmul.f32 %v985_v47, %v578_v37  ;;  %v587_v54 = vsel %vm586_vm8, %v983_v36, %v583_v49  ;;  %vm600_vm9 = vweird.f32 %v985_v47  ;;  %v987_v60 = vpop.eup %986 }
  0xd9   : > { %v592_v58 = vsel %vm589_vm10, %v591_v56, %v587_v54  ;;  %vm601_vm12 = vmor %vm599_vm11, %vm600_vm9  ;;  %v989_v62 = vpop.eup %988 }
  0xda   : > { %v596_v51 = vsub.f32 1.0, %v595_v42  ;;  %v609_v0 = vmul.f32 %v987_v60, %v592_v58 }
  0xdc   : > { %v597_v55 = vmul.f32 %v985_v47, %v596_v51 }
  0xde   : > { %v598_v57 = vadd.f32 %v985_v47, %v597_v55 }
  0xe0   : > { %v602_v61 = vsel %vm601_vm12, %v985_v47, %v598_v57 }
  0xe1   : > { %v607_v63 = vsel %vm604_vm13, %v606_v59, %v602_v61 }
  0xe2   : > { %v610_v1 = vmul.f32 %v989_v62, %v607_v63 }
  0xe4   : > { %v611_v2 = vpack.c.bf16 %v610_v1, %v609_v0 }
  0xe6   : > { %722 = vmatmul.bf16.vlgmr.msra.gmra.mxu2 %v611_v2  ;;  %736 = vmatmul.bf16.vlgmr.msra.gmra.mxu3 %v611_v2 }
 0x169   : > { %v723_v6 = vpop.f32.mrf.mxu2  ;;  %v737_v7 = vpop.f32.mrf.mxu3 }
 0x16a   : > { %v724_v8 = vadd.f32 %v723_v6, %v630_v4  ;;  %v738_v9 = vadd.f32 %v737_v7, %v631_v5 }
 0x16c   : > { %742 = vst [vmem:[%s262_s23] sm:$0xff] %v724_v8 }
 0x16d   : > { %743 = vst [vmem:[%s262_s23 + $0x8] sm:$0xff] %v738_v9 }
 0x171   : > { %v725_v11 = vpop.f32.mrf.mxu2  ;;  %v739_v12 = vpop.f32.mrf.mxu3 }
 0x172   : > { %v726_v13 = vadd.f32 %v725_v11, %v630_v4  ;;  %v740_v14 = vadd.f32 %v739_v12, %v631_v5 }
 0x174   : > { %744 = vst [vmem:[%s262_s23 + $0x10] sm:$0xff] %v726_v13 }
 0x175   : > { %745 = vst [vmem:[%s262_s23 + $0x18] sm:$0xff] %v740_v14 }
 0x176 PF: > { %s15_s20 = sadd.s32 1, %s1012_s20   ;;  %s1254_s18 = smov %s1008_s19 }
 0x177   : > { %p12_p5 = scmp.ge.s32.totalorder %s15_s20, 4   ;;  %s1255_s19 = smov %s1257_s21 }
 0x179   :  { %14 = sbr.rel (!%p12_p5) target bundleno = 2 (0x2), region = 74 }

// kernel: fwd.90
= control target key start
LH: loop header
LB: loop body
LE: loop exit
PB: predicated region body
PF: predicated region fallthrough
CT: control target
= control target key end

     0   :  { %s947_s18 = smov 0   ;;  %s949_s19 = smov 0   ;;  %s1057_s0 = inlined_call_operand.vmem [shape: bf16[2,1,20,8], index: 0, kind: input, shape index: {}]   ;;  %s1058_s1 = inlined_call_operand.vmem [shape: bf16[5,8,256], index: 1, kind: input, shape index: {}]   ;;  %s1059_s2 = inlined_call_operand.vmem [shape: f32[1,256], index: 2, kind: input, shape index: {}]   ;;  %s1060_s3 = inlined_call_operand.vmem [shape: bf16[128,128], index: 3, kind: input, shape index: {}]   ;;  %s1061_s4 = inlined_call_operand.vmem [shape: f32[1,128], index: 4, kind: input, shape index: {}]   ;;  %s1062_s5 = inlined_call_operand.vmem [shape: f32[2,16,128], index: 5, kind: output, shape index: {}]  }
   0x1   :  { %s951_s20 = smov 0  }
   0x2 LB: > { %s27_s21 = sadd.s32 1, %s911_s19  ;;  %p788_p0 = scmp.ge.s32.totalorder %s915_s20, 1  ;;  %s915_s20 = sphi %s951_s20, %s15_s20   ;;  %s911_s19 = sphi %s949_s19, %s1064_s19   ;;  %s907_s18 = sphi %s947_s18, %s1063_s18  }
   0x3   : > { %p29_p1 = scmp.ge.s32.totalorder %s27_s21, 2  ;;  %p207_p2 = scmp.lt.s32.totalorder %s915_s20, 3 }
   0x5   : > { %s1066_s21 = smov (%p29_p1, %s27_s21), 0  ;;  %p208_p3 = pnand %p788_p0, %p207_p2 }
   0x6   : > { %p243_p4 = scmp.lt.s32.totalorder (!%p208_p3), %s907_s18, 1 }
   0x7   : > { %211 = sbr.rel (%p208_p3) target bundleno = 374 (0x176), region = 40 }
   0xc   : > { %v265_v0 = vld [vmem:[%s1058_s1] sm:$0xff]  ;;  %v792_v1 = vld [vmem:[%s1058_s1 + $0x8] sm:$0xff]  ;;  %v797_v2 = vld [vmem:[%s1058_s1 + $0x10] sm:$0xff]  ;;  %vm299_vm0 = vcmask 1043456   ;;  %s1068_s18 = smov (!%p243_p4, %s907_s18), 1  ;;  %vm295_vm1 = vcmask 64512  }
   0xd   : > { %v335_v3 = vunpack.c.l.b16 %v265_v0  ;;  %v336_v4 = vunpack.c.h.b16 %v265_v0  ;;  %v291_v5 = vunpack.c.l.b16 %v792_v1  ;;  %v292_v6 = vunpack.c.h.b16 %v792_v1  ;;  %v800_v7 = vld [vmem:[%s1058_s1 + $0x18] sm:$0xff]  ;;  %s855_s30 = smul.u32 12, %s1068_s18  ;;  %v803_v18 = vld [vmem:[%s1058_s1 + $0x20] sm:$0xff]  ;;  %s842_s8 = sshll.u32 %s1068_s18, 4 }
   0xe   : > { %v387_v8 = vunpack.c.h.b16 %v797_v2  ;;  %v457_v9 = vunpack.c.h.b16 %v800_v7  ;;  %v456_v10 = vunpack.c.l.b16 %v800_v7  ;;  %v386_v25 = vunpack.c.l.b16 %v797_v2  ;;  %s260_s13 = scalar_lea.vmem %s1062_s5, %s842_s8 }
   0xf   : > { %v337_v11 = vpack.c.b16 %v335_v3, %v335_v3  ;;  %v338_v12 = vpack.c.b16 %v336_v4, %v336_v4  ;;  %v293_v13 = vpack.c.b16 %v291_v5, %v291_v5  ;;  %v294_v14 = vpack.c.b16 %v292_v6, %v292_v6  ;;  %s990_s10 = scalar_lea.vmem %s1057_s0, %s855_s30 }
  0x10   : > { %v389_v15 = vpack.c.b16 %v387_v8, %v387_v8  ;;  %v459_v16 = vpack.c.b16 %v457_v9, %v457_v9  ;;  %v458_v17 = vpack.c.b16 %v456_v10, %v456_v10  ;;  %v852_v26 = vld [vmem:[%s990_s10] sm:$0xff]   ;;  %v266_v27 = vld [vmem:[%s990_s10 + $0x8] sm:$0x1]  ;;  %v513_v30 = vunpack.c.h.b16 %v803_v18 }
  0x11   : > { %v342_v19 = vsel %vm299_vm0, %v337_v11, 0  ;;  %v345_v20 = vsel %vm299_vm0, %v338_v12, 0  ;;  %v301_v21 = vsel %vm299_vm0, %v293_v13, 0  ;;  %v304_v22 = vsel %vm299_vm0, %v294_v14, 0  ;;  %v375_v29 = vld [vmem:[%s990_s10] sm:$0xe] }
  0x12   : > { %354 = vmatpush.bf16.msra.mxu3 %v342_v19  ;;  %313 = vmatpush.bf16.msra.mxu0 %v301_v21  ;;  %v397_v23 = vsel %vm299_vm0, %v389_v15, 0  ;;  %v464_v24 = vsel %vm299_vm0, %v458_v17, 0  ;;  %v467_v28 = vsel %vm299_vm0, %v459_v16, 0  ;;  %v854_v31 = vunpack.c.h.b16 %v852_v26  ;;  %v431_v35 = vld [vmem:[%s990_s10 + $0x8] sm:$0x3]  ;;  %v850_v14 = vld [vmem:[%s1060_s3 + $0x38] sm:$0xff] }
  0x13   : > { %327 = vmatpush.bf16.msra.mxu1 %v304_v22  ;;  %v274_v32 = vunpack.c.l.b16 %v266_v27  ;;  %v279_v33 = vshrl.u32 %v852_v26, 16  ;;  %v281_v34 = vshll.u32 %v852_v26, 16  ;;  %476 = vmatpush.bf16.msra.mxu2 %v464_v24  ;;  %v379_v36 = vunpack.c.l.b16 %v375_v29  ;;  %v501_v3 = vld [vmem:[%s990_s10] sm:$0xc]  ;;  %v848_v19 = vld [vmem:[%s1060_s3 + $0x28] sm:$0xff] }
  0x14   : > { %v435_v37 = vunpack.c.l.b16 %v431_v35  ;;  %v388_v38 = vpack.c.b16 %v386_v25, %v386_v25  ;;  %v515_v41 = vpack.c.b16 %v513_v30, %v513_v30  ;;  %v512_v42 = vunpack.c.l.b16 %v803_v18  ;;  %v849_v18 = vld [vmem:[%s1060_s3 + $0x30] sm:$0xff]  ;;  %v847_v22 = vld [vmem:[%s1060_s3 + $0x20] sm:$0xff]  ;;  %v844_v35 = vld [vmem:[%s1060_s3 + $0x8] sm:$0xff] }
  0x15   : > { %795 = vmatmul.msk.bf16.vlgmr.msra.gmra.mxu3 %vm295_vm1, %v852_v26  ;;  %v276_v39 = vpack.c.b16 %v274_v32, %v274_v32  ;;  %v283_v40 = vrot.slane %v281_v34, 1  ;;  %v380_v43 = vpack.c.b16 %v854_v31, %v379_v36  ;;  %vm277_vm2 = vsmask.f32 7424  ;;  %v557_v25 = vld [vmem:[%s1059_s2] sm:$0x3] }
  0x16   : > { %368 = vmatpush.bf16.msrb.mxu3 %v345_v20  ;;  %v436_v44 = vpack.c.b16 %v435_v37, %v435_v37  ;;  %v394_v45 = vsel %vm299_vm0, %v388_v38, 0  ;;  %v514_v48 = vpack.c.b16 %v512_v42, %v512_v42  ;;  %v523_v54 = vsel %vm299_vm0, %v515_v41, 0  ;;  %v843_v41 = vld [vmem:[%s1060_s3] sm:$0xff] }
  0x17   : > { %420 = vmatpush.bf16.msrb.mxu1 %v397_v23  ;;  %v284_v46 = vor.u32 %v283_v40, %v279_v33  ;;  %v286_v47 = vshll.u32 %v276_v39, 16  ;;  %406 = vmatpush.bf16.msrb.mxu0 %v394_v45  ;;  %v439_v49 = vshrl.u32 %v380_v43, 16  ;;  %v442_v50 = vshll.u32 %v380_v43, 16 }
  0x18   : > { %v447_v51 = vshrl.u32 %v436_v44, 16  ;;  %v450_v52 = vshll.u32 %v436_v44, 16  ;;  %v520_v55 = vsel %vm299_vm0, %v514_v48, 0  ;;  %vm437_vm3 = vsmask.f32 6400  ;;  %678 = vmatpush.bf16.msrb.mxu2 %v850_v14 }
  0x19   : > { %v288_v53 = vrot.slane %v286_v47, 1  ;;  %v441_v56 = vrot.slane %v439_v49, 1  ;;  %v444_v57 = vrot.slane %v442_v50, 2  ;;  %v382_v0 = vrot.slane %v380_v43, 1 }
  0x1a   : > { %490 = vmatpush.bf16.msra.mxu3 %v467_v28  ;;  %v449_v58 = vrot.slane %v447_v51, 1  ;;  %v452_v59 = vrot.slane %v450_v52, 2  ;;  %v383_v1 = vrot.slane %v276_v39, 1  ;;  %vm381_vm4 = vcmask 1046528  }
  0x1b   : > { %v289_v60 = vsel %vm277_vm2, %v284_v46, %v288_v53  ;;  %v445_v61 = vor.u32 %v444_v57, %v441_v56  ;;  %v505_v4 = vunpack.c.l.b16 %v501_v3  ;;  %v509_v7 = vrot.slane %v436_v44, 2 }
  0x1c   : > { %793 = vmatmul.msk.bf16.vlgmr.msra.gmra.mxu0 %vm295_vm1, %v289_v60  ;;  %794 = vmatmul.msk.bf16.vlgmr.msra.gmra.mxu1 %vm295_vm1, %v289_v60  ;;  %v453_v62 = vor.u32 %v452_v59, %v449_v58  ;;  %v384_v2 = vsel %vm381_vm4, %v382_v0, %v383_v1  ;;  %vm507_vm5 = vcmask 1045504   ;;  %v560_v30 = vperm.slane %v557_v25, 1 }
  0x1d   : > { %546 = vmatpush.bf16.msra.mxu1 %v523_v54  ;;  %532 = vmatpush.bf16.msra.mxu0 %v520_v55  ;;  %v506_v5 = vpack.c.b16 %v854_v31, %v505_v4  ;;  %v845_v31 = vld [vmem:[%s1060_s3 + $0x10] sm:$0xff]  ;;  %v559_v0 = vperm.slane %v557_v25, 0 }
  0x1e   : > { %v454_v63 = vsel %vm437_vm3, %v445_v61, %v453_v62  ;;  %679 = vmatpush.bf16.msrb.mxu2 %v849_v18 }
  0x1f   : > { %801 = vmatmul.msk.bf16.vlgmr.msra.gmra.mxu2 %vm295_vm1, %v454_v63  ;;  %v508_v6 = vrot.slane %v506_v5, 2 }
  0x21   : > { %v510_v8 = vsel %vm507_vm5, %v508_v6, %v509_v7 }
  0x22   : > { %680 = vmatpush.bf16.msrb.mxu2 %v848_v19 }
  0x25   : > { %796 = vmatmul.msk.bf16.vlgmr.msrb.gmra.mxu3 %vm295_vm1, %v852_v26  ;;  %v846_v26 = vld [vmem:[%s1060_s3 + $0x18] sm:$0xff] }
  0x26   : > { %681 = vmatpush.bf16.msrb.mxu2 %v847_v22 }
  0x2a   : > { %682 = vmatpush.bf16.msrb.mxu2 %v846_v26 }
  0x2c   : > { %798 = vmatmul.msk.bf16.vlgmr.msrb.gmra.mxu0 %vm295_vm1, %v384_v2  ;;  %799 = vmatmul.msk.bf16.vlgmr.msrb.gmra.mxu1 %vm295_vm1, %v384_v2 }
  0x2e   : > { %683 = vmatpush.bf16.msrb.mxu2 %v845_v31 }
  0x32   : > { %684 = vmatpush.bf16.msrb.mxu2 %v844_v35 }
  0x35   : > { %802 = vmatmul.msk.bf16.vlgmr.msra.gmra.mxu3 %vm295_vm1, %v454_v63 }
  0x36   : > { %685 = vmatpush.bf16.msrb.mxu2 %v843_v41 }
  0x3c   : > { %804 = vmatmul.msk.bf16.vlgmr.msra.gmra.mxu0 %vm295_vm1, %v510_v8  ;;  %805 = vmatmul.msk.bf16.vlgmr.msra.gmra.mxu1 %vm295_vm1, %v510_v8 }
  0x98   : > { %v356_v9 = vpop.f32.mrf.mxu3 }
  0x99   : > { %v329_v10 = vpop.f32.mrf.mxu1  ;;  %v315_v11 = vpop.f32.mrf.mxu0 }
  0x9a   : > { %v357_v51 = vadd.f32 %v356_v9, %v315_v11 }
  0xa0   : > { %v358_v12 = vpop.f32.mrf.mxu3 }
  0xa1   : > { %v331_v13 = vpop.f32.mrf.mxu1  ;;  %v317_v16 = vpop.f32.mrf.mxu0 }
  0xa2   : > { %v478_v45 = vpop.f32.mrf.mxu2  ;;  %v359_v52 = vadd.f32 %v358_v12, %v317_v16 }
  0xa8   : > { %v370_v15 = vpop.f32.mrf.mxu3 }
  0xa9   : > { %v422_v17 = vpop.f32.mrf.mxu1  ;;  %v371_v23 = vadd.f32 %v370_v15, %v329_v10  ;;  %v408_v24 = vpop.f32.mrf.mxu0 }
  0xaa   : > { %v427_v53 = vadd.f32 %v408_v24, %v357_v51  ;;  %v480_v56 = vpop.f32.mrf.mxu2 }
  0xab   : > { %v428_v27 = vadd.f32 %v422_v17, %v371_v23 }
  0xac   : > { %v497_v59 = vadd.f32 %v478_v45, %v427_v53 }
  0xb0   : > { %v372_v20 = vpop.f32.mrf.mxu3 }
  0xb1   : > { %v424_v21 = vpop.f32.mrf.mxu1  ;;  %v373_v33 = vadd.f32 %v372_v20, %v331_v13  ;;  %v410_v36 = vpop.f32.mrf.mxu0 }
  0xb2   : > { %v429_v54 = vadd.f32 %v410_v36, %v359_v52 }
  0xb3   : > { %v430_v38 = vadd.f32 %v424_v21, %v373_v33 }
  0xb4   : > { %v499_v62 = vadd.f32 %v480_v56, %v429_v54 }
  0xb8   : > { %v492_v28 = vpop.f32.mrf.mxu3 }
  0xb9   : > { %v498_v29 = vadd.f32 %v492_v28, %v428_v27  ;;  %v548_v32 = vpop.f32.mrf.mxu1  ;;  %v534_v48 = vpop.f32.mrf.mxu0  ;;  %v880_v27 = vld [vmem:[%s1061_s4] ss:$0 sm:$0xff] }
  0xba   : > { %v553_v63 = vadd.f32 %v534_v48, %v497_v59 }
  0xbb   : > { %v554_v34 = vadd.f32 %v548_v32, %v498_v29 }
  0xbc   : > { %v563_v4 = vadd.f32 %v559_v0, %v553_v63 }
  0xbd   : > { %v564_v37 = vadd.f32 %v560_v30, %v554_v34 }
  0xbf   : > { %v806_v39 = vmul.f32 -1.442695, %v564_v37 }
  0xc0   : > { %v494_v40 = vpop.f32.mrf.mxu3 }
  0xc1   : > { %881 = vpow2.f32 %v806_v39  ;;  %v500_v42 = vadd.f32 %v494_v40, %v430_v38  ;;  %v550_v43 = vpop.f32.mrf.mxu1  ;;  %v536_v61 = vpop.f32.mrf.mxu0 }
  0xc2   : > { %v555_v2 = vadd.f32 %v536_v61, %v499_v62 }
  0xc3   : > { %v556_v44 = vadd.f32 %v550_v43, %v500_v42 }
  0xc4   : > { %v565_v6 = vadd.f32 %v559_v0, %v555_v2 }
  0xc5   : > { %v566_v46 = vadd.f32 %v560_v30, %v556_v44 }
  0xc7   : > { %v882_v47 = vpop.eup %881  ;;  %v807_v49 = vmul.f32 -1.442695, %v566_v46 }
  0xc8   : > { %v575_v50 = vadd.f32 1.0, %v882_v47 }
  0xc9   : > { %883 = vpow2.f32 %v807_v49 }
  0xca   : > { %885 = vrcp.f32 %v575_v50  ;;  %v588_v9 = vand.u32 2147483648, %v575_v50  ;;  %vm582_vm7 = vweird.f32 %v575_v50  ;;  %v586_v10 = vand.u32 2147483647, %v575_v50 }
  0xcc   : > { %v589_v16 = vor.u32 1.1754944e-38, %v588_v9  ;;  %vm587_vm10 = vcmp.eq.f32.partialorder %v586_v10, 8.507059e+37 }
  0xcf   : > { %v884_v55 = vpop.eup %883 }
  0xd0   : > { %v886_v57 = vpop.eup %885  ;;  %v576_v58 = vadd.f32 1.0, %v884_v55 }
  0xd1   : > { %v578_v60 = vmul.f32 %v886_v57, %v575_v50  ;;  %vm583_vm6 = vweird.f32 %v886_v57 }
  0xd2   : > { %887 = vrcp.f32 %v576_v58  ;;  %vm584_vm8 = vmor %vm582_vm7, %vm583_vm6  ;;  %v603_v12 = vand.u32 2147483648, %v576_v58  ;;  %v601_v15 = vand.u32 2147483647, %v576_v58  ;;  %vm597_vm11 = vweird.f32 %v576_v58 }
  0xd3   : > { %v579_v1 = vsub.f32 1.0, %v578_v60  ;;  %889 = vtanh.f32 %v563_v4 }
  0xd4   : > { %891 = vtanh.f32 %v565_v6  ;;  %v604_v19 = vor.u32 1.1754944e-38, %v603_v12  ;;  %vm602_vm13 = vcmp.eq.f32.partialorder %v601_v15, 8.507059e+37 }
  0xd5   : > { %v580_v3 = vmul.f32 %v886_v57, %v579_v1 }
  0xd7   : > { %v581_v8 = vadd.f32 %v886_v57, %v580_v3 }
  0xd8   : > { %v888_v5 = vpop.eup %887 }
  0xd9   : > { %v593_v7 = vmul.f32 %v888_v5, %v576_v58  ;;  %v585_v13 = vsel %vm584_vm8, %v886_v57, %v581_v8  ;;  %vm598_vm9 = vweird.f32 %v888_v5  ;;  %v890_v20 = vpop.eup %889 }
  0xda   : > { %v590_v18 = vsel %vm587_vm10, %v589_v16, %v585_v13  ;;  %vm599_vm12 = vmor %vm597_vm11, %vm598_vm9  ;;  %v892_v22 = vpop.eup %891 }
  0xdb   : > { %v594_v11 = vsub.f32 1.0, %v593_v7  ;;  %v607_v24 = vmul.f32 %v890_v20, %v590_v18 }
  0xdd   : > { %v595_v14 = vmul.f32 %v888_v5, %v594_v11 }
  0xdf   : > { %v596_v17 = vadd.f32 %v888_v5, %v595_v14 }
  0xe1   : > { %v600_v21 = vsel %vm599_vm12, %v888_v5, %v596_v17 }
  0xe2   : > { %v605_v23 = vsel %vm602_vm13, %v604_v19, %v600_v21 }
  0xe3   : > { %v608_v25 = vmul.f32 %v892_v22, %v605_v23 }
  0xe5   : > { %v609_v26 = vpack.c.bf16 %v608_v25, %v607_v24 }
  0xe7   : > { %686 = vmatmul.bf16.vlgmr.msrb.gmra.mxu2 %v609_v26 }
 0x16a   : > { %v687_v28 = vpop.f32.mrf.mxu2 }
 0x16b   : > { %v688_v29 = vadd.f32 %v880_v27, %v687_v28 }
 0x16d   : > { %692 = vst [vmem:[%s260_s13] sm:$0xff] %v688_v29 }
 0x172   : > { %v689_v30 = vpop.f32.mrf.mxu2 }
 0x173   : > { %v690_v31 = vadd.f32 %v880_v27, %v689_v30 }
 0x175   : > { %693 = vst [vmem:[%s260_s13 + $0x8] sm:$0xff] %v690_v31 }
 0x176 PF: > { %s15_s20 = sadd.s32 1, %s915_s20   ;;  %s1063_s18 = smov %s911_s19 }
 0x177   : > { %p12_p5 = scmp.ge.s32.totalorder %s15_s20, 4   ;;  %s1064_s19 = smov %s1066_s21 }
 0x179   :  { %14 = sbr.rel (!%p12_p5) target bundleno = 2 (0x2), region = 74 }

// kernel: fwd.91
= control target key start
LH: loop header
LB: loop body
LE: loop exit
PB: predicated region body
PF: predicated region fallthrough
CT: control target
= control target key end

     0   :  { %vm44_vm0 = vcmask 1043456   ;;  %vm37_vm1 = vcmask 64512   ;;  %s142_s1 = inlined_call_operand.vmem [shape: bf16[8,128], index: 1, kind: input, shape index: {}]   ;;  %s143_s0 = inlined_call_operand.vmem [shape: bf16[24,8], index: 0, kind: input, shape index: {}]   ;;  %s144_s2 = inlined_call_operand.vmem [shape: f32[1,128], index: 2, kind: input, shape index: {}]   ;;  %s145_s3 = inlined_call_operand.vmem [shape: f32[24,128], index: 3, kind: output, shape index: {}]  }
   0x1   :  { %v28_v0 = vld [vmem:[%s142_s1] sm:$0xf]  ;;  %v27_v1 = vld [vmem:[%s143_s0 + $0x8] sm:$0xf] }
   0x2   :  { %v46_v2 = vsel %vm44_vm0, %v28_v0, 0  ;;  %v98_v3 = vld [vmem:[%s143_s0] sm:$0xff]  ;;  %v34_v4 = vunpack.c.l.b16 %v27_v1 }
   0x3   :  { %55 = vmatpush.bf16.msra.mxu0 %v46_v2  ;;  %99 = vmatpush.bf16.msra.mxu1 %v46_v2  ;;  %v100_v6 = vld [vmem:[%s144_s2] ss:$0 sm:$0xff] }
   0x4   :  { %v36_v5 = vpack.c.b16 %v34_v4, %v34_v4 }
   0x6   :  { %96 = vmatmul.msk.bf16.vlgmr.msra.gmra.mxu0 %vm37_vm1, %v98_v3  ;;  %97 = vmatmul.msk.bf16.vlgmr.msra.gmra.mxu1 %vm37_vm1, %v36_v5 }
  0x83   :  { %v57_v7 = vpop.f32.mrf.mxu0  ;;  %v62_v8 = vpop.f32.mrf.mxu1 }
  0x84   :  { %v82_v9 = vadd.f32 %v100_v6, %v57_v7  ;;  %v84_v10 = vadd.f32 %v100_v6, %v62_v8 }
  0x86   :  { %85 = vst [vmem:[%s145_s3] sm:$0xff] %v82_v9 }
  0x87   :  { %87 = vst [vmem:[%s145_s3 + $0x10] sm:$0xff] %v84_v10 }
  0x8b   :  { %v59_v11 = vpop.f32.mrf.mxu0  ;;  %v64_v12 = vpop.f32.mrf.mxu1 }
  0x8c   :  { %v83_v13 = vadd.f32 %v100_v6, %v59_v11 }
  0x8e   :  { %86 = vst [vmem:[%s145_s3 + $0x8] sm:$0xff] %v83_v13 }

// kernel: tile.13
= control target key start
LH: loop header
LB: loop body
LE: loop exit
PB: predicated region body
PF: predicated region fallthrough
CT: control target
= control target key end

     0   :  { %s22_s0 = inlined_call_operand.vmem [shape: f32[8], index: 0, kind: input, shape index: {}]   ;;  %s23_s1 = inlined_call_operand.vmem [shape: f32[2,8], index: 1, kind: output, shape index: {}]  }
   0x1   :  { %v4_v0 = vld [vmem:[%s22_s0] ss:$0 sm:$0xff] }
   0x2   :  { %5 = vst [vmem:[%s23_s1] sm:$0x3] %v4_v0 }

// kernel: fwd.92
= control target key start
LH: loop header
LB: loop body
LE: loop exit
PB: predicated region body
PF: predicated region fallthrough
CT: control target
= control target key end

     0   :  { %s678_s12 = smov 0   ;;  %s680_s13 = smov 0   ;;  %s765_s0 = inlined_call_operand.vmem [shape: bf16[2,1,14,4], index: 0, kind: input, shape index: {}]   ;;  %s766_s1 = inlined_call_operand.vmem [shape: bf16[7,4,128], index: 1, kind: input, shape index: {}]   ;;  %s767_s2 = inlined_call_operand.vmem [shape: f32[1,128], index: 2, kind: input, shape index: {}]   ;;  %s768_s3 = inlined_call_operand.vmem [shape: f32[2,8,128], index: 3, kind: output, shape index: {}]  }
   0x1   :  { %s682_s14 = smov 0  }
   0x2 LB: > { %s32_s15 = sadd.s32 1, %s652_s13  ;;  %p589_p0 = scmp.ge.s32.totalorder %s656_s14, 1  ;;  %s656_s14 = sphi %s682_s14, %s13_s14   ;;  %s652_s13 = sphi %s680_s13, %s770_s13   ;;  %s648_s12 = sphi %s678_s12, %s769_s12  }
   0x3   : > { %p34_p1 = scmp.ge.s32.totalorder %s32_s15, 2  ;;  %p183_p2 = scmp.lt.s32.totalorder %s656_s14, 3 }
   0x5   : > { %s772_s15 = smov (%p34_p1, %s32_s15), 0  ;;  %p184_p3 = pnand %p589_p0, %p183_p2 }
   0x6   : > { %p223_p4 = scmp.lt.s32.totalorder (!%p184_p3), %s648_s12, 1 }
   0x7   : > { %187 = sbr.rel (%p184_p3) target bundleno = 181 (0xb5), region = 32 }
   0xc   : > { %v251_v0 = vld [vmem:[%s766_s1] sm:$0x3]  ;;  %vm271_vm0 = vcmask 1041408   ;;  %v596_v1 = vld [vmem:[%s766_s1 + $0x4] sm:$0x3]  ;;  %s774_s12 = smov (!%p223_p4, %s648_s12), 1 }
   0xd   : > { %v292_v2 = vsel %vm271_vm0, %v251_v0, 0  ;;  %v318_v3 = vsel %vm271_vm0, %v596_v1, 0  ;;  %v604_v4 = vld [vmem:[%s766_s1 + $0xc] sm:$0x3]  ;;  %v593_v6 = vld [vmem:[%s766_s1 + $0x2] sm:$0x3] }
   0xe   : > { %301 = vmatpush.bf16.msra.mxu1 %v292_v2  ;;  %327 = vmatpush.bf16.msra.mxu2 %v318_v3  ;;  %v440_v5 = vsel %vm271_vm0, %v604_v4, 0  ;;  %v598_v7 = vld [vmem:[%s766_s1 + $0x6] sm:$0x3]  ;;  %v273_v8 = vsel %vm271_vm0, %v593_v6, 0  ;;  %v600_v10 = vld [vmem:[%s766_s1 + $0x8] sm:$0x3] }
   0xf   : > { %v352_v9 = vsel %vm271_vm0, %v598_v7, 0  ;;  %v602_v11 = vld [vmem:[%s766_s1 + $0xa] sm:$0x3]  ;;  %s608_s30 = sshll.u32 %s774_s12, 3  ;;  %vm267_vm1 = vcmask 31744   ;;  %282 = vmatpush.bf16.msra.mxu0 %v273_v8  ;;  %v379_v12 = vsel %vm271_vm0, %v600_v10, 0 }
  0x10   : > { %361 = vmatpush.bf16.msra.mxu3 %v352_v9  ;;  %v413_v13 = vsel %vm271_vm0, %v602_v11, 0  ;;  %s732_s6 = scalar_lea.vmem %s765_s0, %s608_s30  ;;  %v633_v4 = vld [vmem:[%s767_s2] ss:$0 sm:$0xff]  ;;  %s248_s11 = scalar_lea.vmem %s768_s3, %s608_s30 }
  0x11   : > { %v250_v14 = vld [vmem:[%s732_s6] sm:$0xf]  ;;  %v252_v15 = vld [vmem:[%s732_s6 + $0x4] sm:$0x1] }
  0x12   : > { %449 = vmatpush.bf16.msrb.mxu2 %v440_v5  ;;  %422 = vmatpush.bf16.msrb.mxu1 %v413_v13  ;;  %v307_v16 = vld [vmem:[%s732_s6] sm:$0xe]  ;;  %v257_v17 = vunpack.c.l.b16 %v250_v14  ;;  %v258_v18 = vunpack.c.l.b16 %v252_v15  ;;  %v334_v20 = vld [vmem:[%s732_s6 + $0x4] sm:$0x3] }
  0x13   : > { %388 = vmatpush.bf16.msrb.mxu0 %v379_v12  ;;  %595 = vmatmul.msk.bf16.vlgmr.msra.gmra.mxu1 %vm267_vm1, %v250_v14  ;;  %v311_v19 = vunpack.c.l.b16 %v307_v16  ;;  %v368_v21 = vld [vmem:[%s732_s6] sm:$0xc]  ;;  %v395_v22 = vld [vmem:[%s732_s6 + $0x4] sm:$0x7]  ;;  %v338_v23 = vunpack.c.l.b16 %v334_v20 }
  0x14   : > { %v372_v24 = vunpack.c.l.b16 %v368_v21  ;;  %v399_v25 = vunpack.c.l.b16 %v395_v22  ;;  %v259_v26 = vpack.c.b16 %v258_v18, %v257_v17  ;;  %v429_v40 = vld [vmem:[%s732_s6] sm:$0x8] }
  0x15   : > { %v312_v27 = vpack.c.b16 %v258_v18, %v311_v19  ;;  %v339_v28 = vpack.c.b16 %v338_v23, %v311_v19  ;;  %v433_v45 = vunpack.c.l.b16 %v429_v40 }
  0x16   : > { %v400_v29 = vpack.c.b16 %v399_v25, %v372_v24  ;;  %v261_v31 = vshrl.u32 %v259_v26, 16  ;;  %v263_v32 = vshll.u32 %v259_v26, 16  ;;  %v373_v49 = vpack.c.b16 %v338_v23, %v372_v24 }
  0x17   : > { %v313_v30 = vrot.slane %v312_v27, 1  ;;  %v341_v33 = vshrl.u32 %v339_v28, 16  ;;  %v344_v34 = vshll.u32 %v339_v28, 16  ;;  %v434_v47 = vpack.c.b16 %v399_v25, %v433_v45 }
  0x18   : > { %v402_v35 = vshrl.u32 %v400_v29, 16  ;;  %v405_v36 = vshll.u32 %v400_v29, 16  ;;  %v265_v37 = vrot.slane %v263_v32, 1  ;;  %v374_v50 = vrot.slane %v373_v49, 2 }
  0x19   : > { %597 = vmatmul.msk.bf16.vlgmr.msra.gmra.mxu2 %vm267_vm1, %v313_v30  ;;  %v343_v38 = vrot.slane %v341_v33, 1  ;;  %v346_v39 = vrot.slane %v344_v34, 2  ;;  %v435_v48 = vrot.slane %v434_v47, 3 }
  0x1a   : > { %v266_v41 = vor.u32 %v265_v37, %v261_v31  ;;  %v404_v42 = vrot.slane %v402_v35, 2  ;;  %v407_v43 = vrot.slane %v405_v36, 3 }
  0x1b   : > { %v347_v44 = vor.u32 %v346_v39, %v343_v38 }
  0x1c   : > { %594 = vmatmul.msk.bf16.vlgmr.msra.gmra.mxu0 %vm267_vm1, %v266_v41  ;;  %v408_v46 = vor.u32 %v407_v43, %v404_v42 }
  0x1d   : > { %599 = vmatmul.msk.bf16.vlgmr.msra.gmra.mxu3 %vm267_vm1, %v347_v44 }
  0x23   : > { %603 = vmatmul.msk.bf16.vlgmr.msrb.gmra.mxu1 %vm267_vm1, %v408_v46 }
  0x29   : > { %605 = vmatmul.msk.bf16.vlgmr.msrb.gmra.mxu2 %vm267_vm1, %v435_v48 }
  0x2c   : > { %601 = vmatmul.msk.bf16.vlgmr.msrb.gmra.mxu0 %vm267_vm1, %v374_v50 }
  0x90   : > { %v303_v51 = vpop.f32.mrf.mxu1 }
  0x98   : > { %v305_v52 = vpop.f32.mrf.mxu1 }
  0x99   : > { %v284_v53 = vpop.f32.mrf.mxu0 }
  0x9a   : > { %v304_v58 = vadd.f32 %v303_v51, %v284_v53 }
  0x9c   : > { %v329_v54 = vpop.f32.mrf.mxu2 }
  0x9d   : > { %v333_v60 = vadd.f32 %v329_v54, %v304_v58 }
  0xa0   : > { %v424_v55 = vpop.f32.mrf.mxu1  ;;  %v363_v56 = vpop.f32.mrf.mxu3 }
  0xa1   : > { %v286_v57 = vpop.f32.mrf.mxu0  ;;  %v367_v62 = vadd.f32 %v363_v56, %v333_v60 }
  0xa4   : > { %v331_v59 = vpop.f32.mrf.mxu2 }
  0xa8   : > { %v426_v61 = vpop.f32.mrf.mxu1  ;;  %v365_v63 = vpop.f32.mrf.mxu3 }
  0xa9   : > { %v390_v0 = vpop.f32.mrf.mxu0 }
  0xaa   : > { %v394_v1 = vadd.f32 %v390_v0, %v367_v62 }
  0xac   : > { %v451_v2 = vpop.f32.mrf.mxu2  ;;  %v428_v3 = vadd.f32 %v424_v55, %v394_v1 }
  0xae   : > { %v455_v5 = vadd.f32 %v451_v2, %v428_v3 }
  0xb0   : > { %v460_v6 = vadd.f32 %v633_v4, %v455_v5 }
  0xb1   : > { %v392_v7 = vpop.f32.mrf.mxu0 }
  0xb2   : > { %461 = vst [vmem:[%s248_s11] sm:$0xff] %v460_v6 }
  0xb4   : > { %v453_v8 = vpop.f32.mrf.mxu2 }
  0xb5 PF: > { %s13_s14 = sadd.s32 1, %s656_s14   ;;  %s769_s12 = smov %s652_s13 }
  0xb6   : > { %p10_p5 = scmp.ge.s32.totalorder %s13_s14, 4   ;;  %s770_s13 = smov %s772_s15 }
  0xb8   :  { %12 = sbr.rel (!%p10_p5) target bundleno = 2 (0x2), region = 74 }

// kernel: tile.14
= control target key start
LH: loop header
LB: loop body
LE: loop exit
PB: predicated region body
PF: predicated region fallthrough
CT: control target
= control target key end

     0   :  { %vm7_vm0 = vcmask 64512   ;;  %vm13_vm1 = vcmask 130112   ;;  %s39_s0 = inlined_call_operand.vmem [shape: f32[2,8], index: 0, kind: input, shape index: {}]   ;;  %s40_s1 = inlined_call_operand.vmem [shape: f32[16], index: 1, kind: output, shape index: {}]  }
   0x1   :  { %v4_v0 = vld [vmem:[%s39_s0] sm:$0x3]  ;;  %s22_s0 = smov 8  }
   0x2   :  { %5 = vst [vmem:[#allocation1] sm:$0x3] %v4_v0 }
   0x9   :  { %v10_v1 = vld [vmem:[#allocation1 + $0x1] sm:$0x1]   ;;  %v6_v2 = vld [vmem:[#allocation1] sm:$0x1]  }
   0xa   :  { %11 = vrot.lane.b32.xlu0 %v10_v1, %s22_s0  ;;  %8 = vst.msk [vmem:[#allocation0] sm:$0x1] %vm7_vm0, %v6_v2  }
  0x7c   :  { %v12_v3 = vpop.permute.xlu0 %11  }
  0x7d   :  { %14 = vst.msk [vmem:[#allocation0] sm:$0x1] %vm13_vm1, %v12_v3  }
  0x84   :  { %v17_v4 = vld [vmem:[#allocation0] sm:$0x1] }
  0x85   :  { %20 = vst [vmem:[%s40_s1] sm:$0x1] %v17_v4 }

// kernel: fwd.93
= control target key start
LH: loop header
LB: loop body
LE: loop exit
PB: predicated region body
PF: predicated region fallthrough
CT: control target
= control target key end

     0   :  { %s576_s12 = smov 0   ;;  %s578_s13 = smov 0   ;;  %s627_s0 = inlined_call_operand.vmem [shape: bf16[2,1,10,16], index: 0, kind: input, shape index: {}]   ;;  %s628_s1 = inlined_call_operand.vmem [shape: bf16[3,16,128], index: 1, kind: input, shape index: {}]   ;;  %s629_s2 = inlined_call_operand.vmem [shape: f32[1,128], index: 2, kind: input, shape index: {}]   ;;  %s630_s3 = inlined_call_operand.vmem [shape: f32[2,8,128], index: 3, kind: output, shape index: {}]  }
   0x1   :  { %s580_s14 = smov 0  }
   0x2 LB: > { %s32_s15 = sadd.s32 1, %s550_s13  ;;  %p478_p0 = scmp.ge.s32.totalorder %s554_s14, 1  ;;  %s554_s14 = sphi %s580_s14, %s13_s14   ;;  %s550_s13 = sphi %s578_s13, %s632_s13   ;;  %s546_s12 = sphi %s576_s12, %s631_s12  }
   0x3   : > { %p34_p1 = scmp.ge.s32.totalorder %s32_s15, 2  ;;  %p183_p2 = scmp.lt.s32.totalorder %s554_s14, 3 }
   0x5   : > { %s634_s15 = smov (%p34_p1, %s32_s15), 0  ;;  %p184_p3 = pnand %p478_p0, %p183_p2 }
   0x6   : > { %p223_p4 = scmp.lt.s32.totalorder (!%p184_p3), %s546_s12, 1 }
   0x7   : > { %187 = sbr.rel (%p184_p3) target bundleno = 163 (0xa3), region = 32 }
   0xc   : > { %v504_v0 = vld [vmem:[%s628_s1] sm:$0xff]  ;;  %v506_v1 = vld [vmem:[%s628_s1 + $0x10] sm:$0xff]  ;;  %v505_v2 = vld [vmem:[%s628_s1 + $0x8] sm:$0xff]  ;;  %s636_s12 = smov (!%p223_p4, %s546_s12), 1  ;;  %vm275_vm0 = vcmask 130048  }
   0xd   : > { %308 = vmatpush.bf16.msra.mxu1 %v504_v0  ;;  %338 = vmatpush.bf16.msra.mxu2 %v506_v1  ;;  %s503_s22 = sshll.u32 %s636_s12, 3  ;;  %v531_v20 = vld [vmem:[%s629_s2] ss:$0 sm:$0xff] }
   0xe   : > { %286 = vmatpush.bf16.msra.mxu0 %v505_v2  ;;  %s231_s25 = scalar_lea.vmem %s627_s0, %s503_s22  ;;  %s248_s30 = scalar_lea.vmem %s630_s3, %s503_s22 }
   0xf   : > { %v250_v3 = vld [vmem:[%s231_s25] sm:$0xf]  ;;  %v253_v4 = vld [vmem:[%s231_s25 + $0x4] sm:$0x1] }
  0x10   : > { %v314_v5 = vld [vmem:[%s231_s25] sm:$0xe]  ;;  %v259_v6 = vunpack.c.l.b16 %v250_v3  ;;  %v260_v7 = vunpack.c.l.b16 %v253_v4  ;;  %493 = vmatmul.msk.bf16.vlgmr.msra.gmra.mxu1 %vm275_vm0, %v250_v3 }
  0x11   : > { %v319_v8 = vunpack.c.l.b16 %v314_v5 }
  0x12   : > { %v261_v9 = vpack.c.b16 %v260_v7, %v259_v6 }
  0x13   : > { %v320_v10 = vpack.c.b16 %v260_v7, %v319_v8 }
  0x14   : > { %v263_v12 = vshrl.u32 %v261_v9, 16  ;;  %v265_v13 = vshll.u32 %v261_v9, 16 }
  0x15   : > { %v321_v11 = vrot.slane %v320_v10, 1 }
  0x16   : > { %v267_v14 = vrot.slane %v265_v13, 1 }
  0x17   : > { %500 = vmatmul.msk.bf16.vlgmr.msra.gmra.mxu2 %vm275_vm0, %v321_v11 }
  0x18   : > { %v268_v15 = vor.u32 %v267_v14, %v263_v12 }
  0x1a   : > { %488 = vmatmul.msk.bf16.vlgmr.msra.gmra.mxu0 %vm275_vm0, %v268_v15 }
  0x8d   : > { %v310_v16 = vpop.f32.mrf.mxu1 }
  0x95   : > { %v312_v17 = vpop.f32.mrf.mxu1 }
  0x97   : > { %v288_v18 = vpop.f32.mrf.mxu0 }
  0x98   : > { %v311_v19 = vadd.f32 %v310_v16, %v288_v18 }
  0x9a   : > { %v340_v21 = vpop.f32.mrf.mxu2 }
  0x9b   : > { %v344_v22 = vadd.f32 %v340_v21, %v311_v19 }
  0x9d   : > { %v349_v23 = vadd.f32 %v531_v20, %v344_v22 }
  0x9f   : > { %350 = vst [vmem:[%s248_s30] sm:$0xff] %v349_v23  ;;  %v290_v24 = vpop.f32.mrf.mxu0 }
  0xa2   : > { %v342_v25 = vpop.f32.mrf.mxu2 }
  0xa3 PF: > { %s13_s14 = sadd.s32 1, %s554_s14   ;;  %s631_s12 = smov %s550_s13 }
  0xa4   : > { %p10_p5 = scmp.ge.s32.totalorder %s13_s14, 4   ;;  %s632_s13 = smov %s634_s15 }
  0xa6   :  { %12 = sbr.rel (!%p10_p5) target bundleno = 2 (0x2), region = 70 }

// kernel: fwd.94
= control target key start
LH: loop header
LB: loop body
LE: loop exit
PB: predicated region body
PF: predicated region fallthrough
CT: control target
= control target key end

     0   :  { %s549_s12 = smov 0   ;;  %s551_s13 = smov 0   ;;  %s601_s0 = inlined_call_operand.vmem [shape: bf16[2,1,10,8], index: 0, kind: input, shape index: {}]   ;;  %s602_s1 = inlined_call_operand.vmem [shape: bf16[3,8,128], index: 1, kind: input, shape index: {}]   ;;  %s603_s2 = inlined_call_operand.vmem [shape: f32[1,128], index: 2, kind: input, shape index: {}]   ;;  %s604_s3 = inlined_call_operand.vmem [shape: bf16[2,8,128], index: 3, kind: output, shape index: {}]  }
   0x1   :  { %s553_s14 = smov 0  }
   0x2 LB: > { %s32_s15 = sadd.s32 1, %s523_s13  ;;  %p468_p0 = scmp.ge.s32.totalorder %s527_s14, 1  ;;  %s527_s14 = sphi %s553_s14, %s13_s14   ;;  %s523_s13 = sphi %s551_s13, %s606_s13   ;;  %s519_s12 = sphi %s549_s12, %s605_s12  }
   0x3   : > { %p34_p1 = scmp.ge.s32.totalorder %s32_s15, 2  ;;  %p183_p2 = scmp.lt.s32.totalorder %s527_s14, 3 }
   0x5   : > { %s608_s15 = smov (%p34_p1, %s32_s15), 0  ;;  %p184_p3 = pnand %p468_p0, %p183_p2 }
   0x6   : > { %p223_p4 = scmp.lt.s32.totalorder (!%p184_p3), %s519_s12, 1 }
   0x7   : > { %187 = sbr.rel (%p184_p3) target bundleno = 163 (0xa3), region = 32 }
   0xc   : > { %v251_v0 = vld [vmem:[%s602_s1] sm:$0xf]  ;;  %vm271_vm0 = vcmask 1043456   ;;  %v475_v2 = vld [vmem:[%s602_s1 + $0x8] sm:$0xf]  ;;  %s610_s12 = smov (!%p223_p4, %s519_s12), 1 }
   0xd   : > { %v292_v1 = vsel %vm271_vm0, %v251_v0, 0  ;;  %v472_v3 = vld [vmem:[%s602_s1 + $0x4] sm:$0xf]  ;;  %v318_v4 = vsel %vm271_vm0, %v475_v2, 0  ;;  %s479_s22 = sshll.u32 %s610_s12, 3  ;;  %vm267_vm1 = vcmask 64512  }
   0xe   : > { %301 = vmatpush.bf16.msra.mxu1 %v292_v1  ;;  %v273_v5 = vsel %vm271_vm0, %v472_v3, 0  ;;  %327 = vmatpush.bf16.msra.mxu2 %v318_v4  ;;  %s231_s25 = scalar_lea.vmem %s601_s0, %s479_s22  ;;  %v504_v23 = vld [vmem:[%s603_s2] ss:$0 sm:$0xff]  ;;  %s471_s28 = sshll.u32 %s610_s12, 2 }
   0xf   : > { %282 = vmatpush.bf16.msra.mxu0 %v273_v5  ;;  %v250_v6 = vld [vmem:[%s231_s25] sm:$0xf]  ;;  %v252_v7 = vld [vmem:[%s231_s25 + $0x4] sm:$0x1]  ;;  %s248_s4 = scalar_lea.vmem %s604_s3, %s471_s28 }
  0x10   : > { %v307_v8 = vld [vmem:[%s231_s25] sm:$0xe]  ;;  %v257_v9 = vunpack.c.l.b16 %v250_v6  ;;  %v258_v10 = vunpack.c.l.b16 %v252_v7 }
  0x11   : > { %474 = vmatmul.msk.bf16.vlgmr.msra.gmra.mxu1 %vm267_vm1, %v250_v6  ;;  %v311_v11 = vunpack.c.l.b16 %v307_v8 }
  0x12   : > { %v259_v12 = vpack.c.b16 %v258_v10, %v257_v9 }
  0x13   : > { %v312_v13 = vpack.c.b16 %v258_v10, %v311_v11 }
  0x14   : > { %v261_v15 = vshrl.u32 %v259_v12, 16  ;;  %v263_v16 = vshll.u32 %v259_v12, 16 }
  0x15   : > { %v313_v14 = vrot.slane %v312_v13, 1 }
  0x16   : > { %v265_v17 = vrot.slane %v263_v16, 1 }
  0x17   : > { %476 = vmatmul.msk.bf16.vlgmr.msra.gmra.mxu2 %vm267_vm1, %v313_v14 }
  0x18   : > { %v266_v18 = vor.u32 %v265_v17, %v261_v15 }
  0x1a   : > { %473 = vmatmul.msk.bf16.vlgmr.msra.gmra.mxu0 %vm267_vm1, %v266_v18 }
  0x8e   : > { %v303_v19 = vpop.f32.mrf.mxu1 }
  0x96   : > { %v305_v20 = vpop.f32.mrf.mxu1 }
  0x97   : > { %v284_v21 = vpop.f32.mrf.mxu0 }
  0x98   : > { %v304_v22 = vadd.f32 %v303_v19, %v284_v21 }
  0x9a   : > { %v329_v24 = vpop.f32.mrf.mxu2 }
  0x9b   : > { %v333_v25 = vadd.f32 %v329_v24, %v304_v22 }
  0x9d   : > { %v338_v26 = vadd.f32 %v504_v23, %v333_v25 }
  0x9f   : > { %v339_v27 = vpack.c.bf16 %v338_v26, %v338_v26  ;;  %v286_v28 = vpop.f32.mrf.mxu0 }
  0xa1   : > { %340 = vst [vmem:[%s248_s4] sm:$0xf] %v339_v27 }
  0xa2   : > { %v331_v29 = vpop.f32.mrf.mxu2 }
  0xa3 PF: > { %s13_s14 = sadd.s32 1, %s527_s14   ;;  %s605_s12 = smov %s523_s13 }
  0xa4   : > { %p10_p5 = scmp.ge.s32.totalorder %s13_s14, 4   ;;  %s606_s13 = smov %s608_s15 }
  0xa6   :  { %12 = sbr.rel (!%p10_p5) target bundleno = 2 (0x2), region = 70 }

// kernel: fwd.96
= control target key start
LH: loop header
LB: loop body
LE: loop exit
PB: predicated region body
PF: predicated region fallthrough
CT: control target
= control target key end

     0   :  { %s564_s12 = smov 0   ;;  %s566_s13 = smov 0   ;;  %s616_s0 = inlined_call_operand.vmem [shape: bf16[2,1,14,8], index: 0, kind: input, shape index: {}]   ;;  %s617_s1 = inlined_call_operand.vmem [shape: bf16[3,8,128], index: 1, kind: input, shape index: {}]   ;;  %s618_s2 = inlined_call_operand.vmem [shape: f32[1,128], index: 2, kind: input, shape index: {}]   ;;  %s619_s3 = inlined_call_operand.vmem [shape: bf16[2,8,128], index: 3, kind: output, shape index: {}]  }
   0x1   :  { %s568_s14 = smov 0  }
   0x2 LB: > { %s32_s15 = sadd.s32 1, %s538_s13  ;;  %p473_p0 = scmp.ge.s32.totalorder %s542_s14, 1  ;;  %s542_s14 = sphi %s568_s14, %s13_s14   ;;  %s538_s13 = sphi %s566_s13, %s621_s13   ;;  %s534_s12 = sphi %s564_s12, %s620_s12  }
   0x3   : > { %p34_p1 = scmp.ge.s32.totalorder %s32_s15, 2  ;;  %p183_p2 = scmp.lt.s32.totalorder %s542_s14, 3 }
   0x5   : > { %s623_s15 = smov (%p34_p1, %s32_s15), 0  ;;  %p184_p3 = pnand %p473_p0, %p183_p2 }
   0x6   : > { %p223_p4 = scmp.lt.s32.totalorder (!%p184_p3), %s534_s12, 1 }
   0x7   : > { %187 = sbr.rel (%p184_p3) target bundleno = 161 (0xa1), region = 32 }
   0xc   : > { %v251_v0 = vld [vmem:[%s617_s1] sm:$0xf]  ;;  %vm273_vm0 = vcmask 1043456   ;;  %v484_v2 = vld [vmem:[%s617_s1 + $0x8] sm:$0xf]  ;;  %s625_s12 = smov (!%p223_p4, %s534_s12), 1 }
   0xd   : > { %v294_v1 = vsel %vm273_vm0, %v251_v0, 0  ;;  %v477_v3 = vld [vmem:[%s617_s1 + $0x4] sm:$0xf]  ;;  %v323_v4 = vsel %vm273_vm0, %v484_v2, 0  ;;  %s492_s22 = sshll.u32 %s625_s12, 3  ;;  %vm269_vm1 = vcmask 64512  }
   0xe   : > { %303 = vmatpush.bf16.msra.mxu1 %v294_v1  ;;  %v275_v5 = vsel %vm273_vm0, %v477_v3, 0  ;;  %332 = vmatpush.bf16.msra.mxu2 %v323_v4  ;;  %s231_s25 = scalar_lea.vmem %s616_s0, %s492_s22  ;;  %v519_v24 = vld [vmem:[%s618_s2] ss:$0 sm:$0xff]  ;;  %s476_s28 = sshll.u32 %s625_s12, 2 }
   0xf   : > { %284 = vmatpush.bf16.msra.mxu0 %v275_v5  ;;  %v250_v6 = vld [vmem:[%s231_s25] sm:$0xf]  ;;  %v494_v8 = vld [vmem:[%s231_s25] sm:$0x70]  ;;  %s248_s4 = scalar_lea.vmem %s619_s3, %s476_s28 }
  0x10   : > { %v487_v7 = vld [vmem:[%s231_s25] sm:$0x8]  ;;  %v493_v11 = vld [vmem:[%s231_s25] sm:$0x30] }
  0x11   : > { %483 = vmatmul.msk.bf16.vlgmr.msra.gmra.mxu1 %vm269_vm1, %v250_v6  ;;  %v488_v9 = vor.u32 %v494_v8, %v487_v7  ;;  %v480_v10 = vld [vmem:[%s231_s25] sm:$0xe] }
  0x12   : > { %v481_v12 = vor.u32 %v493_v11, %v480_v10 }
  0x13   : > { %v318_v13 = vrot.slane %v488_v9, 3 }
  0x14   : > { %v262_v14 = vshrl.u32 %v481_v12, 16  ;;  %v265_v15 = vshll.u32 %v481_v12, 16 }
  0x15   : > { %489 = vmatmul.msk.bf16.vlgmr.msra.gmra.mxu2 %vm269_vm1, %v318_v13 }
  0x16   : > { %v264_v16 = vrot.slane %v262_v14, 1  ;;  %v267_v17 = vrot.slane %v265_v15, 2 }
  0x18   : > { %v268_v18 = vor.u32 %v267_v17, %v264_v16 }
  0x1a   : > { %482 = vmatmul.msk.bf16.vlgmr.msra.gmra.mxu0 %vm269_vm1, %v268_v18 }
  0x8e   : > { %v305_v19 = vpop.f32.mrf.mxu1 }
  0x96   : > { %v307_v20 = vpop.f32.mrf.mxu1 }
  0x97   : > { %v286_v21 = vpop.f32.mrf.mxu0 }
  0x98   : > { %v306_v22 = vadd.f32 %v305_v19, %v286_v21  ;;  %v334_v23 = vpop.f32.mrf.mxu2 }
  0x9a   : > { %v338_v25 = vadd.f32 %v334_v23, %v306_v22 }
  0x9c   : > { %v343_v26 = vadd.f32 %v519_v24, %v338_v25 }
  0x9e   : > { %v344_v27 = vpack.c.bf16 %v343_v26, %v343_v26 }
  0x9f   : > { %v288_v28 = vpop.f32.mrf.mxu0 }
  0xa0   : > { %345 = vst [vmem:[%s248_s4] sm:$0xf] %v344_v27  ;;  %v336_v29 = vpop.f32.mrf.mxu2 }
  0xa1 PF: > { %s13_s14 = sadd.s32 1, %s542_s14   ;;  %s620_s12 = smov %s538_s13 }
  0xa2   : > { %p10_p5 = scmp.ge.s32.totalorder %s13_s14, 4   ;;  %s621_s13 = smov %s623_s15 }
  0xa4   :  { %12 = sbr.rel (!%p10_p5) target bundleno = 2 (0x2), region = 70 }

// kernel: fwd.95
= control target key start
LH: loop header
LB: loop body
LE: loop exit
PB: predicated region body
PF: predicated region fallthrough
CT: control target
= control target key end

     0   :  { %s548_s12 = smov 0   ;;  %s550_s13 = smov 0   ;;  %s599_s0 = inlined_call_operand.vmem [shape: bf16[2,1,10,8], index: 0, kind: input, shape index: {}]   ;;  %s600_s1 = inlined_call_operand.vmem [shape: bf16[3,8,128], index: 1, kind: input, shape index: {}]   ;;  %s601_s2 = inlined_call_operand.vmem [shape: f32[1,128], index: 2, kind: input, shape index: {}]   ;;  %s602_s3 = inlined_call_operand.vmem [shape: f32[2,8,128], index: 3, kind: output, shape index: {}]  }
   0x1   :  { %s552_s14 = smov 0  }
   0x2 LB: > { %s32_s15 = sadd.s32 1, %s522_s13  ;;  %p467_p0 = scmp.ge.s32.totalorder %s526_s14, 1  ;;  %s526_s14 = sphi %s552_s14, %s13_s14   ;;  %s522_s13 = sphi %s550_s13, %s604_s13   ;;  %s518_s12 = sphi %s548_s12, %s603_s12  }
   0x3   : > { %p34_p1 = scmp.ge.s32.totalorder %s32_s15, 2  ;;  %p183_p2 = scmp.lt.s32.totalorder %s526_s14, 3 }
   0x5   : > { %s606_s15 = smov (%p34_p1, %s32_s15), 0  ;;  %p184_p3 = pnand %p467_p0, %p183_p2 }
   0x6   : > { %p223_p4 = scmp.lt.s32.totalorder (!%p184_p3), %s518_s12, 1 }
   0x7   : > { %187 = sbr.rel (%p184_p3) target bundleno = 163 (0xa3), region = 32 }
   0xc   : > { %v251_v0 = vld [vmem:[%s600_s1] sm:$0xf]  ;;  %vm271_vm0 = vcmask 1043456   ;;  %v474_v1 = vld [vmem:[%s600_s1 + $0x8] sm:$0xf]  ;;  %s608_s12 = smov (!%p223_p4, %s518_s12), 1 }
   0xd   : > { %v292_v2 = vsel %vm271_vm0, %v251_v0, 0  ;;  %v318_v3 = vsel %vm271_vm0, %v474_v1, 0  ;;  %v471_v4 = vld [vmem:[%s600_s1 + $0x4] sm:$0xf]  ;;  %s478_s22 = sshll.u32 %s608_s12, 3  ;;  %vm267_vm1 = vcmask 64512  }
   0xe   : > { %301 = vmatpush.bf16.msra.mxu1 %v292_v2  ;;  %327 = vmatpush.bf16.msra.mxu2 %v318_v3  ;;  %v273_v5 = vsel %vm271_vm0, %v471_v4, 0  ;;  %s231_s25 = scalar_lea.vmem %s599_s0, %s478_s22  ;;  %v503_v23 = vld [vmem:[%s601_s2] ss:$0 sm:$0xff]  ;;  %s248_s30 = scalar_lea.vmem %s602_s3, %s478_s22 }
   0xf   : > { %282 = vmatpush.bf16.msra.mxu0 %v273_v5  ;;  %v250_v6 = vld [vmem:[%s231_s25] sm:$0xf]  ;;  %v252_v7 = vld [vmem:[%s231_s25 + $0x4] sm:$0x1] }
  0x10   : > { %v307_v8 = vld [vmem:[%s231_s25] sm:$0xe]  ;;  %v257_v9 = vunpack.c.l.b16 %v250_v6  ;;  %v258_v10 = vunpack.c.l.b16 %v252_v7 }
  0x11   : > { %473 = vmatmul.msk.bf16.vlgmr.msra.gmra.mxu1 %vm267_vm1, %v250_v6  ;;  %v311_v11 = vunpack.c.l.b16 %v307_v8 }
  0x12   : > { %v259_v12 = vpack.c.b16 %v258_v10, %v257_v9 }
  0x13   : > { %v312_v13 = vpack.c.b16 %v258_v10, %v311_v11 }
  0x14   : > { %v261_v15 = vshrl.u32 %v259_v12, 16  ;;  %v263_v16 = vshll.u32 %v259_v12, 16 }
  0x15   : > { %v313_v14 = vrot.slane %v312_v13, 1 }
  0x16   : > { %v265_v17 = vrot.slane %v263_v16, 1 }
  0x17   : > { %475 = vmatmul.msk.bf16.vlgmr.msra.gmra.mxu2 %vm267_vm1, %v313_v14 }
  0x18   : > { %v266_v18 = vor.u32 %v265_v17, %v261_v15 }
  0x1a   : > { %472 = vmatmul.msk.bf16.vlgmr.msra.gmra.mxu0 %vm267_vm1, %v266_v18 }
  0x8e   : > { %v303_v19 = vpop.f32.mrf.mxu1 }
  0x96   : > { %v305_v20 = vpop.f32.mrf.mxu1 }
  0x97   : > { %v284_v21 = vpop.f32.mrf.mxu0 }
  0x98   : > { %v304_v22 = vadd.f32 %v303_v19, %v284_v21 }
  0x9a   : > { %v329_v24 = vpop.f32.mrf.mxu2 }
  0x9b   : > { %v333_v25 = vadd.f32 %v329_v24, %v304_v22 }
  0x9d   : > { %v338_v26 = vadd.f32 %v503_v23, %v333_v25 }
  0x9f   : > { %339 = vst [vmem:[%s248_s30] sm:$0xff] %v338_v26  ;;  %v286_v27 = vpop.f32.mrf.mxu0 }
  0xa2   : > { %v331_v28 = vpop.f32.mrf.mxu2 }
  0xa3 PF: > { %s13_s14 = sadd.s32 1, %s526_s14   ;;  %s603_s12 = smov %s522_s13 }
  0xa4   : > { %p10_p5 = scmp.ge.s32.totalorder %s13_s14, 4   ;;  %s604_s13 = smov %s606_s15 }
  0xa6   :  { %12 = sbr.rel (!%p10_p5) target bundleno = 2 (0x2), region = 70 }

// kernel: tile.18
= control target key start
LH: loop header
LB: loop body
LE: loop exit
PB: predicated region body
PF: predicated region fallthrough
CT: control target
= control target key end

     0   :  { %s22_s0 = inlined_call_operand.vmem [shape: f32[4], index: 0, kind: input, shape index: {}]   ;;  %s23_s1 = inlined_call_operand.vmem [shape: f32[2,4], index: 1, kind: output, shape index: {}]  }
   0x1   :  { %v4_v0 = vld [vmem:[%s22_s0] ss:$0 sm:$0xff] }
   0x2   :  { %5 = vst [vmem:[%s23_s1] sm:$0x3] %v4_v0 }

// kernel: tile.19
= control target key start
LH: loop header
LB: loop body
LE: loop exit
PB: predicated region body
PF: predicated region fallthrough
CT: control target
= control target key end

     0   :  { %vm7_vm0 = vcmask 31744   ;;  %vm13_vm1 = vcmask 64544   ;;  %s39_s0 = inlined_call_operand.vmem [shape: f32[2,4], index: 0, kind: input, shape index: {}]   ;;  %s40_s1 = inlined_call_operand.vmem [shape: f32[8], index: 1, kind: output, shape index: {}]  }
   0x1   :  { %v4_v0 = vld [vmem:[%s39_s0] sm:$0x3]  ;;  %s22_s0 = smov 4  }
   0x2   :  { %5 = vst [vmem:[#allocation1] sm:$0x3] %v4_v0 }
   0x9   :  { %v10_v1 = vld [vmem:[#allocation1 + $0x1] sm:$0x1]   ;;  %v6_v2 = vld [vmem:[#allocation1] sm:$0x1]  }
   0xa   :  { %11 = vrot.lane.b32.xlu0 %v10_v1, %s22_s0  ;;  %8 = vst.msk [vmem:[#allocation0] sm:$0x1] %vm7_vm0, %v6_v2  }
  0x7c   :  { %v12_v3 = vpop.permute.xlu0 %11  }
  0x7d   :  { %14 = vst.msk [vmem:[#allocation0] sm:$0x1] %vm13_vm1, %v12_v3  }
  0x84   :  { %v17_v4 = vld [vmem:[#allocation0] sm:$0x1] }
  0x85   :  { %20 = vst [vmem:[%s40_s1] sm:$0x1] %v17_v4 }

// kernel: fwd.98
= control target key start
LH: loop header
LB: loop body
LE: loop exit
PB: predicated region body
PF: predicated region fallthrough
CT: control target
= control target key end

     0   :  { %s563_s12 = smov 0   ;;  %s565_s13 = smov 0   ;;  %s615_s0 = inlined_call_operand.vmem [shape: bf16[2,1,18,8], index: 0, kind: input, shape index: {}]   ;;  %s616_s1 = inlined_call_operand.vmem [shape: bf16[3,8,128], index: 1, kind: input, shape index: {}]   ;;  %s617_s2 = inlined_call_operand.vmem [shape: f32[1,128], index: 2, kind: input, shape index: {}]   ;;  %s618_s3 = inlined_call_operand.vmem [shape: bf16[2,8,128], index: 3, kind: output, shape index: {}]  }
   0x1   :  { %s567_s14 = smov 0  }
   0x2 LB: > { %s32_s15 = sadd.s32 1, %s537_s13  ;;  %p473_p0 = scmp.ge.s32.totalorder %s541_s14, 1  ;;  %s541_s14 = sphi %s567_s14, %s13_s14   ;;  %s537_s13 = sphi %s565_s13, %s620_s13   ;;  %s533_s12 = sphi %s563_s12, %s619_s12  }
   0x3   : > { %p34_p1 = scmp.ge.s32.totalorder %s32_s15, 2  ;;  %p183_p2 = scmp.lt.s32.totalorder %s541_s14, 3 }
   0x5   : > { %s622_s15 = smov (%p34_p1, %s32_s15), 0  ;;  %p184_p3 = pnand %p473_p0, %p183_p2 }
   0x6   : > { %p223_p4 = scmp.lt.s32.totalorder (!%p184_p3), %s533_s12, 1 }
   0x7   : > { %187 = sbr.rel (%p184_p3) target bundleno = 161 (0xa1), region = 32 }
   0xc   : > { %v251_v0 = vld [vmem:[%s616_s1] sm:$0xf]  ;;  %vm273_vm0 = vcmask 1043456   ;;  %v483_v2 = vld [vmem:[%s616_s1 + $0x8] sm:$0xf]  ;;  %s624_s12 = smov (!%p223_p4, %s533_s12), 1 }
   0xd   : > { %v294_v1 = vsel %vm273_vm0, %v251_v0, 0  ;;  %v476_v3 = vld [vmem:[%s616_s1 + $0x4] sm:$0xf]  ;;  %v323_v4 = vsel %vm273_vm0, %v483_v2, 0  ;;  %s493_s22 = smul.u32 12, %s624_s12  ;;  %vm269_vm1 = vcmask 64512  }
   0xe   : > { %303 = vmatpush.bf16.msra.mxu1 %v294_v1  ;;  %v275_v5 = vsel %vm273_vm0, %v476_v3, 0  ;;  %332 = vmatpush.bf16.msra.mxu2 %v323_v4  ;;  %v518_v24 = vld [vmem:[%s617_s2] ss:$0 sm:$0xff]  ;;  %s475_s28 = sshll.u32 %s624_s12, 2 }
   0xf   : > { %284 = vmatpush.bf16.msra.mxu0 %v275_v5  ;;  %s231_s25 = scalar_lea.vmem %s615_s0, %s493_s22  ;;  %s248_s4 = scalar_lea.vmem %s618_s3, %s475_s28 }
  0x10   : > { %v250_v6 = vld [vmem:[%s231_s25] sm:$0xf]  ;;  %v486_v7 = vld [vmem:[%s231_s25 + $0x4] sm:$0xe]  ;;  %v492_v8 = vld [vmem:[%s231_s25 + $0x4] sm:$0x10] }
  0x11   : > { %482 = vmatmul.msk.bf16.vlgmr.msra.gmra.mxu1 %vm269_vm1, %v250_v6  ;;  %v487_v9 = vor.u32 %v492_v8, %v486_v7  ;;  %v479_v10 = vld [vmem:[%s231_s25] sm:$0xc]  ;;  %v491_v11 = vld [vmem:[%s231_s25] sm:$0x70] }
  0x12   : > { %v480_v12 = vor.u32 %v491_v11, %v479_v10 }
  0x13   : > { %v318_v13 = vrot.slane %v487_v9, 1 }
  0x14   : > { %v262_v14 = vshrl.u32 %v480_v12, 16  ;;  %v265_v15 = vshll.u32 %v480_v12, 16 }
  0x15   : > { %488 = vmatmul.msk.bf16.vlgmr.msra.gmra.mxu2 %vm269_vm1, %v318_v13 }
  0x16   : > { %v264_v16 = vrot.slane %v262_v14, 2  ;;  %v267_v17 = vrot.slane %v265_v15, 3 }
  0x18   : > { %v268_v18 = vor.u32 %v267_v17, %v264_v16 }
  0x1a   : > { %481 = vmatmul.msk.bf16.vlgmr.msra.gmra.mxu0 %vm269_vm1, %v268_v18 }
  0x8e   : > { %v305_v19 = vpop.f32.mrf.mxu1 }
  0x96   : > { %v307_v20 = vpop.f32.mrf.mxu1 }
  0x97   : > { %v286_v21 = vpop.f32.mrf.mxu0 }
  0x98   : > { %v306_v22 = vadd.f32 %v305_v19, %v286_v21  ;;  %v334_v23 = vpop.f32.mrf.mxu2 }
  0x9a   : > { %v338_v25 = vadd.f32 %v334_v23, %v306_v22 }
  0x9c   : > { %v343_v26 = vadd.f32 %v518_v24, %v338_v25 }
  0x9e   : > { %v344_v27 = vpack.c.bf16 %v343_v26, %v343_v26 }
  0x9f   : > { %v288_v28 = vpop.f32.mrf.mxu0 }
  0xa0   : > { %345 = vst [vmem:[%s248_s4] sm:$0xf] %v344_v27  ;;  %v336_v29 = vpop.f32.mrf.mxu2 }
  0xa1 PF: > { %s13_s14 = sadd.s32 1, %s541_s14   ;;  %s619_s12 = smov %s537_s13 }
  0xa2   : > { %p10_p5 = scmp.ge.s32.totalorder %s13_s14, 4   ;;  %s620_s13 = smov %s622_s15 }
  0xa4   :  { %12 = sbr.rel (!%p10_p5) target bundleno = 2 (0x2), region = 70 }

// kernel: fwd.103
= control target key start
LH: loop header
LB: loop body
LE: loop exit
PB: predicated region body
PF: predicated region fallthrough
CT: control target
= control target key end

     0   :  { %s606_s12 = smov 0   ;;  %s608_s13 = smov 0   ;;  %s658_s0 = inlined_call_operand.vmem [shape: bf16[2,1,22,4], index: 0, kind: input, shape index: {}]   ;;  %s659_s1 = inlined_call_operand.vmem [shape: bf16[3,4,128], index: 1, kind: input, shape index: {}]   ;;  %s660_s2 = inlined_call_operand.vmem [shape: f32[1,128], index: 2, kind: input, shape index: {}]   ;;  %s661_s3 = inlined_call_operand.vmem [shape: bf16[2,16,128], index: 3, kind: output, shape index: {}]  }
   0x1   :  { %s610_s14 = smov 0  }
   0x2 LB: > { %s32_s15 = sadd.s32 1, %s580_s13  ;;  %p515_p0 = scmp.ge.s32.totalorder %s584_s14, 1  ;;  %s584_s14 = sphi %s610_s14, %s13_s14   ;;  %s580_s13 = sphi %s608_s13, %s663_s13   ;;  %s576_s12 = sphi %s606_s12, %s662_s12  }
   0x3   : > { %p34_p1 = scmp.ge.s32.totalorder %s32_s15, 2  ;;  %p183_p2 = scmp.lt.s32.totalorder %s584_s14, 3 }
   0x5   : > { %s665_s15 = smov (%p34_p1, %s32_s15), 0  ;;  %p184_p3 = pnand %p515_p0, %p183_p2 }
   0x6   : > { %p225_p4 = scmp.lt.s32.totalorder (!%p184_p3), %s576_s12, 1 }
   0x7   : > { %187 = sbr.rel (%p184_p3) target bundleno = 173 (0xad), region = 32 }
   0xc   : > { %v257_v0 = vld [vmem:[%s659_s1] sm:$0x3]  ;;  %vm292_vm0 = vcmask 1041408   ;;  %v522_v2 = vld [vmem:[%s659_s1 + $0x4] sm:$0x3]  ;;  %s667_s12 = smov (!%p225_p4, %s576_s12), 1 }
   0xd   : > { %v317_v1 = vsel %vm292_vm0, %v257_v0, 0  ;;  %v519_v3 = vld [vmem:[%s659_s1 + $0x2] sm:$0x3]  ;;  %v351_v4 = vsel %vm292_vm0, %v522_v2, 0  ;;  %s536_s22 = smul.u32 12, %s667_s12  ;;  %vm288_vm1 = vcmask 31744  }
   0xe   : > { %326 = vmatpush.bf16.msra.mxu1 %v317_v1  ;;  %v294_v5 = vsel %vm292_vm0, %v519_v3, 0  ;;  %360 = vmatpush.bf16.msra.mxu2 %v351_v4  ;;  %vm343_vm2 = vcmask 1044480   ;;  %vm270_vm3 = vsmask.f32 6400  ;;  %v561_v41 = vld [vmem:[%s660_s2] ss:$0 sm:$0xff] }
   0xf   : > { %303 = vmatpush.bf16.msra.mxu0 %v294_v5  ;;  %s233_s25 = scalar_lea.vmem %s658_s0, %s536_s22  ;;  %s526_s28 = sshll.u32 %s667_s12, 3 }
  0x10   : > { %v528_v6 = vld [vmem:[%s233_s25] sm:$0xff]   ;;  %v334_v12 = vld [vmem:[%s233_s25 + $0x8] sm:$0x7]  ;;  %s252_s4 = scalar_lea.vmem %s661_s3, %s526_s28 }
  0x11   : > { %v258_v7 = vld [vmem:[%s233_s25] sm:$0xe]  ;;  %v530_v9 = vunpack.c.h.b16 %v528_v6  ;;  %521 = vmatmul.msk.bf16.vlgmr.msra.gmra.mxu1 %vm288_vm1, %v528_v6  ;;  %v259_v13 = vld [vmem:[%s233_s25 + $0x8] sm:$0x3]  ;;  %v340_v14 = vunpack.c.l.b16 %v334_v12 }
  0x12   : > { %v333_v8 = vld [vmem:[%s233_s25] sm:$0x8]  ;;  %v265_v10 = vunpack.c.l.b16 %v258_v7  ;;  %v267_v15 = vunpack.c.l.b16 %v259_v13 }
  0x13   : > { %v339_v11 = vunpack.c.l.b16 %v333_v8  ;;  %v342_v18 = vpack.c.b16 %v340_v14, %v340_v14 }
  0x14   : > { %v268_v16 = vpack.c.b16 %v530_v9, %v265_v10  ;;  %v269_v19 = vpack.c.b16 %v267_v15, %v267_v15 }
  0x15   : > { %v341_v17 = vpack.c.b16 %v530_v9, %v339_v11  ;;  %v345_v23 = vrot.slane %v342_v18, 3 }
  0x16   : > { %v272_v20 = vshrl.u32 %v268_v16, 16  ;;  %v275_v21 = vshll.u32 %v268_v16, 16  ;;  %v280_v24 = vshrl.u32 %v269_v19, 16  ;;  %v283_v25 = vshll.u32 %v269_v19, 16 }
  0x17   : > { %v344_v22 = vrot.slane %v341_v17, 3 }
  0x18   : > { %v274_v26 = vrot.slane %v272_v20, 1  ;;  %v277_v27 = vrot.slane %v275_v21, 2  ;;  %v282_v29 = vrot.slane %v280_v24, 1  ;;  %v285_v30 = vrot.slane %v283_v25, 2 }
  0x19   : > { %v346_v28 = vsel %vm343_vm2, %v344_v22, %v345_v23 }
  0x1a   : > { %523 = vmatmul.msk.bf16.vlgmr.msra.gmra.mxu2 %vm288_vm1, %v346_v28  ;;  %v278_v31 = vor.u32 %v277_v27, %v274_v26  ;;  %v286_v32 = vor.u32 %v285_v30, %v282_v29 }
  0x1c   : > { %v287_v33 = vsel %vm270_vm3, %v278_v31, %v286_v32 }
  0x1d   : > { %520 = vmatmul.msk.bf16.vlgmr.msra.gmra.mxu0 %vm288_vm1, %v287_v33 }
  0x8e   : > { %v328_v34 = vpop.f32.mrf.mxu1 }
  0x96   : > { %v330_v38 = vpop.f32.mrf.mxu1 }
  0x9a   : > { %v305_v35 = vpop.f32.mrf.mxu0 }
  0x9b   : > { %v329_v37 = vadd.f32 %v328_v34, %v305_v35 }
  0x9d   : > { %v362_v36 = vpop.f32.mrf.mxu2 }
  0x9e   : > { %v367_v40 = vadd.f32 %v362_v36, %v329_v37 }
  0xa0   : > { %v373_v45 = vadd.f32 %v561_v41, %v367_v40 }
  0xa2   : > { %v307_v39 = vpop.f32.mrf.mxu0 }
  0xa3   : > { %v331_v42 = vadd.f32 %v330_v38, %v307_v39 }
  0xa5   : > { %v364_v43 = vpop.f32.mrf.mxu2 }
  0xa6   : > { %v368_v44 = vadd.f32 %v364_v43, %v331_v42 }
  0xa8   : > { %v374_v46 = vadd.f32 %v561_v41, %v368_v44 }
  0xaa   : > { %v534_v47 = vpack.c.bf16 %v374_v46, %v373_v45 }
  0xac   : > { %535 = vst [vmem:[%s252_s4] sm:$0xff] %v534_v47  }
  0xad PF: > { %s13_s14 = sadd.s32 1, %s584_s14   ;;  %s662_s12 = smov %s580_s13 }
  0xae   : > { %p10_p5 = scmp.ge.s32.totalorder %s13_s14, 4   ;;  %s663_s13 = smov %s665_s15 }
  0xb0   :  { %12 = sbr.rel (!%p10_p5) target bundleno = 2 (0x2), region = 70 }

// kernel: fwd.101
= control target key start
LH: loop header
LB: loop body
LE: loop exit
PB: predicated region body
PF: predicated region fallthrough
CT: control target
= control target key end

     0   :  { %s595_s12 = smov 0   ;;  %s597_s13 = smov 0   ;;  %s647_s0 = inlined_call_operand.vmem [shape: bf16[2,1,18,4], index: 0, kind: input, shape index: {}]   ;;  %s648_s1 = inlined_call_operand.vmem [shape: bf16[3,4,128], index: 1, kind: input, shape index: {}]   ;;  %s649_s2 = inlined_call_operand.vmem [shape: f32[1,128], index: 2, kind: input, shape index: {}]   ;;  %s650_s3 = inlined_call_operand.vmem [shape: bf16[2,16,128], index: 3, kind: output, shape index: {}]  }
   0x1   :  { %s599_s14 = smov 0  }
   0x2 LB: > { %s32_s15 = sadd.s32 1, %s569_s13  ;;  %p501_p0 = scmp.ge.s32.totalorder %s573_s14, 1  ;;  %s573_s14 = sphi %s599_s14, %s13_s14   ;;  %s569_s13 = sphi %s597_s13, %s652_s13   ;;  %s565_s12 = sphi %s595_s12, %s651_s12  }
   0x3   : > { %p34_p1 = scmp.ge.s32.totalorder %s32_s15, 2  ;;  %p183_p2 = scmp.lt.s32.totalorder %s573_s14, 3 }
   0x5   : > { %s654_s15 = smov (%p34_p1, %s32_s15), 0  ;;  %p184_p3 = pnand %p501_p0, %p183_p2 }
   0x6   : > { %p225_p4 = scmp.lt.s32.totalorder (!%p184_p3), %s565_s12, 1 }
   0x7   : > { %187 = sbr.rel (%p184_p3) target bundleno = 171 (0xab), region = 32 }
   0xc   : > { %v257_v0 = vld [vmem:[%s648_s1] sm:$0x3]  ;;  %vm286_vm0 = vcmask 1041408   ;;  %v508_v2 = vld [vmem:[%s648_s1 + $0x4] sm:$0x3]  ;;  %s656_s12 = smov (!%p225_p4, %s565_s12), 1 }
   0xd   : > { %v307_v1 = vsel %vm286_vm0, %v257_v0, 0  ;;  %v505_v3 = vld [vmem:[%s648_s1 + $0x2] sm:$0x3]  ;;  %v337_v4 = vsel %vm286_vm0, %v508_v2, 0  ;;  %s525_s22 = smul.u32 12, %s656_s12  ;;  %vm282_vm1 = vcmask 31744  }
   0xe   : > { %316 = vmatpush.bf16.msra.mxu1 %v307_v1  ;;  %v288_v5 = vsel %vm286_vm0, %v505_v3, 0  ;;  %346 = vmatpush.bf16.msra.mxu2 %v337_v4  ;;  %vm329_vm2 = vcmask 1046528   ;;  %vm269_vm3 = vsmask.f32 7424  ;;  %v550_v30 = vld [vmem:[%s649_s2] ss:$0 sm:$0xff] }
   0xf   : > { %297 = vmatpush.bf16.msra.mxu0 %v288_v5  ;;  %s233_s25 = scalar_lea.vmem %s647_s0, %s525_s22  ;;  %s512_s28 = sshll.u32 %s656_s12, 3 }
  0x10   : > { %v514_v6 = vld [vmem:[%s233_s25] sm:$0xff]   ;;  %v258_v8 = vld [vmem:[%s233_s25 + $0x8] sm:$0x1]  ;;  %s252_s4 = scalar_lea.vmem %s650_s3, %s512_s28 }
  0x11   : > { %v522_v7 = vld [vmem:[%s233_s25] sm:$0xf0]  ;;  %v271_v9 = vshrl.u32 %v514_v6, 16  ;;  %v273_v10 = vshll.u32 %v514_v6, 16  ;;  %507 = vmatmul.msk.bf16.vlgmr.msra.gmra.mxu1 %vm282_vm1, %v514_v6  ;;  %v266_v11 = vunpack.c.l.b16 %v258_v8  ;;  %v523_v12 = vld [vmem:[%s233_s25] sm:$0xe] }
  0x12   : > { %v524_v13 = vor.u32 %v523_v12, %v522_v7 }
  0x13   : > { %v275_v14 = vrot.slane %v273_v10, 1  ;;  %v268_v15 = vpack.c.b16 %v266_v11, %v266_v11 }
  0x14   : > { %v330_v16 = vrot.slane %v524_v13, 1 }
  0x15   : > { %v276_v17 = vor.u32 %v275_v14, %v271_v9  ;;  %v331_v18 = vrot.slane %v268_v15, 1  ;;  %v278_v19 = vshll.u32 %v268_v15, 16 }
  0x17   : > { %v332_v20 = vsel %vm329_vm2, %v330_v16, %v331_v18  ;;  %v280_v21 = vrot.slane %v278_v19, 1 }
  0x18   : > { %509 = vmatmul.msk.bf16.vlgmr.msra.gmra.mxu2 %vm282_vm1, %v332_v20 }
  0x19   : > { %v281_v22 = vsel %vm269_vm3, %v276_v17, %v280_v21 }
  0x1a   : > { %506 = vmatmul.msk.bf16.vlgmr.msra.gmra.mxu0 %vm282_vm1, %v281_v22 }
  0x8e   : > { %v318_v23 = vpop.f32.mrf.mxu1 }
  0x96   : > { %v320_v28 = vpop.f32.mrf.mxu1 }
  0x97   : > { %v299_v24 = vpop.f32.mrf.mxu0 }
  0x98   : > { %v319_v26 = vadd.f32 %v318_v23, %v299_v24 }
  0x9b   : > { %v348_v25 = vpop.f32.mrf.mxu2 }
  0x9c   : > { %v353_v29 = vadd.f32 %v348_v25, %v319_v26 }
  0x9e   : > { %v359_v34 = vadd.f32 %v550_v30, %v353_v29 }
  0x9f   : > { %v301_v27 = vpop.f32.mrf.mxu0 }
  0xa0   : > { %v321_v31 = vadd.f32 %v320_v28, %v301_v27 }
  0xa3   : > { %v350_v32 = vpop.f32.mrf.mxu2 }
  0xa4   : > { %v354_v33 = vadd.f32 %v350_v32, %v321_v31 }
  0xa6   : > { %v360_v35 = vadd.f32 %v550_v30, %v354_v33 }
  0xa8   : > { %v520_v36 = vpack.c.bf16 %v360_v35, %v359_v34 }
  0xaa   : > { %521 = vst [vmem:[%s252_s4] sm:$0xff] %v520_v36  }
  0xab PF: > { %s13_s14 = sadd.s32 1, %s573_s14   ;;  %s651_s12 = smov %s569_s13 }
  0xac   : > { %p10_p5 = scmp.ge.s32.totalorder %s13_s14, 4   ;;  %s652_s13 = smov %s654_s15 }
  0xae   :  { %12 = sbr.rel (!%p10_p5) target bundleno = 2 (0x2), region = 70 }

// kernel: fwd.102
= control target key start
LH: loop header
LB: loop body
LE: loop exit
PB: predicated region body
PF: predicated region fallthrough
CT: control target
= control target key end

     0   :  { %s588_s12 = smov 0   ;;  %s590_s13 = smov 0   ;;  %s640_s0 = inlined_call_operand.vmem [shape: bf16[2,1,18,4], index: 0, kind: input, shape index: {}]   ;;  %s641_s1 = inlined_call_operand.vmem [shape: bf16[3,4,128], index: 1, kind: input, shape index: {}]   ;;  %s642_s2 = inlined_call_operand.vmem [shape: f32[1,128], index: 2, kind: input, shape index: {}]   ;;  %s643_s3 = inlined_call_operand.vmem [shape: f32[2,16,128], index: 3, kind: output, shape index: {}]  }
   0x1   :  { %s592_s14 = smov 0  }
   0x2 LB: > { %s32_s15 = sadd.s32 1, %s562_s13  ;;  %p499_p0 = scmp.ge.s32.totalorder %s566_s14, 1  ;;  %s566_s14 = sphi %s592_s14, %s13_s14   ;;  %s562_s13 = sphi %s590_s13, %s645_s13   ;;  %s558_s12 = sphi %s588_s12, %s644_s12  }
   0x3   : > { %p34_p1 = scmp.ge.s32.totalorder %s32_s15, 2  ;;  %p183_p2 = scmp.lt.s32.totalorder %s566_s14, 3 }
   0x5   : > { %s647_s15 = smov (%p34_p1, %s32_s15), 0  ;;  %p184_p3 = pnand %p499_p0, %p183_p2 }
   0x6   : > { %p225_p4 = scmp.lt.s32.totalorder (!%p184_p3), %s558_s12, 1 }
   0x7   : > { %187 = sbr.rel (%p184_p3) target bundleno = 169 (0xa9), region = 32 }
   0xc   : > { %v257_v0 = vld [vmem:[%s641_s1] sm:$0x3]  ;;  %vm286_vm0 = vcmask 1041408   ;;  %v506_v2 = vld [vmem:[%s641_s1 + $0x4] sm:$0x3]  ;;  %s649_s12 = smov (!%p225_p4, %s558_s12), 1 }
   0xd   : > { %v307_v1 = vsel %vm286_vm0, %v257_v0, 0  ;;  %v503_v3 = vld [vmem:[%s641_s1 + $0x2] sm:$0x3]  ;;  %v337_v4 = vsel %vm286_vm0, %v506_v2, 0  ;;  %s518_s22 = smul.u32 12, %s649_s12  ;;  %vm282_vm1 = vcmask 31744  }
   0xe   : > { %316 = vmatpush.bf16.msra.mxu1 %v307_v1  ;;  %v288_v5 = vsel %vm286_vm0, %v503_v3, 0  ;;  %346 = vmatpush.bf16.msra.mxu2 %v337_v4  ;;  %vm329_vm2 = vcmask 1046528   ;;  %vm269_vm3 = vsmask.f32 7424  ;;  %s510_s26 = sshll.u32 %s649_s12, 4 }
   0xf   : > { %297 = vmatpush.bf16.msra.mxu0 %v288_v5  ;;  %s233_s25 = scalar_lea.vmem %s640_s0, %s518_s22  ;;  %v543_v26 = vld [vmem:[%s642_s2] ss:$0 sm:$0xff]  ;;  %s252_s4 = scalar_lea.vmem %s643_s3, %s510_s26 }
  0x10   : > { %v512_v6 = vld [vmem:[%s233_s25] sm:$0xff]   ;;  %v258_v8 = vld [vmem:[%s233_s25 + $0x8] sm:$0x1] }
  0x11   : > { %v515_v7 = vld [vmem:[%s233_s25] sm:$0xf0]  ;;  %v271_v9 = vshrl.u32 %v512_v6, 16  ;;  %v273_v10 = vshll.u32 %v512_v6, 16  ;;  %505 = vmatmul.msk.bf16.vlgmr.msra.gmra.mxu1 %vm282_vm1, %v512_v6  ;;  %v266_v11 = vunpack.c.l.b16 %v258_v8  ;;  %v516_v12 = vld [vmem:[%s233_s25] sm:$0xe] }
  0x12   : > { %v517_v13 = vor.u32 %v516_v12, %v515_v7 }
  0x13   : > { %v275_v14 = vrot.slane %v273_v10, 1  ;;  %v268_v15 = vpack.c.b16 %v266_v11, %v266_v11 }
  0x14   : > { %v330_v16 = vrot.slane %v517_v13, 1 }
  0x15   : > { %v276_v17 = vor.u32 %v275_v14, %v271_v9  ;;  %v331_v18 = vrot.slane %v268_v15, 1  ;;  %v278_v19 = vshll.u32 %v268_v15, 16 }
  0x17   : > { %v332_v20 = vsel %vm329_vm2, %v330_v16, %v331_v18  ;;  %v280_v21 = vrot.slane %v278_v19, 1 }
  0x18   : > { %507 = vmatmul.msk.bf16.vlgmr.msra.gmra.mxu2 %vm282_vm1, %v332_v20 }
  0x19   : > { %v281_v22 = vsel %vm269_vm3, %v276_v17, %v280_v21 }
  0x1a   : > { %504 = vmatmul.msk.bf16.vlgmr.msra.gmra.mxu0 %vm282_vm1, %v281_v22 }
  0x8e   : > { %v318_v23 = vpop.f32.mrf.mxu1 }
  0x96   : > { %v320_v31 = vpop.f32.mrf.mxu1 }
  0x97   : > { %v299_v24 = vpop.f32.mrf.mxu0 }
  0x98   : > { %v319_v25 = vadd.f32 %v318_v23, %v299_v24 }
  0x9b   : > { %v348_v27 = vpop.f32.mrf.mxu2 }
  0x9c   : > { %v353_v28 = vadd.f32 %v348_v27, %v319_v25 }
  0x9e   : > { %v359_v29 = vadd.f32 %v543_v26, %v353_v28 }
  0x9f   : > { %v301_v30 = vpop.f32.mrf.mxu0 }
  0xa0   : > { %361 = vst [vmem:[%s252_s4] sm:$0xff] %v359_v29  ;;  %v321_v32 = vadd.f32 %v320_v31, %v301_v30 }
  0xa3   : > { %v350_v33 = vpop.f32.mrf.mxu2 }
  0xa4   : > { %v354_v34 = vadd.f32 %v350_v33, %v321_v32 }
  0xa6   : > { %v360_v35 = vadd.f32 %v543_v26, %v354_v34 }
  0xa8   : > { %362 = vst [vmem:[%s252_s4 + $0x8] sm:$0xff] %v360_v35 }
  0xa9 PF: > { %s13_s14 = sadd.s32 1, %s566_s14   ;;  %s644_s12 = smov %s562_s13 }
  0xaa   : > { %p10_p5 = scmp.ge.s32.totalorder %s13_s14, 4   ;;  %s645_s13 = smov %s647_s15 }
  0xac   :  { %12 = sbr.rel (!%p10_p5) target bundleno = 2 (0x2), region = 70 }

// kernel: fwd.105
= control target key start
LH: loop header
LB: loop body
LE: loop exit
PB: predicated region body
PF: predicated region fallthrough
CT: control target
= control target key end

     0   :  { %s618_s12 = smov 0   ;;  %s620_s13 = smov 0   ;;  %s670_s0 = inlined_call_operand.vmem [shape: bf16[2,1,26,4], index: 0, kind: input, shape index: {}]   ;;  %s671_s1 = inlined_call_operand.vmem [shape: bf16[3,4,128], index: 1, kind: input, shape index: {}]   ;;  %s672_s2 = inlined_call_operand.vmem [shape: f32[1,128], index: 2, kind: input, shape index: {}]   ;;  %s673_s3 = inlined_call_operand.vmem [shape: bf16[2,16,128], index: 3, kind: output, shape index: {}]  }
   0x1   :  { %s622_s14 = smov 0  }
   0x2 LB: > { %s32_s15 = sadd.s32 1, %s592_s13  ;;  %p518_p0 = scmp.ge.s32.totalorder %s596_s14, 1  ;;  %s596_s14 = sphi %s622_s14, %s13_s14   ;;  %s592_s13 = sphi %s620_s13, %s675_s13   ;;  %s588_s12 = sphi %s618_s12, %s674_s12  }
   0x3   : > { %p34_p1 = scmp.ge.s32.totalorder %s32_s15, 2  ;;  %p183_p2 = scmp.lt.s32.totalorder %s596_s14, 3 }
   0x5   : > { %s677_s15 = smov (%p34_p1, %s32_s15), 0  ;;  %p184_p3 = pnand %p518_p0, %p183_p2 }
   0x6   : > { %p225_p4 = scmp.lt.s32.totalorder (!%p184_p3), %s588_s12, 1 }
   0x7   : > { %187 = sbr.rel (%p184_p3) target bundleno = 171 (0xab), region = 32 }
   0xc   : > { %v257_v0 = vld [vmem:[%s671_s1] sm:$0x3]  ;;  %vm292_vm0 = vcmask 1041408   ;;  %v526_v2 = vld [vmem:[%s671_s1 + $0x4] sm:$0x3]  ;;  %s679_s12 = smov (!%p225_p4, %s588_s12), 1 }
   0xd   : > { %v317_v1 = vsel %vm292_vm0, %v257_v0, 0  ;;  %v523_v3 = vld [vmem:[%s671_s1 + $0x2] sm:$0x3]  ;;  %v354_v4 = vsel %vm292_vm0, %v526_v2, 0  ;;  %s534_s22 = sshll.u32 %s679_s12, 4  ;;  %vm288_vm1 = vcmask 31744  }
   0xe   : > { %326 = vmatpush.bf16.msra.mxu1 %v317_v1  ;;  %v294_v5 = vsel %vm292_vm0, %v523_v3, 0  ;;  %363 = vmatpush.bf16.msra.mxu2 %v354_v4  ;;  %s233_s25 = scalar_lea.vmem %s670_s0, %s534_s22  ;;  %vm346_vm2 = vcmask 1046528   ;;  %vm270_vm3 = vsmask.f32 5376  ;;  %v573_v40 = vld [vmem:[%s672_s2] ss:$0 sm:$0xff] }
   0xf   : > { %303 = vmatpush.bf16.msra.mxu0 %v294_v5  ;;  %v538_v6 = vld [vmem:[%s233_s25] sm:$0xff]   ;;  %v536_v8 = vld [vmem:[%s233_s25 + $0x4] sm:$0xf0]  ;;  %v335_v9 = vld [vmem:[%s233_s25 + $0xc] sm:$0x1]  ;;  %s535_s28 = sshll.u32 %s679_s12, 3 }
  0x10   : > { %v529_v7 = vld [vmem:[%s233_s25 + $0x4] sm:$0xe]  ;;  %v547_v12 = vld [vmem:[%s233_s25] sm:$0xc]  ;;  %v343_v13 = vunpack.c.l.b16 %v335_v9  ;;  %v259_v14 = vld [vmem:[%s233_s25 + $0x8] sm:$0x7]  ;;  %s252_s4 = scalar_lea.vmem %s673_s3, %s535_s28 }
  0x11   : > { %525 = vmatmul.msk.bf16.vlgmr.msra.gmra.mxu1 %vm288_vm1, %v538_v6  ;;  %v530_v10 = vor.u32 %v536_v8, %v529_v7  ;;  %v546_v11 = vld [vmem:[%s233_s25] sm:$0xf0]  ;;  %v267_v16 = vunpack.c.l.b16 %v259_v14 }
  0x12   : > { %v548_v15 = vor.u32 %v547_v12, %v546_v11  ;;  %v345_v17 = vpack.c.b16 %v343_v13, %v343_v13 }
  0x13   : > { %v347_v18 = vrot.slane %v530_v10, 1  ;;  %v269_v21 = vpack.c.b16 %v267_v16, %v267_v16 }
  0x14   : > { %v272_v19 = vshrl.u32 %v548_v15, 16  ;;  %v275_v20 = vshll.u32 %v548_v15, 16  ;;  %v348_v22 = vrot.slane %v345_v17, 1 }
  0x15   : > { %v280_v25 = vshrl.u32 %v269_v21, 16  ;;  %v283_v26 = vshll.u32 %v269_v21, 16 }
  0x16   : > { %v274_v23 = vrot.slane %v272_v19, 2  ;;  %v277_v24 = vrot.slane %v275_v20, 3  ;;  %v349_v27 = vsel %vm346_vm2, %v347_v18, %v348_v22 }
  0x17   : > { %531 = vmatmul.msk.bf16.vlgmr.msra.gmra.mxu2 %vm288_vm1, %v349_v27  ;;  %v282_v29 = vrot.slane %v280_v25, 2  ;;  %v285_v30 = vrot.slane %v283_v26, 3 }
  0x18   : > { %v278_v28 = vor.u32 %v277_v24, %v274_v23 }
  0x19   : > { %v286_v31 = vor.u32 %v285_v30, %v282_v29 }
  0x1b   : > { %v287_v32 = vsel %vm270_vm3, %v278_v28, %v286_v31 }
  0x1c   : > { %524 = vmatmul.msk.bf16.vlgmr.msra.gmra.mxu0 %vm288_vm1, %v287_v32 }
  0x8e   : > { %v328_v33 = vpop.f32.mrf.mxu1 }
  0x96   : > { %v330_v37 = vpop.f32.mrf.mxu1 }
  0x99   : > { %v305_v34 = vpop.f32.mrf.mxu0 }
  0x9a   : > { %v365_v35 = vpop.f32.mrf.mxu2  ;;  %v329_v36 = vadd.f32 %v328_v33, %v305_v34 }
  0x9c   : > { %v370_v39 = vadd.f32 %v365_v35, %v329_v36 }
  0x9e   : > { %v376_v44 = vadd.f32 %v573_v40, %v370_v39 }
  0xa1   : > { %v307_v38 = vpop.f32.mrf.mxu0 }
  0xa2   : > { %v331_v41 = vadd.f32 %v330_v37, %v307_v38  ;;  %v367_v42 = vpop.f32.mrf.mxu2 }
  0xa4   : > { %v371_v43 = vadd.f32 %v367_v42, %v331_v41 }
  0xa6   : > { %v377_v45 = vadd.f32 %v573_v40, %v371_v43 }
  0xa8   : > { %v544_v46 = vpack.c.bf16 %v377_v45, %v376_v44 }
  0xaa   : > { %545 = vst [vmem:[%s252_s4] sm:$0xff] %v544_v46  }
  0xab PF: > { %s13_s14 = sadd.s32 1, %s596_s14   ;;  %s674_s12 = smov %s592_s13 }
  0xac   : > { %p10_p5 = scmp.ge.s32.totalorder %s13_s14, 4   ;;  %s675_s13 = smov %s677_s15 }
  0xae   :  { %12 = sbr.rel (!%p10_p5) target bundleno = 2 (0x2), region = 70 }

// kernel: reverse
= control target key start
LH: loop header
LB: loop body
LE: loop exit
PB: predicated region body
PF: predicated region fallthrough
CT: control target
= control target key end

     0   :  { %v2_v0 = vlaneseq  ;;  %s211_s0 = inlined_call_operand.vmem [shape: f32[2,12,2], index: 0, kind: input, shape index: {}]   ;;  %s212_s1 = inlined_call_operand.vmem [shape: bf16[2,12,2], index: 1, kind: output, shape index: {}]  }
   0x2   :  { %v3_v1 = vsub.s32 1, %v2_v0 }
   0x4   :  { %4 = vset.pattern.permute.xlu0 %v3_v1 }
   0x5   :  { %v39_v2 = vld [vmem:[%s211_s0] sm:$0xff]  ;;  %v41_v3 = vld [vmem:[%s211_s0 + $0x8] sm:$0xff]  ;;  %v43_v5 = vld [vmem:[%s211_s0 + $0x10] sm:$0xff] }
   0x6   :  { %v173_v4 = vpack.i.bf16 %v41_v3, %v39_v2  ;;  %v45_v6 = vld [vmem:[%s211_s0 + $0x18] sm:$0xff] }
   0x7   :  { %v178_v7 = vpack.i.bf16 %v45_v6, %v43_v5 }
   0x8   :  { %174 = vperm.xlu0 %4, %v173_v4  }
  0x10   :  { %179 = vperm.xlu0 %4, %v178_v7  }
  0x7a   :  { %v175_v8 = vpop.permute.xlu0 %174 }
  0x7b   :  { %v177_v9 = vunpack.i.h.bf16 %v175_v8  ;;  %v176_v10 = vunpack.i.l.bf16 %v175_v8 }
  0x7d   :  { %v166_v11 = vpack.c.bf16 %v177_v9, %v176_v10 }
  0x7f   :  { %167 = vst [vmem:[#allocation2] sm:$0xff] %v166_v11  }
  0x82   :  { %v180_v12 = vpop.permute.xlu0 %179 }
  0x83   :  { %v182_v13 = vunpack.i.h.bf16 %v180_v12  ;;  %v181_v14 = vunpack.i.l.bf16 %v180_v12 }
  0x85   :  { %v171_v15 = vpack.c.bf16 %v182_v13, %v181_v14 }
  0x86   :  { %v116_v16 = vld [vmem:[#allocation2] sm:$0xff]  }
  0x87   :  { %117 = vst [vmem:[%s212_s1] sm:$0xff] %v116_v16  }
  0x88   :  { %172 = vst [vmem:[#allocation2 + $0x8] sm:$0xff] %v171_v15  }
  0x8f   :  { %v120_v17 = vld [vmem:[#allocation2 + $0x8] sm:$0xff]  }
  0x90   :  { %121 = vst [vmem:[%s212_s1 + $0x8] sm:$0xff] %v120_v17  }

// kernel: reverse.1
= control target key start
LH: loop header
LB: loop body
LE: loop exit
PB: predicated region body
PF: predicated region fallthrough
CT: control target
= control target key end

     0   :  { %v2_v0 = vlaneseq  ;;  %s162_s0 = inlined_call_operand.vmem [shape: f32[2,12,2], index: 0, kind: input, shape index: {}]   ;;  %s163_s1 = inlined_call_operand.vmem [shape: f32[2,12,2], index: 1, kind: output, shape index: {}]  }
   0x1   :  { %v43_v2 = vld [vmem:[%s162_s0 + $0x10] sm:$0xff]  ;;  %v39_v3 = vld [vmem:[%s162_s0] sm:$0xff]  ;;  %v45_v4 = vld [vmem:[%s162_s0 + $0x18] sm:$0xff] }
   0x2   :  { %v3_v1 = vsub.s32 1, %v2_v0  ;;  %v41_v5 = vld [vmem:[%s162_s0 + $0x8] sm:$0xff] }
   0x4   :  { %4 = vset.pattern.permute.xlu0 %v3_v1  ;;  %127 = vset.pattern.permute.xlu1 %v3_v1 }
   0x5   :  { %63 = vperm.xlu1 %127, %v43_v2   ;;  %51 = vperm.xlu0 %4, %v39_v3  }
   0xd   :  { %69 = vperm.xlu1 %127, %v45_v4   ;;  %57 = vperm.xlu0 %4, %v41_v5  }
  0x77   :  { %v64_v6 = vpop.permute.xlu1 %63  ;;  %v52_v7 = vpop.permute.xlu0 %51 }
  0x78   :  { %111 = vst [vmem:[%s163_s1 + $0x10] sm:$0xff] %v64_v6 }
  0x79   :  { %107 = vst [vmem:[%s163_s1] sm:$0xff] %v52_v7 }
  0x7f   :  { %v70_v8 = vpop.permute.xlu1 %69  ;;  %v58_v9 = vpop.permute.xlu0 %57 }
  0x80   :  { %113 = vst [vmem:[%s163_s1 + $0x18] sm:$0xff] %v70_v8 }
  0x81   :  { %109 = vst [vmem:[%s163_s1 + $0x8] sm:$0xff] %v58_v9 }

// kernel: fwd.107
= control target key start
LH: loop header
LB: loop body
LE: loop exit
PB: predicated region body
PF: predicated region fallthrough
CT: control target
= control target key end

     0   :  { %s749_s12 = smov 0   ;;  %s751_s13 = smov 0   ;;  %s835_s0 = inlined_call_operand.vmem [shape: bf16[2,1,22,4], index: 0, kind: input, shape index: {}]   ;;  %s836_s1 = inlined_call_operand.vmem [shape: bf16[7,4,128], index: 1, kind: input, shape index: {}]   ;;  %s837_s2 = inlined_call_operand.vmem [shape: f32[1,128], index: 2, kind: input, shape index: {}]   ;;  %s838_s3 = inlined_call_operand.vmem [shape: f32[2,16,128], index: 3, kind: output, shape index: {}]  }
   0x1   :  { %s753_s14 = smov 0  }
   0x2 LB: > { %s32_s15 = sadd.s32 1, %s723_s13  ;;  %p655_p0 = scmp.ge.s32.totalorder %s727_s14, 1  ;;  %s727_s14 = sphi %s753_s14, %s13_s14   ;;  %s723_s13 = sphi %s751_s13, %s840_s13   ;;  %s719_s12 = sphi %s749_s12, %s839_s12  }
   0x3   : > { %p34_p1 = scmp.ge.s32.totalorder %s32_s15, 2  ;;  %p183_p2 = scmp.lt.s32.totalorder %s727_s14, 3 }
   0x5   : > { %s842_s15 = smov (%p34_p1, %s32_s15), 0  ;;  %p184_p3 = pnand %p655_p0, %p183_p2 }
   0x6   : > { %p225_p4 = scmp.lt.s32.totalorder (!%p184_p3), %s719_s12, 1 }
   0x7   : > { %187 = sbr.rel (%p184_p3) target bundleno = 188 (0xbc), region = 32 }
   0xc   : > { %v257_v0 = vld [vmem:[%s836_s1] sm:$0x3]  ;;  %vm286_vm0 = vcmask 1041408   ;;  %v662_v2 = vld [vmem:[%s836_s1 + $0x4] sm:$0x3]  ;;  %s844_s12 = smov (!%p225_p4, %s719_s12), 1 }
   0xd   : > { %v307_v1 = vsel %vm286_vm0, %v257_v0, 0  ;;  %v659_v3 = vld [vmem:[%s836_s1 + $0x2] sm:$0x3]  ;;  %v337_v4 = vsel %vm286_vm0, %v662_v2, 0  ;;  %v670_v6 = vld [vmem:[%s836_s1 + $0xc] sm:$0x3] }
   0xe   : > { %316 = vmatpush.bf16.msra.mxu1 %v307_v1  ;;  %v288_v5 = vsel %vm286_vm0, %v659_v3, 0  ;;  %346 = vmatpush.bf16.msra.mxu2 %v337_v4  ;;  %v493_v7 = vsel %vm286_vm0, %v670_v6, 0  ;;  %v664_v8 = vld [vmem:[%s836_s1 + $0x6] sm:$0x3]  ;;  %s679_s26 = smul.u32 12, %s844_s12  ;;  %vm282_vm1 = vcmask 31744  }
   0xf   : > { %297 = vmatpush.bf16.msra.mxu0 %v288_v5  ;;  %v383_v9 = vsel %vm286_vm0, %v664_v8, 0  ;;  %v666_v10 = vld [vmem:[%s836_s1 + $0x8] sm:$0x3]  ;;  %v668_v12 = vld [vmem:[%s836_s1 + $0xa] sm:$0x3]  ;;  %vm329_vm2 = vcmask 1046528  }
  0x10   : > { %392 = vmatpush.bf16.msra.mxu3 %v383_v9  ;;  %v415_v11 = vsel %vm286_vm0, %v666_v10, 0  ;;  %s800_s6 = scalar_lea.vmem %s835_s0, %s679_s26  ;;  %v461_v13 = vsel %vm286_vm0, %v668_v12, 0  ;;  %vm269_vm3 = vsmask.f32 7424  ;;  %vm361_vm4 = vsmask.f32 6400 }
  0x11   : > { %v676_v14 = vld [vmem:[%s800_s6] sm:$0xff]   ;;  %v258_v16 = vld [vmem:[%s800_s6 + $0x8] sm:$0x1]  ;;  %vm439_vm5 = vsmask.f32 5376  ;;  %vm485_vm6 = vcmask 1044480  }
  0x12   : > { %502 = vmatpush.bf16.msrb.mxu2 %v493_v7  ;;  %v401_v15 = vld [vmem:[%s800_s6] sm:$0xc]  ;;  %470 = vmatpush.bf16.msrb.mxu1 %v461_v13  ;;  %v678_v17 = vunpack.c.h.b16 %v676_v14  ;;  %v271_v18 = vshrl.u32 %v676_v14, 16  ;;  %v273_v19 = vshll.u32 %v676_v14, 16  ;;  %v355_v22 = vld [vmem:[%s800_s6 + $0x8] sm:$0x3]  ;;  %v266_v23 = vunpack.c.l.b16 %v258_v16 }
  0x13   : > { %424 = vmatpush.bf16.msrb.mxu0 %v415_v11  ;;  %661 = vmatmul.msk.bf16.vlgmr.msra.gmra.mxu1 %vm282_vm1, %v676_v14  ;;  %v405_v20 = vunpack.c.l.b16 %v401_v15  ;;  %v323_v21 = vld [vmem:[%s800_s6] sm:$0xe]  ;;  %v359_v25 = vunpack.c.l.b16 %v355_v22  ;;  %v433_v26 = vld [vmem:[%s800_s6 + $0x8] sm:$0x7]  ;;  %vm407_vm7 = vcmask 1045504   ;;  %s674_s7 = sshll.u32 %s844_s12, 4 }
  0x14   : > { %v327_v24 = vunpack.c.l.b16 %v323_v21  ;;  %v275_v27 = vrot.slane %v273_v19, 1  ;;  %v437_v29 = vunpack.c.l.b16 %v433_v26  ;;  %v268_v30 = vpack.c.b16 %v266_v23, %v266_v23  ;;  %v479_v45 = vld [vmem:[%s800_s6] sm:$0x8]  ;;  %v704_v23 = vld [vmem:[%s837_s2] ss:$0 sm:$0xff]  ;;  %s252_s16 = scalar_lea.vmem %s838_s3, %s674_s7 }
  0x15   : > { %v406_v28 = vpack.c.b16 %v678_v17, %v405_v20  ;;  %v360_v32 = vpack.c.b16 %v359_v25, %v359_v25  ;;  %v483_v56 = vunpack.c.l.b16 %v479_v45 }
  0x16   : > { %v328_v31 = vpack.c.b16 %v678_v17, %v327_v24  ;;  %v276_v33 = vor.u32 %v275_v27, %v271_v18  ;;  %v438_v34 = vpack.c.b16 %v437_v29, %v437_v29  ;;  %v331_v38 = vrot.slane %v268_v30, 1 }
  0x17   : > { %v441_v35 = vshrl.u32 %v406_v28, 16  ;;  %v444_v36 = vshll.u32 %v406_v28, 16  ;;  %v278_v39 = vshll.u32 %v268_v30, 16  ;;  %v371_v42 = vshrl.u32 %v360_v32, 16 }
  0x18   : > { %v330_v37 = vrot.slane %v328_v31, 1  ;;  %v363_v40 = vshrl.u32 %v328_v31, 16  ;;  %v366_v41 = vshll.u32 %v328_v31, 16  ;;  %v374_v43 = vshll.u32 %v360_v32, 16 }
  0x19   : > { %v443_v44 = vrot.slane %v441_v35, 2  ;;  %v280_v47 = vrot.slane %v278_v39, 1  ;;  %v446_v49 = vrot.slane %v444_v36, 3  ;;  %v373_v51 = vrot.slane %v371_v42, 1 }
  0x1a   : > { %v332_v46 = vsel %vm329_vm2, %v330_v37, %v331_v38  ;;  %v365_v48 = vrot.slane %v363_v40, 1  ;;  %v368_v50 = vrot.slane %v366_v41, 2  ;;  %v376_v52 = vrot.slane %v374_v43, 2 }
  0x1b   : > { %663 = vmatmul.msk.bf16.vlgmr.msra.gmra.mxu2 %vm282_vm1, %v332_v46  ;;  %v449_v53 = vshrl.u32 %v438_v34, 16  ;;  %v281_v54 = vsel %vm269_vm3, %v276_v33, %v280_v47  ;;  %v452_v55 = vshll.u32 %v438_v34, 16  ;;  %v447_v60 = vor.u32 %v446_v49, %v443_v44 }
  0x1c   : > { %660 = vmatmul.msk.bf16.vlgmr.msra.gmra.mxu0 %vm282_vm1, %v281_v54  ;;  %v369_v57 = vor.u32 %v368_v50, %v365_v48  ;;  %v377_v58 = vor.u32 %v376_v52, %v373_v51  ;;  %v484_v0 = vpack.c.b16 %v678_v17, %v483_v56  ;;  %v487_v3 = vrot.slane %v438_v34, 3 }
  0x1d   : > { %v451_v59 = vrot.slane %v449_v53, 2  ;;  %v454_v61 = vrot.slane %v452_v55, 3  ;;  %v408_v4 = vrot.slane %v406_v28, 2  ;;  %v409_v5 = vrot.slane %v360_v32, 2 }
  0x1e   : > { %v378_v62 = vsel %vm361_vm4, %v369_v57, %v377_v58  ;;  %v486_v2 = vrot.slane %v484_v0, 3 }
  0x1f   : > { %665 = vmatmul.msk.bf16.vlgmr.msra.gmra.mxu3 %vm282_vm1, %v378_v62  ;;  %v455_v63 = vor.u32 %v454_v61, %v451_v59  ;;  %v410_v7 = vsel %vm407_vm7, %v408_v4, %v409_v5 }
  0x20   : > { %v488_v6 = vsel %vm485_vm6, %v486_v2, %v487_v3 }
  0x21   : > { %v456_v1 = vsel %vm439_vm5, %v447_v60, %v455_v63 }
  0x23   : > { %669 = vmatmul.msk.bf16.vlgmr.msrb.gmra.mxu1 %vm282_vm1, %v456_v1 }
  0x2b   : > { %671 = vmatmul.msk.bf16.vlgmr.msrb.gmra.mxu2 %vm282_vm1, %v488_v6 }
  0x2c   : > { %667 = vmatmul.msk.bf16.vlgmr.msrb.gmra.mxu0 %vm282_vm1, %v410_v7 }
  0x90   : > { %v318_v8 = vpop.f32.mrf.mxu1 }
  0x98   : > { %v320_v11 = vpop.f32.mrf.mxu1 }
  0x99   : > { %v299_v9 = vpop.f32.mrf.mxu0 }
  0x9a   : > { %v319_v14 = vadd.f32 %v318_v8, %v299_v9 }
  0x9e   : > { %v348_v10 = vpop.f32.mrf.mxu2 }
  0x9f   : > { %v353_v16 = vadd.f32 %v348_v10, %v319_v14 }
  0xa0   : > { %v472_v18 = vpop.f32.mrf.mxu1 }
  0xa1   : > { %v301_v12 = vpop.f32.mrf.mxu0 }
  0xa2   : > { %v394_v13 = vpop.f32.mrf.mxu3  ;;  %v321_v21 = vadd.f32 %v320_v11, %v301_v12 }
  0xa3   : > { %v399_v17 = vadd.f32 %v394_v13, %v353_v16 }
  0xa6   : > { %v350_v15 = vpop.f32.mrf.mxu2 }
  0xa7   : > { %v354_v26 = vadd.f32 %v350_v15, %v321_v21 }
  0xa8   : > { %v474_v32 = vpop.f32.mrf.mxu1 }
  0xa9   : > { %v426_v19 = vpop.f32.mrf.mxu0 }
  0xaa   : > { %v431_v20 = vadd.f32 %v426_v19, %v399_v17  ;;  %v396_v24 = vpop.f32.mrf.mxu3 }
  0xab   : > { %v400_v28 = vadd.f32 %v396_v24, %v354_v26 }
  0xac   : > { %v477_v22 = vadd.f32 %v472_v18, %v431_v20 }
  0xae   : > { %v504_v25 = vpop.f32.mrf.mxu2 }
  0xaf   : > { %v509_v27 = vadd.f32 %v504_v25, %v477_v22 }
  0xb1   : > { %v515_v29 = vadd.f32 %v704_v23, %v509_v27  ;;  %v428_v30 = vpop.f32.mrf.mxu0 }
  0xb2   : > { %v432_v31 = vadd.f32 %v428_v30, %v400_v28 }
  0xb3   : > { %517 = vst [vmem:[%s252_s16] sm:$0xff] %v515_v29 }
  0xb4   : > { %v478_v33 = vadd.f32 %v474_v32, %v432_v31 }
  0xb6   : > { %v506_v34 = vpop.f32.mrf.mxu2 }
  0xb7   : > { %v510_v35 = vadd.f32 %v506_v34, %v478_v33 }
  0xb9   : > { %v516_v36 = vadd.f32 %v704_v23, %v510_v35 }
  0xbb   : > { %518 = vst [vmem:[%s252_s16 + $0x8] sm:$0xff] %v516_v36 }
  0xbc PF: > { %s13_s14 = sadd.s32 1, %s727_s14   ;;  %s839_s12 = smov %s723_s13 }
  0xbd   : > { %p10_p5 = scmp.ge.s32.totalorder %s13_s14, 4   ;;  %s840_s13 = smov %s842_s15 }
  0xbf   :  { %12 = sbr.rel (!%p10_p5) target bundleno = 2 (0x2), region = 74 }

// kernel: fwd.121
= control target key start
LH: loop header
LB: loop body
LE: loop exit
PB: predicated region body
PF: predicated region fallthrough
CT: control target
= control target key end

     0   :  { %vm44_vm0 = vcmask 1040384   ;;  %vm37_vm1 = vcmask 15360   ;;  %s142_s1 = inlined_call_operand.vmem [shape: bf16[2,128], index: 1, kind: input, shape index: {}]   ;;  %s143_s0 = inlined_call_operand.vmem [shape: bf16[24,2], index: 0, kind: input, shape index: {}]   ;;  %s144_s2 = inlined_call_operand.vmem [shape: f32[1,128], index: 2, kind: input, shape index: {}]   ;;  %s145_s3 = inlined_call_operand.vmem [shape: f32[24,128], index: 3, kind: output, shape index: {}]  }
   0x1   :  { %v28_v0 = vld [vmem:[%s142_s1] sm:$0x1]  ;;  %v27_v1 = vld [vmem:[%s143_s0 + $0x8] sm:$0xf] }
   0x2   :  { %v46_v2 = vsel %vm44_vm0, %v28_v0, 0  ;;  %v98_v3 = vld [vmem:[%s143_s0] sm:$0xff]  ;;  %v34_v4 = vunpack.c.l.b16 %v27_v1 }
   0x3   :  { %55 = vmatpush.bf16.msra.mxu0 %v46_v2  ;;  %99 = vmatpush.bf16.msra.mxu1 %v46_v2  ;;  %v100_v6 = vld [vmem:[%s144_s2] ss:$0 sm:$0xff] }
   0x4   :  { %v36_v5 = vpack.c.b16 %v34_v4, %v34_v4 }
   0x6   :  { %96 = vmatmul.msk.bf16.vlgmr.msra.gmra.mxu0 %vm37_vm1, %v98_v3  ;;  %97 = vmatmul.msk.bf16.vlgmr.msra.gmra.mxu1 %vm37_vm1, %v36_v5 }
  0x83   :  { %v57_v7 = vpop.f32.mrf.mxu0  ;;  %v62_v8 = vpop.f32.mrf.mxu1 }
  0x84   :  { %v82_v9 = vadd.f32 %v100_v6, %v57_v7  ;;  %v84_v10 = vadd.f32 %v100_v6, %v62_v8 }
  0x86   :  { %85 = vst [vmem:[%s145_s3] sm:$0xff] %v82_v9 }
  0x87   :  { %87 = vst [vmem:[%s145_s3 + $0x10] sm:$0xff] %v84_v10 }
  0x8b   :  { %v59_v11 = vpop.f32.mrf.mxu0  ;;  %v64_v12 = vpop.f32.mrf.mxu1 }
  0x8c   :  { %v83_v13 = vadd.f32 %v100_v6, %v59_v11 }
  0x8e   :  { %86 = vst [vmem:[%s145_s3 + $0x8] sm:$0xff] %v83_v13 }

// kernel: fwd.108
= control target key start
LH: loop header
LB: loop body
LE: loop exit
PB: predicated region body
PF: predicated region fallthrough
CT: control target
= control target key end

     0   :  { %vm35_vm0 = vcmask 1043456   ;;  %vm31_vm1 = vcmask 64512   ;;  %s120_s1 = inlined_call_operand.vmem [shape: bf16[8,128], index: 1, kind: input, shape index: {}]   ;;  %s121_s0 = inlined_call_operand.vmem [shape: bf16[16,8], index: 0, kind: input, shape index: {}]   ;;  %s122_s2 = inlined_call_operand.vmem [shape: f32[1,128], index: 2, kind: input, shape index: {}]   ;;  %s123_s3 = inlined_call_operand.vmem [shape: bf16[16,128], index: 3, kind: output, shape index: {}]  }
   0x1   :  { %v25_v0 = vld [vmem:[%s120_s1] sm:$0xf] }
   0x2   :  { %v37_v1 = vsel %vm35_vm0, %v25_v0, 0  ;;  %v81_v2 = vld [vmem:[%s121_s0] sm:$0xff] }
   0x3   :  { %46 = vmatpush.bf16.msra.mxu0 %v37_v1  ;;  %v87_v4 = vld [vmem:[%s122_s2] ss:$0 sm:$0xff] }
   0x6   :  { %80 = vmatmul.msk.bf16.vlgmr.msra.gmra.mxu0 %vm31_vm1, %v81_v2 }
  0x83   :  { %v48_v3 = vpop.f32.mrf.mxu0 }
  0x84   :  { %v66_v6 = vadd.f32 %v87_v4, %v48_v3 }
  0x8b   :  { %v50_v5 = vpop.f32.mrf.mxu0 }
  0x8c   :  { %v67_v7 = vadd.f32 %v87_v4, %v50_v5 }
  0x8e   :  { %v85_v8 = vpack.c.bf16 %v67_v7, %v66_v6 }
  0x90   :  { %86 = vst [vmem:[%s123_s3] sm:$0xff] %v85_v8  }

// kernel: fwd.109
= control target key start
LH: loop header
LB: loop body
LE: loop exit
PB: predicated region body
PF: predicated region fallthrough
CT: control target
= control target key end

     0   :  { %s633_s15 = smov 0   ;;  %s635_s16 = smov 0   ;;  %s688_s0 = inlined_call_operand.vmem [shape: bf16[4,8,128], index: 0, kind: input, shape index: {}]   ;;  %s689_s1 = inlined_call_operand.vmem [shape: bf16[4,8,128], index: 1, kind: input, shape index: {}]   ;;  %s690_s2 = inlined_call_operand.vmem [shape: bf16[4,8,128], index: 2, kind: input, shape index: {}]   ;;  %s691_s3 = inlined_call_operand.vmem [shape: f32[4,1,8], index: 3, kind: input, shape index: {}]   ;;  %s692_s4 = inlined_call_operand.vmem [shape: bf16[4,8,128], index: 4, kind: output, shape index: {}]  }
   0x1   :  { %s637_s17 = smov 0  }
   0x2 LB: > { %s33_s18 = sadd.s32 1, %s599_s16  ;;  %p537_p0 = scmp.ge.s32.totalorder %s603_s17, 1  ;;  %s603_s17 = sphi %s637_s17, %s14_s17   ;;  %s599_s16 = sphi %s635_s16, %s694_s16   ;;  %s595_s15 = sphi %s633_s15, %s693_s15  }
   0x3   : > { %p35_p1 = scmp.ge.s32.totalorder %s33_s18, 4  ;;  %p228_p2 = scmp.lt.s32.totalorder %s603_s17, 5 }
   0x5   : > { %s696_s18 = smov (%p35_p1, %s33_s18), 0  ;;  %p229_p3 = pnand %p537_p0, %p228_p2 }
   0x6   : > { %p278_p4 = scmp.lt.s32.totalorder (!%p229_p3), %s595_s15, 3 }
   0x7   : > { %232 = sbr.rel (%p229_p3) target bundleno = 627 (0x273), region = 36 }
   0xc   : > { %s698_s15 = smov (!%p278_p4, %s595_s15), 3  ;;  %v605_v2 = vmov 0   ;;  %vm317_vm0 = vcmask 7168   ;;  %v606_v3 = vmov -1e+30   ;;  %vm344_vm3 = vcmask 64512  }
   0xd   : > { %s651_s19 = sshll.u32 %s698_s15, 2  ;;  %572 = vset.pattern.permute.xlu0 %v605_v2  ;;  %573 = vset.pattern.permute.xlu1 %v605_v2  ;;  %318 = vst.msk [vmem:[#allocation2] sm:$0xff] %vm317_vm0, %v606_v3  ;;  %s304_s28 = scalar_lea.vmem %s691_s3, %s698_s15  ;;  %v607_v12 = vmov 0.0   ;;  %vm380_vm4 = vcmask 1043456  }
   0xe   : > { %s291_s22 = scalar_lea.vmem %s689_s1, %s651_s19  ;;  %s284_s25 = scalar_lea.vmem %s688_s0, %s651_s19  ;;  %574 = vset.pattern.permute.xlu2 %v605_v2  ;;  %v337_v4 = vld [vmem:[%s304_s28] sm:$0x1]  ;;  %319 = vst.msk [vmem:[#allocation3] sm:$0xff] %vm317_vm0, %v607_v12 }
   0xf   : > { %v322_v0 = vld [vmem:[%s291_s22] sm:$0xf]  ;;  %vm338_vm1 = vcmp.gt.f32.partialorder %v337_v4, 0.0  ;;  %s298_s5 = scalar_lea.vmem %s690_s2, %s651_s19  ;;  %s311_s8 = scalar_lea.vmem %s692_s4, %s651_s19 }
  0x10   : > { %330 = vmatpush.bf16.xpose.msra.mxu0 %v322_v0  ;;  %v321_v1 = vld [vmem:[%s284_s25] sm:$0xf]  ;;  %v339_v5 = vsel %vm338_vm1, 1, %v605_v2 }
  0x11   : > { %v340_v6 = vperm.slane %v339_v5, 0  ;;  %v376_v17 = vld [vmem:[%s298_s5] sm:$0xf] }
  0x12   : > { %v382_v18 = vsel %vm380_vm4, %v376_v17, 0 }
  0x13   : > { %vm341_vm2 = vcmp.eq.s32.totalorder %v340_v6, 1  ;;  %391 = vmatpush.bf16.msra.mxu1 %v382_v18 }
  0x14   : > { %v343_v13 = vld [vmem:[#allocation2] sm:$0xff] }
  0x15   : > { %v360_v27 = vld [vmem:[#allocation3] sm:$0xff] }
  0x17   : > { %331 = vmatmul.bf16.vlgmr.msra.gmra.mxu0 %v321_v1 }
  0x94   : > { %v332_v7 = vpop.f32.mrf.mxu0 }
  0x95   : > { %v336_v8 = vmul.f32 0.5, %v332_v7 }
  0x97   : > { %v342_v9 = vsel %vm341_vm2, %v336_v8, -10000.0 }
  0x98   : > { %v345_v10 = vsel %vm344_vm3, %v342_v9, -inf }
  0x99   : > { %346 = vmax.xlane.f32.xlu0 %v345_v10 }
  0x9c   : > { %v334_v11 = vpop.f32.mrf.mxu0 }
 0x10c   : > { %v347_v14 = vpop.xlane.xlu0 %346 }
 0x10d   : > { %v348_v15 = vmax.f32 %v343_v13, %v347_v14 }
 0x10f   : > { %v349_v16 = vsub.f32 %v343_v13, %v348_v15  ;;  %399 = vst.msk [vmem:[#allocation2] sm:$0xff] %vm317_vm0, %v348_v15  ;;  %354 = vperm.xlu0 %572, %v348_v15  }
 0x111   : > { %v350_v25 = vmul.f32 1.442695, %v349_v16 }
 0x181   : > { %v355_v19 = vpop.permute.xlu0 %354 }
 0x182   : > { %v357_v20 = vsub.f32 %v342_v9, %v355_v19 }
 0x184   : > { %v358_v21 = vmul.f32 1.442695, %v357_v20 }
 0x186   : > { %575 = vpow2.f32 %v358_v21 }
 0x187   : > { %577 = vpow2.f32 %v350_v25 }
 0x18c   : > { %v576_v22 = vpop.eup %575 }
 0x18d   : > { %v362_v23 = vsel %vm344_vm3, %v576_v22, 0.0  ;;  %v375_v24 = vpack.c.bf16 %v576_v22, %v576_v22  ;;  %v578_v26 = vpop.eup %577 }
 0x18e   : > { %363 = vadd.xlane.f32.xlu1 %v362_v23  ;;  %v361_v28 = vmul.f32 %v578_v26, %v360_v27 }
 0x18f   : > { %542 = vmatmul.msk.bf16.vlgmr.msra.gmra.mxu1 %vm344_vm3, %v375_v24 }
 0x1a7   : > { %371 = vperm.xlu1 %573, %v578_v26  }
 0x201   : > { %v364_v29 = vpop.xlane.xlu1 %363 }
 0x202   : > { %v365_v30 = vadd.f32 %v364_v29, %v361_v28 }
 0x204   : > { %367 = vst.msk [vmem:[#allocation3] sm:$0xff] %vm317_vm0, %v365_v30 }
 0x20b   : > { %v404_v31 = vld [vmem:[#allocation3] sm:$0xff] }
 0x20c   : > { %v393_v32 = vpop.f32.mrf.mxu1  ;;  %579 = vrcp.f32 %v404_v31 }
 0x212   : > { %v580_v33 = vpop.eup %579 }
 0x213   : > { %408 = vperm.xlu2 %574, %v580_v33  }
 0x214   : > { %v395_v34 = vpop.f32.mrf.mxu1 }
 0x219   : > { %v372_v35 = vpop.permute.xlu1 %371 }
 0x21a   : > { %v374_v36 = vmul.f32 0.0, %v372_v35 }
 0x21c   : > { %v397_v37 = vadd.f32 %v393_v32, %v374_v36 }
 0x26d   : > { %v409_v38 = vpop.permute.xlu2 %408 }
 0x26e   : > { %v411_v39 = vmul.f32 %v409_v38, %v397_v37 }
 0x270   : > { %v412_v40 = vpack.c.bf16 %v411_v39, %v411_v39 }
 0x272   : > { %413 = vst [vmem:[%s311_s8] sm:$0xf] %v412_v40 }
 0x273 PF: > { %s14_s17 = sadd.s32 1, %s603_s17   ;;  %s693_s15 = smov %s599_s16 }
 0x274   : > { %p11_p5 = scmp.ge.s32.totalorder %s14_s17, 6   ;;  %s694_s16 = smov %s696_s18 }
 0x276   :  { %13 = sbr.rel (!%p11_p5) target bundleno = 2 (0x2), region = 83 }

// kernel: fwd.110
= control target key start
LH: loop header
LB: loop body
LE: loop exit
PB: predicated region body
PF: predicated region fallthrough
CT: control target
= control target key end

     0   :  { %vm35_vm0 = vcmask 1043456   ;;  %vm31_vm1 = vcmask 64512   ;;  %s116_s1 = inlined_call_operand.vmem [shape: bf16[8,128], index: 1, kind: input, shape index: {}]   ;;  %s117_s0 = inlined_call_operand.vmem [shape: bf16[16,8], index: 0, kind: input, shape index: {}]   ;;  %s118_s2 = inlined_call_operand.vmem [shape: f32[1,128], index: 2, kind: input, shape index: {}]   ;;  %s119_s3 = inlined_call_operand.vmem [shape: f32[16,128], index: 3, kind: output, shape index: {}]  }
   0x1   :  { %v25_v0 = vld [vmem:[%s116_s1] sm:$0xf] }
   0x2   :  { %v37_v1 = vsel %vm35_vm0, %v25_v0, 0  ;;  %v79_v2 = vld [vmem:[%s117_s0] sm:$0xff] }
   0x3   :  { %46 = vmatpush.bf16.msra.mxu0 %v37_v1  ;;  %v80_v3 = vld [vmem:[%s118_s2] ss:$0 sm:$0xff] }
   0x6   :  { %78 = vmatmul.msk.bf16.vlgmr.msra.gmra.mxu0 %vm31_vm1, %v79_v2 }
  0x83   :  { %v48_v4 = vpop.f32.mrf.mxu0 }
  0x84   :  { %v66_v5 = vadd.f32 %v80_v3, %v48_v4 }
  0x86   :  { %68 = vst [vmem:[%s119_s3] sm:$0xff] %v66_v5 }
  0x8b   :  { %v50_v6 = vpop.f32.mrf.mxu0 }
  0x8c   :  { %v67_v7 = vadd.f32 %v80_v3, %v50_v6 }
  0x8e   :  { %69 = vst [vmem:[%s119_s3 + $0x8] sm:$0xff] %v67_v7 }

// kernel: custom-call.14
= control target key start
LH: loop header
LB: loop body
LE: loop exit
PB: predicated region body
PF: predicated region fallthrough
CT: control target
= control target key end

     0   :  { %s6_s0 = inlined_call_operand.vmem [shape: f32[12,2,6], index: 0, kind: output, shape index: {}]  }

// kernel: custom-call.8
= control target key start
LH: loop header
LB: loop body
LE: loop exit
PB: predicated region body
PF: predicated region fallthrough
CT: control target
= control target key end

     0   :  { %s6_s0 = inlined_call_operand.vmem [shape: f32[2,6], index: 0, kind: output, shape index: {}]  }

// kernel: custom-call.15
= control target key start
LH: loop header
LB: loop body
LE: loop exit
PB: predicated region body
PF: predicated region fallthrough
CT: control target
= control target key end

     0   :  { %s6_s0 = inlined_call_operand.vmem [shape: f32[12,2,6], index: 0, kind: output, shape index: {}]  }

// kernel: fwd.146
= control target key start
LH: loop header
LB: loop body
LE: loop exit
PB: predicated region body
PF: predicated region fallthrough
CT: control target
= control target key end

     0   :  { %s775_s15 = smov 0   ;;  %s777_s16 = smov 0   ;;  %s935_s0 = inlined_call_operand.vmem [shape: f32[2,16,4], index: 0, kind: input, shape index: {}]   ;;  %s936_s1 = inlined_call_operand.vmem [shape: f32[2,128,4], index: 1, kind: input, shape index: {}]   ;;  %s937_s2 = inlined_call_operand.vmem [shape: f32[2,128,4], index: 2, kind: input, shape index: {}]   ;;  %s938_s3 = inlined_call_operand.vmem [shape: f32[2,1,128], index: 3, kind: input, shape index: {}]   ;;  %s939_s4 = inlined_call_operand.vmem [shape: f32[2,16,128], index: 4, kind: output, shape index: {}]  }
   0x1   :  { %s779_s17 = smov 0  }
   0x2 LB: > { %s26_s18 = sadd.s32 1, %s744_s16  ;;  %p618_p0 = scmp.ge.s32.totalorder %s748_s17, 1  ;;  %s748_s17 = sphi %s779_s17, %s14_s17   ;;  %s744_s16 = sphi %s777_s16, %s941_s16   ;;  %s740_s15 = sphi %s775_s15, %s940_s15  }
   0x3   : > { %p28_p1 = scmp.ge.s32.totalorder %s26_s18, 2  ;;  %p211_p2 = scmp.lt.s32.totalorder %s748_s17, 3 }
   0x5   : > { %s943_s18 = smov (%p28_p1, %s26_s18), 0  ;;  %p212_p3 = pnand %p618_p0, %p211_p2 }
   0x6   : > { %p259_p4 = scmp.lt.s32.totalorder (!%p212_p3), %s740_s15, 1 }
   0x7   : > { %215 = sbr.rel (%p212_p3) target bundleno = 216 (0xd8), region = 36 }
   0xc   : > { %s945_s15 = smov (!%p259_p4, %s740_s15), 1  ;;  %vm314_vm0 = vcmask 31744  }
   0xd   : > { %s666_s19 = sshll.u32 %s945_s15, 7  ;;  %s280_s28 = scalar_lea.vmem %s938_s3, %s945_s15 }
   0xe   : > { %s799_s22 = scalar_lea.vmem %s936_s1, %s666_s19  ;;  %s804_s25 = scalar_lea.vmem %s937_s2, %s666_s19  ;;  %v725_v38 = vld [vmem:[%s280_s28] ss:$0 sm:$0xff] }
   0xf   : > { %v313_v0 = vld [vmem:[%s799_s22 + $0x78] sm:$0xff]  ;;  %v312_v2 = vld [vmem:[%s799_s22 + $0x70] sm:$0xff]  ;;  %v311_v4 = vld [vmem:[%s799_s22 + $0x68] sm:$0xff]  ;;  %s665_s29 = sshll.u32 %s945_s15, 4 }
  0x10   : > { %v412_v1 = vld [vmem:[%s804_s25 + $0x78] sm:$0xff]  ;;  %669 = vmatpush.xpose.msk.msra.mxu2 %vm314_vm0, %v313_v0  ;;  %627 = vmatpush.xpose.msk.msra.mxu0 %vm314_vm0, %v313_v0  ;;  %v411_v3 = vld [vmem:[%s804_s25 + $0x70] sm:$0xff]  ;;  %v410_v5 = vld [vmem:[%s804_s25 + $0x68] sm:$0xff]  ;;  %s266_s6 = scalar_lea.vmem %s935_s0, %s665_s29  ;;  %s289_s11 = scalar_lea.vmem %s939_s4, %s665_s29 }
  0x11   : > { %685 = vmatpush.xpose.msk.msra.mxu3 %vm314_vm0, %v412_v1  ;;  %645 = vmatpush.xpose.msk.msra.mxu1 %vm314_vm0, %v412_v1  ;;  %v310_v6 = vld [vmem:[%s799_s22 + $0x60] sm:$0xff]  ;;  %v309_v8 = vld [vmem:[%s799_s22 + $0x58] sm:$0xff]  ;;  %v308_v10 = vld [vmem:[%s799_s22 + $0x50] sm:$0xff] }
  0x12   : > { %v409_v7 = vld [vmem:[%s804_s25 + $0x60] sm:$0xff]  ;;  %v408_v9 = vld [vmem:[%s804_s25 + $0x58] sm:$0xff]  ;;  %v407_v11 = vld [vmem:[%s804_s25 + $0x50] sm:$0xff] }
  0x13   : > { %v307_v12 = vld [vmem:[%s799_s22 + $0x48] sm:$0xff]  ;;  %v306_v14 = vld [vmem:[%s799_s22 + $0x40] sm:$0xff]  ;;  %v305_v16 = vld [vmem:[%s799_s22 + $0x38] sm:$0xff] }
  0x14   : > { %670 = vmatpush.xpose.msk.msra.mxu2 %vm314_vm0, %v312_v2  ;;  %628 = vmatpush.xpose.msk.msra.mxu0 %vm314_vm0, %v312_v2  ;;  %v406_v13 = vld [vmem:[%s804_s25 + $0x48] sm:$0xff]  ;;  %v405_v15 = vld [vmem:[%s804_s25 + $0x40] sm:$0xff]  ;;  %v404_v17 = vld [vmem:[%s804_s25 + $0x38] sm:$0xff] }
  0x15   : > { %686 = vmatpush.xpose.msk.msra.mxu3 %vm314_vm0, %v411_v3  ;;  %646 = vmatpush.xpose.msk.msra.mxu1 %vm314_vm0, %v411_v3  ;;  %v304_v18 = vld [vmem:[%s799_s22 + $0x30] sm:$0xff]  ;;  %v303_v20 = vld [vmem:[%s799_s22 + $0x28] sm:$0xff]  ;;  %v302_v22 = vld [vmem:[%s799_s22 + $0x20] sm:$0xff] }
  0x16   : > { %v403_v19 = vld [vmem:[%s804_s25 + $0x30] sm:$0xff]  ;;  %v402_v21 = vld [vmem:[%s804_s25 + $0x28] sm:$0xff]  ;;  %v401_v23 = vld [vmem:[%s804_s25 + $0x20] sm:$0xff] }
  0x17   : > { %v301_v24 = vld [vmem:[%s799_s22 + $0x18] sm:$0xff]  ;;  %v300_v26 = vld [vmem:[%s799_s22 + $0x10] sm:$0xff]  ;;  %v292_v28 = vld [vmem:[%s266_s6 + $0x8] sm:$0xff] }
  0x18   : > { %671 = vmatpush.xpose.msk.msra.mxu2 %vm314_vm0, %v311_v4  ;;  %629 = vmatpush.xpose.msk.msra.mxu0 %vm314_vm0, %v311_v4  ;;  %v400_v25 = vld [vmem:[%s804_s25 + $0x18] sm:$0xff]  ;;  %v399_v27 = vld [vmem:[%s804_s25 + $0x10] sm:$0xff]  ;;  %v299_v29 = vld [vmem:[%s799_s22 + $0x8] sm:$0xff]  ;;  %v295_v32 = vmul.f32 %v292_v28, %v292_v28 }
  0x19   : > { %687 = vmatpush.xpose.msk.msra.mxu3 %vm314_vm0, %v410_v5  ;;  %647 = vmatpush.xpose.msk.msra.mxu1 %vm314_vm0, %v410_v5  ;;  %v398_v30 = vld [vmem:[%s804_s25 + $0x8] sm:$0xff]  ;;  %v291_v31 = vld [vmem:[%s266_s6] sm:$0xff] }
  0x1a   : > { %v294_v33 = vmul.f32 %v291_v31, %v291_v31  ;;  %v298_v34 = vld [vmem:[%s799_s22] sm:$0xff]  ;;  %v297_v36 = vmul.f32 -0.5, %v295_v32 }
  0x1b   : > { %v397_v35 = vld [vmem:[%s804_s25] sm:$0xff] }
  0x1c   : > { %672 = vmatpush.xpose.msk.msra.mxu2 %vm314_vm0, %v310_v6  ;;  %630 = vmatpush.xpose.msk.msra.mxu0 %vm314_vm0, %v310_v6  ;;  %v296_v37 = vmul.f32 -0.5, %v294_v33 }
  0x1d   : > { %688 = vmatpush.xpose.msk.msra.mxu3 %vm314_vm0, %v409_v7  ;;  %648 = vmatpush.xpose.msk.msra.mxu1 %vm314_vm0, %v409_v7 }
  0x20   : > { %673 = vmatpush.xpose.msk.msra.mxu2 %vm314_vm0, %v309_v8  ;;  %631 = vmatpush.xpose.msk.msra.mxu0 %vm314_vm0, %v309_v8 }
  0x21   : > { %689 = vmatpush.xpose.msk.msra.mxu3 %vm314_vm0, %v408_v9  ;;  %649 = vmatpush.xpose.msk.msra.mxu1 %vm314_vm0, %v408_v9 }
  0x24   : > { %674 = vmatpush.xpose.msk.msra.mxu2 %vm314_vm0, %v308_v10  ;;  %632 = vmatpush.xpose.msk.msra.mxu0 %vm314_vm0, %v308_v10 }
  0x25   : > { %690 = vmatpush.xpose.msk.msra.mxu3 %vm314_vm0, %v407_v11  ;;  %650 = vmatpush.xpose.msk.msra.mxu1 %vm314_vm0, %v407_v11 }
  0x28   : > { %675 = vmatpush.xpose.msk.msra.mxu2 %vm314_vm0, %v307_v12  ;;  %633 = vmatpush.xpose.msk.msra.mxu0 %vm314_vm0, %v307_v12 }
  0x29   : > { %691 = vmatpush.xpose.msk.msra.mxu3 %vm314_vm0, %v406_v13  ;;  %651 = vmatpush.xpose.msk.msra.mxu1 %vm314_vm0, %v406_v13 }
  0x2c   : > { %676 = vmatpush.xpose.msk.msra.mxu2 %vm314_vm0, %v306_v14  ;;  %634 = vmatpush.xpose.msk.msra.mxu0 %vm314_vm0, %v306_v14 }
  0x2d   : > { %692 = vmatpush.xpose.msk.msra.mxu3 %vm314_vm0, %v405_v15  ;;  %652 = vmatpush.xpose.msk.msra.mxu1 %vm314_vm0, %v405_v15 }
  0x30   : > { %677 = vmatpush.xpose.msk.msra.mxu2 %vm314_vm0, %v305_v16  ;;  %635 = vmatpush.xpose.msk.msra.mxu0 %vm314_vm0, %v305_v16 }
  0x31   : > { %693 = vmatpush.xpose.msk.msra.mxu3 %vm314_vm0, %v404_v17  ;;  %653 = vmatpush.xpose.msk.msra.mxu1 %vm314_vm0, %v404_v17 }
  0x34   : > { %678 = vmatpush.xpose.msk.msra.mxu2 %vm314_vm0, %v304_v18  ;;  %636 = vmatpush.xpose.msk.msra.mxu0 %vm314_vm0, %v304_v18 }
  0x35   : > { %694 = vmatpush.xpose.msk.msra.mxu3 %vm314_vm0, %v403_v19  ;;  %654 = vmatpush.xpose.msk.msra.mxu1 %vm314_vm0, %v403_v19 }
  0x38   : > { %679 = vmatpush.xpose.msk.msra.mxu2 %vm314_vm0, %v303_v20  ;;  %637 = vmatpush.xpose.msk.msra.mxu0 %vm314_vm0, %v303_v20 }
  0x39   : > { %695 = vmatpush.xpose.msk.msra.mxu3 %vm314_vm0, %v402_v21  ;;  %655 = vmatpush.xpose.msk.msra.mxu1 %vm314_vm0, %v402_v21 }
  0x3c   : > { %680 = vmatpush.xpose.msk.msra.mxu2 %vm314_vm0, %v302_v22  ;;  %638 = vmatpush.xpose.msk.msra.mxu0 %vm314_vm0, %v302_v22 }
  0x3d   : > { %696 = vmatpush.xpose.msk.msra.mxu3 %vm314_vm0, %v401_v23  ;;  %656 = vmatpush.xpose.msk.msra.mxu1 %vm314_vm0, %v401_v23 }
  0x40   : > { %681 = vmatpush.xpose.msk.msra.mxu2 %vm314_vm0, %v301_v24  ;;  %639 = vmatpush.xpose.msk.msra.mxu0 %vm314_vm0, %v301_v24 }
  0x41   : > { %697 = vmatpush.xpose.msk.msra.mxu3 %vm314_vm0, %v400_v25  ;;  %657 = vmatpush.xpose.msk.msra.mxu1 %vm314_vm0, %v400_v25 }
  0x44   : > { %682 = vmatpush.xpose.msk.msra.mxu2 %vm314_vm0, %v300_v26  ;;  %640 = vmatpush.xpose.msk.msra.mxu0 %vm314_vm0, %v300_v26 }
  0x45   : > { %698 = vmatpush.xpose.msk.msra.mxu3 %vm314_vm0, %v399_v27  ;;  %658 = vmatpush.xpose.msk.msra.mxu1 %vm314_vm0, %v399_v27 }
  0x48   : > { %683 = vmatpush.xpose.msk.msra.mxu2 %vm314_vm0, %v299_v29  ;;  %641 = vmatpush.xpose.msk.msra.mxu0 %vm314_vm0, %v299_v29 }
  0x49   : > { %699 = vmatpush.xpose.msk.msra.mxu3 %vm314_vm0, %v398_v30  ;;  %659 = vmatpush.xpose.msk.msra.mxu1 %vm314_vm0, %v398_v30 }
  0x4c   : > { %684 = vmatpush.xpose.msk.msra.mxu2 %vm314_vm0, %v298_v34  ;;  %642 = vmatpush.xpose.msk.msra.mxu0 %vm314_vm0, %v298_v34 }
  0x4d   : > { %700 = vmatpush.xpose.msk.msra.mxu3 %vm314_vm0, %v397_v35  ;;  %660 = vmatpush.xpose.msk.msra.mxu1 %vm314_vm0, %v397_v35 }
  0x4f   : > { %644 = vmatmul.msk.f32.vlgmr.msra.gmra.mxu2 %vm314_vm0, %v297_v36  ;;  %643 = vmatmul.msk.f32.vlgmr.msra.gmra.mxu0 %vm314_vm0, %v296_v37 }
  0x50   : > { %662 = vmatmul.msk.f32.vlgmr.msra.gmra.mxu3 %vm314_vm0, %v292_v28  ;;  %661 = vmatmul.msk.f32.vlgmr.msra.gmra.mxu1 %vm314_vm0, %v291_v31 }
  0xcc   : > { %v386_v39 = vpop.f32.mrf.mxu0 }
  0xcd   : > { %v484_v40 = vpop.f32.mrf.mxu1  ;;  %v395_v41 = vadd.f32 %v725_v38, %v386_v39 }
  0xcf   : > { %v490_v42 = vadd.f32 %v484_v40, %v395_v41 }
  0xd1   : > { %492 = vst [vmem:[%s289_s11] sm:$0xff] %v490_v42 }
  0xd2   : > { %v389_v43 = vpop.f32.mrf.mxu2 }
  0xd3   : > { %v487_v44 = vpop.f32.mrf.mxu3  ;;  %v396_v45 = vadd.f32 %v725_v38, %v389_v43 }
  0xd5   : > { %v491_v46 = vadd.f32 %v487_v44, %v396_v45 }
  0xd7   : > { %493 = vst [vmem:[%s289_s11 + $0x8] sm:$0xff] %v491_v46 }
  0xd8 PF: > { %s14_s17 = sadd.s32 1, %s748_s17   ;;  %s940_s15 = smov %s744_s16 }
  0xd9   : > { %p11_p5 = scmp.ge.s32.totalorder %s14_s17, 4   ;;  %s941_s16 = smov %s943_s18 }
  0xdb   :  { %13 = sbr.rel (!%p11_p5) target bundleno = 2 (0x2), region = 75 }

// kernel: fwd.118
= control target key start
LH: loop header
LB: loop body
LE: loop exit
PB: predicated region body
PF: predicated region fallthrough
CT: control target
= control target key end

     0   :  { %s686_s12 = smov 0   ;;  %s688_s13 = smov 0   ;;  %s790_s0 = inlined_call_operand.vmem [shape: bf16[2,1,10,8], index: 0, kind: input, shape index: {}]   ;;  %s791_s1 = inlined_call_operand.vmem [shape: bf16[3,8,256], index: 1, kind: input, shape index: {}]   ;;  %s792_s2 = inlined_call_operand.vmem [shape: f32[1,256], index: 2, kind: input, shape index: {}]   ;;  %s793_s3 = inlined_call_operand.vmem [shape: f32[2,8,256], index: 3, kind: output, shape index: {}]  }
   0x1   :  { %s690_s14 = smov 0   ;;  %s692_s15 = smov 0  }
   0x2   :  { %s694_s16 = smov 0   ;;  %s696_s17 = smov 0  }
   0x3   :  { %s698_s18 = smov 0  }
   0x4 LB: > { %s25_s19 = sadd.s32 1, %s656_s16  ;;  %s32_s20 = sadd.s32 1, %s660_s17  ;;  %s664_s18 = sphi %s698_s18, %s13_s18   ;;  %s660_s17 = sphi %s696_s17, %s799_s17   ;;  %s656_s16 = sphi %s694_s16, %s798_s16   ;;  %s652_s15 = sphi %s692_s15, %s797_s15   ;;  %s648_s14 = sphi %s690_s14, %s796_s14   ;;  %s644_s13 = sphi %s688_s13, %s795_s13   ;;  %s640_s12 = sphi %s686_s12, %s794_s12  }
   0x5   : > { %p26_p0 = scmp.ge.s32.totalorder %s25_s19, 2  ;;  %s67_s21 = sadd.s32 1, %s644_s13 }
   0x6   : > { %p74_p1 = scmp.ne.s32.totalorder %s644_s13, %s640_s12  ;;  %p75_p2 = scmp.eq.s32.totalorder %s664_s18, 0 }
   0x7   : > { %s801_s19 = smov (%p26_p0, %s25_s19), 0  ;;  %s803_s20 = smov (!%p26_p0, %s32_s20), %s660_s17 }
   0x8   : > { %s64_s22 = ssub.s32 %s656_s16, %s801_s19  ;;  %p76_p3 = por %p75_p2, %p74_p1 }
   0x9   : > { %p34_p4 = scmp.ge.s32.totalorder %s803_s20, 2  ;;  %p65_p5 = scmp.eq.s32.totalorder %s64_s22, 0 }
   0xa   : > { %p536_p6 = scmp.ge.s32.totalorder %s664_s18, 4 }
   0xb   : > { %s805_s20 = smov (%p34_p4, %s803_s20), 0 }
   0xc   : > { %s735_s23 = scalar_select %p65_p5, %s644_s13, %s67_s21  }
   0xd   : > { %156 = sbr.rel (%p536_p6) target bundleno = 26 (0x1a), region = 16 }
  0x12   : > { %171 = sbr.rel (!%p76_p3) target bundleno = 26 (0x1a), region = 24  ;;  %s173_s24 = sand.u32 (%p76_p3), 1, %s644_s13  }
  0x13   : > { %s537_s25 = sshll.u32 (%p76_p3), %s656_s16, 2  ;;  %s551_s26 = smul.u32 (%p76_p3), 12, %s173_s24 }
  0x14   : > { %s177_s29 = scalar_lea.vmem (%p76_p3), %s791_s1, %s537_s25 }
  0x15   : > { %v194_v0 = vld [vmem:[%s177_s29] sm:$0xf] (%p76_p3)  ;;  %v196_v1 = vld [vmem:[%s177_s29 + $0x8] sm:$0xf] (%p76_p3)  ;;  %v198_v2 = vld [vmem:[%s177_s29 + $0x10] sm:$0xf] (%p76_p3) }
  0x16   : > { %s175_s30 = scalar_lea.vmem (%p76_p3), [#allocation2], %s551_s26 }
  0x17   : > { %195 = vst [vmem:[%s175_s30] sm:$0xf] %v194_v0 }
  0x18   : > { %197 = vst [vmem:[%s175_s30 + $0x4] sm:$0xf] %v196_v1 }
  0x19   : > { %199 = vst [vmem:[%s175_s30 + $0x8] sm:$0xf] %v198_v2 }
  0x1a PF: > { %p538_p7 = scmp.ge.s32.totalorder %s664_s18, 1  ;;  %p234_p8 = scmp.lt.s32.totalorder %s664_s18, 5 }
  0x1c   : > { %p235_p9 = pnand %p538_p7, %p234_p8 }
  0x1d   : > { %s241_s4 = sand.u32 (!%p235_p9), 1, %s640_s12   ;;  %p283_p10 = scmp.lt.s32.totalorder (!%p235_p9), %s652_s15, 1 }
  0x1e   : > { %238 = sbr.rel (%p235_p9) target bundleno = 186 (0xba), region = 69  ;;  %p292_p11 = scmp.lt.s32.totalorder (!%p235_p9), %s648_s14, 1 }
  0x1f   : > { %s552_s5 = smul.u32 (!%p235_p9), 12, %s241_s4 }
  0x21   : > { %s243_s6 = scalar_lea.vmem (!%p235_p9), [#allocation2], %s552_s5 }
  0x23   : > { %vm329_vm0 = vcmask 1043456   ;;  %s807_s15 = smov (!%p283_p10, %s652_s15), 1  ;;  %v309_v3 = vld [vmem:[%s243_s6] sm:$0xf]  ;;  %v546_v4 = vld [vmem:[%s243_s6 + $0x8] sm:$0xf] }
  0x24   : > { %s550_s7 = sshll.u32 %s807_s15, 3  ;;  %v350_v5 = vsel %vm329_vm0, %v309_v3, 0  ;;  %v376_v6 = vsel %vm329_vm0, %v546_v4, 0  ;;  %vm325_vm1 = vcmask 64512   ;;  %v543_v7 = vld [vmem:[%s243_s6 + $0x4] sm:$0xf] }
  0x25   : > { %s291_s10 = scalar_lea.vmem %s790_s0, %s550_s7  ;;  %359 = vmatpush.bf16.msra.mxu1 %v350_v5  ;;  %385 = vmatpush.bf16.msra.mxu2 %v376_v6  ;;  %v331_v14 = vsel %vm329_vm0, %v543_v7, 0  ;;  %s809_s14 = smov (!%p292_p11, %s648_s14), 1 }
  0x26   : > { %v308_v8 = vld [vmem:[%s291_s10] sm:$0xf]  ;;  %v310_v9 = vld [vmem:[%s291_s10 + $0x4] sm:$0x1]  ;;  %340 = vmatpush.bf16.msra.mxu0 %v331_v14  ;;  %s541_s11 = sshll.u32 %s807_s15, 1  ;;  %s294_s22 = scalar_lea.vmem %s792_s2, %s809_s14 }
  0x27   : > { %v365_v10 = vld [vmem:[%s291_s10] sm:$0xe]  ;;  %v315_v11 = vunpack.c.l.b16 %v308_v8  ;;  %v316_v12 = vunpack.c.l.b16 %v310_v9  ;;  %s304_s24 = sadd.s32 %s541_s11, %s809_s14  ;;  %v609_v26 = vld [vmem:[%s294_s22] ss:$0 sm:$0xff] }
  0x28   : > { %v369_v13 = vunpack.c.l.b16 %v365_v10  ;;  %545 = vmatmul.msk.bf16.vlgmr.msra.gmra.mxu1 %vm325_vm1, %v308_v8  ;;  %s542_s25 = sshll.u32 %s304_s24, 3 }
  0x29   : > { %v317_v15 = vpack.c.b16 %v316_v12, %v315_v11  ;;  %s306_s28 = scalar_lea.vmem %s793_s3, %s542_s25 }
  0x2a   : > { %v370_v16 = vpack.c.b16 %v316_v12, %v369_v13 }
  0x2b   : > { %v319_v18 = vshrl.u32 %v317_v15, 16  ;;  %v321_v19 = vshll.u32 %v317_v15, 16 }
  0x2c   : > { %v371_v17 = vrot.slane %v370_v16, 1 }
  0x2d   : > { %v323_v20 = vrot.slane %v321_v19, 1 }
  0x2e   : > { %547 = vmatmul.msk.bf16.vlgmr.msra.gmra.mxu2 %vm325_vm1, %v371_v17 }
  0x2f   : > { %v324_v21 = vor.u32 %v323_v20, %v319_v18 }
  0x31   : > { %544 = vmatmul.msk.bf16.vlgmr.msra.gmra.mxu0 %vm325_vm1, %v324_v21 }
  0xa5   : > { %v361_v22 = vpop.f32.mrf.mxu1 }
  0xad   : > { %v363_v24 = vpop.f32.mrf.mxu1 }
  0xae   : > { %v342_v23 = vpop.f32.mrf.mxu0 }
  0xaf   : > { %v362_v25 = vadd.f32 %v361_v22, %v342_v23 }
  0xb1   : > { %v387_v27 = vpop.f32.mrf.mxu2 }
  0xb2   : > { %v391_v28 = vadd.f32 %v387_v27, %v362_v25 }
  0xb4   : > { %v396_v29 = vadd.f32 %v609_v26, %v391_v28 }
  0xb6   : > { %397 = vst [vmem:[%s306_s28] sm:$0xff] %v396_v29  ;;  %v344_v30 = vpop.f32.mrf.mxu0 }
  0xb9   : > { %v389_v31 = vpop.f32.mrf.mxu2 }
  0xba PF: > { %s13_s18 = sadd.s32 1, %s664_s18   ;;  %s794_s12 = smov %s644_s13 }
  0xbb   : > { %p10_p12 = scmp.ge.s32.totalorder %s13_s18, 6   ;;  %s795_s13 = smov %s735_s23 }
  0xbc   : > { %s796_s14 = smov %s656_s16  ;;  %s797_s15 = smov %s660_s17 }
  0xbd   : > { %s798_s16 = smov %s801_s19  ;;  %s799_s17 = smov %s805_s20 }
  0xbe   :  { %12 = sbr.rel (!%p10_p12) target bundleno = 4 (0x4), region = 116 }

// kernel: fwd.119
= control target key start
LH: loop header
LB: loop body
LE: loop exit
PB: predicated region body
PF: predicated region fallthrough
CT: control target
= control target key end

     0   :  { %s1777_s12 = smov 0   ;;  %s1779_s13 = smov 0   ;;  %s2148_s0 = inlined_call_operand.vmem [shape: bf16[2,1,10,256], index: 0, kind: input, shape index: {}]   ;;  %s2149_s1 = inlined_call_operand.vmem [shape: bf16[3,256,256], index: 1, kind: input, shape index: {}]   ;;  %s2150_s2 = inlined_call_operand.vmem [shape: f32[1,256], index: 2, kind: input, shape index: {}]   ;;  %s2151_s3 = inlined_call_operand.vmem [shape: f32[2,8,256], index: 3, kind: output, shape index: {}]  }
   0x1   :  { %s1781_s14 = smov 0   ;;  %s1783_s15 = smov 0  }
   0x2   :  { %s1785_s16 = smov 0   ;;  %s1787_s17 = smov 0  }
   0x3   :  { %s1789_s18 = smov 0  }
   0x4 LB: > { %s25_s19 = sadd.s32 1, %s1747_s16  ;;  %s32_s20 = sadd.s32 1, %s1751_s17  ;;  %s1755_s18 = sphi %s1789_s18, %s13_s18   ;;  %s1751_s17 = sphi %s1787_s17, %s2157_s17   ;;  %s1747_s16 = sphi %s1785_s16, %s2156_s16   ;;  %s1743_s15 = sphi %s1783_s15, %s2155_s15   ;;  %s1739_s14 = sphi %s1781_s14, %s2154_s14   ;;  %s1735_s13 = sphi %s1779_s13, %s2153_s13   ;;  %s1731_s12 = sphi %s1777_s12, %s2152_s12  }
   0x5   : > { %p26_p0 = scmp.ge.s32.totalorder %s25_s19, 2  ;;  %s67_s21 = sadd.s32 1, %s1735_s13 }
   0x6   : > { %p74_p1 = scmp.ne.s32.totalorder %s1735_s13, %s1731_s12  ;;  %p75_p2 = scmp.eq.s32.totalorder %s1755_s18, 0 }
   0x7   : > { %s2159_s19 = smov (%p26_p0, %s25_s19), 0  ;;  %s2161_s20 = smov (!%p26_p0, %s32_s20), %s1751_s17 }
   0x8   : > { %s64_s22 = ssub.s32 %s1747_s16, %s2159_s19  ;;  %p76_p3 = por %p75_p2, %p74_p1 }
   0x9   : > { %p34_p4 = scmp.ge.s32.totalorder %s2161_s20, 2  ;;  %p65_p5 = scmp.eq.s32.totalorder %s64_s22, 0 }
   0xa   : > { %p1328_p6 = scmp.ge.s32.totalorder %s1755_s18, 4 }
   0xb   : > { %s2163_s20 = smov (%p34_p4, %s2161_s20), 0 }
   0xc   : > { %s1826_s23 = scalar_select %p65_p5, %s1735_s13, %s67_s21  }
   0xd   : > { %156 = sbr.rel (%p1328_p6) target bundleno = 119 (0x77), region = 16 }
  0x12   : > { %171 = sbr.rel (!%p76_p3) target bundleno = 119 (0x77), region = 24  ;;  %s173_s24 = sand.u32 (%p76_p3), 1, %s1735_s13  }
  0x13   : > { %s1329_s25 = sshll.u32 (%p76_p3), %s1747_s16, 2  ;;  %s1642_s26 = smul.u32 (%p76_p3), 384, %s173_s24 }
  0x14   : > { %s1834_s29 = scalar_lea.vmem (%p76_p3), %s2149_s1, %s1329_s25 }
  0x15   : > { %v194_v0 = vld [vmem:[%s1834_s29] sm:$0xf] (%p76_p3)  ;;  %v196_v1 = vld [vmem:[%s1834_s29 + $0x8] sm:$0xf] (%p76_p3)  ;;  %v198_v2 = vld [vmem:[%s1834_s29 + $0x10] sm:$0xf] (%p76_p3) }
  0x16   : > { %s1839_s30 = scalar_lea.vmem (%p76_p3), [#allocation2], %s1642_s26  ;;  %v200_v3 = vld [vmem:[%s1834_s29 + $0x18] sm:$0xf] (%p76_p3)  ;;  %v202_v4 = vld [vmem:[%s1834_s29 + $0x20] sm:$0xf] (%p76_p3) }
  0x17   : > { %195 = vst [vmem:[%s1839_s30] sm:$0xf] %v194_v0  ;;  %v204_v5 = vld [vmem:[%s1834_s29 + $0x28] sm:$0xf]  ;;  %v206_v6 = vld [vmem:[%s1834_s29 + $0x30] sm:$0xf] }
  0x18   : > { %197 = vst [vmem:[%s1839_s30 + $0x4] sm:$0xf] %v196_v1  ;;  %v208_v7 = vld [vmem:[%s1834_s29 + $0x38] sm:$0xf]  ;;  %v210_v8 = vld [vmem:[%s1834_s29 + $0x40] sm:$0xf] }
  0x19   : > { %199 = vst [vmem:[%s1839_s30 + $0x8] sm:$0xf] %v198_v2  ;;  %v212_v9 = vld [vmem:[%s1834_s29 + $0x48] sm:$0xf]  ;;  %v214_v10 = vld [vmem:[%s1834_s29 + $0x50] sm:$0xf] }
  0x1a   : > { %201 = vst [vmem:[%s1839_s30 + $0xc] sm:$0xf] %v200_v3  ;;  %v216_v11 = vld [vmem:[%s1834_s29 + $0x58] sm:$0xf]  ;;  %v218_v12 = vld [vmem:[%s1834_s29 + $0x60] sm:$0xf] }
  0x1b   : > { %203 = vst [vmem:[%s1839_s30 + $0x10] sm:$0xf] %v202_v4  ;;  %v220_v13 = vld [vmem:[%s1834_s29 + $0x68] sm:$0xf]  ;;  %v222_v14 = vld [vmem:[%s1834_s29 + $0x70] sm:$0xf] }
  0x1c   : > { %205 = vst [vmem:[%s1839_s30 + $0x14] sm:$0xf] %v204_v5  ;;  %v224_v15 = vld [vmem:[%s1834_s29 + $0x78] sm:$0xf]  ;;  %v226_v16 = vld [vmem:[%s1834_s29 + $0x80] sm:$0xf] }
  0x1d   : > { %207 = vst [vmem:[%s1839_s30 + $0x18] sm:$0xf] %v206_v6  ;;  %v228_v17 = vld [vmem:[%s1834_s29 + $0x88] sm:$0xf]  ;;  %v230_v18 = vld [vmem:[%s1834_s29 + $0x90] sm:$0xf] }
  0x1e   : > { %209 = vst [vmem:[%s1839_s30 + $0x1c] sm:$0xf] %v208_v7  ;;  %v232_v19 = vld [vmem:[%s1834_s29 + $0x98] sm:$0xf]  ;;  %v234_v20 = vld [vmem:[%s1834_s29 + $0xa0] sm:$0xf] }
  0x1f   : > { %211 = vst [vmem:[%s1839_s30 + $0x20] sm:$0xf] %v210_v8  ;;  %v236_v21 = vld [vmem:[%s1834_s29 + $0xa8] sm:$0xf]  ;;  %v238_v22 = vld [vmem:[%s1834_s29 + $0xb0] sm:$0xf] }
  0x20   : > { %213 = vst [vmem:[%s1839_s30 + $0x24] sm:$0xf] %v212_v9  ;;  %v240_v23 = vld [vmem:[%s1834_s29 + $0xb8] sm:$0xf]  ;;  %v242_v24 = vld [vmem:[%s1834_s29 + $0xc0] sm:$0xf] }
  0x21   : > { %215 = vst [vmem:[%s1839_s30 + $0x28] sm:$0xf] %v214_v10  ;;  %v244_v25 = vld [vmem:[%s1834_s29 + $0xc8] sm:$0xf]  ;;  %v246_v26 = vld [vmem:[%s1834_s29 + $0xd0] sm:$0xf] }
  0x22   : > { %217 = vst [vmem:[%s1839_s30 + $0x2c] sm:$0xf] %v216_v11  ;;  %v248_v27 = vld [vmem:[%s1834_s29 + $0xd8] sm:$0xf]  ;;  %v250_v28 = vld [vmem:[%s1834_s29 + $0xe0] sm:$0xf] }
  0x23   : > { %219 = vst [vmem:[%s1839_s30 + $0x30] sm:$0xf] %v218_v12  ;;  %v252_v29 = vld [vmem:[%s1834_s29 + $0xe8] sm:$0xf]  ;;  %v254_v30 = vld [vmem:[%s1834_s29 + $0xf0] sm:$0xf] }
  0x24   : > { %221 = vst [vmem:[%s1839_s30 + $0x34] sm:$0xf] %v220_v13  ;;  %v256_v31 = vld [vmem:[%s1834_s29 + $0xf8] sm:$0xf]  ;;  %v258_v32 = vld [vmem:[%s1834_s29 + $0x100] sm:$0xf] }
  0x25   : > { %223 = vst [vmem:[%s1839_s30 + $0x38] sm:$0xf] %v222_v14  ;;  %v260_v33 = vld [vmem:[%s1834_s29 + $0x108] sm:$0xf]  ;;  %v262_v34 = vld [vmem:[%s1834_s29 + $0x110] sm:$0xf] }
  0x26   : > { %225 = vst [vmem:[%s1839_s30 + $0x3c] sm:$0xf] %v224_v15  ;;  %v264_v35 = vld [vmem:[%s1834_s29 + $0x118] sm:$0xf]  ;;  %v266_v36 = vld [vmem:[%s1834_s29 + $0x120] sm:$0xf] }
  0x27   : > { %227 = vst [vmem:[%s1839_s30 + $0x40] sm:$0xf] %v226_v16  ;;  %v268_v37 = vld [vmem:[%s1834_s29 + $0x128] sm:$0xf]  ;;  %v270_v38 = vld [vmem:[%s1834_s29 + $0x130] sm:$0xf] }
  0x28   : > { %229 = vst [vmem:[%s1839_s30 + $0x44] sm:$0xf] %v228_v17  ;;  %v272_v39 = vld [vmem:[%s1834_s29 + $0x138] sm:$0xf]  ;;  %v274_v40 = vld [vmem:[%s1834_s29 + $0x140] sm:$0xf] }
  0x29   : > { %231 = vst [vmem:[%s1839_s30 + $0x48] sm:$0xf] %v230_v18  ;;  %v276_v41 = vld [vmem:[%s1834_s29 + $0x148] sm:$0xf]  ;;  %v278_v42 = vld [vmem:[%s1834_s29 + $0x150] sm:$0xf] }
  0x2a   : > { %233 = vst [vmem:[%s1839_s30 + $0x4c] sm:$0xf] %v232_v19  ;;  %v280_v43 = vld [vmem:[%s1834_s29 + $0x158] sm:$0xf]  ;;  %v282_v44 = vld [vmem:[%s1834_s29 + $0x160] sm:$0xf] }
  0x2b   : > { %235 = vst [vmem:[%s1839_s30 + $0x50] sm:$0xf] %v234_v20  ;;  %v284_v45 = vld [vmem:[%s1834_s29 + $0x168] sm:$0xf]  ;;  %v286_v46 = vld [vmem:[%s1834_s29 + $0x170] sm:$0xf] }
  0x2c   : > { %237 = vst [vmem:[%s1839_s30 + $0x54] sm:$0xf] %v236_v21  ;;  %v288_v47 = vld [vmem:[%s1834_s29 + $0x178] sm:$0xf]  ;;  %v290_v48 = vld [vmem:[%s1834_s29 + $0x180] sm:$0xf] }
  0x2d   : > { %239 = vst [vmem:[%s1839_s30 + $0x58] sm:$0xf] %v238_v22  ;;  %v292_v49 = vld [vmem:[%s1834_s29 + $0x188] sm:$0xf]  ;;  %v294_v50 = vld [vmem:[%s1834_s29 + $0x190] sm:$0xf] }
  0x2e   : > { %241 = vst [vmem:[%s1839_s30 + $0x5c] sm:$0xf] %v240_v23  ;;  %v296_v51 = vld [vmem:[%s1834_s29 + $0x198] sm:$0xf]  ;;  %v298_v52 = vld [vmem:[%s1834_s29 + $0x1a0] sm:$0xf] }
  0x2f   : > { %243 = vst [vmem:[%s1839_s30 + $0x60] sm:$0xf] %v242_v24  ;;  %v300_v53 = vld [vmem:[%s1834_s29 + $0x1a8] sm:$0xf]  ;;  %v302_v54 = vld [vmem:[%s1834_s29 + $0x1b0] sm:$0xf] }
  0x30   : > { %245 = vst [vmem:[%s1839_s30 + $0x64] sm:$0xf] %v244_v25  ;;  %v304_v55 = vld [vmem:[%s1834_s29 + $0x1b8] sm:$0xf]  ;;  %v306_v56 = vld [vmem:[%s1834_s29 + $0x1c0] sm:$0xf] }
  0x31   : > { %247 = vst [vmem:[%s1839_s30 + $0x68] sm:$0xf] %v246_v26  ;;  %v308_v57 = vld [vmem:[%s1834_s29 + $0x1c8] sm:$0xf]  ;;  %v310_v58 = vld [vmem:[%s1834_s29 + $0x1d0] sm:$0xf] }
  0x32   : > { %249 = vst [vmem:[%s1839_s30 + $0x6c] sm:$0xf] %v248_v27  ;;  %v312_v59 = vld [vmem:[%s1834_s29 + $0x1d8] sm:$0xf]  ;;  %v314_v60 = vld [vmem:[%s1834_s29 + $0x1e0] sm:$0xf] }
  0x33   : > { %251 = vst [vmem:[%s1839_s30 + $0x70] sm:$0xf] %v250_v28  ;;  %v316_v61 = vld [vmem:[%s1834_s29 + $0x1e8] sm:$0xf]  ;;  %v318_v62 = vld [vmem:[%s1834_s29 + $0x1f0] sm:$0xf] }
  0x34   : > { %253 = vst [vmem:[%s1839_s30 + $0x74] sm:$0xf] %v252_v29  ;;  %v320_v63 = vld [vmem:[%s1834_s29 + $0x1f8] sm:$0xf]  ;;  %v322_v0 = vld [vmem:[%s1834_s29 + $0x200] sm:$0xf] }
  0x35   : > { %255 = vst [vmem:[%s1839_s30 + $0x78] sm:$0xf] %v254_v30  ;;  %v324_v1 = vld [vmem:[%s1834_s29 + $0x208] sm:$0xf]  ;;  %v326_v2 = vld [vmem:[%s1834_s29 + $0x210] sm:$0xf] }
  0x36   : > { %257 = vst [vmem:[%s1839_s30 + $0x7c] sm:$0xf] %v256_v31  ;;  %v328_v3 = vld [vmem:[%s1834_s29 + $0x218] sm:$0xf]  ;;  %v330_v4 = vld [vmem:[%s1834_s29 + $0x220] sm:$0xf] }
  0x37   : > { %259 = vst [vmem:[%s1839_s30 + $0x80] sm:$0xf] %v258_v32  ;;  %v332_v5 = vld [vmem:[%s1834_s29 + $0x228] sm:$0xf]  ;;  %v334_v6 = vld [vmem:[%s1834_s29 + $0x230] sm:$0xf] }
  0x38   : > { %261 = vst [vmem:[%s1839_s30 + $0x84] sm:$0xf] %v260_v33  ;;  %v336_v7 = vld [vmem:[%s1834_s29 + $0x238] sm:$0xf]  ;;  %v338_v8 = vld [vmem:[%s1834_s29 + $0x240] sm:$0xf] }
  0x39   : > { %263 = vst [vmem:[%s1839_s30 + $0x88] sm:$0xf] %v262_v34  ;;  %v340_v9 = vld [vmem:[%s1834_s29 + $0x248] sm:$0xf]  ;;  %v342_v10 = vld [vmem:[%s1834_s29 + $0x250] sm:$0xf] }
  0x3a   : > { %265 = vst [vmem:[%s1839_s30 + $0x8c] sm:$0xf] %v264_v35  ;;  %v344_v11 = vld [vmem:[%s1834_s29 + $0x258] sm:$0xf]  ;;  %v346_v12 = vld [vmem:[%s1834_s29 + $0x260] sm:$0xf] }
  0x3b   : > { %267 = vst [vmem:[%s1839_s30 + $0x90] sm:$0xf] %v266_v36  ;;  %v348_v13 = vld [vmem:[%s1834_s29 + $0x268] sm:$0xf]  ;;  %v350_v14 = vld [vmem:[%s1834_s29 + $0x270] sm:$0xf] }
  0x3c   : > { %269 = vst [vmem:[%s1839_s30 + $0x94] sm:$0xf] %v268_v37  ;;  %v352_v15 = vld [vmem:[%s1834_s29 + $0x278] sm:$0xf]  ;;  %v354_v16 = vld [vmem:[%s1834_s29 + $0x280] sm:$0xf] }
  0x3d   : > { %271 = vst [vmem:[%s1839_s30 + $0x98] sm:$0xf] %v270_v38  ;;  %v356_v17 = vld [vmem:[%s1834_s29 + $0x288] sm:$0xf]  ;;  %v358_v18 = vld [vmem:[%s1834_s29 + $0x290] sm:$0xf] }
  0x3e   : > { %273 = vst [vmem:[%s1839_s30 + $0x9c] sm:$0xf] %v272_v39  ;;  %v360_v19 = vld [vmem:[%s1834_s29 + $0x298] sm:$0xf]  ;;  %v362_v20 = vld [vmem:[%s1834_s29 + $0x2a0] sm:$0xf] }
  0x3f   : > { %275 = vst [vmem:[%s1839_s30 + $0xa0] sm:$0xf] %v274_v40  ;;  %v364_v21 = vld [vmem:[%s1834_s29 + $0x2a8] sm:$0xf]  ;;  %v366_v22 = vld [vmem:[%s1834_s29 + $0x2b0] sm:$0xf] }
  0x40   : > { %277 = vst [vmem:[%s1839_s30 + $0xa4] sm:$0xf] %v276_v41  ;;  %v368_v23 = vld [vmem:[%s1834_s29 + $0x2b8] sm:$0xf]  ;;  %v370_v24 = vld [vmem:[%s1834_s29 + $0x2c0] sm:$0xf] }
  0x41   : > { %279 = vst [vmem:[%s1839_s30 + $0xa8] sm:$0xf] %v278_v42  ;;  %v372_v25 = vld [vmem:[%s1834_s29 + $0x2c8] sm:$0xf]  ;;  %v374_v26 = vld [vmem:[%s1834_s29 + $0x2d0] sm:$0xf] }
  0x42   : > { %281 = vst [vmem:[%s1839_s30 + $0xac] sm:$0xf] %v280_v43  ;;  %v376_v27 = vld [vmem:[%s1834_s29 + $0x2d8] sm:$0xf]  ;;  %v378_v28 = vld [vmem:[%s1834_s29 + $0x2e0] sm:$0xf] }
  0x43   : > { %283 = vst [vmem:[%s1839_s30 + $0xb0] sm:$0xf] %v282_v44  ;;  %v380_v29 = vld [vmem:[%s1834_s29 + $0x2e8] sm:$0xf]  ;;  %v382_v30 = vld [vmem:[%s1834_s29 + $0x2f0] sm:$0xf] }
  0x44   : > { %285 = vst [vmem:[%s1839_s30 + $0xb4] sm:$0xf] %v284_v45  ;;  %v384_v31 = vld [vmem:[%s1834_s29 + $0x2f8] sm:$0xf] }
  0x45   : > { %287 = vst [vmem:[%s1839_s30 + $0xb8] sm:$0xf] %v286_v46 }
  0x46   : > { %289 = vst [vmem:[%s1839_s30 + $0xbc] sm:$0xf] %v288_v47 }
  0x47   : > { %291 = vst [vmem:[%s1839_s30 + $0xc0] sm:$0xf] %v290_v48 }
  0x48   : > { %293 = vst [vmem:[%s1839_s30 + $0xc4] sm:$0xf] %v292_v49 }
  0x49   : > { %295 = vst [vmem:[%s1839_s30 + $0xc8] sm:$0xf] %v294_v50 }
  0x4a   : > { %297 = vst [vmem:[%s1839_s30 + $0xcc] sm:$0xf] %v296_v51 }
  0x4b   : > { %299 = vst [vmem:[%s1839_s30 + $0xd0] sm:$0xf] %v298_v52 }
  0x4c   : > { %301 = vst [vmem:[%s1839_s30 + $0xd4] sm:$0xf] %v300_v53 }
  0x4d   : > { %303 = vst [vmem:[%s1839_s30 + $0xd8] sm:$0xf] %v302_v54 }
  0x4e   : > { %305 = vst [vmem:[%s1839_s30 + $0xdc] sm:$0xf] %v304_v55 }
  0x4f   : > { %307 = vst [vmem:[%s1839_s30 + $0xe0] sm:$0xf] %v306_v56 }
  0x50   : > { %309 = vst [vmem:[%s1839_s30 + $0xe4] sm:$0xf] %v308_v57 }
  0x51   : > { %311 = vst [vmem:[%s1839_s30 + $0xe8] sm:$0xf] %v310_v58 }
  0x52   : > { %313 = vst [vmem:[%s1839_s30 + $0xec] sm:$0xf] %v312_v59 }
  0x53   : > { %315 = vst [vmem:[%s1839_s30 + $0xf0] sm:$0xf] %v314_v60 }
  0x54   : > { %317 = vst [vmem:[%s1839_s30 + $0xf4] sm:$0xf] %v316_v61 }
  0x55   : > { %319 = vst [vmem:[%s1839_s30 + $0xf8] sm:$0xf] %v318_v62 }
  0x56   : > { %321 = vst [vmem:[%s1839_s30 + $0xfc] sm:$0xf] %v320_v63 }
  0x57   : > { %323 = vst [vmem:[%s1839_s30 + $0x100] sm:$0xf] %v322_v0 }
  0x58   : > { %325 = vst [vmem:[%s1839_s30 + $0x104] sm:$0xf] %v324_v1 }
  0x59   : > { %327 = vst [vmem:[%s1839_s30 + $0x108] sm:$0xf] %v326_v2 }
  0x5a   : > { %329 = vst [vmem:[%s1839_s30 + $0x10c] sm:$0xf] %v328_v3 }
  0x5b   : > { %331 = vst [vmem:[%s1839_s30 + $0x110] sm:$0xf] %v330_v4 }
  0x5c   : > { %333 = vst [vmem:[%s1839_s30 + $0x114] sm:$0xf] %v332_v5 }
  0x5d   : > { %335 = vst [vmem:[%s1839_s30 + $0x118] sm:$0xf] %v334_v6 }
  0x5e   : > { %337 = vst [vmem:[%s1839_s30 + $0x11c] sm:$0xf] %v336_v7 }
  0x5f   : > { %339 = vst [vmem:[%s1839_s30 + $0x120] sm:$0xf] %v338_v8 }
  0x60   : > { %341 = vst [vmem:[%s1839_s30 + $0x124] sm:$0xf] %v340_v9 }
  0x61   : > { %343 = vst [vmem:[%s1839_s30 + $0x128] sm:$0xf] %v342_v10 }
  0x62   : > { %345 = vst [vmem:[%s1839_s30 + $0x12c] sm:$0xf] %v344_v11 }
  0x63   : > { %347 = vst [vmem:[%s1839_s30 + $0x130] sm:$0xf] %v346_v12 }
  0x64   : > { %349 = vst [vmem:[%s1839_s30 + $0x134] sm:$0xf] %v348_v13 }
  0x65   : > { %351 = vst [vmem:[%s1839_s30 + $0x138] sm:$0xf] %v350_v14 }
  0x66   : > { %353 = vst [vmem:[%s1839_s30 + $0x13c] sm:$0xf] %v352_v15 }
  0x67   : > { %355 = vst [vmem:[%s1839_s30 + $0x140] sm:$0xf] %v354_v16 }
  0x68   : > { %357 = vst [vmem:[%s1839_s30 + $0x144] sm:$0xf] %v356_v17 }
  0x69   : > { %359 = vst [vmem:[%s1839_s30 + $0x148] sm:$0xf] %v358_v18 }
  0x6a   : > { %361 = vst [vmem:[%s1839_s30 + $0x14c] sm:$0xf] %v360_v19 }
  0x6b   : > { %363 = vst [vmem:[%s1839_s30 + $0x150] sm:$0xf] %v362_v20 }
  0x6c   : > { %365 = vst [vmem:[%s1839_s30 + $0x154] sm:$0xf] %v364_v21 }
  0x6d   : > { %367 = vst [vmem:[%s1839_s30 + $0x158] sm:$0xf] %v366_v22 }
  0x6e   : > { %369 = vst [vmem:[%s1839_s30 + $0x15c] sm:$0xf] %v368_v23 }
  0x6f   : > { %371 = vst [vmem:[%s1839_s30 + $0x160] sm:$0xf] %v370_v24 }
  0x70   : > { %373 = vst [vmem:[%s1839_s30 + $0x164] sm:$0xf] %v372_v25 }
  0x71   : > { %375 = vst [vmem:[%s1839_s30 + $0x168] sm:$0xf] %v374_v26 }
  0x72   : > { %377 = vst [vmem:[%s1839_s30 + $0x16c] sm:$0xf] %v376_v27 }
  0x73   : > { %379 = vst [vmem:[%s1839_s30 + $0x170] sm:$0xf] %v378_v28 }
  0x74   : > { %381 = vst [vmem:[%s1839_s30 + $0x174] sm:$0xf] %v380_v29 }
  0x75   : > { %383 = vst [vmem:[%s1839_s30 + $0x178] sm:$0xf] %v382_v30 }
  0x76   : > { %385 = vst [vmem:[%s1839_s30 + $0x17c] sm:$0xf] %v384_v31 }
  0x77 PF: > { %p1330_p7 = scmp.ge.s32.totalorder %s1755_s18, 1  ;;  %p606_p8 = scmp.lt.s32.totalorder %s1755_s18, 5 }
  0x79   : > { %p607_p9 = pnand %p1330_p7, %p606_p8 }
  0x7a   : > { %s613_s4 = sand.u32 (!%p607_p9), 1, %s1731_s12   ;;  %p655_p10 = scmp.lt.s32.totalorder (!%p607_p9), %s1743_s15, 1 }
  0x7b   : > { %610 = sbr.rel (%p607_p9) target bundleno = 327 (0x147), region = 69  ;;  %p664_p11 = scmp.lt.s32.totalorder (!%p607_p9), %s1739_s14, 1 }
  0x7c   : > { %s1643_s5 = smul.u32 (!%p607_p9), 384, %s613_s4 }
  0x7e   : > { %s2034_s6 = scalar_lea.vmem (!%p607_p9), [#allocation2], %s1643_s5 }
  0x80   : > { %v1617_v32 = vld [vmem:[%s2034_s6 + $0xb8] sm:$0xff]  ;;  %v1616_v34 = vld [vmem:[%s2034_s6 + $0xb0] sm:$0xff]  ;;  %s2165_s15 = smov (!%p655_p10, %s1743_s15), 1  ;;  %v1615_v40 = vld [vmem:[%s2034_s6 + $0xa8] sm:$0xff]  ;;  %s2167_s14 = smov (!%p664_p11, %s1739_s14), 1 }
  0x81   : > { %v1625_v33 = vld [vmem:[%s2034_s6 + $0xf8] sm:$0xff]  ;;  %866 = vmatpush.bf16.msra.mxu0 %v1617_v32  ;;  %v1624_v35 = vld [vmem:[%s2034_s6 + $0xf0] sm:$0xff]  ;;  %s1593_s7 = sshll.u32 %s2165_s15, 4  ;;  %v1623_v41 = vld [vmem:[%s2034_s6 + $0xe8] sm:$0xff]  ;;  %s1333_s11 = sshll.u32 %s2165_s15, 1 }
  0x82   : > { %879 = vmatpush.bf16.msra.mxu1 %v1625_v33  ;;  %v1601_v36 = vld [vmem:[%s2034_s6 + $0x38] sm:$0xff]  ;;  %v1600_v38 = vld [vmem:[%s2034_s6 + $0x30] sm:$0xff]  ;;  %v1599_v42 = vld [vmem:[%s2034_s6 + $0x28] sm:$0xff]  ;;  %s2055_s10 = scalar_lea.vmem %s2148_s0, %s1593_s7  ;;  %s666_s22 = scalar_lea.vmem %s2150_s2, %s2167_s14 }
  0x83   : > { %v1609_v37 = vld [vmem:[%s2034_s6 + $0x78] sm:$0xff]  ;;  %992 = vmatpush.bf16.msra.mxu2 %v1601_v36  ;;  %v1608_v39 = vld [vmem:[%s2034_s6 + $0x70] sm:$0xff]  ;;  %v1607_v43 = vld [vmem:[%s2034_s6 + $0x68] sm:$0xff]  ;;  %s676_s24 = sadd.s32 %s1333_s11, %s2167_s14 }
  0x84   : > { %1005 = vmatpush.bf16.msra.mxu3 %v1609_v37  ;;  %v1614_v44 = vld [vmem:[%s2034_s6 + $0xa0] sm:$0xff]  ;;  %v2061_v47 = vld [vmem:[%s2055_s10 + $0x8] sm:$0x11]  ;;  %v1613_v54 = vld [vmem:[%s2034_s6 + $0x98] sm:$0xff]  ;;  %s1334_s15 = sshll.u32 %s676_s24, 3 }
  0x85   : > { %867 = vmatpush.bf16.msra.mxu0 %v1616_v34  ;;  %v1622_v45 = vld [vmem:[%s2034_s6 + $0xe0] sm:$0xff]  ;;  %v750_v51 = vunpack.c.l.b16 %v2061_v47  ;;  %v751_v53 = vunpack.c.h.b16 %v2061_v47  ;;  %v1621_v55 = vld [vmem:[%s2034_s6 + $0xd8] sm:$0xff]  ;;  %v1612_v60 = vld [vmem:[%s2034_s6 + $0x90] sm:$0xff]  ;;  %s678_s26 = scalar_lea.vmem %s2151_s3, %s1334_s15 }
  0x86   : > { %880 = vmatpush.bf16.msra.mxu1 %v1624_v35  ;;  %v679_v46 = vld [vmem:[%s2055_s10] sm:$0xff]  ;;  %v1597_v56 = vld [vmem:[%s2034_s6 + $0x18] sm:$0xff]  ;;  %v1620_v61 = vld [vmem:[%s2034_s6 + $0xd0] sm:$0xff] }
  0x87   : > { %993 = vmatpush.bf16.msra.mxu2 %v1600_v38  ;;  %v1598_v48 = vld [vmem:[%s2034_s6 + $0x20] sm:$0xff]  ;;  %v2065_v50 = vunpack.c.l.b16 %v679_v46  ;;  %v2068_v52 = vunpack.c.h.b16 %v679_v46  ;;  %v1605_v57 = vld [vmem:[%s2034_s6 + $0x58] sm:$0xff]  ;;  %v1596_v62 = vld [vmem:[%s2034_s6 + $0x10] sm:$0xff] }
  0x88   : > { %1006 = vmatpush.bf16.msra.mxu3 %v1608_v39  ;;  %v1606_v49 = vld [vmem:[%s2034_s6 + $0x60] sm:$0xff]  ;;  %v1604_v63 = vld [vmem:[%s2034_s6 + $0x50] sm:$0xff]  ;;  %v1611_v2 = vld [vmem:[%s2034_s6 + $0x88] sm:$0xff] }
  0x89   : > { %868 = vmatpush.bf16.msra.mxu0 %v1615_v40  ;;  %v752_v58 = vpack.c.b16 %v750_v51, %v2065_v50  ;;  %v753_v59 = vpack.c.b16 %v751_v53, %v2068_v52  ;;  %v1619_v3 = vld [vmem:[%s2034_s6 + $0xc8] sm:$0xff]  ;;  %v1610_v10 = vld [vmem:[%s2034_s6 + $0x80] sm:$0xff]  ;;  %v1633_v12 = vld [vmem:[%s2034_s6 + $0x138] sm:$0xff]  ;;  %v892_v20 = vpack.c.b16 %v2065_v50, %v2065_v50  ;;  %v893_v21 = vpack.c.b16 %v2068_v52, %v2068_v52 }
  0x8a   : > { %881 = vmatpush.bf16.msra.mxu1 %v1623_v41  ;;  %v1595_v4 = vld [vmem:[%s2034_s6 + $0x8] sm:$0xff]  ;;  %v1618_v11 = vld [vmem:[%s2034_s6 + $0xc0] sm:$0xff]  ;;  %v1641_v13 = vld [vmem:[%s2034_s6 + $0x178] sm:$0xff] }
  0x8b   : > { %994 = vmatpush.bf16.msra.mxu2 %v1599_v42  ;;  %v757_v0 = vshll.u32 %v752_v58, 16  ;;  %v764_v1 = vshll.u32 %v753_v59, 16  ;;  %v1603_v5 = vld [vmem:[%s2034_s6 + $0x48] sm:$0xff]  ;;  %v755_v6 = vshrl.u32 %v752_v58, 16  ;;  %v762_v8 = vshrl.u32 %v753_v59, 16  ;;  %v1594_v14 = vld [vmem:[%s2034_s6] sm:$0xff] }
  0x8c   : > { %1007 = vmatpush.bf16.msra.mxu3 %v1607_v43  ;;  %v1602_v15 = vld [vmem:[%s2034_s6 + $0x40] sm:$0xff]  ;;  %v1632_v18 = vld [vmem:[%s2034_s6 + $0x130] sm:$0xff]  ;;  %v1631_v22 = vld [vmem:[%s2034_s6 + $0x128] sm:$0xff] }
  0x8d   : > { %869 = vmatpush.bf16.msra.mxu0 %v1614_v44  ;;  %v759_v7 = vrot.slane %v757_v0, 1  ;;  %v766_v9 = vrot.slane %v764_v1, 1  ;;  %v1640_v19 = vld [vmem:[%s2034_s6 + $0x170] sm:$0xff]  ;;  %v1639_v23 = vld [vmem:[%s2034_s6 + $0x168] sm:$0xff]  ;;  %v1630_v24 = vld [vmem:[%s2034_s6 + $0x120] sm:$0xff] }
  0x8e   : > { %882 = vmatpush.bf16.msra.mxu1 %v1622_v45  ;;  %v1638_v25 = vld [vmem:[%s2034_s6 + $0x160] sm:$0xff]  ;;  %v1629_v26 = vld [vmem:[%s2034_s6 + $0x118] sm:$0xff]  ;;  %v1628_v28 = vld [vmem:[%s2034_s6 + $0x110] sm:$0xff] }
  0x8f   : > { %995 = vmatpush.bf16.msra.mxu2 %v1598_v48  ;;  %v760_v16 = vor.u32 %v759_v7, %v755_v6  ;;  %v767_v17 = vor.u32 %v766_v9, %v762_v8  ;;  %v1637_v27 = vld [vmem:[%s2034_s6 + $0x158] sm:$0xff]  ;;  %v1636_v29 = vld [vmem:[%s2034_s6 + $0x150] sm:$0xff]  ;;  %v1018_v30 = vld [vmem:[%s2055_s10] sm:$0xee] }
  0x90   : > { %1008 = vmatpush.bf16.msra.mxu3 %v1606_v49  ;;  %v1053_v31 = vunpack.c.l.b16 %v1018_v30  ;;  %v1054_v32 = vunpack.c.h.b16 %v1018_v30  ;;  %v1627_v33 = vld [vmem:[%s2034_s6 + $0x108] sm:$0xff]  ;;  %v1626_v37 = vld [vmem:[%s2034_s6 + $0x100] sm:$0xff] }
  0x91   : > { %870 = vmatpush.bf16.msra.mxu0 %v1613_v54  ;;  %v1635_v34 = vld [vmem:[%s2034_s6 + $0x148] sm:$0xff]  ;;  %v1634_v38 = vld [vmem:[%s2034_s6 + $0x140] sm:$0xff] }
  0x92   : > { %883 = vmatpush.bf16.msra.mxu1 %v1621_v55  ;;  %v1055_v35 = vpack.c.b16 %v750_v51, %v1053_v31  ;;  %v1056_v36 = vpack.c.b16 %v751_v53, %v1054_v32  ;;  %v1700_v55 = vld [vmem:[%s666_s22] ss:$0 sm:$0xff] }
  0x93   : > { %996 = vmatpush.bf16.msra.mxu2 %v1597_v56 }
  0x94   : > { %1009 = vmatpush.bf16.msra.mxu3 %v1605_v57  ;;  %v1057_v39 = vrot.slane %v1055_v35, 1  ;;  %v1058_v40 = vrot.slane %v1056_v36, 1 }
  0x95   : > { %871 = vmatpush.bf16.msra.mxu0 %v1612_v60 }
  0x96   : > { %884 = vmatpush.bf16.msra.mxu1 %v1620_v61 }
  0x97   : > { %997 = vmatpush.bf16.msra.mxu2 %v1596_v62 }
  0x98   : > { %1010 = vmatpush.bf16.msra.mxu3 %v1604_v63 }
  0x99   : > { %872 = vmatpush.bf16.msra.mxu0 %v1611_v2 }
  0x9a   : > { %885 = vmatpush.bf16.msra.mxu1 %v1619_v3 }
  0x9b   : > { %998 = vmatpush.bf16.msra.mxu2 %v1595_v4 }
  0x9c   : > { %1011 = vmatpush.bf16.msra.mxu3 %v1603_v5 }
  0x9d   : > { %873 = vmatpush.bf16.msra.mxu0 %v1610_v10 }
  0x9e   : > { %886 = vmatpush.bf16.msra.mxu1 %v1618_v11 }
  0x9f   : > { %999 = vmatpush.bf16.msra.mxu2 %v1594_v14 }
  0xa0   : > { %1012 = vmatpush.bf16.msra.mxu3 %v1602_v15  ;;  %874 = vmatmul.bf16.vlgmr.msra.gmra.mxu0 %v760_v16 }
  0xa1   : > { %1157 = vmatpush.bf16.msrb.mxu0 %v1633_v12  ;;  %887 = vmatmul.bf16.vlgmr.msra.gmra.mxu1 %v767_v17 }
  0xa2   : > { %1170 = vmatpush.bf16.msrb.mxu1 %v1641_v13  ;;  %1000 = vmatmul.bf16.vlgmr.msra.gmra.mxu2 %v892_v20 }
  0xa3   : > { %1013 = vmatmul.bf16.vlgmr.msra.gmra.mxu3 %v893_v21 }
  0xa5   : > { %1158 = vmatpush.bf16.msrb.mxu0 %v1632_v18 }
  0xa6   : > { %1171 = vmatpush.bf16.msrb.mxu1 %v1640_v19 }
  0xa9   : > { %1159 = vmatpush.bf16.msrb.mxu0 %v1631_v22 }
  0xaa   : > { %1172 = vmatpush.bf16.msrb.mxu1 %v1639_v23 }
  0xad   : > { %1160 = vmatpush.bf16.msrb.mxu0 %v1630_v24 }
  0xae   : > { %1173 = vmatpush.bf16.msrb.mxu1 %v1638_v25 }
  0xb1   : > { %1161 = vmatpush.bf16.msrb.mxu0 %v1629_v26 }
  0xb2   : > { %1174 = vmatpush.bf16.msrb.mxu1 %v1637_v27 }
  0xb5   : > { %1162 = vmatpush.bf16.msrb.mxu0 %v1628_v28 }
  0xb6   : > { %1175 = vmatpush.bf16.msrb.mxu1 %v1636_v29 }
  0xb9   : > { %1163 = vmatpush.bf16.msrb.mxu0 %v1627_v33 }
  0xba   : > { %1176 = vmatpush.bf16.msrb.mxu1 %v1635_v34 }
  0xbd   : > { %1164 = vmatpush.bf16.msrb.mxu0 %v1626_v37 }
  0xbe   : > { %1177 = vmatpush.bf16.msrb.mxu1 %v1634_v38 }
  0xc0   : > { %1165 = vmatmul.bf16.vlgmr.msrb.gmra.mxu0 %v1057_v39 }
  0xc1   : > { %1178 = vmatmul.bf16.vlgmr.msrb.gmra.mxu1 %v1058_v40 }
 0x11d   : > { %v875_v41 = vpop.f32.mrf.mxu0 }
 0x11e   : > { %v888_v42 = vpop.f32.mrf.mxu1 }
 0x11f   : > { %v889_v49 = vadd.f32 %v888_v42, %v875_v41 }
 0x125   : > { %v877_v43 = vpop.f32.mrf.mxu0  ;;  %v1001_v45 = vpop.f32.mrf.mxu2 }
 0x126   : > { %v890_v44 = vpop.f32.mrf.mxu1  ;;  %v1014_v46 = vpop.f32.mrf.mxu3  ;;  %v1002_v50 = vadd.f32 %v1001_v45, %v889_v49 }
 0x128   : > { %v1015_v53 = vadd.f32 %v1014_v46, %v1002_v50 }
 0x12d   : > { %v1003_v47 = vpop.f32.mrf.mxu2 }
 0x12e   : > { %v1016_v48 = vpop.f32.mrf.mxu3 }
 0x13d   : > { %v1166_v51 = vpop.f32.mrf.mxu0 }
 0x13e   : > { %v1179_v52 = vpop.f32.mrf.mxu1 }
 0x13f   : > { %v1180_v54 = vadd.f32 %v1179_v52, %v1166_v51 }
 0x141   : > { %v1183_v56 = vadd.f32 %v1180_v54, %v1015_v53 }
 0x143   : > { %v1188_v57 = vadd.f32 %v1700_v55, %v1183_v56 }
 0x145   : > { %1189 = vst [vmem:[%s678_s26] sm:$0xff] %v1188_v57  ;;  %v1168_v58 = vpop.f32.mrf.mxu0 }
 0x146   : > { %v1181_v59 = vpop.f32.mrf.mxu1 }
 0x147 PF: > { %s13_s18 = sadd.s32 1, %s1755_s18   ;;  %s2152_s12 = smov %s1735_s13 }
 0x148   : > { %p10_p12 = scmp.ge.s32.totalorder %s13_s18, 6   ;;  %s2153_s13 = smov %s1826_s23 }
 0x149   : > { %s2154_s14 = smov %s1747_s16  ;;  %s2155_s15 = smov %s1751_s17 }
 0x14a   : > { %s2156_s16 = smov %s2159_s19  ;;  %s2157_s17 = smov %s2163_s20 }
 0x14b   :  { %12 = sbr.rel (!%p10_p12) target bundleno = 4 (0x4), region = 116 }

// kernel: fwd.120
= control target key start
LH: loop header
LB: loop body
LE: loop exit
PB: predicated region body
PF: predicated region fallthrough
CT: control target
= control target key end

     0   :  { %s391_s1 = inlined_call_operand.vmem [shape: bf16[256,128], index: 1, kind: input, shape index: {}]   ;;  %s392_s0 = inlined_call_operand.vmem [shape: bf16[16,256], index: 0, kind: input, shape index: {}]   ;;  %s393_s2 = inlined_call_operand.vmem [shape: f32[1,128], index: 2, kind: input, shape index: {}]   ;;  %s394_s3 = inlined_call_operand.vmem [shape: f32[16,128], index: 3, kind: output, shape index: {}]  }
   0x1   :  { %v292_v0 = vld [vmem:[%s391_s1 + $0x38] sm:$0xff]  ;;  %v291_v2 = vld [vmem:[%s391_s1 + $0x30] sm:$0xff]  ;;  %v290_v4 = vld [vmem:[%s391_s1 + $0x28] sm:$0xff] }
   0x2   :  { %v300_v1 = vld [vmem:[%s391_s1 + $0x78] sm:$0xff]  ;;  %162 = vmatpush.bf16.msra.mxu0 %v292_v0  ;;  %v299_v3 = vld [vmem:[%s391_s1 + $0x70] sm:$0xff]  ;;  %v298_v5 = vld [vmem:[%s391_s1 + $0x68] sm:$0xff] }
   0x3   :  { %176 = vmatpush.bf16.msra.mxu1 %v300_v1  ;;  %v289_v6 = vld [vmem:[%s391_s1 + $0x20] sm:$0xff]  ;;  %v288_v8 = vld [vmem:[%s391_s1 + $0x18] sm:$0xff]  ;;  %v287_v10 = vld [vmem:[%s391_s1 + $0x10] sm:$0xff] }
   0x4   :  { %v297_v7 = vld [vmem:[%s391_s1 + $0x60] sm:$0xff]  ;;  %v296_v9 = vld [vmem:[%s391_s1 + $0x58] sm:$0xff]  ;;  %v295_v11 = vld [vmem:[%s391_s1 + $0x50] sm:$0xff] }
   0x5   :  { %v286_v12 = vld [vmem:[%s391_s1 + $0x8] sm:$0xff]  ;;  %v285_v14 = vld [vmem:[%s391_s1] sm:$0xff] }
   0x6   :  { %163 = vmatpush.bf16.msra.mxu0 %v291_v2  ;;  %v294_v13 = vld [vmem:[%s391_s1 + $0x48] sm:$0xff]  ;;  %v293_v15 = vld [vmem:[%s391_s1 + $0x40] sm:$0xff] }
   0x7   :  { %177 = vmatpush.bf16.msra.mxu1 %v299_v3  ;;  %v213_v16 = vld [vmem:[%s392_s0] sm:$0xf]  ;;  %v284_v17 = vld [vmem:[%s392_s0 + $0x4] sm:$0xf0]  ;;  %v283_v18 = vld [vmem:[%s392_s0 + $0x4] sm:$0xf] }
   0x8   :  { %v215_v19 = vld [vmem:[%s392_s0 + $0x8] sm:$0xf0]  ;;  %v214_v20 = vor.u32 %v284_v17, %v213_v16  ;;  %v301_v22 = vld [vmem:[%s393_s2] ss:$0 sm:$0xff] }
   0x9   :  { %v218_v21 = vor.u32 %v283_v18, %v215_v19 }
   0xa   :  { %164 = vmatpush.bf16.msra.mxu0 %v290_v4 }
   0xb   :  { %178 = vmatpush.bf16.msra.mxu1 %v298_v5 }
   0xe   :  { %165 = vmatpush.bf16.msra.mxu0 %v289_v6 }
   0xf   :  { %179 = vmatpush.bf16.msra.mxu1 %v297_v7 }
  0x12   :  { %166 = vmatpush.bf16.msra.mxu0 %v288_v8 }
  0x13   :  { %180 = vmatpush.bf16.msra.mxu1 %v296_v9 }
  0x16   :  { %167 = vmatpush.bf16.msra.mxu0 %v287_v10 }
  0x17   :  { %181 = vmatpush.bf16.msra.mxu1 %v295_v11 }
  0x1a   :  { %168 = vmatpush.bf16.msra.mxu0 %v286_v12 }
  0x1b   :  { %182 = vmatpush.bf16.msra.mxu1 %v294_v13 }
  0x1e   :  { %169 = vmatpush.bf16.msra.mxu0 %v285_v14 }
  0x1f   :  { %183 = vmatpush.bf16.msra.mxu1 %v293_v15 }
  0x21   :  { %170 = vmatmul.bf16.vlgmr.msra.gmra.mxu0 %v214_v20 }
  0x22   :  { %184 = vmatmul.bf16.vlgmr.msra.gmra.mxu1 %v218_v21 }
  0x9e   :  { %v171_v23 = vpop.f32.mrf.mxu0 }
  0x9f   :  { %v185_v24 = vpop.f32.mrf.mxu1 }
  0xa0   :  { %v186_v25 = vadd.f32 %v185_v24, %v171_v23 }
  0xa2   :  { %v203_v26 = vadd.f32 %v301_v22, %v186_v25 }
  0xa4   :  { %205 = vst [vmem:[%s394_s3] sm:$0xff] %v203_v26 }
  0xa6   :  { %v173_v27 = vpop.f32.mrf.mxu0 }
  0xa7   :  { %v187_v28 = vpop.f32.mrf.mxu1 }
  0xa8   :  { %v188_v29 = vadd.f32 %v187_v28, %v173_v27 }
  0xaa   :  { %v204_v30 = vadd.f32 %v301_v22, %v188_v29 }
  0xac   :  { %206 = vst [vmem:[%s394_s3 + $0x8] sm:$0xff] %v204_v30 }

// kernel: fwd.147
= control target key start
LH: loop header
LB: loop body
LE: loop exit
PB: predicated region body
PF: predicated region fallthrough
CT: control target
= control target key end

     0   :  { %s415_s9 = smov 0   ;;  %s417_s10 = smov 0   ;;  %s448_s0 = inlined_call_operand.vmem [shape: bf16[2,16,6], index: 0, kind: input, shape index: {}]   ;;  %s449_s1 = inlined_call_operand.vmem [shape: bf16[2,6,128], index: 1, kind: input, shape index: {}]   ;;  %s450_s2 = inlined_call_operand.vmem [shape: f32[2,16,128], index: 2, kind: output, shape index: {}]  }
   0x1   :  { %s419_s11 = smov 0  }
   0x2 LB: > { %s24_s12 = sadd.s32 1, %s394_s10  ;;  %p336_p0 = scmp.ge.s32.totalorder %s398_s11, 1  ;;  %s398_s11 = sphi %s419_s11, %s12_s11   ;;  %s394_s10 = sphi %s417_s10, %s452_s10   ;;  %s390_s9 = sphi %s415_s9, %s451_s9  }
   0x3   : > { %p26_p1 = scmp.ge.s32.totalorder %s24_s12, 2  ;;  %p142_p2 = scmp.lt.s32.totalorder %s398_s11, 3 }
   0x5   : > { %s454_s12 = smov (%p26_p1, %s24_s12), 0  ;;  %p143_p3 = pnand %p336_p0, %p142_p2 }
   0x6   : > { %p177_p4 = scmp.lt.s32.totalorder (!%p143_p3), %s390_s9, 1 }
   0x7   : > { %146 = sbr.rel (%p143_p3) target bundleno = 155 (0x9b), region = 28 }
   0xc   : > { %s456_s9 = smov (!%p177_p4, %s390_s9), 1  ;;  %vm213_vm0 = vcmask 1042432   ;;  %vm209_vm1 = vcmask 48128  }
   0xd   : > { %s339_s13 = sshll.u32 %s456_s9, 2  ;;  %s349_s14 = sshll.u32 %s456_s9, 3 }
   0xe   : > { %s189_s17 = scalar_lea.vmem %s449_s1, %s339_s13  ;;  %s184_s20 = scalar_lea.vmem %s448_s0, %s349_s14 }
   0xf   : > { %v203_v0 = vld [vmem:[%s189_s17] sm:$0x7]  ;;  %s350_s21 = sshll.u32 %s456_s9, 4 }
  0x10   : > { %v215_v1 = vsel %vm213_vm0, %v203_v0, 0  ;;  %v351_v2 = vld [vmem:[%s184_s20] sm:$0xff]  ;;  %s198_s24 = scalar_lea.vmem %s450_s2, %s350_s21 }
  0x11   : > { %224 = vmatpush.bf16.msra.mxu0 %v215_v1 }
  0x14   : > { %346 = vmatmul.msk.bf16.vlgmr.msra.gmra.mxu0 %vm209_vm1, %v351_v2 }
  0x91   : > { %v226_v3 = vpop.f32.mrf.mxu0 }
  0x92   : > { %231 = vst [vmem:[%s198_s24] sm:$0xff] %v226_v3 }
  0x99   : > { %v228_v4 = vpop.f32.mrf.mxu0 }
  0x9a   : > { %232 = vst [vmem:[%s198_s24 + $0x8] sm:$0xff] %v228_v4 }
  0x9b PF: > { %s12_s11 = sadd.s32 1, %s398_s11   ;;  %s451_s9 = smov %s394_s10 }
  0x9c   : > { %p9_p5 = scmp.ge.s32.totalorder %s12_s11, 4   ;;  %s452_s10 = smov %s454_s12 }
  0x9e   :  { %11 = sbr.rel (!%p9_p5) target bundleno = 2 (0x2), region = 61 }

</bundles_post_ra>
